<compile_context>
chip_gen: v7x
topology: tpu7x:2x2x1
jax: 0.10.0
libtpu: 0.0.40
codegen_flags: <defaults>
</compile_context>

<pallas_src>
import functools

import jax
import jax.numpy as jnp
from jax.experimental import pallas as pl
from jax.experimental.pallas import tpu as pltpu


def _round_up(x, m):
    return (x + m - 1) // m * m


# ---------------------------------------------------------------------------
# Pallas kernel 1: fused linearMapping
#   out = relu( relu(x @ w1 + b1) @ w2 + b2 )
# The first matmul is tiny (M<=16, K=label_length) and is recomputed for every
# lane tile of the second matmul, so no cross-iteration state is needed and the
# big (512 x 25088) weight streams through VMEM exactly once.
# ---------------------------------------------------------------------------
def _mlp_kernel(x_ref, w1_ref, b1_ref, w2_ref, b2_ref, o_ref):
    h = jnp.dot(x_ref[...], w1_ref[...], preferred_element_type=jnp.float32)
    h = jnp.maximum(h + b1_ref[...], 0.0).astype(jnp.bfloat16)
    acc = jnp.dot(h, w2_ref[...], preferred_element_type=jnp.float32)
    o_ref[...] = jnp.maximum(acc + b2_ref[...], 0.0).astype(o_ref.dtype)


def linear_mapping(x, w1, b1, w2, b2, out_dtype=jnp.bfloat16):
    """x:(B,L) f32; w1:(L,H) bf16 pre-transposed; b1:(H,); w2:(H,N) bf16; b2:(N,)."""
    B, L = x.shape
    L2, H = w1.shape
    H2, N = w2.shape
    assert L == L2 and H == H2, (L, L2, H, H2)
    Nout = N

    xp = x.astype(jnp.bfloat16)
    Mp = _round_up(max(B, 16), 16)              # bf16-friendly sublane tile
    if Mp != B:
        xp = jnp.pad(xp, ((0, Mp - B), (0, 0)))
    if N % 128 != 0:                            # defensive; not hit in this model
        Np = _round_up(N, 128)
        w2 = jnp.pad(w2, ((0, 0), (0, Np - N)))
        b2 = jnp.pad(b2, (0, Np - N))
        N = Np

    # Lane-dense N tiles; 1792 keeps the double-buffered w2 tile at ~3.5 MB.
    tn = next(t for t in (2048, 1792, 1024, 896, 512, 256, 128) if N % t == 0)

    b1r = b1.reshape(1, H).astype(jnp.float32)
    b2r = b2.reshape(1, N).astype(jnp.float32)

    out = pl.pallas_call(
        _mlp_kernel,
        out_shape=jax.ShapeDtypeStruct((Mp, N), out_dtype),
        grid_spec=pltpu.PrefetchScalarGridSpec(
            num_scalar_prefetch=0,
            grid=(N // tn,),
            in_specs=[
                pl.BlockSpec((Mp, L), lambda j: (0, 0)),   # resident across grid
                pl.BlockSpec((L, H), lambda j: (0, 0)),    # resident across grid
                pl.BlockSpec((1, H), lambda j: (0, 0)),
                pl.BlockSpec((H, tn), lambda j: (0, j)),
                pl.BlockSpec((1, tn), lambda j: (0, j)),
            ],
            out_specs=pl.BlockSpec((Mp, tn), lambda j: (0, j)),
        ),
        compiler_params=pltpu.CompilerParams(
            dimension_semantics=("parallel",)),
    )(xp, w1.astype(jnp.bfloat16), b1r, w2.astype(jnp.bfloat16), b2r)

    if Mp != B or N != Nout:
        out = out[:B, :Nout]
    return out


# ---------------------------------------------------------------------------
# Pallas kernel 2: ConvTranspose2d(k=3, s=1, p=0) + ReLU, channels on sublanes.
#
# The (zero-padded) input is flattened row-major over (rows, Wp) per batch, so
# correlation tap (i, j) is a constant lane offset i*Wp + j.  Each grid step
# emits NT flattened output positions (lane-dense); the halo (<= 2*Wp+2 lanes,
# padded to HALO_PAD) is pre-gathered into a side array and stitched after the
# current block in a VMEM scratch; tap windows are static lane slices of it.
# Garbage lanes (2 extra padded columns per row + the tail of the last block)
# are sliced away afterwards.
# ---------------------------------------------------------------------------
def _deconv3x3_relu_kernel(xc_ref, xh_ref, w_ref, b_ref, o_ref, xx_ref,
                           *, taps, nt, halo_pad):
    xx_ref[:, :nt] = xc_ref[...]
    xx_ref[:, nt:nt + halo_pad] = xh_ref[...]
    acc = jnp.dot(w_ref[0], xx_ref[:, 0:nt],
                  preferred_element_type=jnp.float32)
    for t in range(1, 9):
        off = taps[t]
        acc = acc + jnp.dot(w_ref[t], xx_ref[:, off:off + nt],
                            preferred_element_type=jnp.float32)
    o_ref[...] = jnp.maximum(acc + b_ref[...], 0.0).astype(o_ref.dtype)


def deconv3x3_relu(x_nchw, w9, b, out_dtype=jnp.bfloat16):
    """x:(B,Cin,H,W); w9:(9,Cout,Cin) flipped taps (bf16); b:(Cout,) f32.
    Returns relu(ConvTranspose2d(k=3,s=1,p=0)(x)) as (B, Cout, H+2, W+2)."""
    B, Cin, H, W = x_nchw.shape
    Cout = w9.shape[1]
    Wp, Ho, Wo = W + 4, H + 2, W + 2
    nwork = Ho * Wp                       # flattened work domain (stride Wp)
    halo = 2 * Wp + 2
    halo_pad = _round_up(halo, 128)

    # Lane tile: bounded by f32 accumulator (Cout x NT) vreg pressure and
    # operand size; big Cout/Cin -> smaller NT, tiny Cout (last layer) -> 2048.
    cap = 512 if (Cout >= 64 or Cin >= 64) else (1024 if Cout >= 16 else 2048)
    NT = min(cap, _round_up(nwork, 128))
    NT = max(NT, halo_pad)
    nblocks = pl.cdiv(nwork, NT)
    L_work = nblocks * NT
    LX = (nblocks + 1) * NT               # one extra (zero) block feeds the halo

    xp = jnp.pad(x_nchw.astype(jnp.bfloat16), ((0, 0), (0, 0), (2, 2), (2, 2)))
    xf = xp.reshape(B, Cin, (H + 4) * Wp)
    xf = jnp.pad(xf, ((0, 0), (0, 0), (0, LX - (H + 4) * Wp)))

    # Pre-gathered halo: block n's halo = first halo_pad lanes of block n+1.
    xh = xf.reshape(B, Cin, nblocks + 1, NT)[:, :, 1:, :halo_pad]
    xh = xh.reshape(B, Cin, nblocks * halo_pad)
    xw = xf[:, :, :L_work]

    taps = tuple(i * Wp + j for i in range(3) for j in range(3))
    kernel = functools.partial(_deconv3x3_relu_kernel, taps=taps, nt=NT,
                               halo_pad=halo_pad)

    out = pl.pallas_call(
        kernel,
        out_shape=jax.ShapeDtypeStruct((B, Cout, L_work), out_dtype),
        grid_spec=pltpu.PrefetchScalarGridSpec(
            num_scalar_prefetch=0,
            grid=(B, nblocks),
            in_specs=[
                pl.BlockSpec((None, Cin, NT), lambda bb, n: (bb, 0, n)),        # current
                pl.BlockSpec((None, Cin, halo_pad), lambda bb, n: (bb, 0, n)),  # halo
                pl.BlockSpec((9, Cout, Cin), lambda bb, n: (0, 0, 0)),
                pl.BlockSpec((Cout, 1), lambda bb, n: (0, 0)),
            ],
            out_specs=pl.BlockSpec((None, Cout, NT), lambda bb, n: (bb, 0, n)),
            scratch_shapes=[pltpu.VMEM((Cin, NT + halo_pad), jnp.bfloat16)],
        ),
        compiler_params=pltpu.CompilerParams(
            dimension_semantics=("parallel", "parallel")),
    )(xw, xh, w9, b.reshape(Cout, 1).astype(jnp.float32))

    # Drop garbage lanes: (B,Cout,L_work) -> (B,Cout,Ho,Wp) -> keep Wo columns.
    out = out[:, :, :nwork].reshape(B, Cout, Ho, Wp)[:, :, :, :Wo]
    return out


def upsample2x_nearest_nchw(x):
    return jnp.repeat(jnp.repeat(x, 2, axis=2), 2, axis=3)


# ---------------------------------------------------------------------------
# Parameters (deterministic synthetic init, pre-laid-out for the TPU kernels)
# ---------------------------------------------------------------------------
def init_params(key, label_length, k=(16, 32, 64, 128), fc_hidden=512):
    keys = jax.random.split(key, 12)
    p = {}

    def uni(kk, shape, fan_in):
        s = 1.0 / jnp.sqrt(jnp.float32(fan_in))
        return jax.random.uniform(kk, shape, jnp.float32, -s, s)

    # Linear weights stored pre-transposed (in, out) + bf16, once at build time.
    p["lin1_w"] = uni(keys[0], (label_length, fc_hidden), label_length).astype(jnp.bfloat16)
    p["lin1_b"] = uni(keys[1], (fc_hidden,), label_length)
    p["lin2_w"] = uni(keys[2], (fc_hidden, 14 * 14 * 128), fc_hidden).astype(jnp.bfloat16)
    p["lin2_b"] = uni(keys[3], (14 * 14 * 128,), fc_hidden)

    # ConvTranspose2d weights (PyTorch layout (Cin,Cout,3,3)) -> flipped taps
    # reorganised to (9, Cout, Cin) for the channels-on-sublanes conv kernel.
    chans = [(k[3], k[2]), (k[2], k[1]), (k[1], k[0]), (k[0], 3)]
    for idx, (cin, cout) in enumerate(chans):
        fan = cin * 9
        w_pt = uni(keys[4 + 2 * idx], (cin, cout, 3, 3), fan)
        w9 = jnp.transpose(w_pt[:, :, ::-1, ::-1], (2, 3, 1, 0)).reshape(9, cout, cin)
        p[f"deconv{idx}_w9"] = w9.astype(jnp.bfloat16)
        p[f"deconv{idx}_b"] = uni(keys[5 + 2 * idx], (cout,), fan)
    return p


# ---------------------------------------------------------------------------
# Forward pass (eval mode: Dropout == identity)
# ---------------------------------------------------------------------------
def decoder_cnn_forward(params, x):
    B = x.shape[0]
    # linearMapping: Dropout -> Linear -> ReLU -> Dropout -> Linear -> ReLU
    h = linear_mapping(x, params["lin1_w"], params["lin1_b"],
                       params["lin2_w"], params["lin2_b"], out_dtype=jnp.bfloat16)
    # x.view(B, 128, 14, 14): already channels-first, no transpose needed.
    h = h.reshape(B, 128, 14, 14)
    # deconv: 4 x (ConvTranspose2d + ReLU + Upsample(2, nearest))
    for idx in range(4):
        out_dtype = jnp.float32 if idx == 3 else jnp.bfloat16
        h = deconv3x3_relu(h, params[f"deconv{idx}_w9"], params[f"deconv{idx}_b"],
                           out_dtype=out_dtype)
        h = upsample2x_nearest_nchw(h)
    return h  # (B, 3, 284, 284) float32, NCHW


if __name__ == "__main__":
    label_length = 16
    batch = 2

    key = jax.random.PRNGKey(0)
    pkey, xkey = jax.random.split(key)
    params = init_params(pkey, label_length)
    x = jax.random.normal(xkey, (batch, label_length), jnp.float32)

    fwd = jax.jit(decoder_cnn_forward)
    out = jax.block_until_ready(fwd(params, x))

    assert out.shape == (batch, 3, 284, 284), out.shape
    assert out.dtype == jnp.float32
    assert bool(jnp.all(jnp.isfinite(out)))
    assert bool(jnp.all(out >= 0.0))  # final ReLU (upsample preserves sign)
    print("KERNEL_OK")
</pallas_src>

<mosaic_0001>
module attributes {stable_mosaic.version = 11 : i64} {
  func.func @_mlp_kernel(%arg0: i32, %arg1: memref<16x16xbf16, #tpu.memory_space<vmem>>, %arg2: memref<16x512xbf16, #tpu.memory_space<vmem>>, %arg3: memref<1x512xf32, #tpu.memory_space<vmem>>, %arg4: memref<512x1792xbf16, #tpu.memory_space<vmem>>, %arg5: memref<1x1792xf32, #tpu.memory_space<vmem>>, %arg6: memref<16x1792xbf16, #tpu.memory_space<vmem>>) attributes {dimension_semantics = [#tpu.dimension_semantics<parallel>], iteration_bounds = array<i64: 14>, scalar_prefetch = 0 : i64, scratch_operands = 0 : i64, tpu.core_type = #tpu.core_type<tc>, window_params = [{pipeline_mode = #tpu.pipeline_mode<synchronous>, transform_indices = @transform_0, window_bounds = array<i64: 16, 16>}, {pipeline_mode = #tpu.pipeline_mode<synchronous>, transform_indices = @transform_1, window_bounds = array<i64: 16, 512>}, {pipeline_mode = #tpu.pipeline_mode<synchronous>, transform_indices = @transform_2, window_bounds = array<i64: 1, 512>}, {transform_indices = @transform_3, window_bounds = array<i64: 512, 1792>}, {transform_indices = @transform_4, window_bounds = array<i64: 1, 1792>}, {transform_indices = @transform_5, window_bounds = array<i64: 16, 1792>}]} {
    %c0 = arith.constant 0 : index
    %c0_0 = arith.constant 0 : index
    %0 = vector.load %arg1[%c0, %c0_0] : memref<16x16xbf16, #tpu.memory_space<vmem>>, vector<16x16xbf16>
    %c0_1 = arith.constant 0 : index
    %c0_2 = arith.constant 0 : index
    %1 = vector.load %arg2[%c0_1, %c0_2] : memref<16x512xbf16, #tpu.memory_space<vmem>>, vector<16x512xbf16>
    %cst = arith.constant dense<0.000000e+00> : vector<16x512xf32>
    %2 = tpu.matmul %0, %1, %cst {dimension_numbers = #tpu.dot_dimension_numbers<[1], [0], [0], [1], [0, 0, 1, 1], [], []>} : vector<16x16xbf16>, vector<16x512xbf16>, vector<16x512xf32> -> vector<16x512xf32>
    %c0_3 = arith.constant 0 : index
    %c0_4 = arith.constant 0 : index
    %3 = vector.load %arg3[%c0_3, %c0_4] : memref<1x512xf32, #tpu.memory_space<vmem>>, vector<1x512xf32>
    %4 = vector.broadcast %3 : vector<1x512xf32> to vector<16x512xf32>
    %5 = arith.addf %2, %4 : vector<16x512xf32>
    %cst_5 = arith.constant 0.000000e+00 : f32
    %6 = vector.broadcast %cst_5 : f32 to vector<16x512xf32>
    %7 = arith.maximumf %5, %6 : vector<16x512xf32>
    %8 = arith.truncf %7 : vector<16x512xf32> to vector<16x512xbf16>
    %c0_6 = arith.constant 0 : index
    %c0_7 = arith.constant 0 : index
    %9 = vector.load %arg4[%c0_6, %c0_7] : memref<512x1792xbf16, #tpu.memory_space<vmem>>, vector<512x1792xbf16>
    %cst_8 = arith.constant dense<0.000000e+00> : vector<16x1792xf32>
    %10 = tpu.matmul %8, %9, %cst_8 {dimension_numbers = #tpu.dot_dimension_numbers<[1], [0], [0], [1], [0, 0, 1, 1], [], []>} : vector<16x512xbf16>, vector<512x1792xbf16>, vector<16x1792xf32> -> vector<16x1792xf32>
    %c0_9 = arith.constant 0 : index
    %c0_10 = arith.constant 0 : index
    %11 = vector.load %arg5[%c0_9, %c0_10] : memref<1x1792xf32, #tpu.memory_space<vmem>>, vector<1x1792xf32>
    %12 = vector.broadcast %11 : vector<1x1792xf32> to vector<16x1792xf32>
    %13 = arith.addf %10, %12 : vector<16x1792xf32>
    %cst_11 = arith.constant 0.000000e+00 : f32
    %14 = vector.broadcast %cst_11 : f32 to vector<16x1792xf32>
    %15 = arith.maximumf %13, %14 : vector<16x1792xf32>
    %16 = arith.truncf %15 : vector<16x1792xf32> to vector<16x1792xbf16>
    %c0_12 = arith.constant 0 : index
    %c0_13 = arith.constant 0 : index
    %17 = vector.load %arg6[%c0_12, %c0_13] : memref<16x1792xbf16, #tpu.memory_space<vmem>>, vector<16x1792xbf16>
    tpu.vector_store %arg6[%c0_12, %c0_13], %16 {strides = array<i32>} : memref<16x1792xbf16, #tpu.memory_space<vmem>>, vector<16x1792xbf16>,
    return
  }
  func.func @transform_0(%arg0: i32) -> (i32, i32) {
    %c0_i32 = arith.constant 0 : i32
    %c0_i32_0 = arith.constant 0 : i32
    %c0_i32_1 = arith.constant 0 : i32
    return %c0_i32, %c0_i32_0 : i32, i32
  }
  func.func @transform_1(%arg0: i32) -> (i32, i32) {
    %c0_i32 = arith.constant 0 : i32
    %c0_i32_0 = arith.constant 0 : i32
    %c0_i32_1 = arith.constant 0 : i32
    return %c0_i32, %c0_i32_0 : i32, i32
  }
  func.func @transform_2(%arg0: i32) -> (i32, i32) {
    %c0_i32 = arith.constant 0 : i32
    %c0_i32_0 = arith.constant 0 : i32
    %c0_i32_1 = arith.constant 0 : i32
    return %c0_i32, %c0_i32_0 : i32, i32
  }
  func.func @transform_3(%arg0: i32) -> (i32, i32) {
    %c0_i32 = arith.constant 0 : i32
    %c0_i32_0 = arith.constant 0 : i32
    return %c0_i32, %arg0 : i32, i32
  }
  func.func @transform_4(%arg0: i32) -> (i32, i32) {
    %c0_i32 = arith.constant 0 : i32
    %c0_i32_0 = arith.constant 0 : i32
    return %c0_i32, %arg0 : i32, i32
  }
  func.func @transform_5(%arg0: i32) -> (i32, i32) {
    %c0_i32 = arith.constant 0 : i32
    %c0_i32_0 = arith.constant 0 : i32
    return %c0_i32, %arg0 : i32, i32
  }
}

module attributes {stable_mosaic.version = 11 : i64} {
  func.func @_deconv3x3_relu_kernel(%arg0: i32, %arg1: i32, %arg2: memref<1x128x384xbf16, #tpu.memory_space<vmem>>, %arg3: memref<1x128x128xbf16, #tpu.memory_space<vmem>>, %arg4: memref<9x64x128xbf16, #tpu.memory_space<vmem>>, %arg5: memref<64x1xf32, #tpu.memory_space<vmem>>, %arg6: memref<1x64x384xbf16, #tpu.memory_space<vmem>>, %arg7: memref<128x512xbf16, #tpu.memory_space<vmem>>) attributes {dimension_semantics = [#tpu.dimension_semantics<parallel>, #tpu.dimension_semantics<parallel>], iteration_bounds = array<i64: 2, 1>, scalar_prefetch = 0 : i64, scratch_operands = 1 : i64, tpu.core_type = #tpu.core_type<tc>, window_params = [{transform_indices = @transform_0, window_bounds = array<i64: 1, 128, 384>}, {transform_indices = @transform_1, window_bounds = array<i64: 1, 128, 128>}, {pipeline_mode = #tpu.pipeline_mode<synchronous>, transform_indices = @transform_2, window_bounds = array<i64: 9, 64, 128>}, {pipeline_mode = #tpu.pipeline_mode<synchronous>, transform_indices = @transform_3, window_bounds = array<i64: 64, 1>}, {transform_indices = @transform_4, window_bounds = array<i64: 1, 64, 384>}]} {
    %c0 = arith.constant 0 : index
    %c0_0 = arith.constant 0 : index
    %c0_1 = arith.constant 0 : index
    %0 = vector.load %arg2[%c0, %c0_0, %c0_1] : memref<1x128x384xbf16, #tpu.memory_space<vmem>>, vector<1x128x384xbf16>
    %1 = vector.shape_cast %0 : vector<1x128x384xbf16> to vector<128x384xbf16>
    %c0_2 = arith.constant 0 : index
    %c0_3 = arith.constant 0 : index
    %2 = vector.load %arg7[%c0_2, %c0_3] : memref<128x512xbf16, #tpu.memory_space<vmem>>, vector<128x384xbf16>
    tpu.vector_store %arg7[%c0_2, %c0_3], %1 {strides = array<i32>} : memref<128x512xbf16, #tpu.memory_space<vmem>>, vector<128x384xbf16>,
    %c0_4 = arith.constant 0 : index
    %c0_5 = arith.constant 0 : index
    %c0_6 = arith.constant 0 : index
    %3 = vector.load %arg3[%c0_4, %c0_5, %c0_6] : memref<1x128x128xbf16, #tpu.memory_space<vmem>>, vector<1x128x128xbf16>
    %4 = vector.shape_cast %3 : vector<1x128x128xbf16> to vector<128x128xbf16>
    %c0_7 = arith.constant 0 : index
    %c384 = arith.constant 384 : index
    %5 = vector.load %arg7[%c0_7, %c384] : memref<128x512xbf16, #tpu.memory_space<vmem>>, vector<128x128xbf16>
    tpu.vector_store %arg7[%c0_7, %c384], %4 {strides = array<i32>} : memref<128x512xbf16, #tpu.memory_space<vmem>>, vector<128x128xbf16>,
    %c0_8 = arith.constant 0 : index
    %c0_9 = arith.constant 0 : index
    %c0_10 = arith.constant 0 : index
    %6 = vector.load %arg4[%c0_8, %c0_9, %c0_10] : memref<9x64x128xbf16, #tpu.memory_space<vmem>>, vector<1x64x128xbf16>
    %7 = vector.shape_cast %6 : vector<1x64x128xbf16> to vector<64x128xbf16>
    %c0_11 = arith.constant 0 : index
    %c0_12 = arith.constant 0 : index
    %8 = vector.load %arg7[%c0_11, %c0_12] : memref<128x512xbf16, #tpu.memory_space<vmem>>, vector<128x384xbf16>
    %cst = arith.constant dense<0.000000e+00> : vector<64x384xf32>
    %9 = tpu.matmul %7, %8, %cst {dimension_numbers = #tpu.dot_dimension_numbers<[1], [0], [0], [1], [0, 0, 1, 1], [], []>} : vector<64x128xbf16>, vector<128x384xbf16>, vector<64x384xf32> -> vector<64x384xf32>
    %c1 = arith.constant 1 : index
    %c0_13 = arith.constant 0 : index
    %c0_14 = arith.constant 0 : index
    %10 = vector.load %arg4[%c1, %c0_13, %c0_14] : memref<9x64x128xbf16, #tpu.memory_space<vmem>>, vector<1x64x128xbf16>
    %11 = vector.shape_cast %10 : vector<1x64x128xbf16> to vector<64x128xbf16>
    %c0_15 = arith.constant 0 : index
    %c1_16 = arith.constant 1 : index
    %12 = vector.load %arg7[%c0_15, %c1_16] : memref<128x512xbf16, #tpu.memory_space<vmem>>, vector<128x384xbf16>
    %cst_17 = arith.constant dense<0.000000e+00> : vector<64x384xf32>
    %13 = tpu.matmul %11, %12, %cst_17 {dimension_numbers = #tpu.dot_dimension_numbers<[1], [0], [0], [1], [0, 0, 1, 1], [], []>} : vector<64x128xbf16>, vector<128x384xbf16>, vector<64x384xf32> -> vector<64x384xf32>
    %14 = arith.addf %9, %13 : vector<64x384xf32>
    %c2 = arith.constant 2 : index
    %c0_18 = arith.constant 0 : index
    %c0_19 = arith.constant 0 : index
    %15 = vector.load %arg4[%c2, %c0_18, %c0_19] : memref<9x64x128xbf16, #tpu.memory_space<vmem>>, vector<1x64x128xbf16>
    %16 = vector.shape_cast %15 : vector<1x64x128xbf16> to vector<64x128xbf16>
    %c0_20 = arith.constant 0 : index
    %c2_21 = arith.constant 2 : index
    %17 = vector.load %arg7[%c0_20, %c2_21] : memref<128x512xbf16, #tpu.memory_space<vmem>>, vector<128x384xbf16>
    %cst_22 = arith.constant dense<0.000000e+00> : vector<64x384xf32>
    %18 = tpu.matmul %16, %17, %cst_22 {dimension_numbers = #tpu.dot_dimension_numbers<[1], [0], [0], [1], [0, 0, 1, 1], [], []>} : vector<64x128xbf16>, vector<128x384xbf16>, vector<64x384xf32> -> vector<64x384xf32>
    %19 = arith.addf %14, %18 : vector<64x384xf32>
    %c3 = arith.constant 3 : index
    %c0_23 = arith.constant 0 : index
    %c0_24 = arith.constant 0 : index
    %20 = vector.load %arg4[%c3, %c0_23, %c0_24] : memref<9x64x128xbf16, #tpu.memory_space<vmem>>, vector<1x64x128xbf16>
    %21 = vector.shape_cast %20 : vector<1x64x128xbf16> to vector<64x128xbf16>
    %c0_25 = arith.constant 0 : index
    %c18 = arith.constant 18 : index
    %22 = vector.load %arg7[%c0_25, %c18] : memref<128x512xbf16, #tpu.memory_space<vmem>>, vector<128x384xbf16>
    %cst_26 = arith.constant dense<0.000000e+00> : vector<64x384xf32>
    %23 = tpu.matmul %21, %22, %cst_26 {dimension_numbers = #tpu.dot_dimension_numbers<[1], [0], [0], [1], [0, 0, 1, 1], [], []>} : vector<64x128xbf16>, vector<128x384xbf16>, vector<64x384xf32> -> vector<64x384xf32>
    %24 = arith.addf %19, %23 : vector<64x384xf32>
    %c4 = arith.constant 4 : index
    %c0_27 = arith.constant 0 : index
    %c0_28 = arith.constant 0 : index
    %25 = vector.load %arg4[%c4, %c0_27, %c0_28] : memref<9x64x128xbf16, #tpu.memory_space<vmem>>, vector<1x64x128xbf16>
    %26 = vector.shape_cast %25 : vector<1x64x128xbf16> to vector<64x128xbf16>
    %c0_29 = arith.constant 0 : index
    %c19 = arith.constant 19 : index
    %27 = vector.load %arg7[%c0_29, %c19] : memref<128x512xbf16, #tpu.memory_space<vmem>>, vector<128x384xbf16>
    %cst_30 = arith.constant dense<0.000000e+00> : vector<64x384xf32>
    %28 = tpu.matmul %26, %27, %cst_30 {dimension_numbers = #tpu.dot_dimension_numbers<[1], [0], [0], [1], [0, 0, 1, 1], [], []>} : vector<64x128xbf16>, vector<128x384xbf16>, vector<64x384xf32> -> vector<64x384xf32>
    %29 = arith.addf %24, %28 : vector<64x384xf32>
    %c5 = arith.constant 5 : index
    %c0_31 = arith.constant 0 : index
    %c0_32 = arith.constant 0 : index
    %30 = vector.load %arg4[%c5, %c0_31, %c0_32] : memref<9x64x128xbf16, #tpu.memory_space<vmem>>, vector<1x64x128xbf16>
    %31 = vector.shape_cast %30 : vector<1x64x128xbf16> to vector<64x128xbf16>
    %c0_33 = arith.constant 0 : index
    %c20 = arith.constant 20 : index
    %32 = vector.load %arg7[%c0_33, %c20] : memref<128x512xbf16, #tpu.memory_space<vmem>>, vector<128x384xbf16>
    %cst_34 = arith.constant dense<0.000000e+00> : vector<64x384xf32>
    %33 = tpu.matmul %31, %32, %cst_34 {dimension_numbers = #tpu.dot_dimension_numbers<[1], [0], [0], [1], [0, 0, 1, 1], [], []>} : vector<64x128xbf16>, vector<128x384xbf16>, vector<64x384xf32> -> vector<64x384xf32>
    %34 = arith.addf %29, %33 : vector<64x384xf32>
    %c6 = arith.constant 6 : index
    %c0_35 = arith.constant 0 : index
    %c0_36 = arith.constant 0 : index
    %35 = vector.load %arg4[%c6, %c0_35, %c0_36] : memref<9x64x128xbf16, #tpu.memory_space<vmem>>, vector<1x64x128xbf16>
    %36 = vector.shape_cast %35 : vector<1x64x128xbf16> to vector<64x128xbf16>
    %c0_37 = arith.constant 0 : index
    %c36 = arith.constant 36 : index
    %37 = vector.load %arg7[%c0_37, %c36] : memref<128x512xbf16, #tpu.memory_space<vmem>>, vector<128x384xbf16>
    %cst_38 = arith.constant dense<0.000000e+00> : vector<64x384xf32>
    %38 = tpu.matmul %36, %37, %cst_38 {dimension_numbers = #tpu.dot_dimension_numbers<[1], [0], [0], [1], [0, 0, 1, 1], [], []>} : vector<64x128xbf16>, vector<128x384xbf16>, vector<64x384xf32> -> vector<64x384xf32>
    %39 = arith.addf %34, %38 : vector<64x384xf32>
    %c7 = arith.constant 7 : index
    %c0_39 = arith.constant 0 : index
    %c0_40 = arith.constant 0 : index
    %40 = vector.load %arg4[%c7, %c0_39, %c0_40] : memref<9x64x128xbf16, #tpu.memory_space<vmem>>, vector<1x64x128xbf16>
    %41 = vector.shape_cast %40 : vector<1x64x128xbf16> to vector<64x128xbf16>
    %c0_41 = arith.constant 0 : index
    %c37 = arith.constant 37 : index
    %42 = vector.load %arg7[%c0_41, %c37] : memref<128x512xbf16, #tpu.memory_space<vmem>>, vector<128x384xbf16>
    %cst_42 = arith.constant dense<0.000000e+00> : vector<64x384xf32>
    %43 = tpu.matmul %41, %42, %cst_42 {dimension_numbers = #tpu.dot_dimension_numbers<[1], [0], [0], [1], [0, 0, 1, 1], [], []>} : vector<64x128xbf16>, vector<128x384xbf16>, vector<64x384xf32> -> vector<64x384xf32>
    %44 = arith.addf %39, %43 : vector<64x384xf32>
    %c8 = arith.constant 8 : index
    %c0_43 = arith.constant 0 : index
    %c0_44 = arith.constant 0 : index
    %45 = vector.load %arg4[%c8, %c0_43, %c0_44] : memref<9x64x128xbf16, #tpu.memory_space<vmem>>, vector<1x64x128xbf16>
    %46 = vector.shape_cast %45 : vector<1x64x128xbf16> to vector<64x128xbf16>
    %c0_45 = arith.constant 0 : index
    %c38 = arith.constant 38 : index
    %47 = vector.load %arg7[%c0_45, %c38] : memref<128x512xbf16, #tpu.memory_space<vmem>>, vector<128x384xbf16>
    %cst_46 = arith.constant dense<0.000000e+00> : vector<64x384xf32>
    %48 = tpu.matmul %46, %47, %cst_46 {dimension_numbers = #tpu.dot_dimension_numbers<[1], [0], [0], [1], [0, 0, 1, 1], [], []>} : vector<64x128xbf16>, vector<128x384xbf16>, vector<64x384xf32> -> vector<64x384xf32>
    %49 = arith.addf %44, %48 : vector<64x384xf32>
    %c0_47 = arith.constant 0 : index
    %c0_48 = arith.constant 0 : index
    %50 = vector.load %arg5[%c0_47, %c0_48] : memref<64x1xf32, #tpu.memory_space<vmem>>, vector<64x1xf32>
    %51 = vector.broadcast %50 : vector<64x1xf32> to vector<64x384xf32>
    %52 = arith.addf %49, %51 : vector<64x384xf32>
    %cst_49 = arith.constant 0.000000e+00 : f32
    %53 = vector.broadcast %cst_49 : f32 to vector<64x384xf32>
    %54 = arith.maximumf %52, %53 : vector<64x384xf32>
    %55 = arith.truncf %54 : vector<64x384xf32> to vector<64x384xbf16>
    %c0_50 = arith.constant 0 : index
    %c0_51 = arith.constant 0 : index
    %c0_52 = arith.constant 0 : index
    %56 = vector.load %arg6[%c0_50, %c0_51, %c0_52] : memref<1x64x384xbf16, #tpu.memory_space<vmem>>, vector<1x64x384xbf16>
    %57 = vector.shape_cast %56 : vector<1x64x384xbf16> to vector<64x384xbf16>
    %58 = vector.shape_cast %55 : vector<64x384xbf16> to vector<1x64x384xbf16>
    tpu.vector_store %arg6[%c0_50, %c0_51, %c0_52], %58 {strides = array<i32>} : memref<1x64x384xbf16, #tpu.memory_space<vmem>>, vector<1x64x384xbf16>,
    return
  }
  func.func @transform_0(%arg0: i32, %arg1: i32) -> (i32, i32, i32) {
    %c0_i32 = arith.constant 0 : i32
    %c0_i32_0 = arith.constant 0 : i32
    return %arg0, %c0_i32, %arg1 : i32, i32, i32
  }
  func.func @transform_1(%arg0: i32, %arg1: i32) -> (i32, i32, i32) {
    %c0_i32 = arith.constant 0 : i32
    %c0_i32_0 = arith.constant 0 : i32
    return %arg0, %c0_i32, %arg1 : i32, i32, i32
  }
  func.func @transform_2(%arg0: i32, %arg1: i32) -> (i32, i32, i32) {
    %c0_i32 = arith.constant 0 : i32
    %c0_i32_0 = arith.constant 0 : i32
    %c0_i32_1 = arith.constant 0 : i32
    %c0_i32_2 = arith.constant 0 : i32
    return %c0_i32, %c0_i32_0, %c0_i32_1 : i32, i32, i32
  }
  func.func @transform_3(%arg0: i32, %arg1: i32) -> (i32, i32) {
    %c0_i32 = arith.constant 0 : i32
    %c0_i32_0 = arith.constant 0 : i32
    %c0_i32_1 = arith.constant 0 : i32
    return %c0_i32, %c0_i32_0 : i32, i32
  }
  func.func @transform_4(%arg0: i32, %arg1: i32) -> (i32, i32, i32) {
    %c0_i32 = arith.constant 0 : i32
    %c0_i32_0 = arith.constant 0 : i32
    return %arg0, %c0_i32, %arg1 : i32, i32, i32
  }
}

module attributes {stable_mosaic.version = 11 : i64} {
  func.func @_deconv3x3_relu_kernel(%arg0: i32, %arg1: i32, %arg2: memref<1x64x512xbf16, #tpu.memory_space<vmem>>, %arg3: memref<1x64x128xbf16, #tpu.memory_space<vmem>>, %arg4: memref<9x32x64xbf16, #tpu.memory_space<vmem>>, %arg5: memref<32x1xf32, #tpu.memory_space<vmem>>, %arg6: memref<1x32x512xbf16, #tpu.memory_space<vmem>>, %arg7: memref<64x640xbf16, #tpu.memory_space<vmem>>) attributes {dimension_semantics = [#tpu.dimension_semantics<parallel>, #tpu.dimension_semantics<parallel>], iteration_bounds = array<i64: 2, 3>, scalar_prefetch = 0 : i64, scratch_operands = 1 : i64, tpu.core_type = #tpu.core_type<tc>, window_params = [{transform_indices = @transform_0, window_bounds = array<i64: 1, 64, 512>}, {transform_indices = @transform_1, window_bounds = array<i64: 1, 64, 128>}, {pipeline_mode = #tpu.pipeline_mode<synchronous>, transform_indices = @transform_2, window_bounds = array<i64: 9, 32, 64>}, {pipeline_mode = #tpu.pipeline_mode<synchronous>, transform_indices = @transform_3, window_bounds = array<i64: 32, 1>}, {transform_indices = @transform_4, window_bounds = array<i64: 1, 32, 512>}]} {
    %c0 = arith.constant 0 : index
    %c0_0 = arith.constant 0 : index
    %c0_1 = arith.constant 0 : index
    %0 = vector.load %arg2[%c0, %c0_0, %c0_1] : memref<1x64x512xbf16, #tpu.memory_space<vmem>>, vector<1x64x512xbf16>
    %1 = vector.shape_cast %0 : vector<1x64x512xbf16> to vector<64x512xbf16>
    %c0_2 = arith.constant 0 : index
    %c0_3 = arith.constant 0 : index
    %2 = vector.load %arg7[%c0_2, %c0_3] : memref<64x640xbf16, #tpu.memory_space<vmem>>, vector<64x512xbf16>
    tpu.vector_store %arg7[%c0_2, %c0_3], %1 {strides = array<i32>} : memref<64x640xbf16, #tpu.memory_space<vmem>>, vector<64x512xbf16>,
    %c0_4 = arith.constant 0 : index
    %c0_5 = arith.constant 0 : index
    %c0_6 = arith.constant 0 : index
    %3 = vector.load %arg3[%c0_4, %c0_5, %c0_6] : memref<1x64x128xbf16, #tpu.memory_space<vmem>>, vector<1x64x128xbf16>
    %4 = vector.shape_cast %3 : vector<1x64x128xbf16> to vector<64x128xbf16>
    %c0_7 = arith.constant 0 : index
    %c512 = arith.constant 512 : index
    %5 = vector.load %arg7[%c0_7, %c512] : memref<64x640xbf16, #tpu.memory_space<vmem>>, vector<64x128xbf16>
    tpu.vector_store %arg7[%c0_7, %c512], %4 {strides = array<i32>} : memref<64x640xbf16, #tpu.memory_space<vmem>>, vector<64x128xbf16>,
    %c0_8 = arith.constant 0 : index
    %c0_9 = arith.constant 0 : index
    %c0_10 = arith.constant 0 : index
    %6 = vector.load %arg4[%c0_8, %c0_9, %c0_10] : memref<9x32x64xbf16, #tpu.memory_space<vmem>>, vector<1x32x64xbf16>
    %7 = vector.shape_cast %6 : vector<1x32x64xbf16> to vector<32x64xbf16>
    %c0_11 = arith.constant 0 : index
    %c0_12 = arith.constant 0 : index
    %8 = vector.load %arg7[%c0_11, %c0_12] : memref<64x640xbf16, #tpu.memory_space<vmem>>, vector<64x512xbf16>
    %cst = arith.constant dense<0.000000e+00> : vector<32x512xf32>
    %9 = tpu.matmul %7, %8, %cst {dimension_numbers = #tpu.dot_dimension_numbers<[1], [0], [0], [1], [0, 0, 1, 1], [], []>} : vector<32x64xbf16>, vector<64x512xbf16>, vector<32x512xf32> -> vector<32x512xf32>
    %c1 = arith.constant 1 : index
    %c0_13 = arith.constant 0 : index
    %c0_14 = arith.constant 0 : index
    %10 = vector.load %arg4[%c1, %c0_13, %c0_14] : memref<9x32x64xbf16, #tpu.memory_space<vmem>>, vector<1x32x64xbf16>
    %11 = vector.shape_cast %10 : vector<1x32x64xbf16> to vector<32x64xbf16>
    %c0_15 = arith.constant 0 : index
    %c1_16 = arith.constant 1 : index
    %12 = vector.load %arg7[%c0_15, %c1_16] : memref<64x640xbf16, #tpu.memory_space<vmem>>, vector<64x512xbf16>
    %cst_17 = arith.constant dense<0.000000e+00> : vector<32x512xf32>
    %13 = tpu.matmul %11, %12, %cst_17 {dimension_numbers = #tpu.dot_dimension_numbers<[1], [0], [0], [1], [0, 0, 1, 1], [], []>} : vector<32x64xbf16>, vector<64x512xbf16>, vector<32x512xf32> -> vector<32x512xf32>
    %14 = arith.addf %9, %13 : vector<32x512xf32>
    %c2 = arith.constant 2 : index
    %c0_18 = arith.constant 0 : index
    %c0_19 = arith.constant 0 : index
    %15 = vector.load %arg4[%c2, %c0_18, %c0_19] : memref<9x32x64xbf16, #tpu.memory_space<vmem>>, vector<1x32x64xbf16>
    %16 = vector.shape_cast %15 : vector<1x32x64xbf16> to vector<32x64xbf16>
    %c0_20 = arith.constant 0 : index
    %c2_21 = arith.constant 2 : index
    %17 = vector.load %arg7[%c0_20, %c2_21] : memref<64x640xbf16, #tpu.memory_space<vmem>>, vector<64x512xbf16>
    %cst_22 = arith.constant dense<0.000000e+00> : vector<32x512xf32>
    %18 = tpu.matmul %16, %17, %cst_22 {dimension_numbers = #tpu.dot_dimension_numbers<[1], [0], [0], [1], [0, 0, 1, 1], [], []>} : vector<32x64xbf16>, vector<64x512xbf16>, vector<32x512xf32> -> vector<32x512xf32>
    %19 = arith.addf %14, %18 : vector<32x512xf32>
    %c3 = arith.constant 3 : index
    %c0_23 = arith.constant 0 : index
    %c0_24 = arith.constant 0 : index
    %20 = vector.load %arg4[%c3, %c0_23, %c0_24] : memref<9x32x64xbf16, #tpu.memory_space<vmem>>, vector<1x32x64xbf16>
    %21 = vector.shape_cast %20 : vector<1x32x64xbf16> to vector<32x64xbf16>
    %c0_25 = arith.constant 0 : index
    %c36 = arith.constant 36 : index
    %22 = vector.load %arg7[%c0_25, %c36] : memref<64x640xbf16, #tpu.memory_space<vmem>>, vector<64x512xbf16>
    %cst_26 = arith.constant dense<0.000000e+00> : vector<32x512xf32>
    %23 = tpu.matmul %21, %22, %cst_26 {dimension_numbers = #tpu.dot_dimension_numbers<[1], [0], [0], [1], [0, 0, 1, 1], [], []>} : vector<32x64xbf16>, vector<64x512xbf16>, vector<32x512xf32> -> vector<32x512xf32>
    %24 = arith.addf %19, %23 : vector<32x512xf32>
    %c4 = arith.constant 4 : index
    %c0_27 = arith.constant 0 : index
    %c0_28 = arith.constant 0 : index
    %25 = vector.load %arg4[%c4, %c0_27, %c0_28] : memref<9x32x64xbf16, #tpu.memory_space<vmem>>, vector<1x32x64xbf16>
    %26 = vector.shape_cast %25 : vector<1x32x64xbf16> to vector<32x64xbf16>
    %c0_29 = arith.constant 0 : index
    %c37 = arith.constant 37 : index
    %27 = vector.load %arg7[%c0_29, %c37] : memref<64x640xbf16, #tpu.memory_space<vmem>>, vector<64x512xbf16>
    %cst_30 = arith.constant dense<0.000000e+00> : vector<32x512xf32>
    %28 = tpu.matmul %26, %27, %cst_30 {dimension_numbers = #tpu.dot_dimension_numbers<[1], [0], [0], [1], [0, 0, 1, 1], [], []>} : vector<32x64xbf16>, vector<64x512xbf16>, vector<32x512xf32> -> vector<32x512xf32>
    %29 = arith.addf %24, %28 : vector<32x512xf32>
    %c5 = arith.constant 5 : index
    %c0_31 = arith.constant 0 : index
    %c0_32 = arith.constant 0 : index
    %30 = vector.load %arg4[%c5, %c0_31, %c0_32] : memref<9x32x64xbf16, #tpu.memory_space<vmem>>, vector<1x32x64xbf16>
    %31 = vector.shape_cast %30 : vector<1x32x64xbf16> to vector<32x64xbf16>
    %c0_33 = arith.constant 0 : index
    %c38 = arith.constant 38 : index
    %32 = vector.load %arg7[%c0_33, %c38] : memref<64x640xbf16, #tpu.memory_space<vmem>>, vector<64x512xbf16>
    %cst_34 = arith.constant dense<0.000000e+00> : vector<32x512xf32>
    %33 = tpu.matmul %31, %32, %cst_34 {dimension_numbers = #tpu.dot_dimension_numbers<[1], [0], [0], [1], [0, 0, 1, 1], [], []>} : vector<32x64xbf16>, vector<64x512xbf16>, vector<32x512xf32> -> vector<32x512xf32>
    %34 = arith.addf %29, %33 : vector<32x512xf32>
    %c6 = arith.constant 6 : index
    %c0_35 = arith.constant 0 : index
    %c0_36 = arith.constant 0 : index
    %35 = vector.load %arg4[%c6, %c0_35, %c0_36] : memref<9x32x64xbf16, #tpu.memory_space<vmem>>, vector<1x32x64xbf16>
    %36 = vector.shape_cast %35 : vector<1x32x64xbf16> to vector<32x64xbf16>
    %c0_37 = arith.constant 0 : index
    %c72 = arith.constant 72 : index
    %37 = vector.load %arg7[%c0_37, %c72] : memref<64x640xbf16, #tpu.memory_space<vmem>>, vector<64x512xbf16>
    %cst_38 = arith.constant dense<0.000000e+00> : vector<32x512xf32>
    %38 = tpu.matmul %36, %37, %cst_38 {dimension_numbers = #tpu.dot_dimension_numbers<[1], [0], [0], [1], [0, 0, 1, 1], [], []>} : vector<32x64xbf16>, vector<64x512xbf16>, vector<32x512xf32> -> vector<32x512xf32>
    %39 = arith.addf %34, %38 : vector<32x512xf32>
    %c7 = arith.constant 7 : index
    %c0_39 = arith.constant 0 : index
    %c0_40 = arith.constant 0 : index
    %40 = vector.load %arg4[%c7, %c0_39, %c0_40] : memref<9x32x64xbf16, #tpu.memory_space<vmem>>, vector<1x32x64xbf16>
    %41 = vector.shape_cast %40 : vector<1x32x64xbf16> to vector<32x64xbf16>
    %c0_41 = arith.constant 0 : index
    %c73 = arith.constant 73 : index
    %42 = vector.load %arg7[%c0_41, %c73] : memref<64x640xbf16, #tpu.memory_space<vmem>>, vector<64x512xbf16>
    %cst_42 = arith.constant dense<0.000000e+00> : vector<32x512xf32>
    %43 = tpu.matmul %41, %42, %cst_42 {dimension_numbers = #tpu.dot_dimension_numbers<[1], [0], [0], [1], [0, 0, 1, 1], [], []>} : vector<32x64xbf16>, vector<64x512xbf16>, vector<32x512xf32> -> vector<32x512xf32>
    %44 = arith.addf %39, %43 : vector<32x512xf32>
    %c8 = arith.constant 8 : index
    %c0_43 = arith.constant 0 : index
    %c0_44 = arith.constant 0 : index
    %45 = vector.load %arg4[%c8, %c0_43, %c0_44] : memref<9x32x64xbf16, #tpu.memory_space<vmem>>, vector<1x32x64xbf16>
    %46 = vector.shape_cast %45 : vector<1x32x64xbf16> to vector<32x64xbf16>
    %c0_45 = arith.constant 0 : index
    %c74 = arith.constant 74 : index
    %47 = vector.load %arg7[%c0_45, %c74] : memref<64x640xbf16, #tpu.memory_space<vmem>>, vector<64x512xbf16>
    %cst_46 = arith.constant dense<0.000000e+00> : vector<32x512xf32>
    %48 = tpu.matmul %46, %47, %cst_46 {dimension_numbers = #tpu.dot_dimension_numbers<[1], [0], [0], [1], [0, 0, 1, 1], [], []>} : vector<32x64xbf16>, vector<64x512xbf16>, vector<32x512xf32> -> vector<32x512xf32>
    %49 = arith.addf %44, %48 : vector<32x512xf32>
    %c0_47 = arith.constant 0 : index
    %c0_48 = arith.constant 0 : index
    %50 = vector.load %arg5[%c0_47, %c0_48] : memref<32x1xf32, #tpu.memory_space<vmem>>, vector<32x1xf32>
    %51 = vector.broadcast %50 : vector<32x1xf32> to vector<32x512xf32>
    %52 = arith.addf %49, %51 : vector<32x512xf32>
    %cst_49 = arith.constant 0.000000e+00 : f32
    %53 = vector.broadcast %cst_49 : f32 to vector<32x512xf32>
    %54 = arith.maximumf %52, %53 : vector<32x512xf32>
    %55 = arith.truncf %54 : vector<32x512xf32> to vector<32x512xbf16>
    %c0_50 = arith.constant 0 : index
    %c0_51 = arith.constant 0 : index
    %c0_52 = arith.constant 0 : index
    %56 = vector.load %arg6[%c0_50, %c0_51, %c0_52] : memref<1x32x512xbf16, #tpu.memory_space<vmem>>, vector<1x32x512xbf16>
    %57 = vector.shape_cast %56 : vector<1x32x512xbf16> to vector<32x512xbf16>
    %58 = vector.shape_cast %55 : vector<32x512xbf16> to vector<1x32x512xbf16>
    tpu.vector_store %arg6[%c0_50, %c0_51, %c0_52], %58 {strides = array<i32>} : memref<1x32x512xbf16, #tpu.memory_space<vmem>>, vector<1x32x512xbf16>,
    return
  }
  func.func @transform_0(%arg0: i32, %arg1: i32) -> (i32, i32, i32) {
    %c0_i32 = arith.constant 0 : i32
    %c0_i32_0 = arith.constant 0 : i32
    return %arg0, %c0_i32, %arg1 : i32, i32, i32
  }
  func.func @transform_1(%arg0: i32, %arg1: i32) -> (i32, i32, i32) {
    %c0_i32 = arith.constant 0 : i32
    %c0_i32_0 = arith.constant 0 : i32
    return %arg0, %c0_i32, %arg1 : i32, i32, i32
  }
  func.func @transform_2(%arg0: i32, %arg1: i32) -> (i32, i32, i32) {
    %c0_i32 = arith.constant 0 : i32
    %c0_i32_0 = arith.constant 0 : i32
    %c0_i32_1 = arith.constant 0 : i32
    %c0_i32_2 = arith.constant 0 : i32
    return %c0_i32, %c0_i32_0, %c0_i32_1 : i32, i32, i32
  }
  func.func @transform_3(%arg0: i32, %arg1: i32) -> (i32, i32) {
    %c0_i32 = arith.constant 0 : i32
    %c0_i32_0 = arith.constant 0 : i32
    %c0_i32_1 = arith.constant 0 : i32
    return %c0_i32, %c0_i32_0 : i32, i32
  }
  func.func @transform_4(%arg0: i32, %arg1: i32) -> (i32, i32, i32) {
    %c0_i32 = arith.constant 0 : i32
    %c0_i32_0 = arith.constant 0 : i32
    return %arg0, %c0_i32, %arg1 : i32, i32, i32
  }
}

module attributes {stable_mosaic.version = 11 : i64} {
  func.func @_deconv3x3_relu_kernel(%arg0: i32, %arg1: i32, %arg2: memref<1x32x1024xbf16, #tpu.memory_space<vmem>>, %arg3: memref<1x32x256xbf16, #tpu.memory_space<vmem>>, %arg4: memref<9x16x32xbf16, #tpu.memory_space<vmem>>, %arg5: memref<16x1xf32, #tpu.memory_space<vmem>>, %arg6: memref<1x16x1024xbf16, #tpu.memory_space<vmem>>, %arg7: memref<32x1280xbf16, #tpu.memory_space<vmem>>) attributes {dimension_semantics = [#tpu.dimension_semantics<parallel>, #tpu.dimension_semantics<parallel>], iteration_bounds = array<i64: 2, 5>, scalar_prefetch = 0 : i64, scratch_operands = 1 : i64, tpu.core_type = #tpu.core_type<tc>, window_params = [{transform_indices = @transform_0, window_bounds = array<i64: 1, 32, 1024>}, {transform_indices = @transform_1, window_bounds = array<i64: 1, 32, 256>}, {pipeline_mode = #tpu.pipeline_mode<synchronous>, transform_indices = @transform_2, window_bounds = array<i64: 9, 16, 32>}, {pipeline_mode = #tpu.pipeline_mode<synchronous>, transform_indices = @transform_3, window_bounds = array<i64: 16, 1>}, {transform_indices = @transform_4, window_bounds = array<i64: 1, 16, 1024>}]} {
    %c0 = arith.constant 0 : index
    %c0_0 = arith.constant 0 : index
    %c0_1 = arith.constant 0 : index
    %0 = vector.load %arg2[%c0, %c0_0, %c0_1] : memref<1x32x1024xbf16, #tpu.memory_space<vmem>>, vector<1x32x1024xbf16>
    %1 = vector.shape_cast %0 : vector<1x32x1024xbf16> to vector<32x1024xbf16>
    %c0_2 = arith.constant 0 : index
    %c0_3 = arith.constant 0 : index
    %2 = vector.load %arg7[%c0_2, %c0_3] : memref<32x1280xbf16, #tpu.memory_space<vmem>>, vector<32x1024xbf16>
    tpu.vector_store %arg7[%c0_2, %c0_3], %1 {strides = array<i32>} : memref<32x1280xbf16, #tpu.memory_space<vmem>>, vector<32x1024xbf16>,
    %c0_4 = arith.constant 0 : index
    %c0_5 = arith.constant 0 : index
    %c0_6 = arith.constant 0 : index
    %3 = vector.load %arg3[%c0_4, %c0_5, %c0_6] : memref<1x32x256xbf16, #tpu.memory_space<vmem>>, vector<1x32x256xbf16>
    %4 = vector.shape_cast %3 : vector<1x32x256xbf16> to vector<32x256xbf16>
    %c0_7 = arith.constant 0 : index
    %c1024 = arith.constant 1024 : index
    %5 = vector.load %arg7[%c0_7, %c1024] : memref<32x1280xbf16, #tpu.memory_space<vmem>>, vector<32x256xbf16>
    tpu.vector_store %arg7[%c0_7, %c1024], %4 {strides = array<i32>} : memref<32x1280xbf16, #tpu.memory_space<vmem>>, vector<32x256xbf16>,
    %c0_8 = arith.constant 0 : index
    %c0_9 = arith.constant 0 : index
    %c0_10 = arith.constant 0 : index
    %6 = vector.load %arg4[%c0_8, %c0_9, %c0_10] : memref<9x16x32xbf16, #tpu.memory_space<vmem>>, vector<1x16x32xbf16>
    %7 = vector.shape_cast %6 : vector<1x16x32xbf16> to vector<16x32xbf16>
    %c0_11 = arith.constant 0 : index
    %c0_12 = arith.constant 0 : index
    %8 = vector.load %arg7[%c0_11, %c0_12] : memref<32x1280xbf16, #tpu.memory_space<vmem>>, vector<32x1024xbf16>
    %cst = arith.constant dense<0.000000e+00> : vector<16x1024xf32>
    %9 = tpu.matmul %7, %8, %cst {dimension_numbers = #tpu.dot_dimension_numbers<[1], [0], [0], [1], [0, 0, 1, 1], [], []>} : vector<16x32xbf16>, vector<32x1024xbf16>, vector<16x1024xf32> -> vector<16x1024xf32>
    %c1 = arith.constant 1 : index
    %c0_13 = arith.constant 0 : index
    %c0_14 = arith.constant 0 : index
    %10 = vector.load %arg4[%c1, %c0_13, %c0_14] : memref<9x16x32xbf16, #tpu.memory_space<vmem>>, vector<1x16x32xbf16>
    %11 = vector.shape_cast %10 : vector<1x16x32xbf16> to vector<16x32xbf16>
    %c0_15 = arith.constant 0 : index
    %c1_16 = arith.constant 1 : index
    %12 = vector.load %arg7[%c0_15, %c1_16] : memref<32x1280xbf16, #tpu.memory_space<vmem>>, vector<32x1024xbf16>
    %cst_17 = arith.constant dense<0.000000e+00> : vector<16x1024xf32>
    %13 = tpu.matmul %11, %12, %cst_17 {dimension_numbers = #tpu.dot_dimension_numbers<[1], [0], [0], [1], [0, 0, 1, 1], [], []>} : vector<16x32xbf16>, vector<32x1024xbf16>, vector<16x1024xf32> -> vector<16x1024xf32>
    %14 = arith.addf %9, %13 : vector<16x1024xf32>
    %c2 = arith.constant 2 : index
    %c0_18 = arith.constant 0 : index
    %c0_19 = arith.constant 0 : index
    %15 = vector.load %arg4[%c2, %c0_18, %c0_19] : memref<9x16x32xbf16, #tpu.memory_space<vmem>>, vector<1x16x32xbf16>
    %16 = vector.shape_cast %15 : vector<1x16x32xbf16> to vector<16x32xbf16>
    %c0_20 = arith.constant 0 : index
    %c2_21 = arith.constant 2 : index
    %17 = vector.load %arg7[%c0_20, %c2_21] : memref<32x1280xbf16, #tpu.memory_space<vmem>>, vector<32x1024xbf16>
    %cst_22 = arith.constant dense<0.000000e+00> : vector<16x1024xf32>
    %18 = tpu.matmul %16, %17, %cst_22 {dimension_numbers = #tpu.dot_dimension_numbers<[1], [0], [0], [1], [0, 0, 1, 1], [], []>} : vector<16x32xbf16>, vector<32x1024xbf16>, vector<16x1024xf32> -> vector<16x1024xf32>
    %19 = arith.addf %14, %18 : vector<16x1024xf32>
    %c3 = arith.constant 3 : index
    %c0_23 = arith.constant 0 : index
    %c0_24 = arith.constant 0 : index
    %20 = vector.load %arg4[%c3, %c0_23, %c0_24] : memref<9x16x32xbf16, #tpu.memory_space<vmem>>, vector<1x16x32xbf16>
    %21 = vector.shape_cast %20 : vector<1x16x32xbf16> to vector<16x32xbf16>
    %c0_25 = arith.constant 0 : index
    %c72 = arith.constant 72 : index
    %22 = vector.load %arg7[%c0_25, %c72] : memref<32x1280xbf16, #tpu.memory_space<vmem>>, vector<32x1024xbf16>
    %cst_26 = arith.constant dense<0.000000e+00> : vector<16x1024xf32>
    %23 = tpu.matmul %21, %22, %cst_26 {dimension_numbers = #tpu.dot_dimension_numbers<[1], [0], [0], [1], [0, 0, 1, 1], [], []>} : vector<16x32xbf16>, vector<32x1024xbf16>, vector<16x1024xf32> -> vector<16x1024xf32>
    %24 = arith.addf %19, %23 : vector<16x1024xf32>
    %c4 = arith.constant 4 : index
    %c0_27 = arith.constant 0 : index
    %c0_28 = arith.constant 0 : index
    %25 = vector.load %arg4[%c4, %c0_27, %c0_28] : memref<9x16x32xbf16, #tpu.memory_space<vmem>>, vector<1x16x32xbf16>
    %26 = vector.shape_cast %25 : vector<1x16x32xbf16> to vector<16x32xbf16>
    %c0_29 = arith.constant 0 : index
    %c73 = arith.constant 73 : index
    %27 = vector.load %arg7[%c0_29, %c73] : memref<32x1280xbf16, #tpu.memory_space<vmem>>, vector<32x1024xbf16>
    %cst_30 = arith.constant dense<0.000000e+00> : vector<16x1024xf32>
    %28 = tpu.matmul %26, %27, %cst_30 {dimension_numbers = #tpu.dot_dimension_numbers<[1], [0], [0], [1], [0, 0, 1, 1], [], []>} : vector<16x32xbf16>, vector<32x1024xbf16>, vector<16x1024xf32> -> vector<16x1024xf32>
    %29 = arith.addf %24, %28 : vector<16x1024xf32>
    %c5 = arith.constant 5 : index
    %c0_31 = arith.constant 0 : index
    %c0_32 = arith.constant 0 : index
    %30 = vector.load %arg4[%c5, %c0_31, %c0_32] : memref<9x16x32xbf16, #tpu.memory_space<vmem>>, vector<1x16x32xbf16>
    %31 = vector.shape_cast %30 : vector<1x16x32xbf16> to vector<16x32xbf16>
    %c0_33 = arith.constant 0 : index
    %c74 = arith.constant 74 : index
    %32 = vector.load %arg7[%c0_33, %c74] : memref<32x1280xbf16, #tpu.memory_space<vmem>>, vector<32x1024xbf16>
    %cst_34 = arith.constant dense<0.000000e+00> : vector<16x1024xf32>
    %33 = tpu.matmul %31, %32, %cst_34 {dimension_numbers = #tpu.dot_dimension_numbers<[1], [0], [0], [1], [0, 0, 1, 1], [], []>} : vector<16x32xbf16>, vector<32x1024xbf16>, vector<16x1024xf32> -> vector<16x1024xf32>
    %34 = arith.addf %29, %33 : vector<16x1024xf32>
    %c6 = arith.constant 6 : index
    %c0_35 = arith.constant 0 : index
    %c0_36 = arith.constant 0 : index
    %35 = vector.load %arg4[%c6, %c0_35, %c0_36] : memref<9x16x32xbf16, #tpu.memory_space<vmem>>, vector<1x16x32xbf16>
    %36 = vector.shape_cast %35 : vector<1x16x32xbf16> to vector<16x32xbf16>
    %c0_37 = arith.constant 0 : index
    %c144 = arith.constant 144 : index
    %37 = vector.load %arg7[%c0_37, %c144] : memref<32x1280xbf16, #tpu.memory_space<vmem>>, vector<32x1024xbf16>
    %cst_38 = arith.constant dense<0.000000e+00> : vector<16x1024xf32>
    %38 = tpu.matmul %36, %37, %cst_38 {dimension_numbers = #tpu.dot_dimension_numbers<[1], [0], [0], [1], [0, 0, 1, 1], [], []>} : vector<16x32xbf16>, vector<32x1024xbf16>, vector<16x1024xf32> -> vector<16x1024xf32>
    %39 = arith.addf %34, %38 : vector<16x1024xf32>
    %c7 = arith.constant 7 : index
    %c0_39 = arith.constant 0 : index
    %c0_40 = arith.constant 0 : index
    %40 = vector.load %arg4[%c7, %c0_39, %c0_40] : memref<9x16x32xbf16, #tpu.memory_space<vmem>>, vector<1x16x32xbf16>
    %41 = vector.shape_cast %40 : vector<1x16x32xbf16> to vector<16x32xbf16>
    %c0_41 = arith.constant 0 : index
    %c145 = arith.constant 145 : index
    %42 = vector.load %arg7[%c0_41, %c145] : memref<32x1280xbf16, #tpu.memory_space<vmem>>, vector<32x1024xbf16>
    %cst_42 = arith.constant dense<0.000000e+00> : vector<16x1024xf32>
    %43 = tpu.matmul %41, %42, %cst_42 {dimension_numbers = #tpu.dot_dimension_numbers<[1], [0], [0], [1], [0, 0, 1, 1], [], []>} : vector<16x32xbf16>, vector<32x1024xbf16>, vector<16x1024xf32> -> vector<16x1024xf32>
    %44 = arith.addf %39, %43 : vector<16x1024xf32>
    %c8 = arith.constant 8 : index
    %c0_43 = arith.constant 0 : index
    %c0_44 = arith.constant 0 : index
    %45 = vector.load %arg4[%c8, %c0_43, %c0_44] : memref<9x16x32xbf16, #tpu.memory_space<vmem>>, vector<1x16x32xbf16>
    %46 = vector.shape_cast %45 : vector<1x16x32xbf16> to vector<16x32xbf16>
    %c0_45 = arith.constant 0 : index
    %c146 = arith.constant 146 : index
    %47 = vector.load %arg7[%c0_45, %c146] : memref<32x1280xbf16, #tpu.memory_space<vmem>>, vector<32x1024xbf16>
    %cst_46 = arith.constant dense<0.000000e+00> : vector<16x1024xf32>
    %48 = tpu.matmul %46, %47, %cst_46 {dimension_numbers = #tpu.dot_dimension_numbers<[1], [0], [0], [1], [0, 0, 1, 1], [], []>} : vector<16x32xbf16>, vector<32x1024xbf16>, vector<16x1024xf32> -> vector<16x1024xf32>
    %49 = arith.addf %44, %48 : vector<16x1024xf32>
    %c0_47 = arith.constant 0 : index
    %c0_48 = arith.constant 0 : index
    %50 = vector.load %arg5[%c0_47, %c0_48] : memref<16x1xf32, #tpu.memory_space<vmem>>, vector<16x1xf32>
    %51 = vector.broadcast %50 : vector<16x1xf32> to vector<16x1024xf32>
    %52 = arith.addf %49, %51 : vector<16x1024xf32>
    %cst_49 = arith.constant 0.000000e+00 : f32
    %53 = vector.broadcast %cst_49 : f32 to vector<16x1024xf32>
    %54 = arith.maximumf %52, %53 : vector<16x1024xf32>
    %55 = arith.truncf %54 : vector<16x1024xf32> to vector<16x1024xbf16>
    %c0_50 = arith.constant 0 : index
    %c0_51 = arith.constant 0 : index
    %c0_52 = arith.constant 0 : index
    %56 = vector.load %arg6[%c0_50, %c0_51, %c0_52] : memref<1x16x1024xbf16, #tpu.memory_space<vmem>>, vector<1x16x1024xbf16>
    %57 = vector.shape_cast %56 : vector<1x16x1024xbf16> to vector<16x1024xbf16>
    %58 = vector.shape_cast %55 : vector<16x1024xbf16> to vector<1x16x1024xbf16>
    tpu.vector_store %arg6[%c0_50, %c0_51, %c0_52], %58 {strides = array<i32>} : memref<1x16x1024xbf16, #tpu.memory_space<vmem>>, vector<1x16x1024xbf16>,
    return
  }
  func.func @transform_0(%arg0: i32, %arg1: i32) -> (i32, i32, i32) {
    %c0_i32 = arith.constant 0 : i32
    %c0_i32_0 = arith.constant 0 : i32
    return %arg0, %c0_i32, %arg1 : i32, i32, i32
  }
  func.func @transform_1(%arg0: i32, %arg1: i32) -> (i32, i32, i32) {
    %c0_i32 = arith.constant 0 : i32
    %c0_i32_0 = arith.constant 0 : i32
    return %arg0, %c0_i32, %arg1 : i32, i32, i32
  }
  func.func @transform_2(%arg0: i32, %arg1: i32) -> (i32, i32, i32) {
    %c0_i32 = arith.constant 0 : i32
    %c0_i32_0 = arith.constant 0 : i32
    %c0_i32_1 = arith.constant 0 : i32
    %c0_i32_2 = arith.constant 0 : i32
    return %c0_i32, %c0_i32_0, %c0_i32_1 : i32, i32, i32
  }
  func.func @transform_3(%arg0: i32, %arg1: i32) -> (i32, i32) {
    %c0_i32 = arith.constant 0 : i32
    %c0_i32_0 = arith.constant 0 : i32
    %c0_i32_1 = arith.constant 0 : i32
    return %c0_i32, %c0_i32_0 : i32, i32
  }
  func.func @transform_4(%arg0: i32, %arg1: i32) -> (i32, i32, i32) {
    %c0_i32 = arith.constant 0 : i32
    %c0_i32_0 = arith.constant 0 : i32
    return %arg0, %c0_i32, %arg1 : i32, i32, i32
  }
}

module attributes {stable_mosaic.version = 11 : i64} {
  func.func @_deconv3x3_relu_kernel(%arg0: i32, %arg1: i32, %arg2: memref<1x16x2048xbf16, #tpu.memory_space<vmem>>, %arg3: memref<1x16x384xbf16, #tpu.memory_space<vmem>>, %arg4: memref<9x3x16xbf16, #tpu.memory_space<vmem>>, %arg5: memref<3x1xf32, #tpu.memory_space<vmem>>, %arg6: memref<1x3x2048xf32, #tpu.memory_space<vmem>>, %arg7: memref<16x2432xbf16, #tpu.memory_space<vmem>>) attributes {dimension_semantics = [#tpu.dimension_semantics<parallel>, #tpu.dimension_semantics<parallel>], iteration_bounds = array<i64: 2, 10>, scalar_prefetch = 0 : i64, scratch_operands = 1 : i64, tpu.core_type = #tpu.core_type<tc>, window_params = [{transform_indices = @transform_0, window_bounds = array<i64: 1, 16, 2048>}, {transform_indices = @transform_1, window_bounds = array<i64: 1, 16, 384>}, {pipeline_mode = #tpu.pipeline_mode<synchronous>, transform_indices = @transform_2, window_bounds = array<i64: 9, 3, 16>}, {pipeline_mode = #tpu.pipeline_mode<synchronous>, transform_indices = @transform_3, window_bounds = array<i64: 3, 1>}, {transform_indices = @transform_4, window_bounds = array<i64: 1, 3, 2048>}]} {
    %c0 = arith.constant 0 : index
    %c0_0 = arith.constant 0 : index
    %c0_1 = arith.constant 0 : index
    %0 = vector.load %arg2[%c0, %c0_0, %c0_1] : memref<1x16x2048xbf16, #tpu.memory_space<vmem>>, vector<1x16x2048xbf16>
    %1 = vector.shape_cast %0 : vector<1x16x2048xbf16> to vector<16x2048xbf16>
    %c0_2 = arith.constant 0 : index
    %c0_3 = arith.constant 0 : index
    %2 = vector.load %arg7[%c0_2, %c0_3] : memref<16x2432xbf16, #tpu.memory_space<vmem>>, vector<16x2048xbf16>
    tpu.vector_store %arg7[%c0_2, %c0_3], %1 {strides = array<i32>} : memref<16x2432xbf16, #tpu.memory_space<vmem>>, vector<16x2048xbf16>,
    %c0_4 = arith.constant 0 : index
    %c0_5 = arith.constant 0 : index
    %c0_6 = arith.constant 0 : index
    %3 = vector.load %arg3[%c0_4, %c0_5, %c0_6] : memref<1x16x384xbf16, #tpu.memory_space<vmem>>, vector<1x16x384xbf16>
    %4 = vector.shape_cast %3 : vector<1x16x384xbf16> to vector<16x384xbf16>
    %c0_7 = arith.constant 0 : index
    %c2048 = arith.constant 2048 : index
    %5 = vector.load %arg7[%c0_7, %c2048] : memref<16x2432xbf16, #tpu.memory_space<vmem>>, vector<16x384xbf16>
    tpu.vector_store %arg7[%c0_7, %c2048], %4 {strides = array<i32>} : memref<16x2432xbf16, #tpu.memory_space<vmem>>, vector<16x384xbf16>,
    %c0_8 = arith.constant 0 : index
    %c0_9 = arith.constant 0 : index
    %c0_10 = arith.constant 0 : index
    %6 = vector.load %arg4[%c0_8, %c0_9, %c0_10] : memref<9x3x16xbf16, #tpu.memory_space<vmem>>, vector<1x3x16xbf16>
    %7 = vector.shape_cast %6 : vector<1x3x16xbf16> to vector<3x16xbf16>
    %c0_11 = arith.constant 0 : index
    %c0_12 = arith.constant 0 : index
    %8 = vector.load %arg7[%c0_11, %c0_12] : memref<16x2432xbf16, #tpu.memory_space<vmem>>, vector<16x2048xbf16>
    %cst = arith.constant dense<0.000000e+00> : vector<3x2048xf32>
    %9 = tpu.matmul %7, %8, %cst {dimension_numbers = #tpu.dot_dimension_numbers<[1], [0], [0], [1], [0, 0, 1, 1], [], []>} : vector<3x16xbf16>, vector<16x2048xbf16>, vector<3x2048xf32> -> vector<3x2048xf32>
    %c1 = arith.constant 1 : index
    %c0_13 = arith.constant 0 : index
    %c0_14 = arith.constant 0 : index
    %10 = vector.load %arg4[%c1, %c0_13, %c0_14] : memref<9x3x16xbf16, #tpu.memory_space<vmem>>, vector<1x3x16xbf16>
    %11 = vector.shape_cast %10 : vector<1x3x16xbf16> to vector<3x16xbf16>
    %c0_15 = arith.constant 0 : index
    %c1_16 = arith.constant 1 : index
    %12 = vector.load %arg7[%c0_15, %c1_16] : memref<16x2432xbf16, #tpu.memory_space<vmem>>, vector<16x2048xbf16>
    %cst_17 = arith.constant dense<0.000000e+00> : vector<3x2048xf32>
    %13 = tpu.matmul %11, %12, %cst_17 {dimension_numbers = #tpu.dot_dimension_numbers<[1], [0], [0], [1], [0, 0, 1, 1], [], []>} : vector<3x16xbf16>, vector<16x2048xbf16>, vector<3x2048xf32> -> vector<3x2048xf32>
    %14 = arith.addf %9, %13 : vector<3x2048xf32>
    %c2 = arith.constant 2 : index
    %c0_18 = arith.constant 0 : index
    %c0_19 = arith.constant 0 : index
    %15 = vector.load %arg4[%c2, %c0_18, %c0_19] : memref<9x3x16xbf16, #tpu.memory_space<vmem>>, vector<1x3x16xbf16>
    %16 = vector.shape_cast %15 : vector<1x3x16xbf16> to vector<3x16xbf16>
    %c0_20 = arith.constant 0 : index
    %c2_21 = arith.constant 2 : index
    %17 = vector.load %arg7[%c0_20, %c2_21] : memref<16x2432xbf16, #tpu.memory_space<vmem>>, vector<16x2048xbf16>
    %cst_22 = arith.constant dense<0.000000e+00> : vector<3x2048xf32>
    %18 = tpu.matmul %16, %17, %cst_22 {dimension_numbers = #tpu.dot_dimension_numbers<[1], [0], [0], [1], [0, 0, 1, 1], [], []>} : vector<3x16xbf16>, vector<16x2048xbf16>, vector<3x2048xf32> -> vector<3x2048xf32>
    %19 = arith.addf %14, %18 : vector<3x2048xf32>
    %c3 = arith.constant 3 : index
    %c0_23 = arith.constant 0 : index
    %c0_24 = arith.constant 0 : index
    %20 = vector.load %arg4[%c3, %c0_23, %c0_24] : memref<9x3x16xbf16, #tpu.memory_space<vmem>>, vector<1x3x16xbf16>
    %21 = vector.shape_cast %20 : vector<1x3x16xbf16> to vector<3x16xbf16>
    %c0_25 = arith.constant 0 : index
    %c144 = arith.constant 144 : index
    %22 = vector.load %arg7[%c0_25, %c144] : memref<16x2432xbf16, #tpu.memory_space<vmem>>, vector<16x2048xbf16>
    %cst_26 = arith.constant dense<0.000000e+00> : vector<3x2048xf32>
    %23 = tpu.matmul %21, %22, %cst_26 {dimension_numbers = #tpu.dot_dimension_numbers<[1], [0], [0], [1], [0, 0, 1, 1], [], []>} : vector<3x16xbf16>, vector<16x2048xbf16>, vector<3x2048xf32> -> vector<3x2048xf32>
    %24 = arith.addf %19, %23 : vector<3x2048xf32>
    %c4 = arith.constant 4 : index
    %c0_27 = arith.constant 0 : index
    %c0_28 = arith.constant 0 : index
    %25 = vector.load %arg4[%c4, %c0_27, %c0_28] : memref<9x3x16xbf16, #tpu.memory_space<vmem>>, vector<1x3x16xbf16>
    %26 = vector.shape_cast %25 : vector<1x3x16xbf16> to vector<3x16xbf16>
    %c0_29 = arith.constant 0 : index
    %c145 = arith.constant 145 : index
    %27 = vector.load %arg7[%c0_29, %c145] : memref<16x2432xbf16, #tpu.memory_space<vmem>>, vector<16x2048xbf16>
    %cst_30 = arith.constant dense<0.000000e+00> : vector<3x2048xf32>
    %28 = tpu.matmul %26, %27, %cst_30 {dimension_numbers = #tpu.dot_dimension_numbers<[1], [0], [0], [1], [0, 0, 1, 1], [], []>} : vector<3x16xbf16>, vector<16x2048xbf16>, vector<3x2048xf32> -> vector<3x2048xf32>
    %29 = arith.addf %24, %28 : vector<3x2048xf32>
    %c5 = arith.constant 5 : index
    %c0_31 = arith.constant 0 : index
    %c0_32 = arith.constant 0 : index
    %30 = vector.load %arg4[%c5, %c0_31, %c0_32] : memref<9x3x16xbf16, #tpu.memory_space<vmem>>, vector<1x3x16xbf16>
    %31 = vector.shape_cast %30 : vector<1x3x16xbf16> to vector<3x16xbf16>
    %c0_33 = arith.constant 0 : index
    %c146 = arith.constant 146 : index
    %32 = vector.load %arg7[%c0_33, %c146] : memref<16x2432xbf16, #tpu.memory_space<vmem>>, vector<16x2048xbf16>
    %cst_34 = arith.constant dense<0.000000e+00> : vector<3x2048xf32>
    %33 = tpu.matmul %31, %32, %cst_34 {dimension_numbers = #tpu.dot_dimension_numbers<[1], [0], [0], [1], [0, 0, 1, 1], [], []>} : vector<3x16xbf16>, vector<16x2048xbf16>, vector<3x2048xf32> -> vector<3x2048xf32>
    %34 = arith.addf %29, %33 : vector<3x2048xf32>
    %c6 = arith.constant 6 : index
    %c0_35 = arith.constant 0 : index
    %c0_36 = arith.constant 0 : index
    %35 = vector.load %arg4[%c6, %c0_35, %c0_36] : memref<9x3x16xbf16, #tpu.memory_space<vmem>>, vector<1x3x16xbf16>
    %36 = vector.shape_cast %35 : vector<1x3x16xbf16> to vector<3x16xbf16>
    %c0_37 = arith.constant 0 : index
    %c288 = arith.constant 288 : index
    %37 = vector.load %arg7[%c0_37, %c288] : memref<16x2432xbf16, #tpu.memory_space<vmem>>, vector<16x2048xbf16>
    %cst_38 = arith.constant dense<0.000000e+00> : vector<3x2048xf32>
    %38 = tpu.matmul %36, %37, %cst_38 {dimension_numbers = #tpu.dot_dimension_numbers<[1], [0], [0], [1], [0, 0, 1, 1], [], []>} : vector<3x16xbf16>, vector<16x2048xbf16>, vector<3x2048xf32> -> vector<3x2048xf32>
    %39 = arith.addf %34, %38 : vector<3x2048xf32>
    %c7 = arith.constant 7 : index
    %c0_39 = arith.constant 0 : index
    %c0_40 = arith.constant 0 : index
    %40 = vector.load %arg4[%c7, %c0_39, %c0_40] : memref<9x3x16xbf16, #tpu.memory_space<vmem>>, vector<1x3x16xbf16>
    %41 = vector.shape_cast %40 : vector<1x3x16xbf16> to vector<3x16xbf16>
    %c0_41 = arith.constant 0 : index
    %c289 = arith.constant 289 : index
    %42 = vector.load %arg7[%c0_41, %c289] : memref<16x2432xbf16, #tpu.memory_space<vmem>>, vector<16x2048xbf16>
    %cst_42 = arith.constant dense<0.000000e+00> : vector<3x2048xf32>
    %43 = tpu.matmul %41, %42, %cst_42 {dimension_numbers = #tpu.dot_dimension_numbers<[1], [0], [0], [1], [0, 0, 1, 1], [], []>} : vector<3x16xbf16>, vector<16x2048xbf16>, vector<3x2048xf32> -> vector<3x2048xf32>
    %44 = arith.addf %39, %43 : vector<3x2048xf32>
    %c8 = arith.constant 8 : index
    %c0_43 = arith.constant 0 : index
    %c0_44 = arith.constant 0 : index
    %45 = vector.load %arg4[%c8, %c0_43, %c0_44] : memref<9x3x16xbf16, #tpu.memory_space<vmem>>, vector<1x3x16xbf16>
    %46 = vector.shape_cast %45 : vector<1x3x16xbf16> to vector<3x16xbf16>
    %c0_45 = arith.constant 0 : index
    %c290 = arith.constant 290 : index
    %47 = vector.load %arg7[%c0_45, %c290] : memref<16x2432xbf16, #tpu.memory_space<vmem>>, vector<16x2048xbf16>
    %cst_46 = arith.constant dense<0.000000e+00> : vector<3x2048xf32>
    %48 = tpu.matmul %46, %47, %cst_46 {dimension_numbers = #tpu.dot_dimension_numbers<[1], [0], [0], [1], [0, 0, 1, 1], [], []>} : vector<3x16xbf16>, vector<16x2048xbf16>, vector<3x2048xf32> -> vector<3x2048xf32>
    %49 = arith.addf %44, %48 : vector<3x2048xf32>
    %c0_47 = arith.constant 0 : index
    %c0_48 = arith.constant 0 : index
    %50 = vector.load %arg5[%c0_47, %c0_48] : memref<3x1xf32, #tpu.memory_space<vmem>>, vector<3x1xf32>
    %51 = vector.broadcast %50 : vector<3x1xf32> to vector<3x2048xf32>
    %52 = arith.addf %49, %51 : vector<3x2048xf32>
    %cst_49 = arith.constant 0.000000e+00 : f32
    %53 = vector.broadcast %cst_49 : f32 to vector<3x2048xf32>
    %54 = arith.maximumf %52, %53 : vector<3x2048xf32>
    %c0_50 = arith.constant 0 : index
    %c0_51 = arith.constant 0 : index
    %c0_52 = arith.constant 0 : index
    %55 = vector.load %arg6[%c0_50, %c0_51, %c0_52] : memref<1x3x2048xf32, #tpu.memory_space<vmem>>, vector<1x3x2048xf32>
    %56 = vector.shape_cast %55 : vector<1x3x2048xf32> to vector<3x2048xf32>
    %57 = vector.shape_cast %54 : vector<3x2048xf32> to vector<1x3x2048xf32>
    tpu.vector_store %arg6[%c0_50, %c0_51, %c0_52], %57 {strides = array<i32>} : memref<1x3x2048xf32, #tpu.memory_space<vmem>>, vector<1x3x2048xf32>,
    return
  }
  func.func @transform_0(%arg0: i32, %arg1: i32) -> (i32, i32, i32) {
    %c0_i32 = arith.constant 0 : i32
    %c0_i32_0 = arith.constant 0 : i32
    return %arg0, %c0_i32, %arg1 : i32, i32, i32
  }
  func.func @transform_1(%arg0: i32, %arg1: i32) -> (i32, i32, i32) {
    %c0_i32 = arith.constant 0 : i32
    %c0_i32_0 = arith.constant 0 : i32
    return %arg0, %c0_i32, %arg1 : i32, i32, i32
  }
  func.func @transform_2(%arg0: i32, %arg1: i32) -> (i32, i32, i32) {
    %c0_i32 = arith.constant 0 : i32
    %c0_i32_0 = arith.constant 0 : i32
    %c0_i32_1 = arith.constant 0 : i32
    %c0_i32_2 = arith.constant 0 : i32
    return %c0_i32, %c0_i32_0, %c0_i32_1 : i32, i32, i32
  }
  func.func @transform_3(%arg0: i32, %arg1: i32) -> (i32, i32) {
    %c0_i32 = arith.constant 0 : i32
    %c0_i32_0 = arith.constant 0 : i32
    %c0_i32_1 = arith.constant 0 : i32
    return %c0_i32, %c0_i32_0 : i32, i32
  }
  func.func @transform_4(%arg0: i32, %arg1: i32) -> (i32, i32, i32) {
    %c0_i32 = arith.constant 0 : i32
    %c0_i32_0 = arith.constant 0 : i32
    return %arg0, %c0_i32, %arg1 : i32, i32, i32
  }
}

</mosaic_0001>

<bundles_post_ra>
// kernel: decoder_cnn_forward.5
= control target key start
LH: loop header
LB: loop body
LE: loop exit
PB: predicated region body
PF: predicated region fallthrough
CT: control target
= control target key end

     0   :  { %10 = vsyncpa [#allocation3], 0  ;;  %s6314_s0 = inlined_call_operand.vmem [shape: bf16[16,16], index: 0, kind: input, shape index: {}]   ;;  %s6315_s1 = inlined_call_operand.hbm [shape: bf16[16,512], index: 1, kind: input, shape index: {}]   ;;  %s6316_s2 = inlined_call_operand.hbm [shape: f32[1,512], index: 2, kind: input, shape index: {}]   ;;  %s6317_s3 = inlined_call_operand.hbm [shape: bf16[512,25088], index: 3, kind: input, shape index: {}]   ;;  %s6318_s4 = inlined_call_operand.vmem [shape: f32[1,25088], index: 4, kind: input, shape index: {}]   ;;  %s6319_s5 = inlined_call_operand.vmem [shape: bf16[16,25088], index: 5, kind: output, shape index: {}]  }
   0x1   :  { %11 = vsyncpa [#allocation5], 0  ;;  %s5544_s18 = smov 0   ;;  %s5546_s19 = smov 0  }
   0x2   :  { %s5548_s20 = smov 0   ;;  %s5550_s21 = smov 0  }
   0x3 LB: > { %s5563_s22 = sadd.s32 4294967295, %s5503_s21   ;;  %s5566_s23 = sadd.s32 1, %s5503_s21   ;;  %s5503_s21 = sphi %s5550_s21, %s6342_s21   ;;  %s5499_s20 = sphi %s5548_s20, %s6341_s20   ;;  %s5495_s19 = sphi %s5546_s19, %s6340_s19   ;;  %s5491_s18 = sphi %s5544_s18, %s6339_s18  }
   0x4   : > { %s84_s24 = ssub.s32 %s5503_s21, %s5566_s23  ;;  %s87_s25 = sadd.s32 1, %s5499_s20 }
   0x5   : > { %p85_p0 = scmp.eq.s32.totalorder %s84_s24, 0  ;;  %p94_p1 = scmp.ne.s32.totalorder %s5499_s20, %s5495_s19 }
   0x6   : > { %p95_p2 = scmp.eq.s32.totalorder %s5503_s21, 0  ;;  %p100_p3 = scmp.ne.s32.totalorder %s5495_s19, %s5491_s18 }
   0x7   : > { %s5576_s26 = scalar_select %p85_p0, %s5499_s20, %s87_s25  }
   0x8   : > { %p5578_p4 = por %p95_p2, %p94_p1  ;;  %p6320_p5 = scmp.eq.s32.totalorder %s5563_s22, 0 }
   0x9   : > { %p150_p6 = scmp.eq.s32.totalorder %s5563_s22, 13  ;;  %p4075_p7 = scmp.ge.s32.totalorder %s5503_s21, 1 }
   0xa   : > { %p5587_p8 = por %p6320_p5, %p100_p3  ;;  %p163_p9 = scmp.lt.s32.totalorder %s5503_s21, 15 }
   0xb   : > { %p5592_p10 = por %p150_p6, %p94_p1  ;;  %s5505_s6 = smov [#allocation2]  }
   0xc   : > { %s6325_s28 = scalar_select %p5587_p8, 1, 0 }
   0xd   : > { %s6326_s29 = scalar_select %p5592_p10, 1, 0 }
   0xe   : > { %p5596_p11 = pnand %p4075_p7, %p163_p9  ;;  %s178_s7 = sshll.u32 %s5505_s6, 4  ;;  %s179_s7 = int_to_ptr.vmem [resolvable:$true] %s178_s7 }
   0xf   : > { %p4653_p0 = scmp.lt.s32.totalorder %s5503_s21, 14  ;;  %s5375_s13 = scalar_lea.hbm %s6315_s1, 512 }
  0x10   : > { %s6327_s30 = scalar_select %p5596_p11, 1, 0 }
  0x11   : > { %p4640_p12 = pneg %p5596_p11  ;;  %p5612_p1 = pnand %p4653_p0, %p5578_p4 }
  0x12   : > { %p5376_p2 = scmp.ne.s32.totalorder %s6315_s1, %s5375_s13  ;;  %p5382_p4 = scmp.lt.u32.totalorder %s5375_s13, %s6315_s1 }
  0x13   : > { %p5604_p13 = pnand %p4640_p12, %p6320_p5 }
  0x14   : > { %s6329_s10 = scalar_select %p5612_p1, 1, 0 }
  0x15   : > { %p5377_p3 = pneg %p5604_p13 }
  0x17   : > { %p5378_p6 = pnand %p5377_p3, %p5376_p2 }
  0x19   : > { %p5379_p7 = pneg %p5378_p6 }
  0x1b   : > { %p5384_p9 = pnand %p5382_p4, %p5379_p7 }
  0x1d   : > { %5387 = shalt.err (!%p5384_p9)
}
  0x1e   : > { %s5388_s18 = scalar_lea.vmem %s179_s7, 512  ;;  %p5396_p10 = scmp.lt.s32.totalorder %s179_s7, %s179_s7 }
  0x1f   : > { %p5389_p12 = scmp.ne.s32.totalorder %s179_s7, %s5388_s18  ;;  %p5397_p8 = scmp.lt.s32.totalorder %s5388_s18, %s5388_s18 }
  0x21   : > { %p5391_p0 = pnand %p5389_p12, %p5377_p3  ;;  %p5398_p11 = por %p5397_p8, %p5396_p10 }
  0x23   : > { %p5392_p5 = pneg %p5391_p0 }
  0x25   : > { %p5399_p1 = pnand %p5398_p11, %p5392_p5 }
  0x27   : > { %5402 = shalt.err (!%p5399_p1)
}
  0x28   : > { %s5506_s24 = smov 256   ;;  %s5507_s25 = smov 16  }
  0x29   : > { %4643 = dma.hbm_to_vmem [thread:$0]  (!%p5604_p13), %s6315_s1, 512, %s179_s7, [#allocation3], %s5506_s24, %s5506_s24, %s5507_s25  }
  0x2a   : > { %s5508_s11 = smov [#allocation4]   ;;  %s5403_s15 = scalar_lea.hbm %s6316_s2, 64 }
  0x2b   : > { %s192_s12 = sshll.u32 %s5508_s11, 4  ;;  %p5404_p5 = scmp.ne.s32.totalorder %s6316_s2, %s5403_s15  ;;  %s193_s12 = int_to_ptr.vmem [resolvable:$true] %s192_s12 }
  0x2c   : > { %p5410_p11 = scmp.lt.u32.totalorder %s5403_s15, %s6316_s2 }
  0x2d   : > { %p5406_p8 = pnand %p5404_p5, %p5377_p3 }
  0x2f   : > { %p5407_p10 = pneg %p5406_p8 }
  0x31   : > { %p5412_p1 = pnand %p5410_p11, %p5407_p10 }
  0x33   : > { %5415 = shalt.err (!%p5412_p1)
}
  0x34   : > { %s5416_s7 = scalar_lea.vmem %s193_s12, 64  ;;  %p5424_p4 = scmp.lt.s32.totalorder %s193_s12, %s193_s12 }
  0x35   : > { %p5417_p2 = scmp.ne.s32.totalorder %s193_s12, %s5416_s7  ;;  %p5425_p9 = scmp.lt.s32.totalorder %s5416_s7, %s5416_s7 }
  0x37   : > { %p5419_p6 = pnand %p5417_p2, %p5377_p3  ;;  %p5426_p12 = por %p5425_p9, %p5424_p4 }
  0x39   : > { %p5420_p7 = pneg %p5419_p6 }
  0x3b   : > { %p5427_p0 = pnand %p5426_p12, %p5420_p7 }
  0x3d   : > { %5430 = shalt.err (!%p5427_p0)
}
  0x3e   : > { %4646 = dma.hbm_to_vmem [thread:$0]  (!%p5604_p13), %s6316_s2, 64, %s193_s12, [#allocation5]  }
  0x3f   : > { %s205_s9 = sand.u32 1, %s5499_s20   ;;  %s4555_s27 = smul.u32 896, %s5503_s21 }
  0x40   : > { %s4627_s6 = smul.u32 3584, %s205_s9  ;;  %s6330_s16 = sand.u32 1, %s5503_s21  }
  0x41   : > { %s5663_s14 = scalar_lea.hbm %s6317_s3, %s4555_s27  ;;  %s5669_s17 = scalar_lea.sflag [#allocation3], %s6330_s16 }
  0x42   : > { %s207_s8 = scalar_lea.vmem [#allocation6], %s4627_s6  ;;  %s5431_s12 = scalar_lea.hbm %s5663_s14, 57344 }
  0x43   : > { %s214_s15 = sshll.u32 %s207_s8, 4  ;;  %p5432_p13 = scmp.ne.s32.totalorder %s5663_s14, %s5431_s12  ;;  %s5665_s15 = int_to_ptr.vmem [resolvable:$true] %s214_s15 }
  0x44   : > { %p6331_p3 = scmp.ne.s32.totalorder %s6329_s10, 0  ;;  %s5436_s24 = scalar_lea.hbm %s6317_s3, 802816 }
  0x45   : > { %p5437_p11 = scmp.lt.u32.totalorder %s5663_s14, %s6317_s3  ;;  %p5438_p1 = scmp.lt.u32.totalorder %s5436_s24, %s5431_s12 }
  0x46   : > { %p5433_p5 = pneg %p6331_p3  ;;  %p5440_p6 = scmp.lt.u32.totalorder %s5431_s12, %s5663_s14 }
  0x47   : > { %p5439_p2 = por %p5438_p1, %p5437_p11 }
  0x48   : > { %p5434_p8 = pnand %p5433_p5, %p5432_p13 }
  0x49   : > { %p5441_p7 = por %p5440_p6, %p5439_p2 }
  0x4a   : > { %p5435_p10 = pneg %p5434_p8 }
  0x4c   : > { %p5442_p4 = pnand %p5441_p7, %p5435_p10 }
  0x4e   : > { %5445 = shalt.err (!%p5442_p4)
}
  0x4f   : > { %s5446_s21 = scalar_lea.vmem %s5665_s15, 57344  ;;  %s5509_s27 = smov [#allocation6]  }
  0x50   : > { %p5447_p9 = scmp.ne.s32.totalorder %s5665_s15, %s5446_s21  ;;  %s5451_s6 = sshll.u32 %s5509_s27, 4  ;;  %s5452_s6 = int_to_ptr.vmem [resolvable:$false] %s5451_s6 }
  0x51   : > { %s5453_s11 = scalar_lea.vmem %s5452_s6, 114688  ;;  %p5454_p13 = scmp.lt.s32.totalorder %s5665_s15, %s5452_s6 }
  0x52   : > { %p5449_p12 = pnand %p5447_p9, %p5433_p5  ;;  %p5455_p8 = scmp.lt.s32.totalorder %s5453_s11, %s5446_s21 }
  0x54   : > { %p5450_p0 = pneg %p5449_p12  ;;  %p5456_p11 = por %p5455_p8, %p5454_p13 }
  0x56   : > { %p5457_p1 = pnand %p5456_p11, %p5450_p0 }
  0x58   : > { %5460 = shalt.err (!%p5457_p1)
}
  0x59   : > { %s5510_s13 = smov 12544   ;;  %s5511_s8 = smov 896  }
  0x5a   : > { %s5512_s16 = smov 56   ;;  %p6332_p5 = scmp.ne.s32.totalorder %s6327_s30, 0 }
  0x5b   : > { %4650 = dma.hbm_to_vmem [thread:$0]  (!%p6331_p3), %s5663_s14, 57344, %s5665_s15, %s5669_s17, %s5510_s13, %s5511_s8, %s5512_s16  }
  0x5c   : > { %234 = sbr.rel (%p6332_p5) target bundleno = 952 (0x3b8), region = 40  ;;  %p6333_p10 = scmp.eq.s32.totalorder (!%p6332_p5), %s5563_s22, 0 }
  0x63   : > { %5478 = dma.done.wait (%p6333_p10), [#allocation3], 512   ;;  %p6334_p2 = pmov %p6333_p10 }
  0x65   : > { %5480 = vsyncadd (%p6334_p2), [#allocation3], 4294966784  ;;  %p6335_p6 = pmov %p6334_p2 }
  0x66   : > { %p6336_p7 = pmov %p6334_p2 }
  0x67   : > { %5482 = dma.done.wait (%p6335_p6), [#allocation5], 64  }
  0x68   : > { %5484 = vsyncadd (%p6336_p7), [#allocation5], 4294967232  ;;  %s244_s10 = sand.u32 1, %s5563_s22   ;;  %s246_s14 = sand.u32 1, %s5495_s19  }
  0x69   : > { %s4628_s30 = smul.u32 3584, %s246_s14  ;;  %s245_s15 = scalar_lea.sflag [#allocation3], %s244_s10 }
  0x6a   : > { %p6337_p3 = scmp.ne.s32.totalorder %s6325_s28, 0 }
  0x6b   : > { %s5711_s17 = scalar_lea.vmem [#allocation6], %s4628_s30 }
  0x6c   : > { %5486 = dma.done.wait (%p6337_p3), %s245_s15, 57344  }
  0x6d   : > { %5488 = vsyncadd (%p6337_p3), %s245_s15, 4294909952  ;;  %v5513_v0 = vmov 0   ;;  %v4696_v1 = vld [vmem:[#allocation2 + $0x4] ss:$16 sps:$4 sm:$0xff]   ;;  %v4698_v2 = vld [vmem:[#allocation2 + $0xc] ss:$16 sps:$4 sm:$0xff]  }
  0x6e   : > { %375 = vmatprep.mubr.bf16.mxu0 %v5513_v0  ;;  %418 = vmatprep.mubr.bf16.mxu1 %v5513_v0  ;;  %v4700_v3 = vld [vmem:[#allocation2] ss:$16 sps:$4 sm:$0xff]   ;;  %v4701_v4 = vld [vmem:[#allocation2 + $0x8] ss:$16 sps:$4 sm:$0xff]   ;;  %vm339_vm0 = vcmask 130048   ;;  %s279_s28 = smul.u32 14, %s5563_s22 }
  0x6f   : > { %343 = vmatprep.subr.bf16.mxu0 %v4696_v1  ;;  %386 = vmatprep.subr.bf16.mxu1 %v4698_v2  ;;  %v4702_v5 = vld [vmem:[%s6314_s0] sm:$0xff]   ;;  %v4711_v10 = vld [vmem:[%s5711_s17 + $0x74] ss:$56 sps:$4 sm:$0xff]   ;;  %v4709_v11 = vld [vmem:[%s5711_s17 + $0x70] ss:$56 sps:$4 sm:$0xff]   ;;  %s6061_s9 = smul.u32 112, %s246_s14 }
  0x70   : > { %344 = vmatpush1.bf16.msra.mxu0 %v4700_v3  ;;  %387 = vmatpush1.bf16.msra.mxu1 %v4701_v4  ;;  %v4703_v6 = vld [vmem:[%s5711_s17] ss:$56 sps:$4 sm:$0xff]   ;;  %v4705_v7 = vld [vmem:[%s5711_s17 + $0x4] ss:$56 sps:$4 sm:$0xff]   ;;  %v4714_v12 = vld [vmem:[%s5711_s17 + $0x774] ss:$56 sps:$4 sm:$0xff]  }
  0x71   : > { %v4706_v8 = vld [vmem:[%s5711_s17 + $0x700] ss:$56 sps:$4 sm:$0xff]   ;;  %3203 = vmatprep.subr.bf16.mxu1 %v4705_v7  ;;  %v4708_v9 = vld [vmem:[%s5711_s17 + $0x704] ss:$56 sps:$4 sm:$0xff]   ;;  %v4712_v13 = vld [vmem:[%s5711_s17 + $0x770] ss:$56 sps:$4 sm:$0xff]  }
  0x72   : > { %3246 = vmatprep.subr.bf16.mxu0 %v4708_v9  ;;  %v4717_v14 = vld [vmem:[%s5711_s17 + $0xe4] ss:$56 sps:$4 sm:$0xff]   ;;  %v4715_v16 = vld [vmem:[%s5711_s17 + $0xe0] ss:$56 sps:$4 sm:$0xff]   ;;  %v4723_v18 = vld [vmem:[%s5711_s17 + $0x154] ss:$56 sps:$4 sm:$0xff]  }
  0x73   : > { %4088 = vmatmul.mubr.msk.bf16.vlgmr.msra.gmra.mrb[0].mxu0 %vm339_vm0, %v4702_v5  ;;  %4089 = vmatmul.mubr.msk.bf16.vlgmr.msra.gmra.mrb[0].mxu1 %vm339_vm0, %v4702_v5  ;;  %v4720_v15 = vld [vmem:[%s5711_s17 + $0x7e4] ss:$56 sps:$4 sm:$0xff]   ;;  %v4718_v17 = vld [vmem:[%s5711_s17 + $0x7e0] ss:$56 sps:$4 sm:$0xff]   ;;  %v4726_v19 = vld [vmem:[%s5711_s17 + $0x854] ss:$56 sps:$4 sm:$0xff]  }
  0x74   : > { %3204 = vmatpush1.bf16.msra.mxu1 %v4703_v6  ;;  %3247 = vmatpush1.bf16.msra.mxu0 %v4706_v8  ;;  %v4721_v20 = vld [vmem:[%s5711_s17 + $0x150] ss:$56 sps:$4 sm:$0xff]   ;;  %v4729_v22 = vld [vmem:[%s5711_s17 + $0x1c4] ss:$56 sps:$4 sm:$0xff]   ;;  %v4727_v24 = vld [vmem:[%s5711_s17 + $0x1c0] ss:$56 sps:$4 sm:$0xff]   ;;  %v294_v8 = vlaneseq }
  0x75   : > { %3205 = vmatprep.subr.bf16.mxu1 %v4711_v10  ;;  %3248 = vmatprep.subr.bf16.mxu0 %v4714_v12  ;;  %v4724_v21 = vld [vmem:[%s5711_s17 + $0x850] ss:$56 sps:$4 sm:$0xff]   ;;  %v4732_v23 = vld [vmem:[%s5711_s17 + $0x8c4] ss:$56 sps:$4 sm:$0xff]   ;;  %v4730_v25 = vld [vmem:[%s5711_s17 + $0x8c0] ss:$56 sps:$4 sm:$0xff]  }
  0x76   : > { %v4735_v26 = vld [vmem:[%s5711_s17 + $0x234] ss:$56 sps:$4 sm:$0xff]   ;;  %v4733_v28 = vld [vmem:[%s5711_s17 + $0x230] ss:$56 sps:$4 sm:$0xff]   ;;  %v4741_v30 = vld [vmem:[%s5711_s17 + $0x2a4] ss:$56 sps:$4 sm:$0xff]  }
  0x77   : > { %v4738_v27 = vld [vmem:[%s5711_s17 + $0x934] ss:$56 sps:$4 sm:$0xff]   ;;  %v4736_v29 = vld [vmem:[%s5711_s17 + $0x930] ss:$56 sps:$4 sm:$0xff]   ;;  %v4744_v31 = vld [vmem:[%s5711_s17 + $0x9a4] ss:$56 sps:$4 sm:$0xff]  }
  0x78   : > { %3206 = vmatpush1.bf16.msra.mxu1 %v4709_v11  ;;  %3249 = vmatpush1.bf16.msra.mxu0 %v4712_v13  ;;  %v4739_v32 = vld [vmem:[%s5711_s17 + $0x2a0] ss:$56 sps:$4 sm:$0xff]   ;;  %v4747_v34 = vld [vmem:[%s5711_s17 + $0x314] ss:$56 sps:$4 sm:$0xff]   ;;  %v4745_v36 = vld [vmem:[%s5711_s17 + $0x310] ss:$56 sps:$4 sm:$0xff]  }
  0x79   : > { %3207 = vmatprep.subr.bf16.mxu1 %v4717_v14  ;;  %3250 = vmatprep.subr.bf16.mxu0 %v4720_v15  ;;  %v4742_v33 = vld [vmem:[%s5711_s17 + $0x9a0] ss:$56 sps:$4 sm:$0xff]   ;;  %v4750_v35 = vld [vmem:[%s5711_s17 + $0xa14] ss:$56 sps:$4 sm:$0xff]   ;;  %v4748_v37 = vld [vmem:[%s5711_s17 + $0xa10] ss:$56 sps:$4 sm:$0xff]  }
  0x7a   : > { %v4753_v38 = vld [vmem:[%s5711_s17 + $0x384] ss:$56 sps:$4 sm:$0xff]   ;;  %v4751_v40 = vld [vmem:[%s5711_s17 + $0x380] ss:$56 sps:$4 sm:$0xff]   ;;  %v4759_v42 = vld [vmem:[%s5711_s17 + $0x3f4] ss:$56 sps:$4 sm:$0xff]  }
  0x7b   : > { %v4756_v39 = vld [vmem:[%s5711_s17 + $0xa84] ss:$56 sps:$4 sm:$0xff]   ;;  %v4754_v41 = vld [vmem:[%s5711_s17 + $0xa80] ss:$56 sps:$4 sm:$0xff]   ;;  %v4762_v43 = vld [vmem:[%s5711_s17 + $0xaf4] ss:$56 sps:$4 sm:$0xff]  }
  0x7c   : > { %3208 = vmatpush1.bf16.msra.mxu1 %v4715_v16  ;;  %3251 = vmatpush1.bf16.msra.mxu0 %v4718_v17  ;;  %v4757_v44 = vld [vmem:[%s5711_s17 + $0x3f0] ss:$56 sps:$4 sm:$0xff]   ;;  %v4765_v46 = vld [vmem:[%s5711_s17 + $0x464] ss:$56 sps:$4 sm:$0xff]   ;;  %v4763_v48 = vld [vmem:[%s5711_s17 + $0x460] ss:$56 sps:$4 sm:$0xff]  }
  0x7d   : > { %3209 = vmatprep.subr.bf16.mxu1 %v4723_v18  ;;  %3252 = vmatprep.subr.bf16.mxu0 %v4726_v19  ;;  %v4760_v45 = vld [vmem:[%s5711_s17 + $0xaf0] ss:$56 sps:$4 sm:$0xff]   ;;  %v4768_v47 = vld [vmem:[%s5711_s17 + $0xb64] ss:$56 sps:$4 sm:$0xff]   ;;  %v4766_v49 = vld [vmem:[%s5711_s17 + $0xb60] ss:$56 sps:$4 sm:$0xff]  }
  0x7e   : > { %v4771_v50 = vld [vmem:[%s5711_s17 + $0x4d4] ss:$56 sps:$4 sm:$0xff]   ;;  %v4769_v52 = vld [vmem:[%s5711_s17 + $0x4d0] ss:$56 sps:$4 sm:$0xff]   ;;  %v4777_v54 = vld [vmem:[%s5711_s17 + $0x544] ss:$56 sps:$4 sm:$0xff]  }
  0x7f   : > { %v4774_v51 = vld [vmem:[%s5711_s17 + $0xbd4] ss:$56 sps:$4 sm:$0xff]   ;;  %v4772_v53 = vld [vmem:[%s5711_s17 + $0xbd0] ss:$56 sps:$4 sm:$0xff]   ;;  %v4780_v55 = vld [vmem:[%s5711_s17 + $0xc44] ss:$56 sps:$4 sm:$0xff]  }
  0x80   : > { %3210 = vmatpush1.bf16.msra.mxu1 %v4721_v20  ;;  %3253 = vmatpush1.bf16.msra.mxu0 %v4724_v21  ;;  %v4775_v56 = vld [vmem:[%s5711_s17 + $0x540] ss:$56 sps:$4 sm:$0xff]   ;;  %v4783_v58 = vld [vmem:[%s5711_s17 + $0x5b4] ss:$56 sps:$4 sm:$0xff]   ;;  %v4781_v60 = vld [vmem:[%s5711_s17 + $0x5b0] ss:$56 sps:$4 sm:$0xff]  }
  0x81   : > { %3211 = vmatprep.subr.bf16.mxu1 %v4729_v22  ;;  %3254 = vmatprep.subr.bf16.mxu0 %v4732_v23  ;;  %v4778_v57 = vld [vmem:[%s5711_s17 + $0xc40] ss:$56 sps:$4 sm:$0xff]   ;;  %v4786_v59 = vld [vmem:[%s5711_s17 + $0xcb4] ss:$56 sps:$4 sm:$0xff]   ;;  %v4784_v61 = vld [vmem:[%s5711_s17 + $0xcb0] ss:$56 sps:$4 sm:$0xff]  }
  0x82   : > { %v4789_v62 = vld [vmem:[%s5711_s17 + $0x624] ss:$56 sps:$4 sm:$0xff]   ;;  %v4787_v0 = vld [vmem:[%s5711_s17 + $0x620] ss:$56 sps:$4 sm:$0xff]   ;;  %v4795_v2 = vld [vmem:[%s5711_s17 + $0x694] ss:$56 sps:$4 sm:$0xff]  }
  0x83   : > { %v4792_v63 = vld [vmem:[%s5711_s17 + $0xd24] ss:$56 sps:$4 sm:$0xff]   ;;  %v4790_v1 = vld [vmem:[%s5711_s17 + $0xd20] ss:$56 sps:$4 sm:$0xff]   ;;  %v4798_v3 = vld [vmem:[%s5711_s17 + $0xd94] ss:$56 sps:$4 sm:$0xff]  }
  0x84   : > { %3212 = vmatpush1.bf16.msra.mxu1 %v4727_v24  ;;  %3255 = vmatpush1.bf16.msra.mxu0 %v4730_v25  ;;  %v4793_v4 = vld [vmem:[%s5711_s17 + $0x690] ss:$56 sps:$4 sm:$0xff]   ;;  %v4801_v6 = vld [vmem:[%s5711_s17 + $0xc] ss:$56 sps:$4 sm:$0xff]   ;;  %v5786_v9 = vshrl.u32 %v294_v8, 7  ;;  %p280_p4 = scmp.lt.s32.totalorder %s279_s28, 195 }
  0x85   : > { %3213 = vmatprep.subr.bf16.mxu1 %v4735_v26  ;;  %3256 = vmatprep.subr.bf16.mxu0 %v4738_v27  ;;  %v4796_v5 = vld [vmem:[%s5711_s17 + $0xd90] ss:$56 sps:$4 sm:$0xff]   ;;  %v4804_v7 = vld [vmem:[%s5711_s17 + $0x14] ss:$56 sps:$4 sm:$0xff]   ;;  %v292_v12 = vld [vmem:[#allocation4] sm:$0xf] }
  0x86   : > { %v5789_v10 = vsub.s32 0, %v5786_v9  ;;  %v5792_v11 = vsub.s32 2, %v5786_v9  ;;  %v5795_v13 = vsub.s32 1, %v5786_v9  ;;  %v5798_v14 = vsub.s32 3, %v5786_v9  ;;  %v4838_v8 = vld [vmem:[%s5711_s17 + $0x2b0] ss:$56 sps:$4 sm:$0xff]  }
  0x87   : > { %s6344_s28 = smov (!%p280_p4, %s279_s28), 195  ;;  %s6072_s21 = scalar_lea.vmem [#allocation7], %s6061_s9 }
  0x88   : > { %3214 = vmatpush1.bf16.msra.mxu1 %v4733_v28  ;;  %3257 = vmatpush1.bf16.msra.mxu0 %v4736_v29  ;;  %v297_v15 = vrot.slane %v292_v12, %v5789_v10  ;;  %v305_v16 = vrot.slane %v292_v12, %v5792_v11  ;;  %v301_v17 = vrot.slane %v292_v12, %v5795_v13  ;;  %s6041_s25 = scalar_lea.vmem %s6318_s4, %s6344_s28  ;;  %p6338_p9 = scmp.ne.s32.totalorder %s6326_s29, 0 }
  0x89   : > { %3215 = vmatprep.subr.bf16.mxu1 %v4741_v30  ;;  %3258 = vmatprep.subr.bf16.mxu0 %v4744_v31  ;;  %v309_v18 = vrot.slane %v292_v12, %v5798_v14  ;;  %v4843_v12 = vld [vmem:[%s5711_s17 + $0x31c] ss:$56 sps:$4 sm:$0xff]   ;;  %s4570_s27 = smul.u32 (%p6338_p9), 56, %s5563_s22 }
  0x8b   : > { %s3940_s11 = scalar_lea.vmem (%p6338_p9), %s6319_s5, %s4570_s27 }
  0x8c   : > { %3216 = vmatpush1.bf16.msra.mxu1 %v4739_v32  ;;  %3259 = vmatpush1.bf16.msra.mxu0 %v4742_v33 }
  0x8d   : > { %3217 = vmatprep.subr.bf16.mxu1 %v4747_v34  ;;  %3260 = vmatprep.subr.bf16.mxu0 %v4750_v35 }
  0x90   : > { %3218 = vmatpush1.bf16.msra.mxu1 %v4745_v36  ;;  %3261 = vmatpush1.bf16.msra.mxu0 %v4748_v37 }
  0x91   : > { %3219 = vmatprep.subr.bf16.mxu1 %v4753_v38  ;;  %3262 = vmatprep.subr.bf16.mxu0 %v4756_v39 }
  0x94   : > { %3220 = vmatpush1.bf16.msra.mxu1 %v4751_v40  ;;  %3263 = vmatpush1.bf16.msra.mxu0 %v4754_v41 }
  0x95   : > { %3221 = vmatprep.subr.bf16.mxu1 %v4759_v42  ;;  %3264 = vmatprep.subr.bf16.mxu0 %v4762_v43 }
  0x98   : > { %3222 = vmatpush1.bf16.msra.mxu1 %v4757_v44  ;;  %3265 = vmatpush1.bf16.msra.mxu0 %v4760_v45 }
  0x99   : > { %3223 = vmatprep.subr.bf16.mxu1 %v4765_v46  ;;  %3266 = vmatprep.subr.bf16.mxu0 %v4768_v47  ;;  %v4799_v47 = vld [vmem:[%s5711_s17 + $0x8] ss:$56 sps:$4 sm:$0xff]  }
  0x9c   : > { %3224 = vmatpush1.bf16.msra.mxu1 %v4763_v48  ;;  %3267 = vmatpush1.bf16.msra.mxu0 %v4766_v49  ;;  %v4802_v48 = vld [vmem:[%s5711_s17 + $0x10] ss:$56 sps:$4 sm:$0xff]   ;;  %v4807_v49 = vld [vmem:[%s5711_s17 + $0x7c] ss:$56 sps:$4 sm:$0xff]  }
  0x9d   : > { %3225 = vmatprep.subr.bf16.mxu1 %v4771_v50  ;;  %3268 = vmatprep.subr.bf16.mxu0 %v4774_v51  ;;  %v4810_v50 = vld [vmem:[%s5711_s17 + $0x84] ss:$56 sps:$4 sm:$0xff]   ;;  %v4805_v51 = vld [vmem:[%s5711_s17 + $0x78] ss:$56 sps:$4 sm:$0xff]  }
  0xa0   : > { %3226 = vmatpush1.bf16.msra.mxu1 %v4769_v52  ;;  %3269 = vmatpush1.bf16.msra.mxu0 %v4772_v53  ;;  %v4808_v52 = vld [vmem:[%s5711_s17 + $0x80] ss:$56 sps:$4 sm:$0xff]   ;;  %v4813_v53 = vld [vmem:[%s5711_s17 + $0xec] ss:$56 sps:$4 sm:$0xff]  }
  0xa1   : > { %3227 = vmatprep.subr.bf16.mxu1 %v4777_v54  ;;  %3270 = vmatprep.subr.bf16.mxu0 %v4780_v55  ;;  %v4816_v54 = vld [vmem:[%s5711_s17 + $0xf4] ss:$56 sps:$4 sm:$0xff]   ;;  %v4811_v55 = vld [vmem:[%s5711_s17 + $0xe8] ss:$56 sps:$4 sm:$0xff]  }
  0xa4   : > { %3228 = vmatpush1.bf16.msra.mxu1 %v4775_v56  ;;  %3271 = vmatpush1.bf16.msra.mxu0 %v4778_v57  ;;  %v4814_v56 = vld [vmem:[%s5711_s17 + $0xf0] ss:$56 sps:$4 sm:$0xff]   ;;  %v4819_v57 = vld [vmem:[%s5711_s17 + $0x15c] ss:$56 sps:$4 sm:$0xff]  }
  0xa5   : > { %3229 = vmatprep.subr.bf16.mxu1 %v4783_v58  ;;  %3272 = vmatprep.subr.bf16.mxu0 %v4786_v59  ;;  %v4822_v58 = vld [vmem:[%s5711_s17 + $0x164] ss:$56 sps:$4 sm:$0xff]   ;;  %v4817_v59 = vld [vmem:[%s5711_s17 + $0x158] ss:$56 sps:$4 sm:$0xff]  }
  0xa8   : > { %3230 = vmatpush1.bf16.msra.mxu1 %v4781_v60  ;;  %3273 = vmatpush1.bf16.msra.mxu0 %v4784_v61  ;;  %v4820_v60 = vld [vmem:[%s5711_s17 + $0x160] ss:$56 sps:$4 sm:$0xff]   ;;  %v4825_v61 = vld [vmem:[%s5711_s17 + $0x1cc] ss:$56 sps:$4 sm:$0xff]  }
  0xa9   : > { %3231 = vmatprep.subr.bf16.mxu1 %v4789_v62  ;;  %3274 = vmatprep.subr.bf16.mxu0 %v4792_v63  ;;  %v4828_v62 = vld [vmem:[%s5711_s17 + $0x1d4] ss:$56 sps:$4 sm:$0xff]   ;;  %v4823_v63 = vld [vmem:[%s5711_s17 + $0x1c8] ss:$56 sps:$4 sm:$0xff]  }
  0xac   : > { %3232 = vmatpush1.bf16.msra.mxu1 %v4787_v0  ;;  %3275 = vmatpush1.bf16.msra.mxu0 %v4790_v1  ;;  %v4826_v0 = vld [vmem:[%s5711_s17 + $0x1d0] ss:$56 sps:$4 sm:$0xff]   ;;  %v4831_v1 = vld [vmem:[%s5711_s17 + $0x23c] ss:$56 sps:$4 sm:$0xff]  }
  0xad   : > { %3233 = vmatprep.subr.bf16.mxu1 %v4795_v2  ;;  %3276 = vmatprep.subr.bf16.mxu0 %v4798_v3  ;;  %v4834_v2 = vld [vmem:[%s5711_s17 + $0x244] ss:$56 sps:$4 sm:$0xff]   ;;  %v4829_v3 = vld [vmem:[%s5711_s17 + $0x238] ss:$56 sps:$4 sm:$0xff]  }
  0xb0   : > { %3234 = vmatpush1.bf16.msra.mxu1 %v4793_v4  ;;  %3277 = vmatpush1.bf16.msra.mxu0 %v4796_v5  ;;  %v4832_v4 = vld [vmem:[%s5711_s17 + $0x240] ss:$56 sps:$4 sm:$0xff]   ;;  %v4837_v5 = vld [vmem:[%s5711_s17 + $0x2ac] ss:$56 sps:$4 sm:$0xff]  }
  0xb1   : > { %3289 = vmatprep.subr.bf16.mxu1 %v4801_v6  ;;  %3375 = vmatprep.subr.bf16.mxu0 %v4804_v7  ;;  %v4840_v6 = vld [vmem:[%s5711_s17 + $0x2b4] ss:$56 sps:$4 sm:$0xff]   ;;  %v4835_v7 = vld [vmem:[%s5711_s17 + $0x2a8] ss:$56 sps:$4 sm:$0xff]  }
 0x146   : > { %v377_v19 = vpop.f32.mrb[0].mxu0  ;;  %v420_v20 = vpop.f32.mrb[0].mxu1 }
 0x147   : > { %v378_v21 = vadd.f32 %v377_v19, %v297_v15  ;;  %v421_v22 = vadd.f32 %v420_v20, %v305_v16  ;;  %v379_v23 = vpop.f32.mrb[1].mxu0  ;;  %v422_v24 = vpop.f32.mrb[1].mxu1  ;;  %v4852_v19 = vld [vmem:[%s5711_s17 + $0x394] ss:$56 sps:$4 sm:$0xff]   ;;  %v4847_v20 = vld [vmem:[%s5711_s17 + $0x388] ss:$56 sps:$4 sm:$0xff]  }
 0x148   : > { %v380_v25 = vadd.f32 %v379_v23, %v301_v17  ;;  %v423_v26 = vadd.f32 %v422_v24, %v309_v18  ;;  %v381_v27 = vpop.f32.mrb[2].mxu0  ;;  %v424_v28 = vpop.f32.mrb[2].mxu1  ;;  %v4858_v23 = vld [vmem:[%s5711_s17 + $0x404] ss:$56 sps:$4 sm:$0xff]   ;;  %v4853_v24 = vld [vmem:[%s5711_s17 + $0x3f8] ss:$56 sps:$4 sm:$0xff]  }
 0x149   : > { %v382_v29 = vadd.f32 %v381_v27, %v297_v15  ;;  %v425_v30 = vadd.f32 %v424_v28, %v305_v16  ;;  %v383_v31 = vpop.f32.mrb[3].mxu0  ;;  %v426_v32 = vpop.f32.mrb[3].mxu1  ;;  %v429_v35 = vmax.f32 %v378_v21, 0.0  ;;  %v431_v36 = vmax.f32 %v421_v22, 0.0  ;;  %v4846_v15 = vld [vmem:[%s5711_s17 + $0x324] ss:$56 sps:$4 sm:$0xff]  }
 0x14a   : > { %v384_v33 = vadd.f32 %v383_v31, %v301_v17  ;;  %v427_v34 = vadd.f32 %v426_v32, %v309_v18  ;;  %v430_v39 = vmax.f32 %v380_v25, 0.0  ;;  %v432_v40 = vmax.f32 %v423_v26, 0.0  ;;  %v4841_v16 = vld [vmem:[%s5711_s17 + $0x318] ss:$56 sps:$4 sm:$0xff]   ;;  %v4849_v18 = vld [vmem:[%s5711_s17 + $0x38c] ss:$56 sps:$4 sm:$0xff]  }
 0x14b   : > { %v433_v37 = vmax.f32 %v382_v29, 0.0  ;;  %v435_v38 = vmax.f32 %v425_v30, 0.0  ;;  %v4844_v17 = vld [vmem:[%s5711_s17 + $0x320] ss:$56 sps:$4 sm:$0xff]   ;;  %v4850_v21 = vld [vmem:[%s5711_s17 + $0x390] ss:$56 sps:$4 sm:$0xff]  }
 0x14c   : > { %v434_v41 = vmax.f32 %v384_v33, 0.0  ;;  %v436_v42 = vmax.f32 %v427_v34, 0.0  ;;  %v4855_v22 = vld [vmem:[%s5711_s17 + $0x3fc] ss:$56 sps:$4 sm:$0xff]   ;;  %v4856_v25 = vld [vmem:[%s5711_s17 + $0x400] ss:$56 sps:$4 sm:$0xff]  }
 0x14d   : > { %v5804_v43 = vpack.c.bf16 %v433_v37, %v429_v35  ;;  %v5806_v44 = vpack.c.bf16 %v435_v38, %v431_v36  ;;  %v4861_v26 = vld [vmem:[%s5711_s17 + $0x46c] ss:$56 sps:$4 sm:$0xff]   ;;  %v4859_v28 = vld [vmem:[%s5711_s17 + $0x468] ss:$56 sps:$4 sm:$0xff]   ;;  %v4867_v30 = vld [vmem:[%s5711_s17 + $0x4dc] ss:$56 sps:$4 sm:$0xff]  }
 0x14e   : > { %v5808_v45 = vpack.c.bf16 %v434_v41, %v430_v39  ;;  %v5810_v46 = vpack.c.bf16 %v436_v42, %v432_v40  ;;  %v4864_v27 = vld [vmem:[%s5711_s17 + $0x474] ss:$56 sps:$4 sm:$0xff]   ;;  %v4862_v29 = vld [vmem:[%s5711_s17 + $0x470] ss:$56 sps:$4 sm:$0xff]   ;;  %v4870_v31 = vld [vmem:[%s5711_s17 + $0x4e4] ss:$56 sps:$4 sm:$0xff]  }
 0x14f   : > { %v4865_v32 = vld [vmem:[%s5711_s17 + $0x4d8] ss:$56 sps:$4 sm:$0xff]   ;;  %v4873_v34 = vld [vmem:[%s5711_s17 + $0x54c] ss:$56 sps:$4 sm:$0xff]   ;;  %v4871_v36 = vld [vmem:[%s5711_s17 + $0x548] ss:$56 sps:$4 sm:$0xff]  }
 0x150   : > { %3235 = vmatprep.mubr.bf16.mxu1 %v5808_v45  ;;  %3278 = vmatprep.mubr.bf16.mxu0 %v5810_v46  ;;  %v4868_v33 = vld [vmem:[%s5711_s17 + $0x4e0] ss:$56 sps:$4 sm:$0xff]   ;;  %v4876_v35 = vld [vmem:[%s5711_s17 + $0x554] ss:$56 sps:$4 sm:$0xff]   ;;  %v4874_v37 = vld [vmem:[%s5711_s17 + $0x550] ss:$56 sps:$4 sm:$0xff]  }
 0x151   : > { %3236 = vmatmul.mubr.bf16.vlgmr.msra.gmra.mrb[4].mxu1 %v5804_v43  ;;  %3279 = vmatmul.mubr.bf16.vlgmr.msra.gmra.mrb[4].mxu0 %v5806_v44  ;;  %v4879_v38 = vld [vmem:[%s5711_s17 + $0x5bc] ss:$56 sps:$4 sm:$0xff]   ;;  %v4877_v40 = vld [vmem:[%s5711_s17 + $0x5b8] ss:$56 sps:$4 sm:$0xff]   ;;  %v4885_v42 = vld [vmem:[%s5711_s17 + $0x62c] ss:$56 sps:$4 sm:$0xff]  }
 0x152   : > { %3290 = vmatpush1.bf16.msra.mxu1 %v4799_v47  ;;  %3376 = vmatpush1.bf16.msra.mxu0 %v4802_v48  ;;  %v4882_v39 = vld [vmem:[%s5711_s17 + $0x5c4] ss:$56 sps:$4 sm:$0xff]   ;;  %v4880_v41 = vld [vmem:[%s5711_s17 + $0x5c0] ss:$56 sps:$4 sm:$0xff]   ;;  %v4888_v47 = vld [vmem:[%s5711_s17 + $0x634] ss:$56 sps:$4 sm:$0xff]  }
 0x153   : > { %3321 = vmatprep.mubr.bf16.mxu1 %v5808_v45  ;;  %3407 = vmatprep.mubr.bf16.mxu0 %v5808_v45  ;;  %v4883_v48 = vld [vmem:[%s5711_s17 + $0x628] ss:$56 sps:$4 sm:$0xff]  }
 0x154   : > { %3291 = vmatprep.subr.bf16.mxu1 %v4807_v49  ;;  %3377 = vmatprep.subr.bf16.mxu0 %v4810_v50  ;;  %v4886_v49 = vld [vmem:[%s5711_s17 + $0x630] ss:$56 sps:$4 sm:$0xff]   ;;  %v4891_v50 = vld [vmem:[%s5711_s17 + $0x69c] ss:$56 sps:$4 sm:$0xff]  }
 0x156   : > { %3292 = vmatpush1.bf16.msra.mxu1 %v4805_v51  ;;  %3378 = vmatpush1.bf16.msra.mxu0 %v4808_v52  ;;  %v4894_v51 = vld [vmem:[%s5711_s17 + $0x6a4] ss:$56 sps:$4 sm:$0xff]   ;;  %v4889_v52 = vld [vmem:[%s5711_s17 + $0x698] ss:$56 sps:$4 sm:$0xff]  }
 0x157   : > { %3293 = vmatprep.subr.bf16.mxu1 %v4813_v53  ;;  %3379 = vmatprep.subr.bf16.mxu0 %v4816_v54  ;;  %v4892_v53 = vld [vmem:[%s5711_s17 + $0x6a0] ss:$56 sps:$4 sm:$0xff]   ;;  %v4897_v54 = vld [vmem:[%s5711_s17 + $0x70c] ss:$56 sps:$4 sm:$0xff]  }
 0x15a   : > { %3294 = vmatpush1.bf16.msra.mxu1 %v4811_v55  ;;  %3380 = vmatpush1.bf16.msra.mxu0 %v4814_v56  ;;  %v4900_v55 = vld [vmem:[%s5711_s17 + $0x714] ss:$56 sps:$4 sm:$0xff]   ;;  %v4895_v56 = vld [vmem:[%s5711_s17 + $0x708] ss:$56 sps:$4 sm:$0xff]  }
 0x15b   : > { %3295 = vmatprep.subr.bf16.mxu1 %v4819_v57  ;;  %3381 = vmatprep.subr.bf16.mxu0 %v4822_v58  ;;  %v4898_v57 = vld [vmem:[%s5711_s17 + $0x710] ss:$56 sps:$4 sm:$0xff]   ;;  %v4903_v58 = vld [vmem:[%s5711_s17 + $0x77c] ss:$56 sps:$4 sm:$0xff]  }
 0x15e   : > { %3296 = vmatpush1.bf16.msra.mxu1 %v4817_v59  ;;  %3382 = vmatpush1.bf16.msra.mxu0 %v4820_v60  ;;  %v4906_v59 = vld [vmem:[%s5711_s17 + $0x784] ss:$56 sps:$4 sm:$0xff]   ;;  %v4901_v60 = vld [vmem:[%s5711_s17 + $0x778] ss:$56 sps:$4 sm:$0xff]  }
 0x15f   : > { %3297 = vmatprep.subr.bf16.mxu1 %v4825_v61  ;;  %3383 = vmatprep.subr.bf16.mxu0 %v4828_v62  ;;  %v4904_v61 = vld [vmem:[%s5711_s17 + $0x780] ss:$56 sps:$4 sm:$0xff]   ;;  %v4909_v62 = vld [vmem:[%s5711_s17 + $0x7ec] ss:$56 sps:$4 sm:$0xff]  }
 0x162   : > { %3298 = vmatpush1.bf16.msra.mxu1 %v4823_v63  ;;  %3384 = vmatpush1.bf16.msra.mxu0 %v4826_v0  ;;  %v4912_v63 = vld [vmem:[%s5711_s17 + $0x7f4] ss:$56 sps:$4 sm:$0xff]   ;;  %v4907_v0 = vld [vmem:[%s5711_s17 + $0x7e8] ss:$56 sps:$4 sm:$0xff]  }
 0x163   : > { %3299 = vmatprep.subr.bf16.mxu1 %v4831_v1  ;;  %3385 = vmatprep.subr.bf16.mxu0 %v4834_v2  ;;  %v4910_v1 = vld [vmem:[%s5711_s17 + $0x7f0] ss:$56 sps:$4 sm:$0xff]   ;;  %v4915_v2 = vld [vmem:[%s5711_s17 + $0x85c] ss:$56 sps:$4 sm:$0xff]  }
 0x166   : > { %3300 = vmatpush1.bf16.msra.mxu1 %v4829_v3  ;;  %3386 = vmatpush1.bf16.msra.mxu0 %v4832_v4  ;;  %v4918_v3 = vld [vmem:[%s5711_s17 + $0x864] ss:$56 sps:$4 sm:$0xff]   ;;  %v4913_v4 = vld [vmem:[%s5711_s17 + $0x858] ss:$56 sps:$4 sm:$0xff]  }
 0x167   : > { %3301 = vmatprep.subr.bf16.mxu1 %v4837_v5  ;;  %3387 = vmatprep.subr.bf16.mxu0 %v4840_v6  ;;  %v4916_v5 = vld [vmem:[%s5711_s17 + $0x860] ss:$56 sps:$4 sm:$0xff]   ;;  %v4921_v6 = vld [vmem:[%s5711_s17 + $0x8cc] ss:$56 sps:$4 sm:$0xff]  }
 0x16a   : > { %3302 = vmatpush1.bf16.msra.mxu1 %v4835_v7  ;;  %3388 = vmatpush1.bf16.msra.mxu0 %v4838_v8  ;;  %v4924_v7 = vld [vmem:[%s5711_s17 + $0x8d4] ss:$56 sps:$4 sm:$0xff]   ;;  %v4919_v8 = vld [vmem:[%s5711_s17 + $0x8c8] ss:$56 sps:$4 sm:$0xff]  }
 0x16b   : > { %3303 = vmatprep.subr.bf16.mxu1 %v4843_v12  ;;  %3389 = vmatprep.subr.bf16.mxu0 %v4846_v15  ;;  %v4922_v12 = vld [vmem:[%s5711_s17 + $0x8d0] ss:$56 sps:$4 sm:$0xff]   ;;  %v4927_v15 = vld [vmem:[%s5711_s17 + $0x93c] ss:$56 sps:$4 sm:$0xff]  }
 0x16e   : > { %3304 = vmatpush1.bf16.msra.mxu1 %v4841_v16  ;;  %3390 = vmatpush1.bf16.msra.mxu0 %v4844_v17  ;;  %v4930_v16 = vld [vmem:[%s5711_s17 + $0x944] ss:$56 sps:$4 sm:$0xff]   ;;  %v4925_v17 = vld [vmem:[%s5711_s17 + $0x938] ss:$56 sps:$4 sm:$0xff]  }
 0x16f   : > { %3305 = vmatprep.subr.bf16.mxu1 %v4849_v18  ;;  %3391 = vmatprep.subr.bf16.mxu0 %v4852_v19  ;;  %v4928_v18 = vld [vmem:[%s5711_s17 + $0x940] ss:$56 sps:$4 sm:$0xff]   ;;  %v4933_v19 = vld [vmem:[%s5711_s17 + $0x9ac] ss:$56 sps:$4 sm:$0xff]  }
 0x172   : > { %3306 = vmatpush1.bf16.msra.mxu1 %v4847_v20  ;;  %3392 = vmatpush1.bf16.msra.mxu0 %v4850_v21  ;;  %v4936_v20 = vld [vmem:[%s5711_s17 + $0x9b4] ss:$56 sps:$4 sm:$0xff]   ;;  %v4931_v21 = vld [vmem:[%s5711_s17 + $0x9a8] ss:$56 sps:$4 sm:$0xff]  }
 0x173   : > { %3307 = vmatprep.subr.bf16.mxu1 %v4855_v22  ;;  %3393 = vmatprep.subr.bf16.mxu0 %v4858_v23  ;;  %v4934_v22 = vld [vmem:[%s5711_s17 + $0x9b0] ss:$56 sps:$4 sm:$0xff]   ;;  %v4939_v23 = vld [vmem:[%s5711_s17 + $0xa1c] ss:$56 sps:$4 sm:$0xff]  }
 0x176   : > { %3308 = vmatpush1.bf16.msra.mxu1 %v4853_v24  ;;  %3394 = vmatpush1.bf16.msra.mxu0 %v4856_v25  ;;  %v4942_v24 = vld [vmem:[%s5711_s17 + $0xa24] ss:$56 sps:$4 sm:$0xff]   ;;  %v4937_v25 = vld [vmem:[%s5711_s17 + $0xa18] ss:$56 sps:$4 sm:$0xff]  }
 0x177   : > { %3309 = vmatprep.subr.bf16.mxu1 %v4861_v26  ;;  %3395 = vmatprep.subr.bf16.mxu0 %v4864_v27  ;;  %v4940_v26 = vld [vmem:[%s5711_s17 + $0xa20] ss:$56 sps:$4 sm:$0xff]   ;;  %v4945_v27 = vld [vmem:[%s5711_s17 + $0xa8c] ss:$56 sps:$4 sm:$0xff]  }
 0x17a   : > { %3310 = vmatpush1.bf16.msra.mxu1 %v4859_v28  ;;  %3396 = vmatpush1.bf16.msra.mxu0 %v4862_v29  ;;  %v4948_v28 = vld [vmem:[%s5711_s17 + $0xa94] ss:$56 sps:$4 sm:$0xff]   ;;  %v4943_v29 = vld [vmem:[%s5711_s17 + $0xa88] ss:$56 sps:$4 sm:$0xff]  }
 0x17b   : > { %3311 = vmatprep.subr.bf16.mxu1 %v4867_v30  ;;  %3397 = vmatprep.subr.bf16.mxu0 %v4870_v31  ;;  %v4946_v30 = vld [vmem:[%s5711_s17 + $0xa90] ss:$56 sps:$4 sm:$0xff]   ;;  %v4951_v31 = vld [vmem:[%s5711_s17 + $0xafc] ss:$56 sps:$4 sm:$0xff]  }
 0x17e   : > { %3312 = vmatpush1.bf16.msra.mxu1 %v4865_v32  ;;  %3398 = vmatpush1.bf16.msra.mxu0 %v4868_v33  ;;  %v4954_v32 = vld [vmem:[%s5711_s17 + $0xb04] ss:$56 sps:$4 sm:$0xff]   ;;  %v4949_v33 = vld [vmem:[%s5711_s17 + $0xaf8] ss:$56 sps:$4 sm:$0xff]  }
 0x17f   : > { %3313 = vmatprep.subr.bf16.mxu1 %v4873_v34  ;;  %3399 = vmatprep.subr.bf16.mxu0 %v4876_v35  ;;  %v4952_v34 = vld [vmem:[%s5711_s17 + $0xb00] ss:$56 sps:$4 sm:$0xff]   ;;  %v4957_v35 = vld [vmem:[%s5711_s17 + $0xb6c] ss:$56 sps:$4 sm:$0xff]  }
 0x182   : > { %3314 = vmatpush1.bf16.msra.mxu1 %v4871_v36  ;;  %3400 = vmatpush1.bf16.msra.mxu0 %v4874_v37  ;;  %v4960_v36 = vld [vmem:[%s5711_s17 + $0xb74] ss:$56 sps:$4 sm:$0xff]   ;;  %v4955_v37 = vld [vmem:[%s5711_s17 + $0xb68] ss:$56 sps:$4 sm:$0xff]  }
 0x183   : > { %3315 = vmatprep.subr.bf16.mxu1 %v4879_v38  ;;  %3401 = vmatprep.subr.bf16.mxu0 %v4882_v39  ;;  %v4958_v38 = vld [vmem:[%s5711_s17 + $0xb70] ss:$56 sps:$4 sm:$0xff]   ;;  %v4963_v39 = vld [vmem:[%s5711_s17 + $0xbdc] ss:$56 sps:$4 sm:$0xff]  }
 0x186   : > { %3316 = vmatpush1.bf16.msra.mxu1 %v4877_v40  ;;  %3402 = vmatpush1.bf16.msra.mxu0 %v4880_v41  ;;  %v4966_v40 = vld [vmem:[%s5711_s17 + $0xbe4] ss:$56 sps:$4 sm:$0xff]   ;;  %v4961_v41 = vld [vmem:[%s5711_s17 + $0xbd8] ss:$56 sps:$4 sm:$0xff]  }
 0x187   : > { %3317 = vmatprep.subr.bf16.mxu1 %v4885_v42  ;;  %3403 = vmatprep.subr.bf16.mxu0 %v4888_v47  ;;  %v4964_v42 = vld [vmem:[%s5711_s17 + $0xbe0] ss:$56 sps:$4 sm:$0xff]   ;;  %v4969_v47 = vld [vmem:[%s5711_s17 + $0xc4c] ss:$56 sps:$4 sm:$0xff]  }
 0x18a   : > { %3318 = vmatpush1.bf16.msra.mxu1 %v4883_v48  ;;  %3404 = vmatpush1.bf16.msra.mxu0 %v4886_v49  ;;  %v4972_v48 = vld [vmem:[%s5711_s17 + $0xc54] ss:$56 sps:$4 sm:$0xff]   ;;  %v4967_v49 = vld [vmem:[%s5711_s17 + $0xc48] ss:$56 sps:$4 sm:$0xff]  }
 0x18b   : > { %3319 = vmatprep.subr.bf16.mxu1 %v4891_v50  ;;  %3405 = vmatprep.subr.bf16.mxu0 %v4894_v51  ;;  %v4970_v50 = vld [vmem:[%s5711_s17 + $0xc50] ss:$56 sps:$4 sm:$0xff]   ;;  %v4975_v51 = vld [vmem:[%s5711_s17 + $0xcbc] ss:$56 sps:$4 sm:$0xff]  }
 0x18e   : > { %3320 = vmatpush1.bf16.msra.mxu1 %v4889_v52  ;;  %3406 = vmatpush1.bf16.msra.mxu0 %v4892_v53  ;;  %v4978_v52 = vld [vmem:[%s5711_s17 + $0xcc4] ss:$56 sps:$4 sm:$0xff]   ;;  %v4973_v53 = vld [vmem:[%s5711_s17 + $0xcb8] ss:$56 sps:$4 sm:$0xff]  }
 0x18f   : > { %3332 = vmatprep.subr.bf16.mxu1 %v4897_v54  ;;  %3418 = vmatprep.subr.bf16.mxu0 %v4900_v55  ;;  %v4976_v54 = vld [vmem:[%s5711_s17 + $0xcc0] ss:$56 sps:$4 sm:$0xff]   ;;  %v4981_v55 = vld [vmem:[%s5711_s17 + $0xd2c] ss:$56 sps:$4 sm:$0xff]  }
 0x191   : > { %3322 = vmatmul.mubr.bf16.vlgmr.msra.gmra.mrb[8].mxu1 %v5804_v43  ;;  %3408 = vmatmul.mubr.bf16.vlgmr.msra.gmra.mrb[8].mxu0 %v5804_v43 }
 0x192   : > { %3333 = vmatpush1.bf16.msra.mxu1 %v4895_v56  ;;  %3364 = vmatprep.mubr.bf16.mxu1 %v5810_v46  ;;  %v4984_v56 = vld [vmem:[%s5711_s17 + $0xd34] ss:$56 sps:$4 sm:$0xff]  }
 0x193   : > { %3419 = vmatpush1.bf16.msra.mxu0 %v4898_v57  ;;  %3450 = vmatprep.mubr.bf16.mxu0 %v5810_v46  ;;  %v4979_v57 = vld [vmem:[%s5711_s17 + $0xd28] ss:$56 sps:$4 sm:$0xff]  }
 0x194   : > { %3334 = vmatprep.subr.bf16.mxu1 %v4903_v58  ;;  %3420 = vmatprep.subr.bf16.mxu0 %v4906_v59  ;;  %v4982_v58 = vld [vmem:[%s5711_s17 + $0xd30] ss:$56 sps:$4 sm:$0xff]   ;;  %v4987_v59 = vld [vmem:[%s5711_s17 + $0xd9c] ss:$56 sps:$4 sm:$0xff]  }
 0x196   : > { %3335 = vmatpush1.bf16.msra.mxu1 %v4901_v60  ;;  %v4990_v60 = vld [vmem:[%s5711_s17 + $0xda4] ss:$56 sps:$4 sm:$0xff]  }
 0x197   : > { %3421 = vmatpush1.bf16.msra.mxu0 %v4904_v61  ;;  %3336 = vmatprep.subr.bf16.mxu1 %v4909_v62  ;;  %v4985_v61 = vld [vmem:[%s5711_s17 + $0xd98] ss:$56 sps:$4 sm:$0xff]  }
 0x198   : > { %3422 = vmatprep.subr.bf16.mxu0 %v4912_v63  ;;  %v4988_v62 = vld [vmem:[%s5711_s17 + $0xda0] ss:$56 sps:$4 sm:$0xff]   ;;  %v4993_v63 = vld [vmem:[%s5711_s17 + $0x1c] ss:$56 sps:$4 sm:$0xff]  }
 0x19a   : > { %3337 = vmatpush1.bf16.msra.mxu1 %v4907_v0  ;;  %v4996_v0 = vld [vmem:[%s5711_s17 + $0x24] ss:$56 sps:$4 sm:$0xff]  }
 0x19b   : > { %3423 = vmatpush1.bf16.msra.mxu0 %v4910_v1  ;;  %3338 = vmatprep.subr.bf16.mxu1 %v4915_v2  ;;  %v4991_v1 = vld [vmem:[%s5711_s17 + $0x18] ss:$56 sps:$4 sm:$0xff]  }
 0x19c   : > { %3424 = vmatprep.subr.bf16.mxu0 %v4918_v3  ;;  %v4994_v2 = vld [vmem:[%s5711_s17 + $0x20] ss:$56 sps:$4 sm:$0xff]   ;;  %v4999_v3 = vld [vmem:[%s5711_s17 + $0x8c] ss:$56 sps:$4 sm:$0xff]  }
 0x19e   : > { %3339 = vmatpush1.bf16.msra.mxu1 %v4913_v4  ;;  %v5002_v4 = vld [vmem:[%s5711_s17 + $0x94] ss:$56 sps:$4 sm:$0xff]  }
 0x19f   : > { %3425 = vmatpush1.bf16.msra.mxu0 %v4916_v5  ;;  %3340 = vmatprep.subr.bf16.mxu1 %v4921_v6  ;;  %v4997_v5 = vld [vmem:[%s5711_s17 + $0x88] ss:$56 sps:$4 sm:$0xff]  }
 0x1a0   : > { %3426 = vmatprep.subr.bf16.mxu0 %v4924_v7  ;;  %v5000_v6 = vld [vmem:[%s5711_s17 + $0x90] ss:$56 sps:$4 sm:$0xff]   ;;  %v5005_v7 = vld [vmem:[%s5711_s17 + $0xfc] ss:$56 sps:$4 sm:$0xff]  }
 0x1a2   : > { %3341 = vmatpush1.bf16.msra.mxu1 %v4919_v8  ;;  %v5008_v8 = vld [vmem:[%s5711_s17 + $0x104] ss:$56 sps:$4 sm:$0xff]  }
 0x1a3   : > { %3427 = vmatpush1.bf16.msra.mxu0 %v4922_v12  ;;  %3342 = vmatprep.subr.bf16.mxu1 %v4927_v15  ;;  %v5003_v12 = vld [vmem:[%s5711_s17 + $0xf8] ss:$56 sps:$4 sm:$0xff]  }
 0x1a4   : > { %3428 = vmatprep.subr.bf16.mxu0 %v4930_v16  ;;  %v5006_v15 = vld [vmem:[%s5711_s17 + $0x100] ss:$56 sps:$4 sm:$0xff]   ;;  %v5011_v16 = vld [vmem:[%s5711_s17 + $0x16c] ss:$56 sps:$4 sm:$0xff]  }
 0x1a6   : > { %3343 = vmatpush1.bf16.msra.mxu1 %v4925_v17  ;;  %v5014_v17 = vld [vmem:[%s5711_s17 + $0x174] ss:$56 sps:$4 sm:$0xff]  }
 0x1a7   : > { %3429 = vmatpush1.bf16.msra.mxu0 %v4928_v18  ;;  %3344 = vmatprep.subr.bf16.mxu1 %v4933_v19  ;;  %v5009_v18 = vld [vmem:[%s5711_s17 + $0x168] ss:$56 sps:$4 sm:$0xff]  }
 0x1a8   : > { %3430 = vmatprep.subr.bf16.mxu0 %v4936_v20  ;;  %v5012_v19 = vld [vmem:[%s5711_s17 + $0x170] ss:$56 sps:$4 sm:$0xff]   ;;  %v5017_v20 = vld [vmem:[%s5711_s17 + $0x1dc] ss:$56 sps:$4 sm:$0xff]  }
 0x1aa   : > { %3345 = vmatpush1.bf16.msra.mxu1 %v4931_v21  ;;  %v5020_v21 = vld [vmem:[%s5711_s17 + $0x1e4] ss:$56 sps:$4 sm:$0xff]  }
 0x1ab   : > { %3431 = vmatpush1.bf16.msra.mxu0 %v4934_v22  ;;  %3346 = vmatprep.subr.bf16.mxu1 %v4939_v23  ;;  %v5015_v22 = vld [vmem:[%s5711_s17 + $0x1d8] ss:$56 sps:$4 sm:$0xff]  }
 0x1ac   : > { %3432 = vmatprep.subr.bf16.mxu0 %v4942_v24  ;;  %v5018_v23 = vld [vmem:[%s5711_s17 + $0x1e0] ss:$56 sps:$4 sm:$0xff]   ;;  %v5023_v24 = vld [vmem:[%s5711_s17 + $0x24c] ss:$56 sps:$4 sm:$0xff]  }
 0x1ae   : > { %3347 = vmatpush1.bf16.msra.mxu1 %v4937_v25  ;;  %v5026_v25 = vld [vmem:[%s5711_s17 + $0x254] ss:$56 sps:$4 sm:$0xff]  }
 0x1af   : > { %3433 = vmatpush1.bf16.msra.mxu0 %v4940_v26  ;;  %3348 = vmatprep.subr.bf16.mxu1 %v4945_v27  ;;  %v5021_v26 = vld [vmem:[%s5711_s17 + $0x248] ss:$56 sps:$4 sm:$0xff]  }
 0x1b0   : > { %3434 = vmatprep.subr.bf16.mxu0 %v4948_v28  ;;  %v5024_v27 = vld [vmem:[%s5711_s17 + $0x250] ss:$56 sps:$4 sm:$0xff]   ;;  %v5029_v28 = vld [vmem:[%s5711_s17 + $0x2bc] ss:$56 sps:$4 sm:$0xff]  }
 0x1b2   : > { %3349 = vmatpush1.bf16.msra.mxu1 %v4943_v29  ;;  %v5032_v29 = vld [vmem:[%s5711_s17 + $0x2c4] ss:$56 sps:$4 sm:$0xff]  }
 0x1b3   : > { %3435 = vmatpush1.bf16.msra.mxu0 %v4946_v30  ;;  %3350 = vmatprep.subr.bf16.mxu1 %v4951_v31  ;;  %v5027_v30 = vld [vmem:[%s5711_s17 + $0x2b8] ss:$56 sps:$4 sm:$0xff]  }
 0x1b4   : > { %3436 = vmatprep.subr.bf16.mxu0 %v4954_v32  ;;  %v5030_v31 = vld [vmem:[%s5711_s17 + $0x2c0] ss:$56 sps:$4 sm:$0xff]   ;;  %v5035_v32 = vld [vmem:[%s5711_s17 + $0x32c] ss:$56 sps:$4 sm:$0xff]  }
 0x1b6   : > { %3351 = vmatpush1.bf16.msra.mxu1 %v4949_v33  ;;  %v5038_v33 = vld [vmem:[%s5711_s17 + $0x334] ss:$56 sps:$4 sm:$0xff]  }
 0x1b7   : > { %3437 = vmatpush1.bf16.msra.mxu0 %v4952_v34  ;;  %3352 = vmatprep.subr.bf16.mxu1 %v4957_v35  ;;  %v5033_v34 = vld [vmem:[%s5711_s17 + $0x328] ss:$56 sps:$4 sm:$0xff]  }
 0x1b8   : > { %3438 = vmatprep.subr.bf16.mxu0 %v4960_v36  ;;  %v5036_v35 = vld [vmem:[%s5711_s17 + $0x330] ss:$56 sps:$4 sm:$0xff]   ;;  %v5041_v36 = vld [vmem:[%s5711_s17 + $0x39c] ss:$56 sps:$4 sm:$0xff]  }
 0x1ba   : > { %3353 = vmatpush1.bf16.msra.mxu1 %v4955_v37  ;;  %v5044_v37 = vld [vmem:[%s5711_s17 + $0x3a4] ss:$56 sps:$4 sm:$0xff]  }
 0x1bb   : > { %3439 = vmatpush1.bf16.msra.mxu0 %v4958_v38  ;;  %3354 = vmatprep.subr.bf16.mxu1 %v4963_v39  ;;  %v5039_v38 = vld [vmem:[%s5711_s17 + $0x398] ss:$56 sps:$4 sm:$0xff]  }
 0x1bc   : > { %3440 = vmatprep.subr.bf16.mxu0 %v4966_v40  ;;  %v5042_v39 = vld [vmem:[%s5711_s17 + $0x3a0] ss:$56 sps:$4 sm:$0xff]   ;;  %v5047_v40 = vld [vmem:[%s5711_s17 + $0x40c] ss:$56 sps:$4 sm:$0xff]  }
 0x1be   : > { %3355 = vmatpush1.bf16.msra.mxu1 %v4961_v41  ;;  %v5050_v41 = vld [vmem:[%s5711_s17 + $0x414] ss:$56 sps:$4 sm:$0xff]  }
 0x1bf   : > { %3441 = vmatpush1.bf16.msra.mxu0 %v4964_v42  ;;  %3356 = vmatprep.subr.bf16.mxu1 %v4969_v47  ;;  %v5045_v42 = vld [vmem:[%s5711_s17 + $0x408] ss:$56 sps:$4 sm:$0xff]  }
 0x1c0   : > { %3442 = vmatprep.subr.bf16.mxu0 %v4972_v48  ;;  %v5048_v47 = vld [vmem:[%s5711_s17 + $0x410] ss:$56 sps:$4 sm:$0xff]   ;;  %v5053_v48 = vld [vmem:[%s5711_s17 + $0x47c] ss:$56 sps:$4 sm:$0xff]  }
 0x1c2   : > { %3357 = vmatpush1.bf16.msra.mxu1 %v4967_v49  ;;  %v5056_v49 = vld [vmem:[%s5711_s17 + $0x484] ss:$56 sps:$4 sm:$0xff]  }
 0x1c3   : > { %3443 = vmatpush1.bf16.msra.mxu0 %v4970_v50  ;;  %3358 = vmatprep.subr.bf16.mxu1 %v4975_v51  ;;  %v5051_v50 = vld [vmem:[%s5711_s17 + $0x478] ss:$56 sps:$4 sm:$0xff]  }
 0x1c4   : > { %3444 = vmatprep.subr.bf16.mxu0 %v4978_v52  ;;  %v5054_v51 = vld [vmem:[%s5711_s17 + $0x480] ss:$56 sps:$4 sm:$0xff]   ;;  %v5059_v52 = vld [vmem:[%s5711_s17 + $0x4ec] ss:$56 sps:$4 sm:$0xff]  }
 0x1c6   : > { %3359 = vmatpush1.bf16.msra.mxu1 %v4973_v53  ;;  %v5062_v53 = vld [vmem:[%s5711_s17 + $0x4f4] ss:$56 sps:$4 sm:$0xff]  }
 0x1c7   : > { %3445 = vmatpush1.bf16.msra.mxu0 %v4976_v54  ;;  %3360 = vmatprep.subr.bf16.mxu1 %v4981_v55  ;;  %v5057_v54 = vld [vmem:[%s5711_s17 + $0x4e8] ss:$56 sps:$4 sm:$0xff]  }
 0x1c8   : > { %3446 = vmatprep.subr.bf16.mxu0 %v4984_v56  ;;  %v5060_v55 = vld [vmem:[%s5711_s17 + $0x4f0] ss:$56 sps:$4 sm:$0xff]   ;;  %v5065_v56 = vld [vmem:[%s5711_s17 + $0x55c] ss:$56 sps:$4 sm:$0xff]  }
 0x1ca   : > { %3361 = vmatpush1.bf16.msra.mxu1 %v4979_v57  ;;  %v5068_v57 = vld [vmem:[%s5711_s17 + $0x564] ss:$56 sps:$4 sm:$0xff]  }
 0x1cb   : > { %3447 = vmatpush1.bf16.msra.mxu0 %v4982_v58  ;;  %3362 = vmatprep.subr.bf16.mxu1 %v4987_v59  ;;  %v5063_v58 = vld [vmem:[%s5711_s17 + $0x558] ss:$56 sps:$4 sm:$0xff]  }
 0x1cc   : > { %3448 = vmatprep.subr.bf16.mxu0 %v4990_v60  ;;  %v5066_v59 = vld [vmem:[%s5711_s17 + $0x560] ss:$56 sps:$4 sm:$0xff]   ;;  %v5071_v60 = vld [vmem:[%s5711_s17 + $0x5cc] ss:$56 sps:$4 sm:$0xff]  }
 0x1ce   : > { %3363 = vmatpush1.bf16.msra.mxu1 %v4985_v61  ;;  %v5074_v61 = vld [vmem:[%s5711_s17 + $0x5d4] ss:$56 sps:$4 sm:$0xff]  }
 0x1cf   : > { %3449 = vmatpush1.bf16.msra.mxu0 %v4988_v62  ;;  %3461 = vmatprep.subr.bf16.mxu1 %v4993_v63  ;;  %v5069_v62 = vld [vmem:[%s5711_s17 + $0x5c8] ss:$56 sps:$4 sm:$0xff]  }
 0x1d0   : > { %3547 = vmatprep.subr.bf16.mxu0 %v4996_v0  ;;  %v5072_v63 = vld [vmem:[%s5711_s17 + $0x5d0] ss:$56 sps:$4 sm:$0xff]   ;;  %v5077_v0 = vld [vmem:[%s5711_s17 + $0x63c] ss:$56 sps:$4 sm:$0xff]  }
 0x1d1   : > { %3365 = vmatmul.mubr.bf16.vlgmr.msra.gmra.mrb[8].mxu1 %v5806_v44 }
 0x1d2   : > { %3451 = vmatmul.mubr.bf16.vlgmr.msra.gmra.mrb[8].mxu0 %v5806_v44  ;;  %3462 = vmatpush1.bf16.msra.mxu1 %v4991_v1  ;;  %v5080_v1 = vld [vmem:[%s5711_s17 + $0x644] ss:$56 sps:$4 sm:$0xff]  }
 0x1d3   : > { %3493 = vmatprep.mubr.bf16.mxu1 %v5808_v45  ;;  %3548 = vmatpush1.bf16.msra.mxu0 %v4994_v2  ;;  %v5075_v2 = vld [vmem:[%s5711_s17 + $0x638] ss:$56 sps:$4 sm:$0xff]  }
 0x1d4   : > { %3579 = vmatprep.mubr.bf16.mxu0 %v5808_v45  ;;  %3463 = vmatprep.subr.bf16.mxu1 %v4999_v3  ;;  %v5078_v3 = vld [vmem:[%s5711_s17 + $0x640] ss:$56 sps:$4 sm:$0xff]  }
 0x1d5   : > { %3549 = vmatprep.subr.bf16.mxu0 %v5002_v4  ;;  %v5083_v4 = vld [vmem:[%s5711_s17 + $0x6ac] ss:$56 sps:$4 sm:$0xff]  }
 0x1d6   : > { %3464 = vmatpush1.bf16.msra.mxu1 %v4997_v5  ;;  %v5086_v5 = vld [vmem:[%s5711_s17 + $0x6b4] ss:$56 sps:$4 sm:$0xff]  }
 0x1d7   : > { %3550 = vmatpush1.bf16.msra.mxu0 %v5000_v6  ;;  %3465 = vmatprep.subr.bf16.mxu1 %v5005_v7  ;;  %v5081_v6 = vld [vmem:[%s5711_s17 + $0x6a8] ss:$56 sps:$4 sm:$0xff]  }
 0x1d8   : > { %3551 = vmatprep.subr.bf16.mxu0 %v5008_v8  ;;  %v5084_v7 = vld [vmem:[%s5711_s17 + $0x6b0] ss:$56 sps:$4 sm:$0xff]   ;;  %v5089_v8 = vld [vmem:[%s5711_s17 + $0x71c] ss:$56 sps:$4 sm:$0xff]  }
 0x1da   : > { %3466 = vmatpush1.bf16.msra.mxu1 %v5003_v12  ;;  %v5092_v12 = vld [vmem:[%s5711_s17 + $0x724] ss:$56 sps:$4 sm:$0xff]  }
 0x1db   : > { %3552 = vmatpush1.bf16.msra.mxu0 %v5006_v15  ;;  %3467 = vmatprep.subr.bf16.mxu1 %v5011_v16  ;;  %v5087_v15 = vld [vmem:[%s5711_s17 + $0x718] ss:$56 sps:$4 sm:$0xff]  }
 0x1dc   : > { %3553 = vmatprep.subr.bf16.mxu0 %v5014_v17  ;;  %v5090_v16 = vld [vmem:[%s5711_s17 + $0x720] ss:$56 sps:$4 sm:$0xff]   ;;  %v5095_v17 = vld [vmem:[%s5711_s17 + $0x78c] ss:$56 sps:$4 sm:$0xff]  }
 0x1de   : > { %3468 = vmatpush1.bf16.msra.mxu1 %v5009_v18  ;;  %v5098_v18 = vld [vmem:[%s5711_s17 + $0x794] ss:$56 sps:$4 sm:$0xff]  }
 0x1df   : > { %3554 = vmatpush1.bf16.msra.mxu0 %v5012_v19  ;;  %3469 = vmatprep.subr.bf16.mxu1 %v5017_v20  ;;  %v5093_v19 = vld [vmem:[%s5711_s17 + $0x788] ss:$56 sps:$4 sm:$0xff]  }
 0x1e0   : > { %3555 = vmatprep.subr.bf16.mxu0 %v5020_v21  ;;  %v5096_v20 = vld [vmem:[%s5711_s17 + $0x790] ss:$56 sps:$4 sm:$0xff]   ;;  %v5101_v21 = vld [vmem:[%s5711_s17 + $0x7fc] ss:$56 sps:$4 sm:$0xff]  }
 0x1e2   : > { %3470 = vmatpush1.bf16.msra.mxu1 %v5015_v22  ;;  %v5104_v22 = vld [vmem:[%s5711_s17 + $0x804] ss:$56 sps:$4 sm:$0xff]  }
 0x1e3   : > { %3556 = vmatpush1.bf16.msra.mxu0 %v5018_v23  ;;  %3471 = vmatprep.subr.bf16.mxu1 %v5023_v24  ;;  %v5099_v23 = vld [vmem:[%s5711_s17 + $0x7f8] ss:$56 sps:$4 sm:$0xff]  }
 0x1e4   : > { %3557 = vmatprep.subr.bf16.mxu0 %v5026_v25  ;;  %v5102_v24 = vld [vmem:[%s5711_s17 + $0x800] ss:$56 sps:$4 sm:$0xff]   ;;  %v5107_v25 = vld [vmem:[%s5711_s17 + $0x86c] ss:$56 sps:$4 sm:$0xff]  }
 0x1e6   : > { %3472 = vmatpush1.bf16.msra.mxu1 %v5021_v26  ;;  %v5110_v26 = vld [vmem:[%s5711_s17 + $0x874] ss:$56 sps:$4 sm:$0xff]  }
 0x1e7   : > { %3558 = vmatpush1.bf16.msra.mxu0 %v5024_v27  ;;  %3473 = vmatprep.subr.bf16.mxu1 %v5029_v28  ;;  %v5105_v27 = vld [vmem:[%s5711_s17 + $0x868] ss:$56 sps:$4 sm:$0xff]  }
 0x1e8   : > { %3559 = vmatprep.subr.bf16.mxu0 %v5032_v29  ;;  %v5108_v28 = vld [vmem:[%s5711_s17 + $0x870] ss:$56 sps:$4 sm:$0xff]   ;;  %v5113_v29 = vld [vmem:[%s5711_s17 + $0x8dc] ss:$56 sps:$4 sm:$0xff]  }
 0x1ea   : > { %3474 = vmatpush1.bf16.msra.mxu1 %v5027_v30  ;;  %v5116_v30 = vld [vmem:[%s5711_s17 + $0x8e4] ss:$56 sps:$4 sm:$0xff]  }
 0x1eb   : > { %3560 = vmatpush1.bf16.msra.mxu0 %v5030_v31  ;;  %3475 = vmatprep.subr.bf16.mxu1 %v5035_v32  ;;  %v5111_v31 = vld [vmem:[%s5711_s17 + $0x8d8] ss:$56 sps:$4 sm:$0xff]   ;;  %v6046_v32 = vld [vmem:[%s6041_s25] sm:$0xff] }
 0x1ec   : > { %3561 = vmatprep.subr.bf16.mxu0 %v5038_v33  ;;  %v5114_v33 = vld [vmem:[%s5711_s17 + $0x8e0] ss:$56 sps:$4 sm:$0xff]  }
 0x1ee   : > { %3476 = vmatpush1.bf16.msra.mxu1 %v5033_v34  ;;  %v5119_v34 = vld [vmem:[%s5711_s17 + $0x94c] ss:$56 sps:$4 sm:$0xff]  }
 0x1ef   : > { %3562 = vmatpush1.bf16.msra.mxu0 %v5036_v35  ;;  %3477 = vmatprep.subr.bf16.mxu1 %v5041_v36  ;;  %v5122_v35 = vld [vmem:[%s5711_s17 + $0x954] ss:$56 sps:$4 sm:$0xff]   ;;  %v896_v36 = vrot.slane %v6046_v32, %v5789_v10 }
 0x1f0   : > { %3563 = vmatprep.subr.bf16.mxu0 %v5044_v37  ;;  %v5117_v37 = vld [vmem:[%s5711_s17 + $0x948] ss:$56 sps:$4 sm:$0xff]  }
 0x1f2   : > { %3478 = vmatpush1.bf16.msra.mxu1 %v5039_v38  ;;  %v900_v38 = vrot.slane %v6046_v32, %v5795_v13 }
 0x1f3   : > { %3564 = vmatpush1.bf16.msra.mxu0 %v5042_v39  ;;  %3479 = vmatprep.subr.bf16.mxu1 %v5047_v40  ;;  %v5120_v39 = vld [vmem:[%s5711_s17 + $0x950] ss:$56 sps:$4 sm:$0xff]   ;;  %v5125_v40 = vld [vmem:[%s5711_s17 + $0x9bc] ss:$56 sps:$4 sm:$0xff]  }
 0x1f4   : > { %3565 = vmatprep.subr.bf16.mxu0 %v5050_v41 }
 0x1f6   : > { %3480 = vmatpush1.bf16.msra.mxu1 %v5045_v42 }
 0x1f7   : > { %3566 = vmatpush1.bf16.msra.mxu0 %v5048_v47  ;;  %3481 = vmatprep.subr.bf16.mxu1 %v5053_v48  ;;  %v5128_v47 = vld [vmem:[%s5711_s17 + $0x9c4] ss:$56 sps:$4 sm:$0xff]  }
 0x1f8   : > { %3567 = vmatprep.subr.bf16.mxu0 %v5056_v49 }
 0x1fa   : > { %3482 = vmatpush1.bf16.msra.mxu1 %v5051_v50 }
 0x1fb   : > { %3568 = vmatpush1.bf16.msra.mxu0 %v5054_v51  ;;  %3483 = vmatprep.subr.bf16.mxu1 %v5059_v52 }
 0x1fc   : > { %3569 = vmatprep.subr.bf16.mxu0 %v5062_v53 }
 0x1fe   : > { %3484 = vmatpush1.bf16.msra.mxu1 %v5057_v54  ;;  %v5123_v54 = vld [vmem:[%s5711_s17 + $0x9b8] ss:$56 sps:$4 sm:$0xff]  }
 0x1ff   : > { %3570 = vmatpush1.bf16.msra.mxu0 %v5060_v55  ;;  %3485 = vmatprep.subr.bf16.mxu1 %v5065_v56 }
 0x200   : > { %3571 = vmatprep.subr.bf16.mxu0 %v5068_v57 }
 0x202   : > { %3486 = vmatpush1.bf16.msra.mxu1 %v5063_v58 }
 0x203   : > { %3572 = vmatpush1.bf16.msra.mxu0 %v5066_v59  ;;  %3487 = vmatprep.subr.bf16.mxu1 %v5071_v60  ;;  %v5126_v59 = vld [vmem:[%s5711_s17 + $0x9c0] ss:$56 sps:$4 sm:$0xff]   ;;  %v5131_v60 = vld [vmem:[%s5711_s17 + $0xa2c] ss:$56 sps:$4 sm:$0xff]  }
 0x204   : > { %3573 = vmatprep.subr.bf16.mxu0 %v5074_v61 }
 0x206   : > { %3488 = vmatpush1.bf16.msra.mxu1 %v5069_v62 }
 0x207   : > { %3574 = vmatpush1.bf16.msra.mxu0 %v5072_v63  ;;  %3489 = vmatprep.subr.bf16.mxu1 %v5077_v0  ;;  %v5134_v63 = vld [vmem:[%s5711_s17 + $0xa34] ss:$56 sps:$4 sm:$0xff]  }
 0x208   : > { %3575 = vmatprep.subr.bf16.mxu0 %v5080_v1 }
 0x20a   : > { %3490 = vmatpush1.bf16.msra.mxu1 %v5075_v2 }
 0x20b   : > { %3576 = vmatpush1.bf16.msra.mxu0 %v5078_v3  ;;  %3491 = vmatprep.subr.bf16.mxu1 %v5083_v4  ;;  %v5129_v4 = vld [vmem:[%s5711_s17 + $0xa28] ss:$56 sps:$4 sm:$0xff]  }
 0x20c   : > { %3577 = vmatprep.subr.bf16.mxu0 %v5086_v5 }
 0x20e   : > { %3492 = vmatpush1.bf16.msra.mxu1 %v5081_v6  ;;  %v5132_v6 = vld [vmem:[%s5711_s17 + $0xa30] ss:$56 sps:$4 sm:$0xff]  }
 0x20f   : > { %3578 = vmatpush1.bf16.msra.mxu0 %v5084_v7  ;;  %3504 = vmatprep.subr.bf16.mxu1 %v5089_v8  ;;  %v5137_v7 = vld [vmem:[%s5711_s17 + $0xa9c] ss:$56 sps:$4 sm:$0xff]  }
 0x210   : > { %3590 = vmatprep.subr.bf16.mxu0 %v5092_v12 }
 0x211   : > { %3494 = vmatmul.mubr.bf16.vlgmr.msra.gmra.mrb[12].mxu1 %v5804_v43 }
 0x212   : > { %3580 = vmatmul.mubr.bf16.vlgmr.msra.gmra.mrb[12].mxu0 %v5804_v43  ;;  %3505 = vmatpush1.bf16.msra.mxu1 %v5087_v15  ;;  %v5140_v15 = vld [vmem:[%s5711_s17 + $0xaa4] ss:$56 sps:$4 sm:$0xff]  }
 0x213   : > { %3536 = vmatprep.mubr.bf16.mxu1 %v5810_v46  ;;  %3591 = vmatpush1.bf16.msra.mxu0 %v5090_v16 }
 0x214   : > { %3622 = vmatprep.mubr.bf16.mxu0 %v5810_v46  ;;  %3506 = vmatprep.subr.bf16.mxu1 %v5095_v17  ;;  %v5135_v17 = vld [vmem:[%s5711_s17 + $0xa98] ss:$56 sps:$4 sm:$0xff]  }
 0x215   : > { %3592 = vmatprep.subr.bf16.mxu0 %v5098_v18  ;;  %v5138_v18 = vld [vmem:[%s5711_s17 + $0xaa0] ss:$56 sps:$4 sm:$0xff]  }
 0x216   : > { %3507 = vmatpush1.bf16.msra.mxu1 %v5093_v19  ;;  %v5143_v19 = vld [vmem:[%s5711_s17 + $0xb0c] ss:$56 sps:$4 sm:$0xff]  }
 0x217   : > { %3593 = vmatpush1.bf16.msra.mxu0 %v5096_v20  ;;  %3508 = vmatprep.subr.bf16.mxu1 %v5101_v21  ;;  %v5146_v20 = vld [vmem:[%s5711_s17 + $0xb14] ss:$56 sps:$4 sm:$0xff]   ;;  %v5141_v21 = vld [vmem:[%s5711_s17 + $0xb08] ss:$56 sps:$4 sm:$0xff]  }
 0x218   : > { %3594 = vmatprep.subr.bf16.mxu0 %v5104_v22  ;;  %v5144_v22 = vld [vmem:[%s5711_s17 + $0xb10] ss:$56 sps:$4 sm:$0xff]  }
 0x21a   : > { %3509 = vmatpush1.bf16.msra.mxu1 %v5099_v23  ;;  %v5149_v23 = vld [vmem:[%s5711_s17 + $0xb7c] ss:$56 sps:$4 sm:$0xff]  }
 0x21b   : > { %3595 = vmatpush1.bf16.msra.mxu0 %v5102_v24  ;;  %3510 = vmatprep.subr.bf16.mxu1 %v5107_v25  ;;  %v5152_v24 = vld [vmem:[%s5711_s17 + $0xb84] ss:$56 sps:$4 sm:$0xff]   ;;  %v5147_v25 = vld [vmem:[%s5711_s17 + $0xb78] ss:$56 sps:$4 sm:$0xff]  }
 0x21c   : > { %3596 = vmatprep.subr.bf16.mxu0 %v5110_v26  ;;  %v5150_v26 = vld [vmem:[%s5711_s17 + $0xb80] ss:$56 sps:$4 sm:$0xff]  }
 0x21e   : > { %3511 = vmatpush1.bf16.msra.mxu1 %v5105_v27  ;;  %v5155_v27 = vld [vmem:[%s5711_s17 + $0xbec] ss:$56 sps:$4 sm:$0xff]  }
 0x21f   : > { %3597 = vmatpush1.bf16.msra.mxu0 %v5108_v28  ;;  %3512 = vmatprep.subr.bf16.mxu1 %v5113_v29  ;;  %v5158_v28 = vld [vmem:[%s5711_s17 + $0xbf4] ss:$56 sps:$4 sm:$0xff]   ;;  %v5153_v29 = vld [vmem:[%s5711_s17 + $0xbe8] ss:$56 sps:$4 sm:$0xff]  }
 0x220   : > { %3598 = vmatprep.subr.bf16.mxu0 %v5116_v30  ;;  %v5156_v30 = vld [vmem:[%s5711_s17 + $0xbf0] ss:$56 sps:$4 sm:$0xff]  }
 0x222   : > { %3513 = vmatpush1.bf16.msra.mxu1 %v5111_v31  ;;  %v5161_v31 = vld [vmem:[%s5711_s17 + $0xc5c] ss:$56 sps:$4 sm:$0xff]  }
 0x223   : > { %3599 = vmatpush1.bf16.msra.mxu0 %v5114_v33  ;;  %3514 = vmatprep.subr.bf16.mxu1 %v5119_v34  ;;  %v5164_v33 = vld [vmem:[%s5711_s17 + $0xc64] ss:$56 sps:$4 sm:$0xff]   ;;  %v5159_v34 = vld [vmem:[%s5711_s17 + $0xc58] ss:$56 sps:$4 sm:$0xff]  }
 0x224   : > { %v3237_v41 = vpop.f32.mrb[4].mxu1  ;;  %v3280_v42 = vpop.f32.mrb[4].mxu0  ;;  %3600 = vmatprep.subr.bf16.mxu0 %v5122_v35  ;;  %v5162_v35 = vld [vmem:[%s5711_s17 + $0xc60] ss:$56 sps:$4 sm:$0xff]  }
 0x225   : > { %v3238_v48 = vadd.f32 %v3237_v41, %v896_v36  ;;  %v3239_v49 = vpop.f32.mrb[5].mxu1  ;;  %v3282_v50 = vpop.f32.mrb[5].mxu0  ;;  %v5176_v41 = vld [vmem:[%s5711_s17 + $0xd44] ss:$56 sps:$4 sm:$0xff]  }
 0x226   : > { %v3240_v51 = vadd.f32 %v3239_v49, %v900_v38  ;;  %3515 = vmatpush1.bf16.msra.mxu1 %v5117_v37  ;;  %v3241_v52 = vpop.f32.mrb[6].mxu1  ;;  %v3284_v53 = vpop.f32.mrb[6].mxu0  ;;  %v5170_v37 = vld [vmem:[%s5711_s17 + $0xcd4] ss:$56 sps:$4 sm:$0xff]  }
 0x227   : > { %v3281_v55 = vadd.f32 %v3280_v42, %v3238_v48  ;;  %3601 = vmatpush1.bf16.msra.mxu0 %v5120_v39  ;;  %v3242_v56 = vadd.f32 %v3241_v52, %v896_v36  ;;  %v3243_v57 = vpop.f32.mrb[7].mxu1  ;;  %v3286_v58 = vpop.f32.mrb[7].mxu0  ;;  %3516 = vmatprep.subr.bf16.mxu1 %v5125_v40  ;;  %v5167_v36 = vld [vmem:[%s5711_s17 + $0xccc] ss:$56 sps:$4 sm:$0xff]   ;;  %v5168_v39 = vld [vmem:[%s5711_s17 + $0xcd0] ss:$56 sps:$4 sm:$0xff]  }
 0x228   : > { %v3283_v61 = vadd.f32 %v3282_v50, %v3240_v51  ;;  %v3244_v62 = vadd.f32 %v3243_v57, %v900_v38  ;;  %3602 = vmatprep.subr.bf16.mxu0 %v5128_v47  ;;  %v5165_v38 = vld [vmem:[%s5711_s17 + $0xcc8] ss:$56 sps:$4 sm:$0xff]   ;;  %v5173_v40 = vld [vmem:[%s5711_s17 + $0xd3c] ss:$56 sps:$4 sm:$0xff]   ;;  %v5171_v42 = vld [vmem:[%s5711_s17 + $0xd38] ss:$56 sps:$4 sm:$0xff]  }
 0x229   : > { %v3805_v0 = vmax.f32 %v3281_v55, 0.0  ;;  %v3285_v1 = vadd.f32 %v3284_v53, %v3242_v56  ;;  %v5174_v47 = vld [vmem:[%s5711_s17 + $0xd40] ss:$56 sps:$4 sm:$0xff]   ;;  %v5179_v48 = vld [vmem:[%s5711_s17 + $0xdac] ss:$56 sps:$4 sm:$0xff]  }
 0x22a   : > { %v3806_v2 = vmax.f32 %v3283_v61, 0.0  ;;  %v3287_v3 = vadd.f32 %v3286_v58, %v3244_v62  ;;  %3517 = vmatpush1.bf16.msra.mxu1 %v5123_v54  ;;  %v5182_v49 = vld [vmem:[%s5711_s17 + $0xdb4] ss:$56 sps:$4 sm:$0xff]   ;;  %v5177_v50 = vld [vmem:[%s5711_s17 + $0xda8] ss:$56 sps:$4 sm:$0xff]  }
 0x22b   : > { %v3819_v5 = vmax.f32 %v3285_v1, 0.0  ;;  %3603 = vmatpush1.bf16.msra.mxu0 %v5126_v59  ;;  %3518 = vmatprep.subr.bf16.mxu1 %v5131_v60  ;;  %v5180_v51 = vld [vmem:[%s5711_s17 + $0xdb0] ss:$56 sps:$4 sm:$0xff]   ;;  %v5185_v52 = vld [vmem:[%s5711_s17 + $0x2c] ss:$56 sps:$4 sm:$0xff]  }
 0x22c   : > { %v4556_v8 = vpack.c.bf16 %v3806_v2, %v3805_v0  ;;  %v3820_v12 = vmax.f32 %v3287_v3, 0.0  ;;  %3604 = vmatprep.subr.bf16.mxu0 %v5134_v63  ;;  %v5188_v53 = vld [vmem:[%s5711_s17 + $0x34] ss:$56 sps:$4 sm:$0xff]   ;;  %v5183_v54 = vld [vmem:[%s5711_s17 + $0x28] ss:$56 sps:$4 sm:$0xff]  }
 0x22d   : > { %v5186_v55 = vld [vmem:[%s5711_s17 + $0x30] ss:$56 sps:$4 sm:$0xff]   ;;  %v5191_v56 = vld [vmem:[%s5711_s17 + $0x9c] ss:$56 sps:$4 sm:$0xff]   ;;  %v5192_v59 = vld [vmem:[%s5711_s17 + $0xa0] ss:$56 sps:$4 sm:$0xff]  }
 0x22e   : > { %3917 = vst [vmem:[%s6072_s21] sm:$0xff] %v4556_v8  ;;  %v4563_v16 = vpack.c.bf16 %v3820_v12, %v3819_v5  ;;  %3519 = vmatpush1.bf16.msra.mxu1 %v5129_v4  ;;  %v5194_v57 = vld [vmem:[%s5711_s17 + $0xa4] ss:$56 sps:$4 sm:$0xff]   ;;  %v5189_v58 = vld [vmem:[%s5711_s17 + $0x98] ss:$56 sps:$4 sm:$0xff]   ;;  %v5200_v61 = vld [vmem:[%s5711_s17 + $0x114] ss:$56 sps:$4 sm:$0xff]  }
 0x22f   : > { %3605 = vmatpush1.bf16.msra.mxu0 %v5132_v6  ;;  %3520 = vmatprep.subr.bf16.mxu1 %v5137_v7  ;;  %v5197_v60 = vld [vmem:[%s5711_s17 + $0x10c] ss:$56 sps:$4 sm:$0xff]   ;;  %v5195_v62 = vld [vmem:[%s5711_s17 + $0x108] ss:$56 sps:$4 sm:$0xff]   ;;  %v5203_v0 = vld [vmem:[%s5711_s17 + $0x17c] ss:$56 sps:$4 sm:$0xff]  }
 0x230   : > { %3924 = vst [vmem:[%s6072_s21 + $0x38] sm:$0xff] %v4563_v16  ;;  %3606 = vmatprep.subr.bf16.mxu0 %v5140_v15  ;;  %v5198_v63 = vld [vmem:[%s5711_s17 + $0x110] ss:$56 sps:$4 sm:$0xff]   ;;  %v5206_v1 = vld [vmem:[%s5711_s17 + $0x184] ss:$56 sps:$4 sm:$0xff]  }
 0x231   : > { %v5204_v2 = vld [vmem:[%s5711_s17 + $0x180] ss:$56 sps:$4 sm:$0xff]   ;;  %v5209_v3 = vld [vmem:[%s5711_s17 + $0x1ec] ss:$56 sps:$4 sm:$0xff]   ;;  %v5210_v6 = vld [vmem:[%s5711_s17 + $0x1f0] ss:$56 sps:$4 sm:$0xff]  }
 0x232   : > { %3521 = vmatpush1.bf16.msra.mxu1 %v5135_v17  ;;  %v5212_v4 = vld [vmem:[%s5711_s17 + $0x1f4] ss:$56 sps:$4 sm:$0xff]   ;;  %v5207_v5 = vld [vmem:[%s5711_s17 + $0x1e8] ss:$56 sps:$4 sm:$0xff]   ;;  %v5218_v8 = vld [vmem:[%s5711_s17 + $0x264] ss:$56 sps:$4 sm:$0xff]  }
 0x233   : > { %3607 = vmatpush1.bf16.msra.mxu0 %v5138_v18  ;;  %3522 = vmatprep.subr.bf16.mxu1 %v5143_v19  ;;  %v5215_v7 = vld [vmem:[%s5711_s17 + $0x25c] ss:$56 sps:$4 sm:$0xff]   ;;  %v5213_v12 = vld [vmem:[%s5711_s17 + $0x258] ss:$56 sps:$4 sm:$0xff]   ;;  %v5221_v16 = vld [vmem:[%s5711_s17 + $0x2cc] ss:$56 sps:$4 sm:$0xff]  }
 0x234   : > { %3608 = vmatprep.subr.bf16.mxu0 %v5146_v20  ;;  %v5216_v15 = vld [vmem:[%s5711_s17 + $0x260] ss:$56 sps:$4 sm:$0xff]   ;;  %v5224_v17 = vld [vmem:[%s5711_s17 + $0x2d4] ss:$56 sps:$4 sm:$0xff]   ;;  %v5222_v19 = vld [vmem:[%s5711_s17 + $0x2d0] ss:$56 sps:$4 sm:$0xff]  }
 0x235   : > { %v5219_v18 = vld [vmem:[%s5711_s17 + $0x2c8] ss:$56 sps:$4 sm:$0xff]   ;;  %v5227_v20 = vld [vmem:[%s5711_s17 + $0x33c] ss:$56 sps:$4 sm:$0xff]  }
 0x236   : > { %3523 = vmatpush1.bf16.msra.mxu1 %v5141_v21  ;;  %v5230_v21 = vld [vmem:[%s5711_s17 + $0x344] ss:$56 sps:$4 sm:$0xff]  }
 0x237   : > { %3609 = vmatpush1.bf16.msra.mxu0 %v5144_v22  ;;  %3524 = vmatprep.subr.bf16.mxu1 %v5149_v23  ;;  %v5225_v22 = vld [vmem:[%s5711_s17 + $0x338] ss:$56 sps:$4 sm:$0xff]  }
 0x238   : > { %3610 = vmatprep.subr.bf16.mxu0 %v5152_v24  ;;  %v5228_v23 = vld [vmem:[%s5711_s17 + $0x340] ss:$56 sps:$4 sm:$0xff]   ;;  %v5233_v24 = vld [vmem:[%s5711_s17 + $0x3ac] ss:$56 sps:$4 sm:$0xff]  }
 0x23a   : > { %3525 = vmatpush1.bf16.msra.mxu1 %v5147_v25  ;;  %v5236_v25 = vld [vmem:[%s5711_s17 + $0x3b4] ss:$56 sps:$4 sm:$0xff]  }
 0x23b   : > { %3611 = vmatpush1.bf16.msra.mxu0 %v5150_v26  ;;  %3526 = vmatprep.subr.bf16.mxu1 %v5155_v27  ;;  %v5231_v26 = vld [vmem:[%s5711_s17 + $0x3a8] ss:$56 sps:$4 sm:$0xff]  }
 0x23c   : > { %3612 = vmatprep.subr.bf16.mxu0 %v5158_v28  ;;  %v5234_v27 = vld [vmem:[%s5711_s17 + $0x3b0] ss:$56 sps:$4 sm:$0xff]   ;;  %v5239_v28 = vld [vmem:[%s5711_s17 + $0x41c] ss:$56 sps:$4 sm:$0xff]  }
 0x23e   : > { %3527 = vmatpush1.bf16.msra.mxu1 %v5153_v29  ;;  %v5242_v29 = vld [vmem:[%s5711_s17 + $0x424] ss:$56 sps:$4 sm:$0xff]  }
 0x23f   : > { %3613 = vmatpush1.bf16.msra.mxu0 %v5156_v30  ;;  %3528 = vmatprep.subr.bf16.mxu1 %v5161_v31  ;;  %v5237_v30 = vld [vmem:[%s5711_s17 + $0x418] ss:$56 sps:$4 sm:$0xff]  }
 0x240   : > { %3614 = vmatprep.subr.bf16.mxu0 %v5164_v33  ;;  %v5240_v31 = vld [vmem:[%s5711_s17 + $0x420] ss:$56 sps:$4 sm:$0xff]   ;;  %v5245_v33 = vld [vmem:[%s5711_s17 + $0x48c] ss:$56 sps:$4 sm:$0xff]  }
 0x242   : > { %3529 = vmatpush1.bf16.msra.mxu1 %v5159_v34  ;;  %v5248_v34 = vld [vmem:[%s5711_s17 + $0x494] ss:$56 sps:$4 sm:$0xff]  }
 0x243   : > { %3615 = vmatpush1.bf16.msra.mxu0 %v5162_v35  ;;  %3530 = vmatprep.subr.bf16.mxu1 %v5167_v36  ;;  %v5243_v35 = vld [vmem:[%s5711_s17 + $0x488] ss:$56 sps:$4 sm:$0xff]  }
 0x244   : > { %3616 = vmatprep.subr.bf16.mxu0 %v5170_v37  ;;  %v5246_v36 = vld [vmem:[%s5711_s17 + $0x490] ss:$56 sps:$4 sm:$0xff]   ;;  %v5251_v37 = vld [vmem:[%s5711_s17 + $0x4fc] ss:$56 sps:$4 sm:$0xff]  }
 0x246   : > { %3531 = vmatpush1.bf16.msra.mxu1 %v5165_v38  ;;  %v5254_v38 = vld [vmem:[%s5711_s17 + $0x504] ss:$56 sps:$4 sm:$0xff]  }
 0x247   : > { %3617 = vmatpush1.bf16.msra.mxu0 %v5168_v39  ;;  %3532 = vmatprep.subr.bf16.mxu1 %v5173_v40  ;;  %v5249_v39 = vld [vmem:[%s5711_s17 + $0x4f8] ss:$56 sps:$4 sm:$0xff]  }
 0x248   : > { %3618 = vmatprep.subr.bf16.mxu0 %v5176_v41  ;;  %v5252_v40 = vld [vmem:[%s5711_s17 + $0x500] ss:$56 sps:$4 sm:$0xff]   ;;  %v5257_v41 = vld [vmem:[%s5711_s17 + $0x56c] ss:$56 sps:$4 sm:$0xff]  }
 0x24a   : > { %3533 = vmatpush1.bf16.msra.mxu1 %v5171_v42  ;;  %v5260_v42 = vld [vmem:[%s5711_s17 + $0x574] ss:$56 sps:$4 sm:$0xff]  }
 0x24b   : > { %3619 = vmatpush1.bf16.msra.mxu0 %v5174_v47  ;;  %3534 = vmatprep.subr.bf16.mxu1 %v5179_v48  ;;  %v5255_v47 = vld [vmem:[%s5711_s17 + $0x568] ss:$56 sps:$4 sm:$0xff]  }
 0x24c   : > { %3620 = vmatprep.subr.bf16.mxu0 %v5182_v49  ;;  %v5258_v48 = vld [vmem:[%s5711_s17 + $0x570] ss:$56 sps:$4 sm:$0xff]   ;;  %v5263_v49 = vld [vmem:[%s5711_s17 + $0x5dc] ss:$56 sps:$4 sm:$0xff]  }
 0x24e   : > { %3535 = vmatpush1.bf16.msra.mxu1 %v5177_v50  ;;  %v5266_v50 = vld [vmem:[%s5711_s17 + $0x5e4] ss:$56 sps:$4 sm:$0xff]  }
 0x24f   : > { %3621 = vmatpush1.bf16.msra.mxu0 %v5180_v51  ;;  %3633 = vmatprep.subr.bf16.mxu1 %v5185_v52  ;;  %v5261_v51 = vld [vmem:[%s5711_s17 + $0x5d8] ss:$56 sps:$4 sm:$0xff]  }
 0x250   : > { %3719 = vmatprep.subr.bf16.mxu0 %v5188_v53  ;;  %v5264_v52 = vld [vmem:[%s5711_s17 + $0x5e0] ss:$56 sps:$4 sm:$0xff]   ;;  %v5269_v53 = vld [vmem:[%s5711_s17 + $0x64c] ss:$56 sps:$4 sm:$0xff]  }
 0x251   : > { %3537 = vmatmul.mubr.bf16.vlgmr.msra.gmra.mrb[12].mxu1 %v5806_v44 }
 0x252   : > { %3623 = vmatmul.mubr.bf16.vlgmr.msra.gmra.mrb[12].mxu0 %v5806_v44  ;;  %3634 = vmatpush1.bf16.msra.mxu1 %v5183_v54  ;;  %v5272_v54 = vld [vmem:[%s5711_s17 + $0x654] ss:$56 sps:$4 sm:$0xff]  }
 0x253   : > { %3665 = vmatprep.mubr.bf16.mxu1 %v5808_v45  ;;  %3720 = vmatpush1.bf16.msra.mxu0 %v5186_v55  ;;  %v5267_v55 = vld [vmem:[%s5711_s17 + $0x648] ss:$56 sps:$4 sm:$0xff]  }
 0x254   : > { %3751 = vmatprep.mubr.bf16.mxu0 %v5808_v45  ;;  %3635 = vmatprep.subr.bf16.mxu1 %v5191_v56  ;;  %v5201_v45 = vld [vmem:[%s5711_s17 + $0x178] ss:$56 sps:$4 sm:$0xff]  }
 0x255   : > { %3721 = vmatprep.subr.bf16.mxu0 %v5194_v57  ;;  %v5270_v56 = vld [vmem:[%s5711_s17 + $0x650] ss:$56 sps:$4 sm:$0xff]   ;;  %v5275_v57 = vld [vmem:[%s5711_s17 + $0x6bc] ss:$56 sps:$4 sm:$0xff]  }
 0x256   : > { %3636 = vmatpush1.bf16.msra.mxu1 %v5189_v58  ;;  %v5278_v58 = vld [vmem:[%s5711_s17 + $0x6c4] ss:$56 sps:$4 sm:$0xff]  }
 0x257   : > { %3722 = vmatpush1.bf16.msra.mxu0 %v5192_v59  ;;  %3637 = vmatprep.subr.bf16.mxu1 %v5197_v60  ;;  %v5273_v59 = vld [vmem:[%s5711_s17 + $0x6b8] ss:$56 sps:$4 sm:$0xff]  }
 0x258   : > { %3723 = vmatprep.subr.bf16.mxu0 %v5200_v61  ;;  %v5276_v60 = vld [vmem:[%s5711_s17 + $0x6c0] ss:$56 sps:$4 sm:$0xff]   ;;  %v5281_v61 = vld [vmem:[%s5711_s17 + $0x72c] ss:$56 sps:$4 sm:$0xff]  }
 0x25a   : > { %3638 = vmatpush1.bf16.msra.mxu1 %v5195_v62  ;;  %v5284_v62 = vld [vmem:[%s5711_s17 + $0x734] ss:$56 sps:$4 sm:$0xff]  }
 0x25b   : > { %3724 = vmatpush1.bf16.msra.mxu0 %v5198_v63  ;;  %3639 = vmatprep.subr.bf16.mxu1 %v5203_v0  ;;  %v5279_v63 = vld [vmem:[%s5711_s17 + $0x728] ss:$56 sps:$4 sm:$0xff]  }
 0x25c   : > { %3725 = vmatprep.subr.bf16.mxu0 %v5206_v1  ;;  %v5282_v0 = vld [vmem:[%s5711_s17 + $0x730] ss:$56 sps:$4 sm:$0xff]   ;;  %v5287_v1 = vld [vmem:[%s5711_s17 + $0x79c] ss:$56 sps:$4 sm:$0xff]  }
 0x25e   : > { %3640 = vmatpush1.bf16.msra.mxu1 %v5201_v45  ;;  %v5290_v45 = vld [vmem:[%s5711_s17 + $0x7a4] ss:$56 sps:$4 sm:$0xff]  }
 0x25f   : > { %3726 = vmatpush1.bf16.msra.mxu0 %v5204_v2  ;;  %3641 = vmatprep.subr.bf16.mxu1 %v5209_v3  ;;  %v5285_v2 = vld [vmem:[%s5711_s17 + $0x798] ss:$56 sps:$4 sm:$0xff]  }
 0x260   : > { %3727 = vmatprep.subr.bf16.mxu0 %v5212_v4  ;;  %v5288_v3 = vld [vmem:[%s5711_s17 + $0x7a0] ss:$56 sps:$4 sm:$0xff]   ;;  %v5293_v4 = vld [vmem:[%s5711_s17 + $0x80c] ss:$56 sps:$4 sm:$0xff]  }
 0x262   : > { %3642 = vmatpush1.bf16.msra.mxu1 %v5207_v5  ;;  %v5296_v5 = vld [vmem:[%s5711_s17 + $0x814] ss:$56 sps:$4 sm:$0xff]  }
 0x263   : > { %3728 = vmatpush1.bf16.msra.mxu0 %v5210_v6  ;;  %3643 = vmatprep.subr.bf16.mxu1 %v5215_v7  ;;  %v5294_v6 = vld [vmem:[%s5711_s17 + $0x810] ss:$56 sps:$4 sm:$0xff]   ;;  %v5299_v7 = vld [vmem:[%s5711_s17 + $0x87c] ss:$56 sps:$4 sm:$0xff]  }
 0x264   : > { %3729 = vmatprep.subr.bf16.mxu0 %v5218_v8  ;;  %v5302_v8 = vld [vmem:[%s5711_s17 + $0x884] ss:$56 sps:$4 sm:$0xff]  }
 0x266   : > { %3644 = vmatpush1.bf16.msra.mxu1 %v5213_v12  ;;  %v5297_v12 = vld [vmem:[%s5711_s17 + $0x878] ss:$56 sps:$4 sm:$0xff]  }
 0x267   : > { %3730 = vmatpush1.bf16.msra.mxu0 %v5216_v15  ;;  %3645 = vmatprep.subr.bf16.mxu1 %v5221_v16  ;;  %v5305_v15 = vld [vmem:[%s5711_s17 + $0x8ec] ss:$56 sps:$4 sm:$0xff]  }
 0x268   : > { %3731 = vmatprep.subr.bf16.mxu0 %v5224_v17  ;;  %v5308_v16 = vld [vmem:[%s5711_s17 + $0x8f4] ss:$56 sps:$4 sm:$0xff]   ;;  %v5303_v17 = vld [vmem:[%s5711_s17 + $0x8e8] ss:$56 sps:$4 sm:$0xff]  }
 0x26a   : > { %3646 = vmatpush1.bf16.msra.mxu1 %v5219_v18  ;;  %v911_v18 = vsub.s32 4, %v5786_v9 }
 0x26b   : > { %3732 = vmatpush1.bf16.msra.mxu0 %v5222_v19  ;;  %3647 = vmatprep.subr.bf16.mxu1 %v5227_v20  ;;  %v5306_v19 = vld [vmem:[%s5711_s17 + $0x8f0] ss:$56 sps:$4 sm:$0xff]   ;;  %v915_v20 = vsub.s32 5, %v5786_v9 }
 0x26c   : > { %3733 = vmatprep.subr.bf16.mxu0 %v5230_v21  ;;  %v5311_v21 = vld [vmem:[%s5711_s17 + $0x95c] ss:$56 sps:$4 sm:$0xff]  }
 0x26e   : > { %3648 = vmatpush1.bf16.msra.mxu1 %v5225_v22  ;;  %v5314_v22 = vld [vmem:[%s5711_s17 + $0x964] ss:$56 sps:$4 sm:$0xff]  }
 0x26f   : > { %3734 = vmatpush1.bf16.msra.mxu0 %v5228_v23  ;;  %3649 = vmatprep.subr.bf16.mxu1 %v5233_v24  ;;  %v904_v23 = vrot.slane %v6046_v32, %v5792_v11  ;;  %v912_v24 = vrot.slane %v6046_v32, %v911_v18 }
 0x270   : > { %3735 = vmatprep.subr.bf16.mxu0 %v5236_v25  ;;  %v908_v25 = vrot.slane %v6046_v32, %v5798_v14 }
 0x272   : > { %3650 = vmatpush1.bf16.msra.mxu1 %v5231_v26  ;;  %v5309_v26 = vld [vmem:[%s5711_s17 + $0x958] ss:$56 sps:$4 sm:$0xff]  }
 0x273   : > { %3736 = vmatpush1.bf16.msra.mxu0 %v5234_v27  ;;  %3651 = vmatprep.subr.bf16.mxu1 %v5239_v28  ;;  %v916_v27 = vrot.slane %v6046_v32, %v915_v20  ;;  %v5312_v28 = vld [vmem:[%s5711_s17 + $0x960] ss:$56 sps:$4 sm:$0xff]  }
 0x274   : > { %3737 = vmatprep.subr.bf16.mxu0 %v5242_v29  ;;  %v5317_v29 = vld [vmem:[%s5711_s17 + $0x9cc] ss:$56 sps:$4 sm:$0xff]  }
 0x276   : > { %3652 = vmatpush1.bf16.msra.mxu1 %v5237_v30 }
 0x277   : > { %3738 = vmatpush1.bf16.msra.mxu0 %v5240_v31  ;;  %3653 = vmatprep.subr.bf16.mxu1 %v5245_v33  ;;  %v5320_v31 = vld [vmem:[%s5711_s17 + $0x9d4] ss:$56 sps:$4 sm:$0xff]  }
 0x278   : > { %3739 = vmatprep.subr.bf16.mxu0 %v5248_v34 }
 0x27a   : > { %3654 = vmatpush1.bf16.msra.mxu1 %v5243_v35 }
 0x27b   : > { %3740 = vmatpush1.bf16.msra.mxu0 %v5246_v36  ;;  %3655 = vmatprep.subr.bf16.mxu1 %v5251_v37 }
 0x27c   : > { %3741 = vmatprep.subr.bf16.mxu0 %v5254_v38 }
 0x27e   : > { %3656 = vmatpush1.bf16.msra.mxu1 %v5249_v39 }
 0x27f   : > { %3742 = vmatpush1.bf16.msra.mxu0 %v5252_v40  ;;  %3657 = vmatprep.subr.bf16.mxu1 %v5257_v41  ;;  %v5315_v40 = vld [vmem:[%s5711_s17 + $0x9c8] ss:$56 sps:$4 sm:$0xff]  }
 0x280   : > { %3743 = vmatprep.subr.bf16.mxu0 %v5260_v42  ;;  %v5318_v41 = vld [vmem:[%s5711_s17 + $0x9d0] ss:$56 sps:$4 sm:$0xff]  }
 0x282   : > { %3658 = vmatpush1.bf16.msra.mxu1 %v5255_v47 }
 0x283   : > { %3744 = vmatpush1.bf16.msra.mxu0 %v5258_v48  ;;  %3659 = vmatprep.subr.bf16.mxu1 %v5263_v49 }
 0x284   : > { %3745 = vmatprep.subr.bf16.mxu0 %v5266_v50 }
 0x286   : > { %3660 = vmatpush1.bf16.msra.mxu1 %v5261_v51  ;;  %v5323_v51 = vld [vmem:[%s5711_s17 + $0xa3c] ss:$56 sps:$4 sm:$0xff]  }
 0x287   : > { %3746 = vmatpush1.bf16.msra.mxu0 %v5264_v52  ;;  %3661 = vmatprep.subr.bf16.mxu1 %v5269_v53 }
 0x288   : > { %3747 = vmatprep.subr.bf16.mxu0 %v5272_v54 }
 0x28a   : > { %3662 = vmatpush1.bf16.msra.mxu1 %v5267_v55 }
 0x28b   : > { %3748 = vmatpush1.bf16.msra.mxu0 %v5270_v56  ;;  %3663 = vmatprep.subr.bf16.mxu1 %v5275_v57  ;;  %v5326_v57 = vld [vmem:[%s5711_s17 + $0xa44] ss:$56 sps:$4 sm:$0xff]  }
 0x28c   : > { %3749 = vmatprep.subr.bf16.mxu0 %v5278_v58 }
 0x28e   : > { %3664 = vmatpush1.bf16.msra.mxu1 %v5273_v59 }
 0x28f   : > { %3750 = vmatpush1.bf16.msra.mxu0 %v5276_v60  ;;  %3676 = vmatprep.subr.bf16.mxu1 %v5281_v61 }
 0x290   : > { %3762 = vmatprep.subr.bf16.mxu0 %v5284_v62 }
 0x291   : > { %3666 = vmatmul.mubr.bf16.vlgmr.msra.gmra.mrb[16].mxu1 %v5804_v43 }
 0x292   : > { %3752 = vmatmul.mubr.bf16.vlgmr.msra.gmra.mrb[16].mxu0 %v5804_v43  ;;  %3677 = vmatpush1.bf16.msra.mxu1 %v5279_v63  ;;  %v5291_v43 = vld [vmem:[%s5711_s17 + $0x808] ss:$56 sps:$4 sm:$0xff]  }
 0x293   : > { %3708 = vmatprep.mubr.bf16.mxu1 %v5810_v46  ;;  %3763 = vmatpush1.bf16.msra.mxu0 %v5282_v0  ;;  %v5321_v0 = vld [vmem:[%s5711_s17 + $0xa38] ss:$56 sps:$4 sm:$0xff]  }
 0x294   : > { %3794 = vmatprep.mubr.bf16.mxu0 %v5810_v46  ;;  %3678 = vmatprep.subr.bf16.mxu1 %v5287_v1  ;;  %v5300_v46 = vld [vmem:[%s5711_s17 + $0x880] ss:$56 sps:$4 sm:$0xff]  }
 0x295   : > { %3764 = vmatprep.subr.bf16.mxu0 %v5290_v45 }
 0x296   : > { %3679 = vmatpush1.bf16.msra.mxu1 %v5285_v2  ;;  %v5324_v2 = vld [vmem:[%s5711_s17 + $0xa40] ss:$56 sps:$4 sm:$0xff]  }
 0x297   : > { %3765 = vmatpush1.bf16.msra.mxu0 %v5288_v3  ;;  %3680 = vmatprep.subr.bf16.mxu1 %v5293_v4  ;;  %v5329_v3 = vld [vmem:[%s5711_s17 + $0xaac] ss:$56 sps:$4 sm:$0xff]  }
 0x298   : > { %3766 = vmatprep.subr.bf16.mxu0 %v5296_v5  ;;  %v5332_v5 = vld [vmem:[%s5711_s17 + $0xab4] ss:$56 sps:$4 sm:$0xff]  }
 0x29a   : > { %3681 = vmatpush1.bf16.msra.mxu1 %v5291_v43 }
 0x29b   : > { %3767 = vmatpush1.bf16.msra.mxu0 %v5294_v6  ;;  %3682 = vmatprep.subr.bf16.mxu1 %v5299_v7  ;;  %v5327_v6 = vld [vmem:[%s5711_s17 + $0xaa8] ss:$56 sps:$4 sm:$0xff]  }
 0x29c   : > { %3768 = vmatprep.subr.bf16.mxu0 %v5302_v8  ;;  %v5330_v7 = vld [vmem:[%s5711_s17 + $0xab0] ss:$56 sps:$4 sm:$0xff]   ;;  %v5335_v8 = vld [vmem:[%s5711_s17 + $0xb1c] ss:$56 sps:$4 sm:$0xff]  }
 0x29e   : > { %3683 = vmatpush1.bf16.msra.mxu1 %v5297_v12  ;;  %v5338_v12 = vld [vmem:[%s5711_s17 + $0xb24] ss:$56 sps:$4 sm:$0xff]  }
 0x29f   : > { %3769 = vmatpush1.bf16.msra.mxu0 %v5300_v46  ;;  %3684 = vmatprep.subr.bf16.mxu1 %v5305_v15  ;;  %v5333_v46 = vld [vmem:[%s5711_s17 + $0xb18] ss:$56 sps:$4 sm:$0xff]  }
 0x2a0   : > { %3770 = vmatprep.subr.bf16.mxu0 %v5308_v16  ;;  %v5336_v15 = vld [vmem:[%s5711_s17 + $0xb20] ss:$56 sps:$4 sm:$0xff]   ;;  %v5341_v16 = vld [vmem:[%s5711_s17 + $0xb8c] ss:$56 sps:$4 sm:$0xff]  }
 0x2a2   : > { %3685 = vmatpush1.bf16.msra.mxu1 %v5303_v17  ;;  %v5344_v17 = vld [vmem:[%s5711_s17 + $0xb94] ss:$56 sps:$4 sm:$0xff]  }
 0x2a3   : > { %3771 = vmatpush1.bf16.msra.mxu0 %v5306_v19  ;;  %3686 = vmatprep.subr.bf16.mxu1 %v5311_v21  ;;  %v5339_v19 = vld [vmem:[%s5711_s17 + $0xb88] ss:$56 sps:$4 sm:$0xff]  }
 0x2a4   : > { %v3366_v30 = vpop.f32.mrb[8].mxu1  ;;  %3772 = vmatprep.subr.bf16.mxu0 %v5314_v22  ;;  %v5342_v21 = vld [vmem:[%s5711_s17 + $0xb90] ss:$56 sps:$4 sm:$0xff]   ;;  %v5347_v22 = vld [vmem:[%s5711_s17 + $0xbfc] ss:$56 sps:$4 sm:$0xff]  }
 0x2a5   : > { %v4579_v33 = vadd.f32 %v3366_v30, %v904_v23  ;;  %v3452_v34 = vpop.f32.mrb[8].mxu0  ;;  %v3368_v35 = vpop.f32.mrb[9].mxu1  ;;  %v5359_v30 = vld [vmem:[%s5711_s17 + $0xcdc] ss:$56 sps:$4 sm:$0xff]  }
 0x2a6   : > { %v4583_v36 = vadd.f32 %v3452_v34, %v912_v24  ;;  %v4580_v37 = vadd.f32 %v3368_v35, %v908_v25  ;;  %v3454_v38 = vpop.f32.mrb[9].mxu0  ;;  %v3370_v39 = vpop.f32.mrb[10].mxu1  ;;  %3687 = vmatpush1.bf16.msra.mxu1 %v5309_v26  ;;  %v5353_v26 = vld [vmem:[%s5711_s17 + $0xc6c] ss:$56 sps:$4 sm:$0xff]   ;;  %v5360_v34 = vld [vmem:[%s5711_s17 + $0xce0] ss:$56 sps:$4 sm:$0xff]  }
 0x2a7   : > { %v3807_v42 = vmax.f32 %v4579_v33, 0.0  ;;  %v4584_v47 = vadd.f32 %v3454_v38, %v916_v27  ;;  %v4581_v48 = vadd.f32 %v3370_v39, %v904_v23  ;;  %v3456_v49 = vpop.f32.mrb[10].mxu0  ;;  %3773 = vmatpush1.bf16.msra.mxu0 %v5312_v28  ;;  %v3372_v50 = vpop.f32.mrb[11].mxu1  ;;  %3688 = vmatprep.subr.bf16.mxu1 %v5317_v29  ;;  %v5350_v23 = vld [vmem:[%s5711_s17 + $0xc04] ss:$56 sps:$4 sm:$0xff]  }
 0x2a8   : > { %v3809_v52 = vmax.f32 %v4583_v36, 0.0  ;;  %v3808_v53 = vmax.f32 %v4580_v37, 0.0  ;;  %v4585_v54 = vadd.f32 %v3456_v49, %v912_v24  ;;  %v4582_v55 = vadd.f32 %v3372_v50, %v908_v25  ;;  %v3458_v56 = vpop.f32.mrb[11].mxu0  ;;  %3774 = vmatprep.subr.bf16.mxu0 %v5320_v31  ;;  %v5345_v24 = vld [vmem:[%s5711_s17 + $0xbf8] ss:$56 sps:$4 sm:$0xff]  }
 0x2a9   : > { %v3810_v58 = vmax.f32 %v4584_v47, 0.0  ;;  %v3821_v59 = vmax.f32 %v4581_v48, 0.0  ;;  %v4586_v60 = vadd.f32 %v3458_v56, %v916_v27  ;;  %v5348_v25 = vld [vmem:[%s5711_s17 + $0xc00] ss:$56 sps:$4 sm:$0xff]   ;;  %v5356_v27 = vld [vmem:[%s5711_s17 + $0xc74] ss:$56 sps:$4 sm:$0xff]  }
 0x2aa   : > { %v4557_v61 = vpack.c.bf16 %v3808_v53, %v3807_v42  ;;  %v3823_v62 = vmax.f32 %v4585_v54, 0.0  ;;  %v3822_v63 = vmax.f32 %v4582_v55, 0.0  ;;  %3689 = vmatpush1.bf16.msra.mxu1 %v5315_v40  ;;  %v5351_v28 = vld [vmem:[%s5711_s17 + $0xc68] ss:$56 sps:$4 sm:$0xff]   ;;  %v5362_v31 = vld [vmem:[%s5711_s17 + $0xce4] ss:$56 sps:$4 sm:$0xff]  }
 0x2ab   : > { %v4558_v1 = vpack.c.bf16 %v3810_v58, %v3809_v52  ;;  %v3824_v45 = vmax.f32 %v4586_v60, 0.0  ;;  %3775 = vmatpush1.bf16.msra.mxu0 %v5318_v41  ;;  %3690 = vmatprep.subr.bf16.mxu1 %v5323_v51  ;;  %v5354_v29 = vld [vmem:[%s5711_s17 + $0xc70] ss:$56 sps:$4 sm:$0xff]   ;;  %v5365_v35 = vld [vmem:[%s5711_s17 + $0xd4c] ss:$56 sps:$4 sm:$0xff]   ;;  %v919_v47 = vsub.s32 6, %v5786_v9 }
 0x2ac   : > { %3918 = vst [vmem:[%s6072_s21 + $0x8] sm:$0xff] %v4557_v61  ;;  %v4564_v4 = vpack.c.bf16 %v3822_v63, %v3821_v59  ;;  %3776 = vmatprep.subr.bf16.mxu0 %v5326_v57  ;;  %v5357_v33 = vld [vmem:[%s5711_s17 + $0xcd8] ss:$56 sps:$4 sm:$0xff]   ;;  %v5368_v36 = vld [vmem:[%s5711_s17 + $0xd54] ss:$56 sps:$4 sm:$0xff]   ;;  %v923_v48 = vsub.s32 7, %v5786_v9 }
 0x2ad   : > { %3919 = vst [vmem:[%s6072_s21 + $0x10] sm:$0xff] %v4558_v1  ;;  %v4565_v43 = vpack.c.bf16 %v3824_v45, %v3823_v62  ;;  %v5363_v37 = vld [vmem:[%s5711_s17 + $0xd48] ss:$56 sps:$4 sm:$0xff]   ;;  %v5371_v39 = vld [vmem:[%s5711_s17 + $0xdbc] ss:$56 sps:$4 sm:$0xff]   ;;  %v920_v50 = vrot.slane %v6046_v32, %v919_v47 }
 0x2ae   : > { %3925 = vst [vmem:[%s6072_s21 + $0x40] sm:$0xff] %v4564_v4  ;;  %3691 = vmatpush1.bf16.msra.mxu1 %v5321_v0  ;;  %v5366_v38 = vld [vmem:[%s5711_s17 + $0xd50] ss:$56 sps:$4 sm:$0xff]   ;;  %v5374_v40 = vld [vmem:[%s5711_s17 + $0xdc4] ss:$56 sps:$4 sm:$0xff]   ;;  %v924_v52 = vrot.slane %v6046_v32, %v923_v48 }
 0x2af   : > { %3926 = vst [vmem:[%s6072_s21 + $0x48] sm:$0xff] %v4565_v43  ;;  %3777 = vmatpush1.bf16.msra.mxu0 %v5324_v2  ;;  %3692 = vmatprep.subr.bf16.mxu1 %v5329_v3  ;;  %v5369_v41 = vld [vmem:[%s5711_s17 + $0xdb8] ss:$56 sps:$4 sm:$0xff]   ;;  %v890_v49 = vld [vmem:[%s6041_s25 + $0x8] sm:$0x3f] }
 0x2b0   : > { %3778 = vmatprep.subr.bf16.mxu0 %v5332_v5  ;;  %v5372_v42 = vld [vmem:[%s5711_s17 + $0xdc0] ss:$56 sps:$4 sm:$0xff]   ;;  %v928_v51 = vrot.slane %v890_v49, %v5789_v10  ;;  %v932_v53 = vrot.slane %v890_v49, %v5795_v13 }
 0x2b2   : > { %3693 = vmatpush1.bf16.msra.mxu1 %v5327_v6 }
 0x2b3   : > { %3779 = vmatpush1.bf16.msra.mxu0 %v5330_v7  ;;  %3694 = vmatprep.subr.bf16.mxu1 %v5335_v8 }
 0x2b4   : > { %3780 = vmatprep.subr.bf16.mxu0 %v5338_v12 }
 0x2b6   : > { %3695 = vmatpush1.bf16.msra.mxu1 %v5333_v46 }
 0x2b7   : > { %3781 = vmatpush1.bf16.msra.mxu0 %v5336_v15  ;;  %3696 = vmatprep.subr.bf16.mxu1 %v5341_v16  ;;  %v936_v16 = vrot.slane %v890_v49, %v5792_v11 }
 0x2b8   : > { %3782 = vmatprep.subr.bf16.mxu0 %v5344_v17  ;;  %v944_v17 = vrot.slane %v890_v49, %v911_v18 }
 0x2ba   : > { %3697 = vmatpush1.bf16.msra.mxu1 %v5339_v19  ;;  %v940_v19 = vrot.slane %v890_v49, %v5798_v14 }
 0x2bb   : > { %3783 = vmatpush1.bf16.msra.mxu0 %v5342_v21  ;;  %3698 = vmatprep.subr.bf16.mxu1 %v5347_v22  ;;  %v948_v21 = vrot.slane %v890_v49, %v915_v20 }
 0x2bc   : > { %3784 = vmatprep.subr.bf16.mxu0 %v5350_v23 }
 0x2be   : > { %3699 = vmatpush1.bf16.msra.mxu1 %v5345_v24 }
 0x2bf   : > { %3785 = vmatpush1.bf16.msra.mxu0 %v5348_v25  ;;  %3700 = vmatprep.subr.bf16.mxu1 %v5353_v26 }
 0x2c0   : > { %3786 = vmatprep.subr.bf16.mxu0 %v5356_v27 }
 0x2c2   : > { %3701 = vmatpush1.bf16.msra.mxu1 %v5351_v28 }
 0x2c3   : > { %3787 = vmatpush1.bf16.msra.mxu0 %v5354_v29  ;;  %3702 = vmatprep.subr.bf16.mxu1 %v5359_v30 }
 0x2c4   : > { %3788 = vmatprep.subr.bf16.mxu0 %v5362_v31 }
 0x2c6   : > { %3703 = vmatpush1.bf16.msra.mxu1 %v5357_v33 }
 0x2c7   : > { %3789 = vmatpush1.bf16.msra.mxu0 %v5360_v34  ;;  %3704 = vmatprep.subr.bf16.mxu1 %v5365_v35 }
 0x2c8   : > { %3790 = vmatprep.subr.bf16.mxu0 %v5368_v36 }
 0x2ca   : > { %3705 = vmatpush1.bf16.msra.mxu1 %v5363_v37 }
 0x2cb   : > { %3791 = vmatpush1.bf16.msra.mxu0 %v5366_v38  ;;  %3706 = vmatprep.subr.bf16.mxu1 %v5371_v39 }
 0x2cc   : > { %3792 = vmatprep.subr.bf16.mxu0 %v5374_v40 }
 0x2ce   : > { %3707 = vmatpush1.bf16.msra.mxu1 %v5369_v41 }
 0x2cf   : > { %3793 = vmatpush1.bf16.msra.mxu0 %v5372_v42 }
 0x2d1   : > { %3709 = vmatmul.mubr.bf16.vlgmr.msra.gmra.mrb[16].mxu1 %v5806_v44 }
 0x2d2   : > { %3795 = vmatmul.mubr.bf16.vlgmr.msra.gmra.mrb[16].mxu0 %v5806_v44 }
 0x324   : > { %v3538_v54 = vpop.f32.mrb[12].mxu1 }
 0x325   : > { %v4587_v55 = vadd.f32 %v3538_v54, %v920_v50  ;;  %v3624_v56 = vpop.f32.mrb[12].mxu0  ;;  %v3540_v57 = vpop.f32.mrb[13].mxu1 }
 0x326   : > { %v4591_v58 = vadd.f32 %v3624_v56, %v928_v51  ;;  %v4588_v59 = vadd.f32 %v3540_v57, %v924_v52  ;;  %v3626_v44 = vpop.f32.mrb[13].mxu0  ;;  %v3542_v60 = vpop.f32.mrb[14].mxu1  ;;  %v3967_v57 = vld [vmem:[%s6072_s21 + $0x38] sm:$0xff] (%p6338_p9) }
 0x327   : > { %v3811_v61 = vmax.f32 %v4587_v55, 0.0  ;;  %v4592_v62 = vadd.f32 %v3626_v44, %v932_v53  ;;  %v4589_v63 = vadd.f32 %v3542_v60, %v920_v50  ;;  %v3628_v0 = vpop.f32.mrb[14].mxu0  ;;  %v3544_v1 = vpop.f32.mrb[15].mxu1  ;;  %v3953_v50 = vld [vmem:[%s6072_s21] sm:$0xff] (%p6338_p9)  ;;  %3968 = vst [vmem:[%s3940_s11 + $0x310] sm:$0xff] (%p6338_p9), %v3967_v57 }
 0x328   : > { %v3813_v10 = vmax.f32 %v4591_v58, 0.0  ;;  %v3812_v45 = vmax.f32 %v4588_v59, 0.0  ;;  %v4593_v32 = vadd.f32 %v3628_v0, %v928_v51  ;;  %v4590_v13 = vadd.f32 %v3544_v1, %v924_v52  ;;  %v3630_v2 = vpop.f32.mrb[15].mxu0  ;;  %v3955_v51 = vld [vmem:[%s6072_s21 + $0x8] sm:$0xff] (%p6338_p9)  ;;  %v3957_v52 = vld [vmem:[%s6072_s21 + $0x10] sm:$0xff] (%p6338_p9)  ;;  %v3969_v58 = vld [vmem:[%s6072_s21 + $0x40] sm:$0xff] (%p6338_p9)  ;;  %3954 = vst [vmem:[%s3940_s11] sm:$0xff] (%p6338_p9), %v3953_v50 }
 0x329   : > { %v3814_v3 = vmax.f32 %v4592_v62, 0.0  ;;  %v3825_v4 = vmax.f32 %v4589_v63, 0.0  ;;  %v4594_v5 = vadd.f32 %v3630_v2, %v932_v53  ;;  %3956 = vst [vmem:[%s3940_s11 + $0x8] sm:$0xff] (%p6338_p9), %v3955_v51  ;;  %3958 = vst [vmem:[%s3940_s11 + $0x10] sm:$0xff] (%p6338_p9), %v3957_v52  ;;  %v3971_v59 = vld [vmem:[%s6072_s21 + $0x48] sm:$0xff] (%p6338_p9) }
 0x32a   : > { %v4559_v43 = vpack.c.bf16 %v3812_v45, %v3811_v61  ;;  %v3827_v6 = vmax.f32 %v4593_v32, 0.0  ;;  %v3826_v7 = vmax.f32 %v4590_v13, 0.0  ;;  %3970 = vst [vmem:[%s3940_s11 + $0x318] sm:$0xff] (%p6338_p9), %v3969_v58  ;;  %3972 = vst [vmem:[%s3940_s11 + $0x320] sm:$0xff] (%p6338_p9), %v3971_v59 }
 0x32b   : > { %v4560_v8 = vpack.c.bf16 %v3814_v3, %v3813_v10  ;;  %v3828_v12 = vmax.f32 %v4594_v5, 0.0 }
 0x32c   : > { %3920 = vst [vmem:[%s6072_s21 + $0x18] sm:$0xff] %v4559_v43  ;;  %v4566_v46 = vpack.c.bf16 %v3826_v7, %v3825_v4 }
 0x32d   : > { %3921 = vst [vmem:[%s6072_s21 + $0x20] sm:$0xff] %v4560_v8  ;;  %v4567_v15 = vpack.c.bf16 %v3828_v12, %v3827_v6 }
 0x32e   : > { %3927 = vst [vmem:[%s6072_s21 + $0x50] sm:$0xff] %v4566_v46 }
 0x32f   : > { %3928 = vst [vmem:[%s6072_s21 + $0x58] sm:$0xff] %v4567_v15 }
 0x333   : > { %v3959_v53 = vld [vmem:[%s6072_s21 + $0x18] sm:$0xff] (%p6338_p9) }
 0x334   : > { %v3961_v54 = vld [vmem:[%s6072_s21 + $0x20] sm:$0xff] (%p6338_p9)  ;;  %3960 = vst [vmem:[%s3940_s11 + $0x18] sm:$0xff] (%p6338_p9), %v3959_v53 }
 0x335   : > { %3962 = vst [vmem:[%s3940_s11 + $0x20] sm:$0xff] (%p6338_p9), %v3961_v54  ;;  %v3973_v44 = vld [vmem:[%s6072_s21 + $0x50] sm:$0xff] (%p6338_p9) }
 0x336   : > { %v3975_v60 = vld [vmem:[%s6072_s21 + $0x58] sm:$0xff] (%p6338_p9)  ;;  %3974 = vst [vmem:[%s3940_s11 + $0x328] sm:$0xff] (%p6338_p9), %v3973_v44 }
 0x337   : > { %3976 = vst [vmem:[%s3940_s11 + $0x330] sm:$0xff] (%p6338_p9), %v3975_v60 }
 0x3a4   : > { %v3710_v22 = vpop.f32.mrb[16].mxu1 }
 0x3a5   : > { %v4595_v23 = vadd.f32 %v3710_v22, %v936_v16  ;;  %v3796_v24 = vpop.f32.mrb[16].mxu0  ;;  %v3712_v25 = vpop.f32.mrb[17].mxu1 }
 0x3a6   : > { %v4599_v26 = vadd.f32 %v3796_v24, %v944_v17  ;;  %v4596_v27 = vadd.f32 %v3712_v25, %v940_v19  ;;  %v3798_v28 = vpop.f32.mrb[17].mxu0  ;;  %v3714_v29 = vpop.f32.mrb[18].mxu1 }
 0x3a7   : > { %v3815_v30 = vmax.f32 %v4595_v23, 0.0  ;;  %v4600_v31 = vadd.f32 %v3798_v28, %v948_v21  ;;  %v4597_v33 = vadd.f32 %v3714_v29, %v936_v16  ;;  %v3800_v11 = vpop.f32.mrb[18].mxu0  ;;  %v3716_v34 = vpop.f32.mrb[19].mxu1 }
 0x3a8   : > { %v3817_v18 = vmax.f32 %v4599_v26, 0.0  ;;  %v3816_v14 = vmax.f32 %v4596_v27, 0.0  ;;  %v4601_v9 = vadd.f32 %v3800_v11, %v944_v17  ;;  %v4598_v20 = vadd.f32 %v3716_v34, %v940_v19  ;;  %v3802_v35 = vpop.f32.mrb[19].mxu0 }
 0x3a9   : > { %v3818_v36 = vmax.f32 %v4600_v31, 0.0  ;;  %v3829_v37 = vmax.f32 %v4597_v33, 0.0  ;;  %v4602_v38 = vadd.f32 %v3802_v35, %v948_v21  ;;  %3937 = sbr.rel (!%p6338_p9) target bundleno = 952 (0x3b8), region = 56 }
 0x3aa   : > { %v4561_v39 = vpack.c.bf16 %v3816_v14, %v3815_v30  ;;  %v3831_v40 = vmax.f32 %v4601_v9, 0.0  ;;  %v3830_v41 = vmax.f32 %v4598_v20, 0.0 }
 0x3ab   : > { %v4562_v42 = vpack.c.bf16 %v3818_v36, %v3817_v18  ;;  %v3832_v47 = vmax.f32 %v4602_v38, 0.0 }
 0x3ac   : > { %3922 = vst [vmem:[%s6072_s21 + $0x28] sm:$0xff] %v4561_v39  ;;  %v4568_v48 = vpack.c.bf16 %v3830_v41, %v3829_v37 }
 0x3ad   : > { %3923 = vst [vmem:[%s6072_s21 + $0x30] sm:$0xff] %v4562_v42  ;;  %v4569_v49 = vpack.c.bf16 %v3832_v47, %v3831_v40 }
 0x3ae   : > { %3929 = vst [vmem:[%s6072_s21 + $0x60] sm:$0xff] %v4568_v48 }
 0x3af   : > { %3930 = vst [vmem:[%s6072_s21 + $0x68] sm:$0xff] %v4569_v49 }
 0x3b3   : > { %v3963_v55 = vld [vmem:[%s6072_s21 + $0x28] sm:$0xff] }
 0x3b4   : > { %v3965_v56 = vld [vmem:[%s6072_s21 + $0x30] sm:$0xff]  ;;  %3964 = vst [vmem:[%s3940_s11 + $0x28] sm:$0xff] %v3963_v55 }
 0x3b5   : > { %3966 = vst [vmem:[%s3940_s11 + $0x30] sm:$0xff] %v3965_v56  ;;  %v3977_v61 = vld [vmem:[%s6072_s21 + $0x60] sm:$0xff] }
 0x3b6   : > { %v3979_v62 = vld [vmem:[%s6072_s21 + $0x68] sm:$0xff]  ;;  %3978 = vst [vmem:[%s3940_s11 + $0x338] sm:$0xff] %v3977_v61 }
 0x3b7   : > { %3980 = vst [vmem:[%s3940_s11 + $0x340] sm:$0xff] %v3979_v62 }
 0x3b8 PF: > { %p14_p12 = scmp.ge.s32.totalorder %s5566_s23, 16   ;;  %s6339_s18 = smov %s5495_s19 }
 0x3b9   : > { %s6340_s19 = smov %s5499_s20  ;;  %s6341_s20 = smov %s5576_s26 }
 0x3ba   : > { %s6342_s21 = smov %s5566_s23  ;;  %16 = sbr.rel (!%p14_p12) target bundleno = 3 (0x3), region = 113 }
 0x3c1   :  { %3996 = vsyncpa [#allocation3], 1 }
 0x3c2   :  { %3998 = vsyncpa [#allocation3 + $0x1], 1 }
 0x3c3   :  { %3999 = vsyncpa [#allocation5], 1 }

// kernel: decoder_cnn_forward.6
= control target key start
LH: loop header
LB: loop body
LE: loop exit
PB: predicated region body
PF: predicated region fallthrough
CT: control target
= control target key end

     0   :  { %s4415_s15 = smov 0   ;;  %s4417_s16 = smov 0   ;;  %s5752_s0 = inlined_call_operand.vmem [shape: bf16[2,128,384], index: 0, kind: input, shape index: {}]   ;;  %s5753_s1 = inlined_call_operand.vmem [shape: bf16[2,128,128], index: 1, kind: input, shape index: {}]   ;;  %s5754_s2 = inlined_call_operand.vmem [shape: bf16[9,64,128], index: 2, kind: input, shape index: {}]   ;;  %s5755_s3 = inlined_call_operand.vmem [shape: f32[64,1], index: 3, kind: input, shape index: {}]   ;;  %s5756_s4 = inlined_call_operand.vmem [shape: bf16[2,64,384], index: 4, kind: output, shape index: {}]  }
   0x1   :  { %s4419_s17 = smov 0  }
   0x2 LB: > { %s26_s18 = sadd.s32 1, %s4375_s16  ;;  %p3524_p0 = scmp.ge.s32.totalorder %s4379_s17, 1  ;;  %s4379_s17 = sphi %s4419_s17, %s14_s17   ;;  %s4375_s16 = sphi %s4417_s16, %s5758_s16   ;;  %s4371_s15 = sphi %s4415_s15, %s5757_s15  }
   0x3   : > { %p28_p1 = scmp.ge.s32.totalorder %s26_s18, 2  ;;  %p198_p2 = scmp.lt.s32.totalorder %s4379_s17, 3 }
   0x5   : > { %s5760_s18 = smov (%p28_p1, %s26_s18), 0  ;;  %p199_p3 = pnand %p3524_p0, %p198_p2 }
   0x6   : > { %p241_p4 = scmp.lt.s32.totalorder (!%p199_p3), %s4371_s15, 1  ;;  %s4381_s27 = smov (!%p199_p3), 127   ;;  %v4382_v25 = vmov (!%p199_p3), 0   ;;  %v4572_v26 = vld [vmem:[%s5754_s2 + $0x20] sm:$0xff] (!%p199_p3)   ;;  %vm718_vm0 = vcmask (!%p199_p3), 1039360   ;;  %vm1164_vm1 = vcmask (!%p199_p3), 1031168  }
   0x7   : > { %202 = sbr.rel (%p199_p3) target bundleno = 885 (0x375), region = 36  ;;  %799 = vmatprep.mubr.bf16.mxu0 (!%p199_p3), %v4382_v25  ;;  %4247 = vset.pattern.permute.xlu0 (!%p199_p3), %v4382_v25  ;;  %s4383_s30 = smov (!%p199_p3), 126   ;;  %vm1472_vm2 = vcmask (!%p199_p3), 900096   ;;  %vm1780_vm3 = vcmask (!%p199_p3), 891904   ;;  %vm2088_vm4 = vcmask (!%p199_p3), 883712   ;;  %vm2396_vm5 = vcmask (!%p199_p3), 752640  }
   0x8   : > { %3820 = vmatprep.mubr.bf16.mxu1 (!%p199_p3), %v4572_v26  ;;  %4248 = vset.pattern.permute.xlu1 (!%p199_p3), %v4382_v25  ;;  %s4384_s5 = smov (!%p199_p3), 110   ;;  %s4385_s8 = smov (!%p199_p3), 109   ;;  %vm2704_vm6 = vcmask (!%p199_p3), 744448   ;;  %vm3012_vm7 = vcmask (!%p199_p3), 736256  }
   0x9   : > { %s4387_s14 = smov (!%p199_p3), 92   ;;  %s4389_s11 = smov (!%p199_p3), 90  }
   0xe   : > { %s5762_s15 = smov (!%p241_p4, %s4371_s15), 1 }
   0xf   : > { %s4212_s19 = smul.u32 192, %s5762_s15  ;;  %s3679_s20 = sshll.u32 %s5762_s15, 6 }
  0x10   : > { %s4440_s23 = scalar_lea.vmem %s5753_s1, %s3679_s20  ;;  %s4213_s12 = smul.u32 96, %s5762_s15 }
  0x11   : > { %s4445_s26 = scalar_lea.vmem %s5752_s0, %s4212_s19  ;;  %v4506_v12 = vld [vmem:[%s4440_s23] sm:$0xff]   ;;  %v4524_v16 = vld [vmem:[%s4440_s23 + $0x8] sm:$0xff]   ;;  %v4544_v20 = vld [vmem:[%s4440_s23 + $0x10] sm:$0xff]  }
  0x12   : > { %v4448_v0 = vld [vmem:[%s4445_s26 + $0x4] ss:$12 sps:$4 sm:$0xff]   ;;  %v4451_v1 = vld [vmem:[%s4445_s26] ss:$12 sps:$4 sm:$0xff]   ;;  %v4456_v2 = vld [vmem:[%s4445_s26 + $0x8] ss:$12 sps:$4 sm:$0xff]  }
  0x13   : > { %656 = vrot.lane.b32.xlu0 %v4448_v0, %s4381_s27  ;;  %654 = vrot.lane.b32.xlu1 %v4451_v1, %s4381_s27  ;;  %v4461_v3 = vld [vmem:[%s4445_s26 + $0x1c] ss:$12 sps:$4 sm:$0xff]   ;;  %v4466_v4 = vld [vmem:[%s4445_s26 + $0x20] ss:$12 sps:$4 sm:$0xff]  }
  0x14   : > { %v4471_v5 = vld [vmem:[%s4445_s26 + $0x18] ss:$12 sps:$4 sm:$0xff]   ;;  %v4476_v6 = vld [vmem:[%s4445_s26 + $0x34] ss:$12 sps:$4 sm:$0xff]   ;;  %v4486_v8 = vld [vmem:[%s4445_s26 + $0x30] ss:$12 sps:$4 sm:$0xff]  }
  0x15   : > { %v4481_v7 = vld [vmem:[%s4445_s26 + $0x38] ss:$12 sps:$4 sm:$0xff]   ;;  %v4496_v10 = vld [vmem:[%s4445_s26 + $0x50] ss:$12 sps:$4 sm:$0xff]   ;;  %v4501_v11 = vld [vmem:[%s4445_s26 + $0x48] ss:$12 sps:$4 sm:$0xff]  }
  0x16   : > { %v4491_v9 = vld [vmem:[%s4445_s26 + $0x4c] ss:$12 sps:$4 sm:$0xff]   ;;  %v4511_v13 = vld [vmem:[%s4445_s26 + $0x64] ss:$12 sps:$4 sm:$0xff]   ;;  %v4514_v14 = vld [vmem:[%s4445_s26 + $0x68] ss:$12 sps:$4 sm:$0xff]  }
  0x17   : > { %658 = vrot.lane.b32.xlu0 %v4456_v2, %s4381_s27  ;;  %664 = vrot.lane.b32.xlu1 %v4461_v3, %s4381_s27  ;;  %v4517_v15 = vld [vmem:[%s4445_s26 + $0x60] ss:$12 sps:$4 sm:$0xff]   ;;  %v4527_v17 = vld [vmem:[%s4445_s26 + $0x7c] ss:$12 sps:$4 sm:$0xff]  }
  0x18   : > { %v4534_v18 = vld [vmem:[%s4445_s26 + $0x80] ss:$12 sps:$4 sm:$0xff]   ;;  %v4537_v19 = vld [vmem:[%s4445_s26 + $0x78] ss:$12 sps:$4 sm:$0xff]   ;;  %v4557_v23 = vld [vmem:[%s4445_s26 + $0x90] ss:$12 sps:$4 sm:$0xff]  }
  0x19   : > { %v4547_v21 = vld [vmem:[%s4445_s26 + $0x94] ss:$12 sps:$4 sm:$0xff]   ;;  %v4554_v22 = vld [vmem:[%s4445_s26 + $0x98] ss:$12 sps:$4 sm:$0xff]   ;;  %v4585_v28 = vld [vmem:[%s4445_s26 + $0xb0] ss:$12 sps:$4 sm:$0xff]  }
  0x1a   : > { %v4566_v24 = vld [vmem:[%s4440_s23 + $0x18] sm:$0xff]   ;;  %v4590_v29 = vld [vmem:[%s4445_s26 + $0xa8] ss:$12 sps:$4 sm:$0xff]   ;;  %v4595_v30 = vld [vmem:[%s4440_s23 + $0x20] sm:$0xff]  }
  0x1b   : > { %666 = vrot.lane.b32.xlu0 %v4466_v4, %s4381_s27  ;;  %662 = vrot.lane.b32.xlu1 %v4471_v5, %s4381_s27  ;;  %v4577_v27 = vld [vmem:[%s4445_s26 + $0xac] ss:$12 sps:$4 sm:$0xff]   ;;  %v4605_v32 = vld [vmem:[%s4440_s23 + $0x30] sm:$0xff]  }
  0x1c   : > { %v4600_v31 = vld [vmem:[%s4440_s23 + $0x28] sm:$0xff]   ;;  %v4610_v33 = vld [vmem:[%s4440_s23 + $0x38] sm:$0xff]  }
  0x1f   : > { %672 = vrot.lane.b32.xlu0 %v4476_v6, %s4381_s27  ;;  %674 = vrot.lane.b32.xlu1 %v4481_v7, %s4381_s27 }
  0x23   : > { %670 = vrot.lane.b32.xlu0 %v4486_v8, %s4381_s27  ;;  %680 = vrot.lane.b32.xlu1 %v4491_v9, %s4381_s27 }
  0x27   : > { %682 = vrot.lane.b32.xlu0 %v4496_v10, %s4381_s27  ;;  %678 = vrot.lane.b32.xlu1 %v4501_v11, %s4381_s27 }
  0x2b   : > { %660 = vrot.lane.b32.xlu0 %v4506_v12, %s4381_s27  ;;  %688 = vrot.lane.b32.xlu1 %v4511_v13, %s4381_s27 }
  0x2f   : > { %690 = vrot.lane.b32.xlu0 %v4514_v14, %s4381_s27  ;;  %686 = vrot.lane.b32.xlu1 %v4517_v15, %s4381_s27 }
  0x33   : > { %668 = vrot.lane.b32.xlu0 %v4524_v16, %s4381_s27  ;;  %696 = vrot.lane.b32.xlu1 %v4527_v17, %s4381_s27 }
  0x37   : > { %698 = vrot.lane.b32.xlu0 %v4534_v18, %s4381_s27  ;;  %694 = vrot.lane.b32.xlu1 %v4537_v19, %s4381_s27 }
  0x3b   : > { %676 = vrot.lane.b32.xlu0 %v4544_v20, %s4381_s27  ;;  %704 = vrot.lane.b32.xlu1 %v4547_v21, %s4381_s27 }
  0x3f   : > { %706 = vrot.lane.b32.xlu0 %v4554_v22, %s4381_s27  ;;  %702 = vrot.lane.b32.xlu1 %v4557_v23, %s4381_s27 }
  0x43   : > { %684 = vrot.lane.b32.xlu0 %v4566_v24, %s4381_s27  ;;  %712 = vrot.lane.b32.xlu1 %v4577_v27, %s4381_s27 }
  0x47   : > { %714 = vrot.lane.b32.xlu0 %v4585_v28, %s4381_s27  ;;  %710 = vrot.lane.b32.xlu1 %v4590_v29, %s4381_s27 }
  0x4b   : > { %692 = vrot.lane.b32.xlu0 %v4595_v30, %s4381_s27  ;;  %700 = vrot.lane.b32.xlu1 %v4600_v31, %s4381_s27 }
  0x4f   : > { %708 = vrot.lane.b32.xlu0 %v4605_v32, %s4381_s27  ;;  %716 = vrot.lane.b32.xlu1 %v4610_v33, %s4381_s27 }
  0x53   : > { %1102 = vrot.lane.b32.xlu0 %v4448_v0, %s4383_s30  ;;  %1104 = vrot.lane.b32.xlu1 %v4456_v2, %s4383_s30 }
  0x57   : > { %1100 = vrot.lane.b32.xlu0 %v4451_v1, %s4383_s30  ;;  %1110 = vrot.lane.b32.xlu1 %v4461_v3, %s4383_s30 }
  0x5b   : > { %1112 = vrot.lane.b32.xlu0 %v4466_v4, %s4383_s30  ;;  %1108 = vrot.lane.b32.xlu1 %v4471_v5, %s4383_s30 }
  0x5f   : > { %1118 = vrot.lane.b32.xlu0 %v4476_v6, %s4383_s30  ;;  %1120 = vrot.lane.b32.xlu1 %v4481_v7, %s4383_s30 }
  0x63   : > { %1116 = vrot.lane.b32.xlu0 %v4486_v8, %s4383_s30  ;;  %1126 = vrot.lane.b32.xlu1 %v4491_v9, %s4383_s30 }
  0x67   : > { %1128 = vrot.lane.b32.xlu0 %v4496_v10, %s4383_s30  ;;  %1124 = vrot.lane.b32.xlu1 %v4501_v11, %s4383_s30 }
  0x6b   : > { %1106 = vrot.lane.b32.xlu0 %v4506_v12, %s4383_s30  ;;  %1134 = vrot.lane.b32.xlu1 %v4511_v13, %s4383_s30 }
  0x6f   : > { %1136 = vrot.lane.b32.xlu0 %v4514_v14, %s4383_s30  ;;  %1132 = vrot.lane.b32.xlu1 %v4517_v15, %s4383_s30 }
  0x73   : > { %1114 = vrot.lane.b32.xlu0 %v4524_v16, %s4383_s30  ;;  %1142 = vrot.lane.b32.xlu1 %v4527_v17, %s4383_s30 }
  0x77   : > { %1144 = vrot.lane.b32.xlu0 %v4534_v18, %s4383_s30  ;;  %1140 = vrot.lane.b32.xlu1 %v4537_v19, %s4383_s30 }
  0x7b   : > { %1122 = vrot.lane.b32.xlu0 %v4544_v20, %s4383_s30  ;;  %1150 = vrot.lane.b32.xlu1 %v4547_v21, %s4383_s30 }
  0x7f   : > { %1152 = vrot.lane.b32.xlu0 %v4554_v22, %s4383_s30  ;;  %1148 = vrot.lane.b32.xlu1 %v4557_v23, %s4383_s30 }
  0x83   : > { %1130 = vrot.lane.b32.xlu0 %v4566_v24, %s4383_s30  ;;  %1158 = vrot.lane.b32.xlu1 %v4577_v27, %s4383_s30 }
  0x85   : > { %v657_v34 = vpop.permute.xlu0 %656  ;;  %v655_v35 = vpop.permute.xlu1 %654 }
  0x86   : > { %v719_v39 = vsel %vm718_vm0, %v655_v35, %v657_v34 }
  0x87   : > { %1160 = vrot.lane.b32.xlu0 %v4585_v28, %s4383_s30  ;;  %1156 = vrot.lane.b32.xlu1 %v4590_v29, %s4383_s30 }
  0x89   : > { %v659_v36 = vpop.permute.xlu0 %658  ;;  %v665_v37 = vpop.permute.xlu1 %664 }
  0x8a   : > { %v720_v38 = vsel %vm718_vm0, %v657_v34, %v659_v36 }
  0x8b   : > { %767 = vmatprep.subr.bf16.mxu0 %v720_v38  ;;  %1138 = vrot.lane.b32.xlu0 %v4595_v30, %s4383_s30 }
  0x8c   : > { %1410 = vrot.lane.b32.xlu1 %v4448_v0, %s4384_s5  ;;  %768 = vmatpush1.bf16.msra.mxu0 %v719_v39 }
  0x8d   : > { %v667_v40 = vpop.permute.xlu0 %666  ;;  %v663_v41 = vpop.permute.xlu1 %662 }
  0x8e   : > { %v723_v42 = vsel %vm718_vm0, %v665_v37, %v667_v40  ;;  %v722_v43 = vsel %vm718_vm0, %v663_v41, %v665_v37 }
  0x8f   : > { %1412 = vrot.lane.b32.xlu0 %v4456_v2, %s4384_s5  ;;  %769 = vmatprep.subr.bf16.mxu0 %v723_v42 }
  0x90   : > { %1408 = vrot.lane.b32.xlu1 %v4451_v1, %s4384_s5  ;;  %770 = vmatpush1.bf16.msra.mxu0 %v722_v43 }
  0x91   : > { %v673_v44 = vpop.permute.xlu0 %672  ;;  %v675_v45 = vpop.permute.xlu1 %674 }
  0x92   : > { %v726_v46 = vsel %vm718_vm0, %v673_v44, %v675_v45 }
  0x93   : > { %1146 = vrot.lane.b32.xlu0 %v4600_v31, %s4383_s30  ;;  %771 = vmatprep.subr.bf16.mxu0 %v726_v46 }
  0x94   : > { %1418 = vrot.lane.b32.xlu1 %v4461_v3, %s4384_s5 }
  0x95   : > { %v671_v47 = vpop.permute.xlu0 %670  ;;  %v681_v48 = vpop.permute.xlu1 %680 }
  0x96   : > { %v725_v49 = vsel %vm718_vm0, %v671_v47, %v673_v44 }
  0x97   : > { %1420 = vrot.lane.b32.xlu0 %v4466_v4, %s4384_s5  ;;  %772 = vmatpush1.bf16.msra.mxu0 %v725_v49 }
  0x98   : > { %1416 = vrot.lane.b32.xlu1 %v4471_v5, %s4384_s5 }
  0x99   : > { %v683_v50 = vpop.permute.xlu0 %682  ;;  %v679_v51 = vpop.permute.xlu1 %678 }
  0x9a   : > { %v729_v52 = vsel %vm718_vm0, %v681_v48, %v683_v50  ;;  %v728_v53 = vsel %vm718_vm0, %v679_v51, %v681_v48 }
  0x9b   : > { %1154 = vrot.lane.b32.xlu0 %v4605_v32, %s4383_s30  ;;  %773 = vmatprep.subr.bf16.mxu0 %v729_v52 }
  0x9c   : > { %1426 = vrot.lane.b32.xlu1 %v4476_v6, %s4384_s5  ;;  %774 = vmatpush1.bf16.msra.mxu0 %v728_v53 }
  0x9d   : > { %v661_v54 = vpop.permute.xlu0 %660  ;;  %v689_v55 = vpop.permute.xlu1 %688 }
  0x9e   : > { %v721_v56 = vsel %vm718_vm0, %v659_v36, %v661_v54 }
  0x9f   : > { %3804 = vmatprep.subr.bf16.mxu1 %v721_v56  ;;  %1428 = vrot.lane.b32.xlu0 %v4481_v7, %s4384_s5 }
  0xa0   : > { %1424 = vrot.lane.b32.xlu1 %v4486_v8, %s4384_s5  ;;  %3805 = vmatpush3.bf16.msra.mxu1 %v721_v56 }
  0xa1   : > { %v691_v57 = vpop.permute.xlu0 %690  ;;  %v687_v58 = vpop.permute.xlu1 %686 }
  0xa2   : > { %v732_v59 = vsel %vm718_vm0, %v689_v55, %v691_v57  ;;  %v731_v60 = vsel %vm718_vm0, %v687_v58, %v689_v55 }
  0xa3   : > { %1162 = vrot.lane.b32.xlu0 %v4610_v33, %s4383_s30  ;;  %775 = vmatprep.subr.bf16.mxu0 %v732_v59 }
  0xa4   : > { %1434 = vrot.lane.b32.xlu1 %v4491_v9, %s4384_s5  ;;  %776 = vmatpush1.bf16.msra.mxu0 %v731_v60 }
  0xa5   : > { %v669_v61 = vpop.permute.xlu0 %668  ;;  %v697_v62 = vpop.permute.xlu1 %696 }
  0xa6   : > { %v724_v63 = vsel %vm718_vm0, %v667_v40, %v669_v61 }
  0xa7   : > { %3806 = vmatprep.subr.bf16.mxu1 %v724_v63  ;;  %1436 = vrot.lane.b32.xlu0 %v4496_v10, %s4384_s5 }
  0xa8   : > { %1432 = vrot.lane.b32.xlu1 %v4501_v11, %s4384_s5  ;;  %3807 = vmatpush3.bf16.msra.mxu1 %v724_v63 }
  0xa9   : > { %v699_v34 = vpop.permute.xlu0 %698  ;;  %v695_v35 = vpop.permute.xlu1 %694 }
  0xaa   : > { %v735_v36 = vsel %vm718_vm0, %v697_v62, %v699_v34  ;;  %v734_v37 = vsel %vm718_vm0, %v695_v35, %v697_v62 }
  0xab   : > { %1414 = vrot.lane.b32.xlu0 %v4506_v12, %s4384_s5  ;;  %777 = vmatprep.subr.bf16.mxu0 %v735_v36 }
  0xac   : > { %1442 = vrot.lane.b32.xlu1 %v4511_v13, %s4384_s5  ;;  %778 = vmatpush1.bf16.msra.mxu0 %v734_v37 }
  0xad   : > { %v677_v38 = vpop.permute.xlu0 %676  ;;  %v705_v39 = vpop.permute.xlu1 %704 }
  0xae   : > { %v727_v40 = vsel %vm718_vm0, %v675_v45, %v677_v38 }
  0xaf   : > { %1444 = vrot.lane.b32.xlu0 %v4514_v14, %s4384_s5  ;;  %3808 = vmatprep.subr.bf16.mxu1 %v727_v40 }
  0xb0   : > { %1440 = vrot.lane.b32.xlu1 %v4517_v15, %s4384_s5  ;;  %3809 = vmatpush3.bf16.msra.mxu1 %v727_v40 }
  0xb1   : > { %v707_v41 = vpop.permute.xlu0 %706  ;;  %v703_v42 = vpop.permute.xlu1 %702 }
  0xb2   : > { %v738_v43 = vsel %vm718_vm0, %v705_v39, %v707_v41  ;;  %v737_v44 = vsel %vm718_vm0, %v703_v42, %v705_v39 }
  0xb3   : > { %1422 = vrot.lane.b32.xlu0 %v4524_v16, %s4384_s5  ;;  %779 = vmatprep.subr.bf16.mxu0 %v738_v43 }
  0xb4   : > { %1450 = vrot.lane.b32.xlu1 %v4527_v17, %s4384_s5  ;;  %780 = vmatpush1.bf16.msra.mxu0 %v737_v44  ;;  %v4294_v44 = vld [vmem:[%s5754_s2 + $0x8] sm:$0xff]  }
  0xb5   : > { %v685_v45 = vpop.permute.xlu0 %684  ;;  %v713_v46 = vpop.permute.xlu1 %712 }
  0xb6   : > { %v730_v47 = vsel %vm718_vm0, %v683_v50, %v685_v45 }
  0xb7   : > { %1452 = vrot.lane.b32.xlu0 %v4534_v18, %s4384_s5  ;;  %3810 = vmatprep.subr.bf16.mxu1 %v730_v47 }
  0xb8   : > { %1448 = vrot.lane.b32.xlu1 %v4537_v19, %s4384_s5  ;;  %3811 = vmatpush3.bf16.msra.mxu1 %v730_v47 }
  0xb9   : > { %v715_v48 = vpop.permute.xlu0 %714  ;;  %v711_v49 = vpop.permute.xlu1 %710 }
  0xba   : > { %v741_v51 = vsel %vm718_vm0, %v713_v46, %v715_v48  ;;  %v740_v52 = vsel %vm718_vm0, %v711_v49, %v713_v46 }
  0xbb   : > { %1430 = vrot.lane.b32.xlu0 %v4544_v20, %s4384_s5  ;;  %781 = vmatprep.subr.bf16.mxu0 %v741_v51  ;;  %v4295_v51 = vld [vmem:[%s5754_s2 + $0x10] sm:$0xff]  }
  0xbc   : > { %1458 = vrot.lane.b32.xlu1 %v4547_v21, %s4384_s5  ;;  %782 = vmatpush1.bf16.msra.mxu0 %v740_v52 }
  0xbd   : > { %v693_v50 = vpop.permute.xlu0 %692  ;;  %929 = vmatprep.subr.bf16.mxu0 %v4448_v0  ;;  %v701_v53 = vpop.permute.xlu1 %700 }
  0xbe   : > { %v733_v54 = vsel %vm718_vm0, %v691_v57, %v693_v50  ;;  %v736_v56 = vsel %vm718_vm0, %v699_v34, %v701_v53  ;;  %v4291_v34 = vld [vmem:[%s5754_s2 + $0x30] sm:$0xff]  }
  0xbf   : > { %1460 = vrot.lane.b32.xlu0 %v4554_v22, %s4384_s5  ;;  %3812 = vmatprep.subr.bf16.mxu1 %v733_v54 }
  0xc0   : > { %1456 = vrot.lane.b32.xlu1 %v4557_v23, %s4384_s5  ;;  %800 = vmatmul.mubr.bf16.vlgmr.msra.gmra.mrb[0].mxu0 %v4572_v26  ;;  %v4290_v26 = vld [vmem:[%s5754_s2 + $0x28] sm:$0xff]  }
  0xc1   : > { %3813 = vmatpush3.bf16.msra.mxu1 %v733_v54  ;;  %930 = vmatpush1.bf16.msra.mxu0 %v4451_v1  ;;  %v709_v55 = vpop.permute.xlu0 %708  ;;  %v717_v58 = vpop.permute.xlu1 %716 }
  0xc2   : > { %3814 = vmatprep.subr.bf16.mxu1 %v736_v56  ;;  %931 = vmatprep.subr.bf16.mxu0 %v4461_v3  ;;  %v739_v59 = vsel %vm718_vm0, %v707_v41, %v709_v55  ;;  %v742_v62 = vsel %vm718_vm0, %v715_v48, %v717_v58 }
  0xc3   : > { %1438 = vrot.lane.b32.xlu0 %v4566_v24, %s4384_s5  ;;  %809 = vmatprep.mubr.bf16.mxu0 %v4382_v25 }
  0xc4   : > { %1466 = vrot.lane.b32.xlu1 %v4577_v27, %s4384_s5 }
  0xc5   : > { %3815 = vmatpush3.bf16.msra.mxu1 %v736_v56  ;;  %932 = vmatpush1.bf16.msra.mxu0 %v4471_v5  ;;  %v4763_v57 = vpop.permute.xlu0 %1102  ;;  %v4766_v60 = vpop.permute.xlu1 %1104 }
  0xc6   : > { %3816 = vmatprep.subr.bf16.mxu1 %v739_v59  ;;  %933 = vmatprep.subr.bf16.mxu0 %v4476_v6  ;;  %v1166_v40 = vsel %vm1164_vm1, %v4763_v57, %v4766_v60 }
  0xc7   : > { %1468 = vrot.lane.b32.xlu0 %v4585_v28, %s4384_s5 }
  0xc8   : > { %1464 = vrot.lane.b32.xlu1 %v4590_v29, %s4384_s5  ;;  %810 = vmatmul.mubr.bf16.gmra.mrb[4].mxu0 %v4290_v26 }
  0xc9   : > { %3817 = vmatpush3.bf16.msra.mxu1 %v739_v59  ;;  %934 = vmatpush1.bf16.msra.mxu0 %v4486_v8  ;;  %v1101_v61 = vpop.permute.xlu0 %1100  ;;  %v4775_v63 = vpop.permute.xlu1 %1110 }
  0xca   : > { %3818 = vmatprep.subr.bf16.mxu1 %v742_v62  ;;  %935 = vmatprep.subr.bf16.mxu0 %v4491_v9 }
  0xcb   : > { %1446 = vrot.lane.b32.xlu0 %v4595_v30, %s4384_s5  ;;  %819 = vmatprep.mubr.bf16.mxu0 %v4382_v25 }
  0xcc   : > { %1718 = vrot.lane.b32.xlu1 %v4448_v0, %s4385_s8 }
  0xcd   : > { %3819 = vmatpush3.bf16.msra.mxu1 %v742_v62  ;;  %936 = vmatpush1.bf16.msra.mxu0 %v4501_v11  ;;  %v4787_v35 = vpop.permute.xlu0 %1112  ;;  %v1109_v36 = vpop.permute.xlu1 %1108 }
  0xce   : > { %937 = vmatprep.subr.bf16.mxu0 %v4511_v13  ;;  %3828 = vmatprep.subr.bf16.mxu1 %v4456_v2  ;;  %v1169_v43 = vsel %vm1164_vm1, %v4775_v63, %v4787_v35 }
  0xcf   : > { %1720 = vrot.lane.b32.xlu0 %v4456_v2, %s4385_s8 }
  0xd0   : > { %1716 = vrot.lane.b32.xlu1 %v4451_v1, %s4385_s8  ;;  %820 = vmatmul.mubr.bf16.gmra.mrb[8].mxu0 %v4291_v34  ;;  %v4292_v1 = vld [vmem:[%s5754_s2 + $0x38] sm:$0xff]  }
  0xd1   : > { %3821 = vmatmul.mubr.bf16.vlgmr.msra.gmra.mrb[0].mxu1 %v4290_v26  ;;  %938 = vmatpush1.bf16.msra.mxu0 %v4517_v15  ;;  %v4796_v0 = vpop.permute.xlu0 %1118  ;;  %v4799_v37 = vpop.permute.xlu1 %1120 }
  0xd2   : > { %3829 = vmatpush3.bf16.msra.mxu1 %v4456_v2  ;;  %939 = vmatprep.subr.bf16.mxu0 %v4527_v17  ;;  %v1172_v46 = vsel %vm1164_vm1, %v4796_v0, %v4799_v37 }
  0xd3   : > { %1454 = vrot.lane.b32.xlu0 %v4600_v31, %s4384_s5  ;;  %3830 = vmatprep.subr.bf16.mxu1 %v4466_v4 }
  0xd4   : > { %1726 = vrot.lane.b32.xlu1 %v4461_v3, %s4385_s8  ;;  %829 = vmatprep.mubr.bf16.mxu0 %v4382_v25 }
  0xd5   : > { %940 = vmatpush1.bf16.msra.mxu0 %v4537_v19  ;;  %v1117_v2 = vpop.permute.xlu0 %1116  ;;  %3824 = vmatprep.mubr.bf16.mxu1 %v4291_v34  ;;  %v4813_v38 = vpop.permute.xlu1 %1126 }
  0xd6   : > { %3831 = vmatpush3.bf16.msra.mxu1 %v4466_v4  ;;  %941 = vmatprep.subr.bf16.mxu0 %v4547_v21 }
  0xd7   : > { %1728 = vrot.lane.b32.xlu0 %v4466_v4, %s4385_s8  ;;  %3832 = vmatprep.subr.bf16.mxu1 %v4481_v7  ;;  %v4293_v4 = vld [vmem:[%s5754_s2] sm:$0xff]  }
  0xd8   : > { %1724 = vrot.lane.b32.xlu1 %v4471_v5, %s4385_s8  ;;  %830 = vmatmul.mubr.bf16.gmra.mrb[12].mxu0 %v4292_v1 }
  0xd9   : > { %942 = vmatpush1.bf16.msra.mxu0 %v4557_v23  ;;  %v4822_v3 = vpop.permute.xlu0 %1128  ;;  %961 = vmatprep.mubr.bf16.mxu0 %v4382_v25  ;;  %v1125_v39 = vpop.permute.xlu1 %1124 }
  0xda   : > { %3833 = vmatpush3.bf16.msra.mxu1 %v4481_v7  ;;  %943 = vmatprep.subr.bf16.mxu0 %v4577_v27  ;;  %v1175_v49 = vsel %vm1164_vm1, %v4813_v38, %v4822_v3 }
  0xdb   : > { %1462 = vrot.lane.b32.xlu0 %v4605_v32, %s4384_s5  ;;  %3834 = vmatprep.subr.bf16.mxu1 %v4496_v10 }
  0xdc   : > { %1734 = vrot.lane.b32.xlu1 %v4476_v6, %s4385_s8  ;;  %3825 = vmatmul.mubr.bf16.gmra.mrb[4].mxu1 %v4292_v1  ;;  %v1165_v6 = vsel %vm1164_vm1, %v1101_v61, %v4763_v57 }
  0xdd   : > { %944 = vmatpush1.bf16.msra.mxu0 %v4590_v29  ;;  %v1107_v5 = vpop.permute.xlu0 %1106  ;;  %3844 = vmatprep.mubr.bf16.mxu1 %v4293_v4  ;;  %v1135_v41 = vpop.permute.xlu1 %1134 }
  0xde   : > { %3835 = vmatpush3.bf16.msra.mxu1 %v4496_v10  ;;  %1213 = vmatprep.subr.bf16.mxu0 %v1166_v40 }
  0xdf   : > { %1736 = vrot.lane.b32.xlu0 %v4481_v7, %s4385_s8  ;;  %3836 = vmatprep.subr.bf16.mxu1 %v4514_v14 }
  0xe0   : > { %1732 = vrot.lane.b32.xlu1 %v4486_v8, %s4385_s8  ;;  %962 = vmatmul.mubr.bf16.vlgmr.msra.gmra.mrb[0].mxu0 %v4293_v4  ;;  %v1168_v8 = vsel %vm1164_vm1, %v1109_v36, %v4775_v63  ;;  %v4298_v4 = vld [vmem:[%s5754_s2 + $0x48] sm:$0xff]  }
  0xe1   : > { %1214 = vmatpush1.bf16.msra.mxu0 %v1165_v6  ;;  %v4847_v42 = vpop.permute.xlu0 %1136  ;;  %971 = vmatprep.mubr.bf16.mxu0 %v4382_v25  ;;  %v1133_v7 = vpop.permute.xlu1 %1132 }
  0xe2   : > { %3837 = vmatpush3.bf16.msra.mxu1 %v4514_v14  ;;  %1215 = vmatprep.subr.bf16.mxu0 %v1169_v43  ;;  %v1178_v50 = vsel %vm1164_vm1, %v1135_v41, %v4847_v42 }
  0xe3   : > { %1470 = vrot.lane.b32.xlu0 %v4610_v33, %s4384_s5  ;;  %3838 = vmatprep.subr.bf16.mxu1 %v4534_v18  ;;  %s4386_s5 = smov 108  }
  0xe4   : > { %1742 = vrot.lane.b32.xlu1 %v4491_v9, %s4385_s8  ;;  %v1171_v9 = vsel %vm1164_vm1, %v1117_v2, %v4796_v0 }
  0xe5   : > { %1216 = vmatpush1.bf16.msra.mxu0 %v1168_v8  ;;  %v1115_v45 = vpop.permute.xlu0 %1114  ;;  %v1143_v47 = vpop.permute.xlu1 %1142 }
  0xe6   : > { %3839 = vmatpush3.bf16.msra.mxu1 %v4534_v18  ;;  %1217 = vmatprep.subr.bf16.mxu0 %v1172_v46  ;;  %v1170_v56 = vsel %vm1164_vm1, %v4787_v35, %v1115_v45  ;;  %v4985_v45 = vld [vmem:[%s4445_s26 + $0x8] ss:$12 sps:$4 sm:$0xff]   ;;  %v4990_v46 = vld [vmem:[%s4445_s26] ss:$12 sps:$4 sm:$0xff]  }
  0xe7   : > { %1744 = vrot.lane.b32.xlu0 %v4496_v10, %s4385_s8  ;;  %3840 = vmatprep.subr.bf16.mxu1 %v4554_v22 }
  0xe8   : > { %1740 = vrot.lane.b32.xlu1 %v4501_v11, %s4385_s8  ;;  %972 = vmatmul.mubr.bf16.gmra.mrb[4].mxu0 %v4294_v44  ;;  %v1174_v11 = vsel %vm1164_vm1, %v1125_v39, %v4813_v38 }
  0xe9   : > { %1218 = vmatpush1.bf16.msra.mxu0 %v1171_v9  ;;  %v4875_v48 = vpop.permute.xlu0 %1144  ;;  %981 = vmatprep.mubr.bf16.mxu0 %v4382_v25  ;;  %v1141_v10 = vpop.permute.xlu1 %1140 }
  0xea   : > { %3841 = vmatpush3.bf16.msra.mxu1 %v4554_v22  ;;  %1219 = vmatprep.subr.bf16.mxu0 %v1175_v49  ;;  %v1181_v55 = vsel %vm1164_vm1, %v1143_v47, %v4875_v48 }
  0xeb   : > { %1722 = vrot.lane.b32.xlu0 %v4506_v12, %s4385_s8  ;;  %3842 = vmatprep.subr.bf16.mxu1 %v4585_v28  ;;  %v1167_v12 = vsel %vm1164_vm1, %v4766_v60, %v1107_v5 }
  0xec   : > { %1750 = vrot.lane.b32.xlu1 %v4511_v13, %s4385_s8  ;;  %v1177_v13 = vsel %vm1164_vm1, %v1133_v7, %v1135_v41  ;;  %v4299_v7 = vld [vmem:[%s5754_s2 + $0x50] sm:$0xff]  }
  0xed   : > { %1220 = vmatpush1.bf16.msra.mxu0 %v1174_v11  ;;  %v1123_v52 = vpop.permute.xlu0 %1122  ;;  %v1151_v53 = vpop.permute.xlu1 %1150 }
  0xee   : > { %3843 = vmatpush3.bf16.msra.mxu1 %v4585_v28  ;;  %1221 = vmatprep.subr.bf16.mxu0 %v1178_v50 }
  0xef   : > { %3852 = vmatprep.subr.bf16.mxu1 %v1167_v12  ;;  %1752 = vrot.lane.b32.xlu0 %v4514_v14, %s4385_s8  ;;  %v1180_v14 = vsel %vm1164_vm1, %v1141_v10, %v1143_v47  ;;  %v5003_v10 = vld [vmem:[%s4445_s26 + $0x1c] ss:$12 sps:$4 sm:$0xff]  }
  0xf0   : > { %1748 = vrot.lane.b32.xlu1 %v4517_v15, %s4385_s8  ;;  %982 = vmatmul.mubr.bf16.gmra.mrb[8].mxu0 %v4295_v51  ;;  %v4296_v15 = vld [vmem:[%s5754_s2 + $0x18] sm:$0xff]  }
  0xf1   : > { %3845 = vmatmul.mubr.bf16.vlgmr.msra.gmra.mrb[0].mxu1 %v4294_v44  ;;  %1222 = vmatpush1.bf16.msra.mxu0 %v1177_v13  ;;  %v4902_v54 = vpop.permute.xlu0 %1152  ;;  %v1149_v58 = vpop.permute.xlu1 %1148 }
  0xf2   : > { %3853 = vmatpush3.bf16.msra.mxu1 %v1167_v12  ;;  %1223 = vmatprep.subr.bf16.mxu0 %v1181_v55  ;;  %v1184_v57 = vsel %vm1164_vm1, %v1151_v53, %v4902_v54  ;;  %v5013_v12 = vld [vmem:[%s4445_s26 + $0x20] ss:$12 sps:$4 sm:$0xff]  }
  0xf3   : > { %3854 = vmatprep.subr.bf16.mxu1 %v1170_v56  ;;  %1730 = vrot.lane.b32.xlu0 %v4524_v16, %s4385_s8  ;;  %v1173_v16 = vsel %vm1164_vm1, %v4799_v37, %v1123_v52 }
  0xf4   : > { %1758 = vrot.lane.b32.xlu1 %v4527_v17, %s4385_s8  ;;  %991 = vmatprep.mubr.bf16.mxu0 %v4382_v25  ;;  %v1183_v17 = vsel %vm1164_vm1, %v1149_v58, %v1151_v53  ;;  %v5018_v53 = vld [vmem:[%s4445_s26 + $0x18] ss:$12 sps:$4 sm:$0xff]   ;;  %v5031_v58 = vld [vmem:[%s4445_s26 + $0x34] ss:$12 sps:$4 sm:$0xff]  }
  0xf5   : > { %1224 = vmatpush1.bf16.msra.mxu0 %v1180_v14  ;;  %v1131_v26 = vpop.permute.xlu0 %1130  ;;  %3848 = vmatprep.mubr.bf16.mxu1 %v4295_v51  ;;  %v1159_v59 = vpop.permute.xlu1 %1158  ;;  %v4300_v51 = vld [vmem:[%s5754_s2 + $0x58] sm:$0xff]  }
  0xf6   : > { %3855 = vmatpush3.bf16.msra.mxu1 %v1170_v56  ;;  %1225 = vmatprep.subr.bf16.mxu0 %v1184_v57  ;;  %v1176_v61 = vsel %vm1164_vm1, %v4822_v3, %v1131_v26  ;;  %v5038_v57 = vld [vmem:[%s4445_s26 + $0x38] ss:$12 sps:$4 sm:$0xff]  }
  0xf7   : > { %3856 = vmatprep.subr.bf16.mxu1 %v1173_v16  ;;  %1760 = vrot.lane.b32.xlu0 %v4534_v18, %s4385_s8 }
  0xf8   : > { %1756 = vrot.lane.b32.xlu1 %v4537_v19, %s4385_s8  ;;  %992 = vmatmul.mubr.bf16.gmra.mrb[12].mxu0 %v4296_v15  ;;  %v4297_v19 = vld [vmem:[%s5754_s2 + $0x40] sm:$0xff]  }
  0xf9   : > { %1226 = vmatpush1.bf16.msra.mxu0 %v1183_v17  ;;  %v4926_v60 = vpop.permute.xlu0 %1160  ;;  %1245 = vmatprep.mubr.bf16.mxu0 %v4382_v25  ;;  %v1157_v62 = vpop.permute.xlu1 %1156 }
  0xfa   : > { %3857 = vmatpush3.bf16.msra.mxu1 %v1173_v16  ;;  %v1187_v63 = vsel %vm1164_vm1, %v1159_v59, %v4926_v60  ;;  %v1186_v18 = vsel %vm1164_vm1, %v1157_v62, %v1159_v59  ;;  %v5062_v62 = vld [vmem:[%s5754_s2 + $0x60] sm:$0xff]  }
  0xfb   : > { %3858 = vmatprep.subr.bf16.mxu1 %v1176_v61  ;;  %1738 = vrot.lane.b32.xlu0 %v4544_v20, %s4385_s8 }
  0xfc   : > { %1766 = vrot.lane.b32.xlu1 %v4547_v21, %s4385_s8  ;;  %1227 = vmatprep.subr.bf16.mxu0 %v1187_v63 }
  0xfd   : > { %1228 = vmatpush1.bf16.msra.mxu0 %v1186_v18  ;;  %v1139_v34 = vpop.permute.xlu0 %1138  ;;  %3849 = vmatmul.mubr.bf16.gmra.mrb[4].mxu1 %v4296_v15 }
  0xfe   : > { %3859 = vmatpush3.bf16.msra.mxu1 %v1176_v61  ;;  %v1411_v35 = vpop.permute.xlu1 %1410  ;;  %v1179_v36 = vsel %vm1164_vm1, %v4847_v42, %v1139_v34  ;;  %3868 = vmatprep.mubr.bf16.mxu1 %v4297_v19  ;;  %v4975_v42 = vld [vmem:[%s4445_s26 + $0x4] ss:$12 sps:$4 sm:$0xff]   ;;  %v5055_v61 = vld [vmem:[%s4445_s26 + $0x4c] ss:$12 sps:$4 sm:$0xff]   ;;  %v5073_v34 = vld [vmem:[%s4445_s26 + $0x48] ss:$12 sps:$4 sm:$0xff]  }
  0xff   : > { %1768 = vrot.lane.b32.xlu0 %v4554_v22, %s4385_s8  ;;  %3860 = vmatprep.subr.bf16.mxu1 %v1179_v36 }
 0x100   : > { %1764 = vrot.lane.b32.xlu1 %v4557_v23, %s4385_s8  ;;  %1246 = vmatmul.mubr.bf16.vlgmr.msra.gmra.mrb[0].mxu0 %v4297_v19  ;;  %v5068_v19 = vld [vmem:[%s4445_s26 + $0x50] ss:$12 sps:$4 sm:$0xff]  }
 0x101   : > { %v4947_v0 = vpop.permute.xlu0 %1412  ;;  %1255 = vmatprep.mubr.bf16.mxu0 %v4382_v25 }
 0x102   : > { %3861 = vmatpush3.bf16.msra.mxu1 %v1179_v36  ;;  %v1409_v37 = vpop.permute.xlu1 %1408  ;;  %v1474_v1 = vsel %vm1472_vm2, %v1411_v35, %v4947_v0 }
 0x103   : > { %v1473_v2 = vsel %vm1472_vm2, %v1409_v37, %v1411_v35  ;;  %1746 = vrot.lane.b32.xlu0 %v4566_v24, %s4385_s8  ;;  %1521 = vmatprep.subr.bf16.mxu0 %v1474_v1  ;;  %v5083_v1 = vld [vmem:[%s4440_s23] sm:$0xff]  }
 0x104   : > { %1774 = vrot.lane.b32.xlu1 %v4577_v27, %s4385_s8  ;;  %1522 = vmatpush1.bf16.msra.mxu0 %v1473_v2  ;;  %v5088_v2 = vld [vmem:[%s4445_s26 + $0x64] ss:$12 sps:$4 sm:$0xff]  }
 0x105   : > { %v1147_v38 = vpop.permute.xlu0 %1146 }
 0x106   : > { %v1419_v3 = vpop.permute.xlu1 %1418  ;;  %v1182_v39 = vsel %vm1164_vm1, %v4875_v48, %v1147_v38 }
 0x107   : > { %1776 = vrot.lane.b32.xlu0 %v4585_v28, %s4385_s8  ;;  %3862 = vmatprep.subr.bf16.mxu1 %v1182_v39 }
 0x108   : > { %1772 = vrot.lane.b32.xlu1 %v4590_v29, %s4385_s8  ;;  %3863 = vmatpush3.bf16.msra.mxu1 %v1182_v39 }
 0x109   : > { %v4966_v5 = vpop.permute.xlu0 %1420  ;;  %1256 = vmatmul.mubr.bf16.gmra.mrb[4].mxu0 %v4298_v4 }
 0x10a   : > { %v1417_v40 = vpop.permute.xlu1 %1416  ;;  %v1477_v41 = vsel %vm1472_vm2, %v1419_v3, %v4966_v5  ;;  %1265 = vmatprep.mubr.bf16.mxu0 %v4382_v25 }
 0x10b   : > { %v1476_v6 = vsel %vm1472_vm2, %v1417_v40, %v1419_v3  ;;  %1754 = vrot.lane.b32.xlu0 %v4595_v30, %s4385_s8  ;;  %1523 = vmatprep.subr.bf16.mxu0 %v1477_v41 }
 0x10c   : > { %2026 = vrot.lane.b32.xlu1 %v4975_v42, %s4386_s5  ;;  %1524 = vmatpush1.bf16.msra.mxu0 %v1476_v6 }
 0x10d   : > { %v1155_v43 = vpop.permute.xlu0 %1154 }
 0x10e   : > { %v1427_v8 = vpop.permute.xlu1 %1426  ;;  %v1185_v44 = vsel %vm1164_vm1, %v4902_v54, %v1155_v43 }
 0x10f   : > { %2028 = vrot.lane.b32.xlu0 %v4985_v45, %s4386_s5  ;;  %3864 = vmatprep.subr.bf16.mxu1 %v1185_v44 }
 0x110   : > { %2024 = vrot.lane.b32.xlu1 %v4990_v46, %s4386_s5  ;;  %3865 = vmatpush3.bf16.msra.mxu1 %v1185_v44 }
 0x111   : > { %v4994_v47 = vpop.permute.xlu0 %1428  ;;  %1266 = vmatmul.mubr.bf16.gmra.mrb[8].mxu0 %v4299_v7 }
 0x112   : > { %v1425_v9 = vpop.permute.xlu1 %1424  ;;  %v1480_v48 = vsel %vm1472_vm2, %v1427_v8, %v4994_v47  ;;  %1275 = vmatprep.mubr.bf16.mxu0 %v4382_v25 }
 0x113   : > { %v1479_v49 = vsel %vm1472_vm2, %v1425_v9, %v1427_v8  ;;  %1762 = vrot.lane.b32.xlu0 %v4600_v31, %s4385_s8  ;;  %1525 = vmatprep.subr.bf16.mxu0 %v1480_v48  ;;  %v5115_v8 = vld [vmem:[%s4445_s26 + $0x7c] ss:$12 sps:$4 sm:$0xff]   ;;  %v5122_v48 = vld [vmem:[%s4445_s26 + $0x80] ss:$12 sps:$4 sm:$0xff]  }
 0x114   : > { %2034 = vrot.lane.b32.xlu1 %v5003_v10, %s4386_s5  ;;  %1526 = vmatpush1.bf16.msra.mxu0 %v1479_v49  ;;  %v5127_v49 = vld [vmem:[%s4445_s26 + $0x78] ss:$12 sps:$4 sm:$0xff]  }
 0x115   : > { %v1163_v11 = vpop.permute.xlu0 %1162 }
 0x116   : > { %v1435_v52 = vpop.permute.xlu1 %1434  ;;  %v1188_v50 = vsel %vm1164_vm1, %v4926_v60, %v1163_v11 }
 0x117   : > { %2036 = vrot.lane.b32.xlu0 %v5013_v12, %s4386_s5  ;;  %3866 = vmatprep.subr.bf16.mxu1 %v1188_v50 }
 0x118   : > { %2032 = vrot.lane.b32.xlu1 %v5018_v53, %s4386_s5  ;;  %3867 = vmatpush3.bf16.msra.mxu1 %v1188_v50 }
 0x119   : > { %v5022_v13 = vpop.permute.xlu0 %1436  ;;  %1276 = vmatmul.mubr.bf16.gmra.mrb[12].mxu0 %v4300_v51 }
 0x11a   : > { %v1433_v54 = vpop.permute.xlu1 %1432  ;;  %v1483_v55 = vsel %vm1472_vm2, %v1435_v52, %v5022_v13  ;;  %1553 = vmatprep.mubr.bf16.mxu0 %v4382_v25 }
 0x11b   : > { %v1482_v56 = vsel %vm1472_vm2, %v1433_v54, %v1435_v52  ;;  %1770 = vrot.lane.b32.xlu0 %v4605_v32, %s4385_s8  ;;  %1527 = vmatprep.subr.bf16.mxu0 %v1483_v55  ;;  %v5043_v32 = vld [vmem:[%s4445_s26 + $0x30] ss:$12 sps:$4 sm:$0xff]  }
 0x11c   : > { %2042 = vrot.lane.b32.xlu1 %v5031_v58, %s4386_s5  ;;  %1528 = vmatpush1.bf16.msra.mxu0 %v1482_v56 }
 0x11d   : > { %v1415_v14 = vpop.permute.xlu0 %1414  ;;  %3869 = vmatmul.mubr.bf16.vlgmr.msra.gmra.mrb[0].mxu1 %v4298_v4  ;;  %v5095_v4 = vld [vmem:[%s4445_s26 + $0x68] ss:$12 sps:$4 sm:$0xff]  }
 0x11e   : > { %v1443_v15 = vpop.permute.xlu1 %1442  ;;  %v1475_v26 = vsel %vm1472_vm2, %v4947_v0, %v1415_v14  ;;  %3872 = vmatprep.mubr.bf16.mxu1 %v4299_v7  ;;  %v5110_v7 = vld [vmem:[%s4440_s23 + $0x8] sm:$0xff]  }
 0x11f   : > { %2044 = vrot.lane.b32.xlu0 %v5038_v57, %s4386_s5  ;;  %3876 = vmatprep.subr.bf16.mxu1 %v1475_v26 }
 0x120   : > { %2040 = vrot.lane.b32.xlu1 %v5043_v32, %s4386_s5  ;;  %3877 = vmatpush3.bf16.msra.mxu1 %v1475_v26  ;;  %v4302_v26 = vld [vmem:[%s5754_s2 + $0x68] sm:$0xff]  }
 0x121   : > { %v5047_v16 = vpop.permute.xlu0 %1444 }
 0x122   : > { %v1441_v59 = vpop.permute.xlu1 %1440  ;;  %v1486_v17 = vsel %vm1472_vm2, %v1443_v15, %v5047_v16 }
 0x123   : > { %v1485_v60 = vsel %vm1472_vm2, %v1441_v59, %v1443_v15  ;;  %1778 = vrot.lane.b32.xlu0 %v4610_v33, %s4385_s8  ;;  %1529 = vmatprep.subr.bf16.mxu0 %v1486_v17  ;;  %v4303_v59 = vld [vmem:[%s5754_s2 + $0x70] sm:$0xff]  }
 0x124   : > { %2050 = vrot.lane.b32.xlu1 %v5055_v61, %s4386_s5  ;;  %1530 = vmatpush1.bf16.msra.mxu0 %v1485_v60 }
 0x125   : > { %v1423_v63 = vpop.permute.xlu0 %1422  ;;  %3873 = vmatmul.mubr.bf16.gmra.mrb[4].mxu1 %v4300_v51 }
 0x126   : > { %v1451_v18 = vpop.permute.xlu1 %1450  ;;  %v1478_v33 = vsel %vm1472_vm2, %v4966_v5, %v1423_v63  ;;  %3892 = vmatprep.mubr.bf16.mxu1 %v5062_v62  ;;  %v5100_v5 = vld [vmem:[%s4445_s26 + $0x60] ss:$12 sps:$4 sm:$0xff]  }
 0x127   : > { %2052 = vrot.lane.b32.xlu0 %v5068_v19, %s4386_s5  ;;  %3878 = vmatprep.subr.bf16.mxu1 %v1478_v33 }
 0x128   : > { %2048 = vrot.lane.b32.xlu1 %v5073_v34, %s4386_s5  ;;  %3879 = vmatpush3.bf16.msra.mxu1 %v1478_v33 }
 0x129   : > { %v5077_v35 = vpop.permute.xlu0 %1452 }
 0x12a   : > { %v1449_v36 = vpop.permute.xlu1 %1448  ;;  %v1489_v0 = vsel %vm1472_vm2, %v1451_v18, %v5077_v35 }
 0x12b   : > { %v1488_v37 = vsel %vm1472_vm2, %v1449_v36, %v1451_v18  ;;  %2030 = vrot.lane.b32.xlu0 %v5083_v1, %s4386_s5  ;;  %1531 = vmatprep.subr.bf16.mxu0 %v1489_v0 }
 0x12c   : > { %2058 = vrot.lane.b32.xlu1 %v5088_v2, %s4386_s5  ;;  %1532 = vmatpush1.bf16.msra.mxu0 %v1488_v37 }
 0x12d   : > { %v1431_v38 = vpop.permute.xlu0 %1430 }
 0x12e   : > { %v1459_v3 = vpop.permute.xlu1 %1458  ;;  %v1481_v39 = vsel %vm1472_vm2, %v4994_v47, %v1431_v38 }
 0x12f   : > { %2060 = vrot.lane.b32.xlu0 %v5095_v4, %s4386_s5  ;;  %3880 = vmatprep.subr.bf16.mxu1 %v1481_v39 }
 0x130   : > { %2056 = vrot.lane.b32.xlu1 %v5100_v5, %s4386_s5  ;;  %3881 = vmatpush3.bf16.msra.mxu1 %v1481_v39  ;;  %v5211_v39 = vld [vmem:[%s4440_s23 + $0x30] sm:$0xff]  }
 0x131   : > { %v5104_v40 = vpop.permute.xlu0 %1460 }
 0x132   : > { %v1457_v41 = vpop.permute.xlu1 %1456  ;;  %v1492_v6 = vsel %vm1472_vm2, %v1459_v3, %v5104_v40 }
 0x133   : > { %v1491_v43 = vsel %vm1472_vm2, %v1457_v41, %v1459_v3  ;;  %2038 = vrot.lane.b32.xlu0 %v5110_v7, %s4386_s5  ;;  %1533 = vmatprep.subr.bf16.mxu0 %v1492_v6 }
 0x134   : > { %2066 = vrot.lane.b32.xlu1 %v5115_v8, %s4386_s5  ;;  %1534 = vmatpush1.bf16.msra.mxu0 %v1491_v43 }
 0x135   : > { %v1439_v44 = vpop.permute.xlu0 %1438 }
 0x136   : > { %v1467_v47 = vpop.permute.xlu1 %1466  ;;  %v1484_v9 = vsel %vm1472_vm2, %v5022_v13, %v1439_v44 }
 0x137   : > { %2068 = vrot.lane.b32.xlu0 %v5122_v48, %s4386_s5  ;;  %3882 = vmatprep.subr.bf16.mxu1 %v1484_v9 }
 0x138   : > { %2064 = vrot.lane.b32.xlu1 %v5127_v49, %s4386_s5  ;;  %3883 = vmatpush3.bf16.msra.mxu1 %v1484_v9 }
 0x139   : > { %v5131_v11 = vpop.permute.xlu0 %1468 }
 0x13a   : > { %v1465_v51 = vpop.permute.xlu1 %1464  ;;  %v1495_v52 = vsel %vm1472_vm2, %v1467_v47, %v5131_v11 }
 0x13b   : > { %v1494_v50 = vsel %vm1472_vm2, %v1465_v51, %v1467_v47  ;;  %2046 = vrot.lane.b32.xlu0 %v4544_v20, %s4386_s5  ;;  %1535 = vmatprep.subr.bf16.mxu0 %v1495_v52  ;;  %v4305_v51 = vld [vmem:[%s5754_s2 + $0x80] sm:$0xff]  }
 0x13c   : > { %2074 = vrot.lane.b32.xlu1 %v4547_v21, %s4386_s5  ;;  %1536 = vmatpush1.bf16.msra.mxu0 %v1494_v50 }
 0x13d   : > { %v1447_v13 = vpop.permute.xlu0 %1446 }
 0x13e   : > { %v1719_v54 = vpop.permute.xlu1 %1718  ;;  %v1487_v55 = vsel %vm1472_vm2, %v5047_v16, %v1447_v13 }
 0x13f   : > { %2076 = vrot.lane.b32.xlu0 %v4554_v22, %s4386_s5  ;;  %3884 = vmatprep.subr.bf16.mxu1 %v1487_v55 }
 0x140   : > { %2072 = vrot.lane.b32.xlu1 %v4557_v23, %s4386_s5  ;;  %3885 = vmatpush3.bf16.msra.mxu1 %v1487_v55 }
 0x141   : > { %v5146_v20 = vpop.permute.xlu0 %1720  ;;  %1554 = vmatmul.mubr.bf16.vlgmr.msra.gmra.mrb[0].mxu0 %v5062_v62 }
 0x142   : > { %v1717_v21 = vpop.permute.xlu1 %1716  ;;  %v1782_v56 = vsel %vm1780_vm3, %v1719_v54, %v5146_v20  ;;  %1563 = vmatprep.mubr.bf16.mxu0 %v4382_v25 }
 0x143   : > { %v1781_v14 = vsel %vm1780_vm3, %v1717_v21, %v1719_v54  ;;  %2054 = vrot.lane.b32.xlu0 %v4566_v24, %s4386_s5  ;;  %1829 = vmatprep.subr.bf16.mxu0 %v1782_v56 }
 0x144   : > { %2082 = vrot.lane.b32.xlu1 %v4577_v27, %s4386_s5  ;;  %1830 = vmatpush1.bf16.msra.mxu0 %v1781_v14 }
 0x145   : > { %v1455_v22 = vpop.permute.xlu0 %1454 }
 0x146   : > { %v1727_v23 = vpop.permute.xlu1 %1726  ;;  %v1490_v15 = vsel %vm1472_vm2, %v5077_v35, %v1455_v22  ;;  %v4304_v35 = vld [vmem:[%s5754_s2 + $0x78] sm:$0xff]  }
 0x147   : > { %2084 = vrot.lane.b32.xlu0 %v4585_v28, %s4386_s5  ;;  %3886 = vmatprep.subr.bf16.mxu1 %v1490_v15 }
 0x148   : > { %2080 = vrot.lane.b32.xlu1 %v4590_v29, %s4386_s5  ;;  %3887 = vmatpush3.bf16.msra.mxu1 %v1490_v15 }
 0x149   : > { %v5166_v24 = vpop.permute.xlu0 %1728  ;;  %1564 = vmatmul.mubr.bf16.gmra.mrb[4].mxu0 %v4302_v26 }
 0x14a   : > { %v1725_v27 = vpop.permute.xlu1 %1724  ;;  %v1785_v16 = vsel %vm1780_vm3, %v1727_v23, %v5166_v24  ;;  %1573 = vmatprep.mubr.bf16.mxu0 %v4382_v25 }
 0x14b   : > { %v1784_v28 = vsel %vm1780_vm3, %v1725_v27, %v1727_v23  ;;  %2062 = vrot.lane.b32.xlu0 %v4595_v30, %s4386_s5  ;;  %1831 = vmatprep.subr.bf16.mxu0 %v1785_v16 }
 0x14c   : > { %2334 = vrot.lane.b32.xlu1 %v4975_v42, %s4387_s14  ;;  %1832 = vmatpush1.bf16.msra.mxu0 %v1784_v28 }
 0x14d   : > { %v1463_v29 = vpop.permute.xlu0 %1462 }
 0x14e   : > { %v1735_v17 = vpop.permute.xlu1 %1734  ;;  %v1493_v60 = vsel %vm1472_vm2, %v5104_v40, %v1463_v29 }
 0x14f   : > { %2336 = vrot.lane.b32.xlu0 %v4985_v45, %s4387_s14  ;;  %3888 = vmatprep.subr.bf16.mxu1 %v1493_v60 }
 0x150   : > { %2332 = vrot.lane.b32.xlu1 %v4990_v46, %s4387_s14  ;;  %3889 = vmatpush3.bf16.msra.mxu1 %v1493_v60 }
 0x151   : > { %v5185_v30 = vpop.permute.xlu0 %1736  ;;  %1574 = vmatmul.mubr.bf16.gmra.mrb[8].mxu0 %v4303_v59 }
 0x152   : > { %v1733_v62 = vpop.permute.xlu1 %1732  ;;  %v1788_v63 = vsel %vm1780_vm3, %v1735_v17, %v5185_v30  ;;  %1583 = vmatprep.mubr.bf16.mxu0 %v4382_v25 }
 0x153   : > { %v1787_v18 = vsel %vm1780_vm3, %v1733_v62, %v1735_v17  ;;  %2070 = vrot.lane.b32.xlu0 %v4600_v31, %s4386_s5  ;;  %1833 = vmatprep.subr.bf16.mxu0 %v1788_v63  ;;  %v5282_v62 = vld [vmem:[%s4445_s26 + $0x94] ss:$12 sps:$4 sm:$0xff]  }
 0x154   : > { %2342 = vrot.lane.b32.xlu1 %v5003_v10, %s4387_s14  ;;  %1834 = vmatpush1.bf16.msra.mxu0 %v1787_v18 }
 0x155   : > { %v1471_v33 = vpop.permute.xlu0 %1470 }
 0x156   : > { %v1743_v36 = vpop.permute.xlu1 %1742  ;;  %v1496_v0 = vsel %vm1472_vm2, %v5131_v11, %v1471_v33  ;;  %v5226_v11 = vld [vmem:[%s4440_s23 + $0x38] sm:$0xff]  }
 0x157   : > { %2344 = vrot.lane.b32.xlu0 %v5013_v12, %s4387_s14  ;;  %3890 = vmatprep.subr.bf16.mxu1 %v1496_v0 }
 0x158   : > { %2340 = vrot.lane.b32.xlu1 %v5018_v53, %s4387_s14  ;;  %3891 = vmatpush3.bf16.msra.mxu1 %v1496_v0 }
 0x159   : > { %v5204_v31 = vpop.permute.xlu0 %1744  ;;  %1584 = vmatmul.mubr.bf16.gmra.mrb[12].mxu0 %v4304_v35 }
 0x15a   : > { %v1741_v37 = vpop.permute.xlu1 %1740  ;;  %v1791_v38 = vsel %vm1780_vm3, %v1743_v36, %v5204_v31  ;;  %1861 = vmatprep.mubr.bf16.mxu0 %v4382_v25 }
 0x15b   : > { %v1790_v3 = vsel %vm1780_vm3, %v1741_v37, %v1743_v36  ;;  %2078 = vrot.lane.b32.xlu0 %v5211_v39, %s4386_s5  ;;  %1835 = vmatprep.subr.bf16.mxu0 %v1791_v38  ;;  %v5293_v36 = vld [vmem:[%s4445_s26 + $0x90] ss:$12 sps:$4 sm:$0xff]  }
 0x15c   : > { %2350 = vrot.lane.b32.xlu1 %v5031_v58, %s4387_s14  ;;  %1836 = vmatpush1.bf16.msra.mxu0 %v1790_v3  ;;  %v5304_v3 = vld [vmem:[%s4440_s23 + $0x18] sm:$0xff]  }
 0x15d   : > { %v1723_v40 = vpop.permute.xlu0 %1722  ;;  %3893 = vmatmul.mubr.bf16.vlgmr.msra.gmra.mrb[0].mxu1 %v4302_v26 }
 0x15e   : > { %v1751_v41 = vpop.permute.xlu1 %1750  ;;  %v1783_v6 = vsel %vm1780_vm3, %v5146_v20, %v1723_v40  ;;  %3896 = vmatprep.mubr.bf16.mxu1 %v4303_v59  ;;  %v5309_v40 = vld [vmem:[%s4445_s26 + $0xac] ss:$12 sps:$4 sm:$0xff]  }
 0x15f   : > { %2352 = vrot.lane.b32.xlu0 %v5038_v57, %s4387_s14  ;;  %3900 = vmatprep.subr.bf16.mxu1 %v1783_v6 }
 0x160   : > { %2348 = vrot.lane.b32.xlu1 %v5043_v32, %s4387_s14  ;;  %3901 = vmatpush3.bf16.msra.mxu1 %v1783_v6 }
 0x161   : > { %v1753_v43 = vpop.permute.xlu0 %1752 }
 0x162   : > { %v1749_v44 = vpop.permute.xlu1 %1748  ;;  %v1794_v47 = vsel %vm1780_vm3, %v1751_v41, %v1753_v43 }
 0x163   : > { %v1793_v9 = vsel %vm1780_vm3, %v1749_v44, %v1751_v41  ;;  %2086 = vrot.lane.b32.xlu0 %v5226_v11, %s4386_s5  ;;  %1837 = vmatprep.subr.bf16.mxu0 %v1794_v47  ;;  %v5316_v44 = vld [vmem:[%s4445_s26 + $0xb0] ss:$12 sps:$4 sm:$0xff]   ;;  %v4306_v47 = vld [vmem:[%s5754_s2 + $0x88] sm:$0xff]  }
 0x164   : > { %2358 = vrot.lane.b32.xlu1 %v5055_v61, %s4387_s14  ;;  %1838 = vmatpush1.bf16.msra.mxu0 %v1793_v9  ;;  %v5324_v9 = vld [vmem:[%s4445_s26 + $0xa8] ss:$12 sps:$4 sm:$0xff]  }
 0x165   : > { %v1731_v52 = vpop.permute.xlu0 %1730  ;;  %3897 = vmatmul.mubr.bf16.gmra.mrb[4].mxu1 %v4304_v35  ;;  %v5288_v35 = vld [vmem:[%s4445_s26 + $0x98] ss:$12 sps:$4 sm:$0xff]   ;;  %s4388_s26 = smov 91  }
 0x166   : > { %v1759_v50 = vpop.permute.xlu1 %1758  ;;  %v1786_v13 = vsel %vm1780_vm3, %v5166_v24, %v1731_v52  ;;  %3916 = vmatprep.mubr.bf16.mxu1 %v4305_v51 }
 0x167   : > { %2360 = vrot.lane.b32.xlu0 %v5068_v19, %s4387_s14  ;;  %3902 = vmatprep.subr.bf16.mxu1 %v1786_v13 }
 0x168   : > { %2356 = vrot.lane.b32.xlu1 %v5073_v34, %s4387_s14  ;;  %3903 = vmatpush3.bf16.msra.mxu1 %v1786_v13 }
 0x169   : > { %v5241_v54 = vpop.permute.xlu0 %1760 }
 0x16a   : > { %v1757_v55 = vpop.permute.xlu1 %1756  ;;  %v1797_v20 = vsel %vm1780_vm3, %v1759_v50, %v5241_v54 }
 0x16b   : > { %v1796_v21 = vsel %vm1780_vm3, %v1757_v55, %v1759_v50  ;;  %2338 = vrot.lane.b32.xlu0 %v5083_v1, %s4387_s14  ;;  %1839 = vmatprep.subr.bf16.mxu0 %v1797_v20  ;;  %v4307_v20 = vld [vmem:[%s5754_s2 + $0x90] sm:$0xff]  }
 0x16c   : > { %2366 = vrot.lane.b32.xlu1 %v5088_v2, %s4387_s14  ;;  %1840 = vmatpush1.bf16.msra.mxu0 %v1796_v21 }
 0x16d   : > { %v1739_v56 = vpop.permute.xlu0 %1738 }
 0x16e   : > { %v1767_v14 = vpop.permute.xlu1 %1766  ;;  %v1789_v22 = vsel %vm1780_vm3, %v5185_v30, %v1739_v56  ;;  %v5277_v30 = vld [vmem:[%s4440_s23 + $0x10] sm:$0xff]  }
 0x16f   : > { %2368 = vrot.lane.b32.xlu0 %v5095_v4, %s4387_s14  ;;  %3904 = vmatprep.subr.bf16.mxu1 %v1789_v22 }
 0x170   : > { %2364 = vrot.lane.b32.xlu1 %v5100_v5, %s4387_s14  ;;  %3905 = vmatpush3.bf16.msra.mxu1 %v1789_v22 }
 0x171   : > { %v5256_v23 = vpop.permute.xlu0 %1768 }
 0x172   : > { %v1765_v15 = vpop.permute.xlu1 %1764  ;;  %v1800_v26 = vsel %vm1780_vm3, %v1767_v14, %v5256_v23 }
 0x173   : > { %v1799_v24 = vsel %vm1780_vm3, %v1765_v15, %v1767_v14  ;;  %2346 = vrot.lane.b32.xlu0 %v5110_v7, %s4387_s14  ;;  %1841 = vmatprep.subr.bf16.mxu0 %v1800_v26 }
 0x174   : > { %2374 = vrot.lane.b32.xlu1 %v5115_v8, %s4387_s14  ;;  %1842 = vmatpush1.bf16.msra.mxu0 %v1799_v24 }
 0x175   : > { %v1747_v27 = vpop.permute.xlu0 %1746 }
 0x176   : > { %v1775_v16 = vpop.permute.xlu1 %1774  ;;  %v1792_v28 = vsel %vm1780_vm3, %v5204_v31, %v1747_v27  ;;  %v4308_v27 = vld [vmem:[%s5754_s2 + $0x98] sm:$0xff]  }
 0x177   : > { %2376 = vrot.lane.b32.xlu0 %v5122_v48, %s4387_s14  ;;  %3906 = vmatprep.subr.bf16.mxu1 %v1792_v28 }
 0x178   : > { %2372 = vrot.lane.b32.xlu1 %v5127_v49, %s4387_s14  ;;  %3907 = vmatpush3.bf16.msra.mxu1 %v1792_v28 }
 0x179   : > { %v5271_v29 = vpop.permute.xlu0 %1776 }
 0x17a   : > { %v1773_v59 = vpop.permute.xlu1 %1772  ;;  %v1803_v17 = vsel %vm1780_vm3, %v1775_v16, %v5271_v29 }
 0x17b   : > { %v1802_v60 = vsel %vm1780_vm3, %v1773_v59, %v1775_v16  ;;  %2354 = vrot.lane.b32.xlu0 %v5277_v30, %s4387_s14  ;;  %1843 = vmatprep.subr.bf16.mxu0 %v1803_v17 }
 0x17c   : > { %2382 = vrot.lane.b32.xlu1 %v5282_v62, %s4387_s14  ;;  %1844 = vmatpush1.bf16.msra.mxu0 %v1802_v60 }
 0x17d   : > { %v1755_v63 = vpop.permute.xlu0 %1754 }
 0x17e   : > { %v2027_v18 = vpop.permute.xlu1 %2026  ;;  %v1795_v33 = vsel %vm1780_vm3, %v1753_v43, %v1755_v63 }
 0x17f   : > { %2384 = vrot.lane.b32.xlu0 %v5288_v35, %s4387_s14  ;;  %3908 = vmatprep.subr.bf16.mxu1 %v1795_v33 }
 0x180   : > { %2380 = vrot.lane.b32.xlu1 %v5293_v36, %s4387_s14  ;;  %3909 = vmatpush3.bf16.msra.mxu1 %v1795_v33 }
 0x181   : > { %v5297_v0 = vpop.permute.xlu0 %2028  ;;  %1862 = vmatmul.mubr.bf16.vlgmr.msra.gmra.mrb[0].mxu0 %v4305_v51 }
 0x182   : > { %v2025_v31 = vpop.permute.xlu1 %2024  ;;  %v2090_v37 = vsel %vm2088_vm4, %v2027_v18, %v5297_v0  ;;  %1871 = vmatprep.mubr.bf16.mxu0 %v4382_v25 }
 0x183   : > { %v2089_v38 = vsel %vm2088_vm4, %v2025_v31, %v2027_v18  ;;  %2362 = vrot.lane.b32.xlu0 %v5304_v3, %s4387_s14  ;;  %2137 = vmatprep.subr.bf16.mxu0 %v2090_v37 }
 0x184   : > { %2390 = vrot.lane.b32.xlu1 %v5309_v40, %s4387_s14  ;;  %2138 = vmatpush1.bf16.msra.mxu0 %v2089_v38 }
 0x185   : > { %v1763_v41 = vpop.permute.xlu0 %1762 }
 0x186   : > { %v2035_v6 = vpop.permute.xlu1 %2034  ;;  %v1798_v43 = vsel %vm1780_vm3, %v5241_v54, %v1763_v41  ;;  %v5335_v54 = vld [vmem:[%s4440_s23 + $0x20] sm:$0xff]  }
 0x187   : > { %2392 = vrot.lane.b32.xlu0 %v5316_v44, %s4387_s14  ;;  %3910 = vmatprep.subr.bf16.mxu1 %v1798_v43 }
 0x188   : > { %2388 = vrot.lane.b32.xlu1 %v5324_v9, %s4387_s14  ;;  %3911 = vmatpush3.bf16.msra.mxu1 %v1798_v43 }
 0x189   : > { %v5328_v51 = vpop.permute.xlu0 %2036  ;;  %1872 = vmatmul.mubr.bf16.gmra.mrb[4].mxu0 %v4306_v47 }
 0x18a   : > { %v2033_v52 = vpop.permute.xlu1 %2032  ;;  %v2093_v50 = vsel %vm2088_vm4, %v2035_v6, %v5328_v51  ;;  %1881 = vmatprep.mubr.bf16.mxu0 %v4382_v25 }
 0x18b   : > { %v2092_v13 = vsel %vm2088_vm4, %v2033_v52, %v2035_v6  ;;  %2370 = vrot.lane.b32.xlu0 %v5335_v54, %s4387_s14  ;;  %2139 = vmatprep.subr.bf16.mxu0 %v2093_v50 }
 0x18c   : > { %2642 = vrot.lane.b32.xlu1 %v4975_v42, %s4388_s26  ;;  %2140 = vmatpush1.bf16.msra.mxu0 %v2092_v13 }
 0x18d   : > { %v1771_v55 = vpop.permute.xlu0 %1770 }
 0x18e   : > { %v2043_v21 = vpop.permute.xlu1 %2042  ;;  %v1801_v56 = vsel %vm1780_vm3, %v5256_v23, %v1771_v55  ;;  %v5357_v23 = vld [vmem:[%s4440_s23 + $0x28] sm:$0xff]  }
 0x18f   : > { %2644 = vrot.lane.b32.xlu0 %v4985_v45, %s4388_s26  ;;  %3912 = vmatprep.subr.bf16.mxu1 %v1801_v56 }
 0x190   : > { %2640 = vrot.lane.b32.xlu1 %v4990_v46, %s4388_s26  ;;  %3913 = vmatpush3.bf16.msra.mxu1 %v1801_v56 }
 0x191   : > { %v5350_v14 = vpop.permute.xlu0 %2044  ;;  %1882 = vmatmul.mubr.bf16.gmra.mrb[8].mxu0 %v4307_v20 }
 0x192   : > { %v2041_v22 = vpop.permute.xlu1 %2040  ;;  %v2096_v15 = vsel %vm2088_vm4, %v2043_v21, %v5350_v14  ;;  %1891 = vmatprep.mubr.bf16.mxu0 %v4382_v25 }
 0x193   : > { %v2095_v26 = vsel %vm2088_vm4, %v2041_v22, %v2043_v21  ;;  %2378 = vrot.lane.b32.xlu0 %v5357_v23, %s4387_s14  ;;  %2141 = vmatprep.subr.bf16.mxu0 %v2096_v15 }
 0x194   : > { %2650 = vrot.lane.b32.xlu1 %v5003_v10, %s4388_s26  ;;  %2142 = vmatpush1.bf16.msra.mxu0 %v2095_v26 }
 0x195   : > { %v1779_v24 = vpop.permute.xlu0 %1778 }
 0x196   : > { %v2051_v16 = vpop.permute.xlu1 %2050  ;;  %v1804_v28 = vsel %vm1780_vm3, %v5271_v29, %v1779_v24 }
 0x197   : > { %2652 = vrot.lane.b32.xlu0 %v5013_v12, %s4388_s26  ;;  %3914 = vmatprep.subr.bf16.mxu1 %v1804_v28 }
 0x198   : > { %2648 = vrot.lane.b32.xlu1 %v5018_v53, %s4388_s26  ;;  %3915 = vmatpush3.bf16.msra.mxu1 %v1804_v28 }
 0x199   : > { %v5372_v59 = vpop.permute.xlu0 %2052  ;;  %1892 = vmatmul.mubr.bf16.gmra.mrb[12].mxu0 %v4308_v27 }
 0x19a   : > { %v2049_v17 = vpop.permute.xlu1 %2048  ;;  %v2099_v60 = vsel %vm2088_vm4, %v2051_v16, %v5372_v59  ;;  %2169 = vmatprep.mubr.bf16.mxu0 %v4382_v25 }
 0x19b   : > { %v2098_v63 = vsel %vm2088_vm4, %v2049_v17, %v2051_v16  ;;  %2386 = vrot.lane.b32.xlu0 %v5211_v39, %s4387_s14  ;;  %2143 = vmatprep.subr.bf16.mxu0 %v2099_v60 }
 0x19c   : > { %2658 = vrot.lane.b32.xlu1 %v5031_v58, %s4388_s26  ;;  %2144 = vmatpush1.bf16.msra.mxu0 %v2098_v63 }
 0x19d   : > { %v2031_v29 = vpop.permute.xlu0 %2030  ;;  %3917 = vmatmul.mubr.bf16.vlgmr.msra.gmra.mrb[0].mxu1 %v4306_v47 }
 0x19e   : > { %v2059_v18 = vpop.permute.xlu1 %2058  ;;  %v2091_v33 = vsel %vm2088_vm4, %v5297_v0, %v2031_v29  ;;  %3920 = vmatprep.mubr.bf16.mxu1 %v4307_v20  ;;  %v4309_v0 = vld [vmem:[%s5754_s2 + $0xa0] sm:$0xff]  }
 0x19f   : > { %2660 = vrot.lane.b32.xlu0 %v5038_v57, %s4388_s26  ;;  %3924 = vmatprep.subr.bf16.mxu1 %v2091_v33 }
 0x1a0   : > { %2656 = vrot.lane.b32.xlu1 %v5043_v32, %s4388_s26  ;;  %3925 = vmatpush3.bf16.msra.mxu1 %v2091_v33 }
 0x1a1   : > { %v2061_v31 = vpop.permute.xlu0 %2060 }
 0x1a2   : > { %v2057_v37 = vpop.permute.xlu1 %2056  ;;  %v2102_v38 = vsel %vm2088_vm4, %v2059_v18, %v2061_v31 }
 0x1a3   : > { %v2101_v41 = vsel %vm2088_vm4, %v2057_v37, %v2059_v18  ;;  %2394 = vrot.lane.b32.xlu0 %v5226_v11, %s4387_s14  ;;  %2145 = vmatprep.subr.bf16.mxu0 %v2102_v38  ;;  %s5725_s14 = scalar_lea.vmem %s5756_s4, %s4213_s12 }
 0x1a4   : > { %2666 = vrot.lane.b32.xlu1 %v5055_v61, %s4388_s26  ;;  %2146 = vmatpush1.bf16.msra.mxu0 %v2101_v41 }
 0x1a5   : > { %v2039_v6 = vpop.permute.xlu0 %2038  ;;  %3921 = vmatmul.mubr.bf16.gmra.mrb[4].mxu1 %v4308_v27 }
 0x1a6   : > { %v2067_v43 = vpop.permute.xlu1 %2066  ;;  %v2094_v47 = vsel %vm2088_vm4, %v5328_v51, %v2039_v6  ;;  %3940 = vmatprep.mubr.bf16.mxu1 %v4309_v0  ;;  %v4310_v6 = vld [vmem:[%s5754_s2 + $0xa8] sm:$0xff]  }
 0x1a7   : > { %2668 = vrot.lane.b32.xlu0 %v5068_v19, %s4388_s26  ;;  %3926 = vmatprep.subr.bf16.mxu1 %v2094_v47 }
 0x1a8   : > { %2664 = vrot.lane.b32.xlu1 %v5073_v34, %s4388_s26  ;;  %3927 = vmatpush3.bf16.msra.mxu1 %v2094_v47 }
 0x1a9   : > { %v2069_v52 = vpop.permute.xlu0 %2068 }
 0x1aa   : > { %v2065_v50 = vpop.permute.xlu1 %2064  ;;  %v2105_v13 = vsel %vm2088_vm4, %v2067_v43, %v2069_v52 }
 0x1ab   : > { %v2104_v55 = vsel %vm2088_vm4, %v2065_v50, %v2067_v43  ;;  %2646 = vrot.lane.b32.xlu0 %v5083_v1, %s4388_s26  ;;  %2147 = vmatprep.subr.bf16.mxu0 %v2105_v13 }
 0x1ac   : > { %2674 = vrot.lane.b32.xlu1 %v5088_v2, %s4388_s26  ;;  %2148 = vmatpush1.bf16.msra.mxu0 %v2104_v55  ;;  %v4311_v55 = vld [vmem:[%s5754_s2 + $0xb0] sm:$0xff]  }
 0x1ad   : > { %v2047_v51 = vpop.permute.xlu0 %2046 }
 0x1ae   : > { %v2075_v20 = vpop.permute.xlu1 %2074  ;;  %v2097_v21 = vsel %vm2088_vm4, %v5350_v14, %v2047_v51 }
 0x1af   : > { %2676 = vrot.lane.b32.xlu0 %v5095_v4, %s4388_s26  ;;  %3928 = vmatprep.subr.bf16.mxu1 %v2097_v21 }
 0x1b0   : > { %2672 = vrot.lane.b32.xlu1 %v5100_v5, %s4388_s26  ;;  %3929 = vmatpush3.bf16.msra.mxu1 %v2097_v21 }
 0x1b1   : > { %v5415_v56 = vpop.permute.xlu0 %2076 }
 0x1b2   : > { %v2073_v22 = vpop.permute.xlu1 %2072  ;;  %v2108_v15 = vsel %vm2088_vm4, %v2075_v20, %v5415_v56 }
 0x1b3   : > { %v2107_v26 = vsel %vm2088_vm4, %v2073_v22, %v2075_v20  ;;  %2654 = vrot.lane.b32.xlu0 %v5110_v7, %s4388_s26  ;;  %2149 = vmatprep.subr.bf16.mxu0 %v2108_v15 }
 0x1b4   : > { %2682 = vrot.lane.b32.xlu1 %v5115_v8, %s4388_s26  ;;  %2150 = vmatpush1.bf16.msra.mxu0 %v2107_v26 }
 0x1b5   : > { %v2055_v14 = vpop.permute.xlu0 %2054 }
 0x1b6   : > { %v2083_v24 = vpop.permute.xlu1 %2082  ;;  %v2100_v27 = vsel %vm2088_vm4, %v5372_v59, %v2055_v14 }
 0x1b7   : > { %2684 = vrot.lane.b32.xlu0 %v5122_v48, %s4388_s26  ;;  %3930 = vmatprep.subr.bf16.mxu1 %v2100_v27 }
 0x1b8   : > { %2680 = vrot.lane.b32.xlu1 %v5127_v49, %s4388_s26  ;;  %3931 = vmatpush3.bf16.msra.mxu1 %v2100_v27 }
 0x1b9   : > { %v5430_v16 = vpop.permute.xlu0 %2084 }
 0x1ba   : > { %v2081_v28 = vpop.permute.xlu1 %2080  ;;  %v2111_v17 = vsel %vm2088_vm4, %v2083_v24, %v5430_v16 }
 0x1bb   : > { %v2110_v60 = vsel %vm2088_vm4, %v2081_v28, %v2083_v24  ;;  %2662 = vrot.lane.b32.xlu0 %v5277_v30, %s4388_s26  ;;  %2151 = vmatprep.subr.bf16.mxu0 %v2111_v17 }
 0x1bc   : > { %2690 = vrot.lane.b32.xlu1 %v5282_v62, %s4388_s26  ;;  %2152 = vmatpush1.bf16.msra.mxu0 %v2110_v60 }
 0x1bd   : > { %v2063_v59 = vpop.permute.xlu0 %2062 }
 0x1be   : > { %v2335_v63 = vpop.permute.xlu1 %2334  ;;  %v2103_v29 = vsel %vm2088_vm4, %v2061_v31, %v2063_v59 }
 0x1bf   : > { %2692 = vrot.lane.b32.xlu0 %v5288_v35, %s4388_s26  ;;  %3932 = vmatprep.subr.bf16.mxu1 %v2103_v29 }
 0x1c0   : > { %2688 = vrot.lane.b32.xlu1 %v5293_v36, %s4388_s26  ;;  %3933 = vmatpush3.bf16.msra.mxu1 %v2103_v29 }
 0x1c1   : > { %v5444_v18 = vpop.permute.xlu0 %2336  ;;  %2170 = vmatmul.mubr.bf16.vlgmr.msra.gmra.mrb[0].mxu0 %v4309_v0 }
 0x1c2   : > { %v2333_v33 = vpop.permute.xlu1 %2332  ;;  %v2398_v37 = vsel %vm2396_vm5, %v2335_v63, %v5444_v18  ;;  %2179 = vmatprep.mubr.bf16.mxu0 %v4382_v25 }
 0x1c3   : > { %v2397_v31 = vsel %vm2396_vm5, %v2333_v33, %v2335_v63  ;;  %2670 = vrot.lane.b32.xlu0 %v5304_v3, %s4388_s26  ;;  %2445 = vmatprep.subr.bf16.mxu0 %v2398_v37 }
 0x1c4   : > { %2698 = vrot.lane.b32.xlu1 %v5309_v40, %s4388_s26  ;;  %2446 = vmatpush1.bf16.msra.mxu0 %v2397_v31 }
 0x1c5   : > { %v2071_v38 = vpop.permute.xlu0 %2070 }
 0x1c6   : > { %v2343_v41 = vpop.permute.xlu1 %2342  ;;  %v2106_v0 = vsel %vm2088_vm4, %v2069_v52, %v2071_v38 }
 0x1c7   : > { %2700 = vrot.lane.b32.xlu0 %v5316_v44, %s4388_s26  ;;  %3934 = vmatprep.subr.bf16.mxu1 %v2106_v0 }
 0x1c8   : > { %2696 = vrot.lane.b32.xlu1 %v5324_v9, %s4388_s26  ;;  %3935 = vmatpush3.bf16.msra.mxu1 %v2106_v0 }
 0x1c9   : > { %v5462_v43 = vpop.permute.xlu0 %2344  ;;  %2180 = vmatmul.mubr.bf16.gmra.mrb[4].mxu0 %v4310_v6 }
 0x1ca   : > { %v2341_v47 = vpop.permute.xlu1 %2340  ;;  %v2401_v50 = vsel %vm2396_vm5, %v2343_v41, %v5462_v43  ;;  %2189 = vmatprep.mubr.bf16.mxu0 %v4382_v25 }
 0x1cb   : > { %v2400_v52 = vsel %vm2396_vm5, %v2341_v47, %v2343_v41  ;;  %2678 = vrot.lane.b32.xlu0 %v5335_v54, %s4388_s26  ;;  %2447 = vmatprep.subr.bf16.mxu0 %v2401_v50 }
 0x1cc   : > { %2950 = vrot.lane.b32.xlu1 %v4975_v42, %s4389_s11  ;;  %2448 = vmatpush1.bf16.msra.mxu0 %v2400_v52 }
 0x1cd   : > { %v2079_v13 = vpop.permute.xlu0 %2078 }
 0x1ce   : > { %v2351_v51 = vpop.permute.xlu1 %2350  ;;  %v2109_v20 = vsel %vm2088_vm4, %v5415_v56, %v2079_v13  ;;  %v4314_v13 = vld [vmem:[%s5754_s2 + $0xc8] sm:$0xff]  }
 0x1cf   : > { %2952 = vrot.lane.b32.xlu0 %v4985_v45, %s4389_s11  ;;  %3936 = vmatprep.subr.bf16.mxu1 %v2109_v20 }
 0x1d0   : > { %2948 = vrot.lane.b32.xlu1 %v4990_v46, %s4389_s11  ;;  %3937 = vmatpush3.bf16.msra.mxu1 %v2109_v20  ;;  %v4312_v46 = vld [vmem:[%s5754_s2 + $0xb8] sm:$0xff]  }
 0x1d1   : > { %v5481_v21 = vpop.permute.xlu0 %2352  ;;  %2190 = vmatmul.mubr.bf16.gmra.mrb[8].mxu0 %v4311_v55 }
 0x1d2   : > { %v2349_v42 = vpop.permute.xlu1 %2348  ;;  %v2404_v22 = vsel %vm2396_vm5, %v2351_v51, %v5481_v21  ;;  %2199 = vmatprep.mubr.bf16.mxu0 %v4382_v25 }
 0x1d3   : > { %v2403_v15 = vsel %vm2396_vm5, %v2349_v42, %v2351_v51  ;;  %2686 = vrot.lane.b32.xlu0 %v5357_v23, %s4388_s26  ;;  %2449 = vmatprep.subr.bf16.mxu0 %v2404_v22  ;;  %v4315_v51 = vld [vmem:[%s5754_s2 + $0xd0] sm:$0xff]  }
 0x1d4   : > { %2958 = vrot.lane.b32.xlu1 %v5003_v10, %s4389_s11  ;;  %2450 = vmatpush1.bf16.msra.mxu0 %v2403_v15 }
 0x1d5   : > { %v2087_v45 = vpop.permute.xlu0 %2086 }
 0x1d6   : > { %v2359_v56 = vpop.permute.xlu1 %2358  ;;  %v2112_v26 = vsel %vm2088_vm4, %v5430_v16, %v2087_v45 }
 0x1d7   : > { %2960 = vrot.lane.b32.xlu0 %v5013_v12, %s4389_s11  ;;  %3938 = vmatprep.subr.bf16.mxu1 %v2112_v26 }
 0x1d8   : > { %2956 = vrot.lane.b32.xlu1 %v5018_v53, %s4389_s11  ;;  %3939 = vmatpush3.bf16.msra.mxu1 %v2112_v26 }
 0x1d9   : > { %v5500_v14 = vpop.permute.xlu0 %2360  ;;  %2200 = vmatmul.mubr.bf16.gmra.mrb[12].mxu0 %v4312_v46 }
 0x1da   : > { %v2357_v10 = vpop.permute.xlu1 %2356  ;;  %v2407_v24 = vsel %vm2396_vm5, %v2359_v56, %v5500_v14  ;;  %2477 = vmatprep.mubr.bf16.mxu0 %v4382_v25 }
 0x1db   : > { %v2406_v27 = vsel %vm2396_vm5, %v2357_v10, %v2359_v56  ;;  %2694 = vrot.lane.b32.xlu0 %v5211_v39, %s4388_s26  ;;  %2451 = vmatprep.subr.bf16.mxu0 %v2407_v24  ;;  %v3224_v56 = vld [vmem:[%s5755_s3 + $0x8] sm:$0xff]  ;;  %v3226_v24 = vld [vmem:[%s5755_s3 + $0x18] sm:$0xff] }
 0x1dc   : > { %2966 = vrot.lane.b32.xlu1 %v5031_v58, %s4389_s11  ;;  %2452 = vmatpush1.bf16.msra.mxu0 %v2406_v27  ;;  %v3225_v27 = vld [vmem:[%s5755_s3 + $0x10] sm:$0xff] }
 0x1dd   : > { %v2339_v12 = vpop.permute.xlu0 %2338  ;;  %3941 = vmatmul.mubr.bf16.vlgmr.msra.gmra.mrb[0].mxu1 %v4310_v6 }
 0x1de   : > { %v2367_v53 = vpop.permute.xlu1 %2366  ;;  %v2399_v16 = vsel %vm2396_vm5, %v5444_v18, %v2339_v12  ;;  %3944 = vmatprep.mubr.bf16.mxu1 %v4311_v55 }
 0x1df   : > { %2968 = vrot.lane.b32.xlu0 %v5038_v57, %s4389_s11  ;;  %3948 = vmatprep.subr.bf16.mxu1 %v2399_v16  ;;  %v4313_v57 = vld [vmem:[%s5754_s2 + $0xc0] sm:$0xff]  }
 0x1e0   : > { %2964 = vrot.lane.b32.xlu1 %v5043_v32, %s4389_s11  ;;  %3949 = vmatpush3.bf16.msra.mxu1 %v2399_v16 }
 0x1e1   : > { %v2369_v28 = vpop.permute.xlu0 %2368 }
 0x1e2   : > { %v2365_v17 = vpop.permute.xlu1 %2364  ;;  %v2410_v58 = vsel %vm2396_vm5, %v2367_v53, %v2369_v28 }
 0x1e3   : > { %v2409_v60 = vsel %vm2396_vm5, %v2365_v17, %v2367_v53  ;;  %2702 = vrot.lane.b32.xlu0 %v5226_v11, %s4388_s26  ;;  %2453 = vmatprep.subr.bf16.mxu0 %v2410_v58  ;;  %v3228_v17 = vld [vmem:[%s5755_s3 + $0x28] sm:$0xff]  ;;  %v3227_v58 = vld [vmem:[%s5755_s3 + $0x20] sm:$0xff] }
 0x1e4   : > { %2974 = vrot.lane.b32.xlu1 %v5055_v61, %s4389_s11  ;;  %2454 = vmatpush1.bf16.msra.mxu0 %v2409_v60 }
 0x1e5   : > { %v2347_v32 = vpop.permute.xlu0 %2346  ;;  %3945 = vmatmul.mubr.bf16.gmra.mrb[4].mxu1 %v4312_v46  ;;  %v3223_v46 = vld [vmem:[%s5755_s3] sm:$0xff] }
 0x1e6   : > { %v2375_v59 = vpop.permute.xlu1 %2374  ;;  %v2402_v63 = vsel %vm2396_vm5, %v5462_v43, %v2347_v32  ;;  %3964 = vmatprep.mubr.bf16.mxu1 %v4313_v57 }
 0x1e7   : > { %2976 = vrot.lane.b32.xlu0 %v5068_v19, %s4389_s11  ;;  %3950 = vmatprep.subr.bf16.mxu1 %v2402_v63 }
 0x1e8   : > { %2972 = vrot.lane.b32.xlu1 %v5073_v34, %s4389_s11  ;;  %3951 = vmatpush3.bf16.msra.mxu1 %v2402_v63  ;;  %v3230_v63 = vld [vmem:[%s5755_s3 + $0x38] sm:$0xff] }
 0x1e9   : > { %v2377_v61 = vpop.permute.xlu0 %2376 }
 0x1ea   : > { %v2373_v29 = vpop.permute.xlu1 %2372  ;;  %v2413_v18 = vsel %vm2396_vm5, %v2375_v59, %v2377_v61 }
 0x1eb   : > { %v2412_v33 = vsel %vm2396_vm5, %v2373_v29, %v2375_v59  ;;  %2954 = vrot.lane.b32.xlu0 %v5083_v1, %s4389_s11  ;;  %2455 = vmatprep.subr.bf16.mxu0 %v2413_v18  ;;  %v4317_v59 = vld [vmem:[%s5754_s2 + $0xe0] sm:$0xff]  }
 0x1ec   : > { %2982 = vrot.lane.b32.xlu1 %v5088_v2, %s4389_s11  ;;  %2456 = vmatpush1.bf16.msra.mxu0 %v2412_v33 }
 0x1ed   : > { %v2355_v19 = vpop.permute.xlu0 %2354 }
 0x1ee   : > { %v2383_v37 = vpop.permute.xlu1 %2382  ;;  %v2405_v34 = vsel %vm2396_vm5, %v5481_v21, %v2355_v19 }
 0x1ef   : > { %2984 = vrot.lane.b32.xlu0 %v5095_v4, %s4389_s11  ;;  %3952 = vmatprep.subr.bf16.mxu1 %v2405_v34 }
 0x1f0   : > { %2980 = vrot.lane.b32.xlu1 %v5100_v5, %s4389_s11  ;;  %3953 = vmatpush3.bf16.msra.mxu1 %v2405_v34 }
 0x1f1   : > { %v5543_v31 = vpop.permute.xlu0 %2384 }
 0x1f2   : > { %v2381_v1 = vpop.permute.xlu1 %2380  ;;  %v2416_v2 = vsel %vm2396_vm5, %v2383_v37, %v5543_v31 }
 0x1f3   : > { %v2415_v38 = vsel %vm2396_vm5, %v2381_v1, %v2383_v37  ;;  %2962 = vrot.lane.b32.xlu0 %v5110_v7, %s4389_s11  ;;  %2457 = vmatprep.subr.bf16.mxu0 %v2416_v2 }
 0x1f4   : > { %2990 = vrot.lane.b32.xlu1 %v5115_v8, %s4389_s11  ;;  %2458 = vmatpush1.bf16.msra.mxu0 %v2415_v38 }
 0x1f5   : > { %v2363_v4 = vpop.permute.xlu0 %2362 }
 0x1f6   : > { %v2391_v41 = vpop.permute.xlu1 %2390  ;;  %v2408_v5 = vsel %vm2396_vm5, %v5500_v14, %v2363_v4 }
 0x1f7   : > { %2992 = vrot.lane.b32.xlu0 %v5122_v48, %s4389_s11  ;;  %3954 = vmatprep.subr.bf16.mxu1 %v2408_v5 }
 0x1f8   : > { %2988 = vrot.lane.b32.xlu1 %v5127_v49, %s4389_s11  ;;  %3955 = vmatpush3.bf16.msra.mxu1 %v2408_v5 }
 0x1f9   : > { %v5558_v0 = vpop.permute.xlu0 %2392 }
 0x1fa   : > { %v2389_v7 = vpop.permute.xlu1 %2388  ;;  %v2419_v8 = vsel %vm2396_vm5, %v2391_v41, %v5558_v0 }
 0x1fb   : > { %v2418_v6 = vsel %vm2396_vm5, %v2389_v7, %v2391_v41  ;;  %2970 = vrot.lane.b32.xlu0 %v5277_v30, %s4389_s11  ;;  %2459 = vmatprep.subr.bf16.mxu0 %v2419_v8 }
 0x1fc   : > { %2998 = vrot.lane.b32.xlu1 %v5282_v62, %s4389_s11  ;;  %2460 = vmatpush1.bf16.msra.mxu0 %v2418_v6 }
 0x1fd   : > { %v2371_v48 = vpop.permute.xlu0 %2370 }
 0x1fe   : > { %v2643_v43 = vpop.permute.xlu1 %2642  ;;  %v2411_v49 = vsel %vm2396_vm5, %v2369_v28, %v2371_v48 }
 0x1ff   : > { %3000 = vrot.lane.b32.xlu0 %v5288_v35, %s4389_s11  ;;  %3956 = vmatprep.subr.bf16.mxu1 %v2411_v49 }
 0x200   : > { %2996 = vrot.lane.b32.xlu1 %v5293_v36, %s4389_s11  ;;  %3957 = vmatpush3.bf16.msra.mxu1 %v2411_v49 }
 0x201   : > { %v5572_v47 = vpop.permute.xlu0 %2644  ;;  %2478 = vmatmul.mubr.bf16.vlgmr.msra.gmra.mrb[0].mxu0 %v4313_v57 }
 0x202   : > { %v2641_v30 = vpop.permute.xlu1 %2640  ;;  %v2706_v62 = vsel %vm2704_vm6, %v2643_v43, %v5572_v47  ;;  %2487 = vmatprep.mubr.bf16.mxu0 %v4382_v25 }
 0x203   : > { %v2705_v50 = vsel %vm2704_vm6, %v2641_v30, %v2643_v43  ;;  %2978 = vrot.lane.b32.xlu0 %v5304_v3, %s4389_s11  ;;  %2753 = vmatprep.subr.bf16.mxu0 %v2706_v62 }
 0x204   : > { %3006 = vrot.lane.b32.xlu1 %v5309_v40, %s4389_s11  ;;  %2754 = vmatpush1.bf16.msra.mxu0 %v2705_v50 }
 0x205   : > { %v2379_v35 = vpop.permute.xlu0 %2378 }
 0x206   : > { %v2651_v36 = vpop.permute.xlu1 %2650  ;;  %v2414_v52 = vsel %vm2396_vm5, %v2377_v61, %v2379_v35  ;;  %v3229_v61 = vld [vmem:[%s5755_s3 + $0x30] sm:$0xff] }
 0x207   : > { %3008 = vrot.lane.b32.xlu0 %v5316_v44, %s4389_s11  ;;  %3958 = vmatprep.subr.bf16.mxu1 %v2414_v52 }
 0x208   : > { %3004 = vrot.lane.b32.xlu1 %v5324_v9, %s4389_s11  ;;  %3959 = vmatpush3.bf16.msra.mxu1 %v2414_v52 }
 0x209   : > { %v5590_v3 = vpop.permute.xlu0 %2652  ;;  %2488 = vmatmul.mubr.bf16.gmra.mrb[4].mxu0 %v4314_v13 }
 0x20a   : > { %v2649_v40 = vpop.permute.xlu1 %2648  ;;  %v2709_v55 = vsel %vm2704_vm6, %v2651_v36, %v5590_v3  ;;  %2497 = vmatprep.mubr.bf16.mxu0 %v4382_v25 }
 0x20b   : > { %v2708_v44 = vsel %vm2704_vm6, %v2649_v40, %v2651_v36  ;;  %2986 = vrot.lane.b32.xlu0 %v5335_v54, %s4389_s11  ;;  %2755 = vmatprep.subr.bf16.mxu0 %v2709_v55  ;;  %v4318_v55 = vld [vmem:[%s5754_s2 + $0xe8] sm:$0xff]  }
 0x20c   : > { %2994 = vrot.lane.b32.xlu1 %v5357_v23, %s4389_s11  ;;  %2756 = vmatpush1.bf16.msra.mxu0 %v2708_v44 }
 0x20d   : > { %v2387_v9 = vpop.permute.xlu0 %2386 }
 0x20e   : > { %v2659_v20 = vpop.permute.xlu1 %2658  ;;  %v2417_v21 = vsel %vm2396_vm5, %v5543_v31, %v2387_v9 }
 0x20f   : > { %3002 = vrot.lane.b32.xlu0 %v5211_v39, %s4389_s11  ;;  %3960 = vmatprep.subr.bf16.mxu1 %v2417_v21  ;;  %v4316_v39 = vld [vmem:[%s5754_s2 + $0xd8] sm:$0xff]  }
 0x210   : > { %3010 = vrot.lane.b32.xlu1 %v5226_v11, %s4389_s11  ;;  %3961 = vmatpush3.bf16.msra.mxu1 %v2417_v21 }
 0x211   : > { %v5609_v54 = vpop.permute.xlu0 %2660  ;;  %2498 = vmatmul.mubr.bf16.gmra.mrb[8].mxu0 %v4315_v51 }
 0x212   : > { %v2657_v23 = vpop.permute.xlu1 %2656  ;;  %v2712_v42 = vsel %vm2704_vm6, %v2659_v20, %v5609_v54  ;;  %2507 = vmatprep.mubr.bf16.mxu0 %v4382_v25 }
 0x213   : > { %v2711_v22 = vsel %vm2704_vm6, %v2657_v23, %v2659_v20  ;;  %2757 = vmatprep.subr.bf16.mxu0 %v2712_v42  ;;  %3233 = vperm.xlu0 %4247, %v3223_v46   ;;  %v4319_v23 = vld [vmem:[%s5754_s2 + $0xf0] sm:$0xff]  }
 0x214   : > { %2758 = vmatpush1.bf16.msra.mxu0 %v2711_v22  ;;  %3238 = vperm.xlu1 %4248, %v3224_v56   ;;  %v4320_v56 = vld [vmem:[%s5754_s2 + $0xf8] sm:$0xff]  }
 0x215   : > { %v2395_v15 = vpop.permute.xlu0 %2394 }
 0x216   : > { %v2667_v11 = vpop.permute.xlu1 %2666  ;;  %v2420_v45 = vsel %vm2396_vm5, %v5558_v0, %v2395_v15 }
 0x217   : > { %3962 = vmatprep.subr.bf16.mxu1 %v2420_v45  ;;  %3248 = vperm.xlu0 %4247, %v3226_v24  }
 0x218   : > { %3963 = vmatpush3.bf16.msra.mxu1 %v2420_v45  ;;  %3243 = vperm.xlu1 %4248, %v3225_v27  }
 0x219   : > { %v2669_v26 = vpop.permute.xlu0 %2668  ;;  %2508 = vmatmul.mubr.bf16.gmra.mrb[12].mxu0 %v4316_v39 }
 0x21a   : > { %v2665_v14 = vpop.permute.xlu1 %2664  ;;  %v2715_v10 = vsel %vm2704_vm6, %v2667_v11, %v2669_v26  ;;  %2785 = vmatprep.mubr.bf16.mxu0 %v4382_v25 }
 0x21b   : > { %v2714_v12 = vsel %vm2704_vm6, %v2665_v14, %v2667_v11  ;;  %2759 = vmatprep.subr.bf16.mxu0 %v2715_v10  ;;  %3965 = vmatmul.mubr.bf16.vlgmr.msra.gmra.mrb[0].mxu1 %v4314_v13 }
 0x21c   : > { %2760 = vmatpush1.bf16.msra.mxu0 %v2714_v12  ;;  %3968 = vmatprep.mubr.bf16.mxu1 %v4315_v51 }
 0x21d   : > { %v2647_v53 = vpop.permute.xlu0 %2646  ;;  %3258 = vperm.xlu0 %4247, %v3228_v17   ;;  %3253 = vperm.xlu1 %4248, %v3227_v58  }
 0x21e   : > { %v2675_v16 = vpop.permute.xlu1 %2674  ;;  %v2707_v28 = vsel %vm2704_vm6, %v5572_v47, %v2647_v53 }
 0x21f   : > { %3972 = vmatprep.subr.bf16.mxu1 %v2707_v28 }
 0x220   : > { %3973 = vmatpush3.bf16.msra.mxu1 %v2707_v28 }
 0x221   : > { %v2677_v60 = vpop.permute.xlu0 %2676  ;;  %3268 = vperm.xlu0 %4247, %v3230_v63   ;;  %3263 = vperm.xlu1 %4248, %v3229_v61  }
 0x222   : > { %v2673_v57 = vpop.permute.xlu1 %2672  ;;  %v2718_v32 = vsel %vm2704_vm6, %v2675_v16, %v2677_v60 }
 0x223   : > { %v2717_v29 = vsel %vm2704_vm6, %v2673_v57, %v2675_v16  ;;  %2761 = vmatprep.subr.bf16.mxu0 %v2718_v32  ;;  %3969 = vmatmul.mubr.bf16.gmra.mrb[4].mxu1 %v4316_v39  ;;  %v4321_v32 = vld [vmem:[%s5754_s2 + $0x100] sm:$0xff]  }
 0x224   : > { %2762 = vmatpush1.bf16.msra.mxu0 %v2717_v29  ;;  %3988 = vmatprep.mubr.bf16.mxu1 %v4317_v59 }
 0x225   : > { %v2655_v18 = vpop.permute.xlu0 %2654 }
 0x226   : > { %v2683_v33 = vpop.permute.xlu1 %2682  ;;  %v2710_v19 = vsel %vm2704_vm6, %v5590_v3, %v2655_v18 }
 0x227   : > { %3974 = vmatprep.subr.bf16.mxu1 %v2710_v19 }
 0x228   : > { %3975 = vmatpush3.bf16.msra.mxu1 %v2710_v19 }
 0x229   : > { %v2685_v37 = vpop.permute.xlu0 %2684 }
 0x22a   : > { %v2681_v34 = vpop.permute.xlu1 %2680  ;;  %v2721_v31 = vsel %vm2704_vm6, %v2683_v33, %v2685_v37 }
 0x22b   : > { %v2720_v1 = vsel %vm2704_vm6, %v2681_v34, %v2683_v33  ;;  %2763 = vmatprep.subr.bf16.mxu0 %v2721_v31 }
 0x22c   : > { %2764 = vmatpush1.bf16.msra.mxu0 %v2720_v1 }
 0x22d   : > { %v2663_v2 = vpop.permute.xlu0 %2662 }
 0x22e   : > { %v2691_v38 = vpop.permute.xlu1 %2690  ;;  %v2713_v4 = vsel %vm2704_vm6, %v5609_v54, %v2663_v2 }
 0x22f   : > { %3976 = vmatprep.subr.bf16.mxu1 %v2713_v4 }
 0x230   : > { %3977 = vmatpush3.bf16.msra.mxu1 %v2713_v4 }
 0x231   : > { %v2693_v41 = vpop.permute.xlu0 %2692 }
 0x232   : > { %v2689_v5 = vpop.permute.xlu1 %2688  ;;  %v2724_v0 = vsel %vm2704_vm6, %v2691_v38, %v2693_v41 }
 0x233   : > { %v2723_v7 = vsel %vm2704_vm6, %v2689_v5, %v2691_v38  ;;  %2765 = vmatprep.subr.bf16.mxu0 %v2724_v0 }
 0x234   : > { %2766 = vmatpush1.bf16.msra.mxu0 %v2723_v7 }
 0x235   : > { %v2671_v8 = vpop.permute.xlu0 %2670 }
 0x236   : > { %v2699_v6 = vpop.permute.xlu1 %2698  ;;  %v2716_v48 = vsel %vm2704_vm6, %v2669_v26, %v2671_v8 }
 0x237   : > { %3978 = vmatprep.subr.bf16.mxu1 %v2716_v48 }
 0x238   : > { %3979 = vmatpush3.bf16.msra.mxu1 %v2716_v48 }
 0x239   : > { %v2701_v43 = vpop.permute.xlu0 %2700 }
 0x23a   : > { %v2697_v49 = vpop.permute.xlu1 %2696  ;;  %v2727_v47 = vsel %vm2704_vm6, %v2699_v6, %v2701_v43 }
 0x23b   : > { %v2726_v30 = vsel %vm2704_vm6, %v2697_v49, %v2699_v6  ;;  %2767 = vmatprep.subr.bf16.mxu0 %v2727_v47 }
 0x23c   : > { %2768 = vmatpush1.bf16.msra.mxu0 %v2726_v30 }
 0x23d   : > { %v2679_v62 = vpop.permute.xlu0 %2678 }
 0x23e   : > { %v2951_v50 = vpop.permute.xlu1 %2950  ;;  %v2719_v35 = vsel %vm2704_vm6, %v2677_v60, %v2679_v62 }
 0x23f   : > { %3980 = vmatprep.subr.bf16.mxu1 %v2719_v35  ;;  %2786 = vmatmul.mubr.bf16.vlgmr.msra.gmra.mrb[0].mxu0 %v4317_v59 }
 0x240   : > { %3981 = vmatpush3.bf16.msra.mxu1 %v2719_v35  ;;  %2795 = vmatprep.mubr.bf16.mxu0 %v4382_v25  ;;  %v4322_v35 = vld [vmem:[%s5754_s2 + $0x108] sm:$0xff]  }
 0x241   : > { %v2953_v36 = vpop.permute.xlu0 %2952 }
 0x242   : > { %v2949_v52 = vpop.permute.xlu1 %2948  ;;  %v3014_v13 = vsel %vm3012_vm7, %v2951_v50, %v2953_v36 }
 0x243   : > { %v3013_v3 = vsel %vm3012_vm7, %v2949_v52, %v2951_v50  ;;  %3061 = vmatprep.subr.bf16.mxu0 %v3014_v13 }
 0x244   : > { %3062 = vmatpush1.bf16.msra.mxu0 %v3013_v3  ;;  %v4323_v3 = vld [vmem:[%s5754_s2 + $0x110] sm:$0xff]  }
 0x245   : > { %v2687_v40 = vpop.permute.xlu0 %2686 }
 0x246   : > { %v2959_v44 = vpop.permute.xlu1 %2958  ;;  %v2722_v9 = vsel %vm2704_vm6, %v2685_v37, %v2687_v40  ;;  %v4324_v40 = vld [vmem:[%s5754_s2 + $0x118] sm:$0xff]  }
 0x247   : > { %3982 = vmatprep.subr.bf16.mxu1 %v2722_v9  ;;  %2796 = vmatmul.mubr.bf16.gmra.mrb[4].mxu0 %v4318_v55 }
 0x248   : > { %3983 = vmatpush3.bf16.msra.mxu1 %v2722_v9  ;;  %2805 = vmatprep.mubr.bf16.mxu0 %v4382_v25 }
 0x249   : > { %v2961_v51 = vpop.permute.xlu0 %2960 }
 0x24a   : > { %v2957_v20 = vpop.permute.xlu1 %2956  ;;  %v3017_v21 = vsel %vm3012_vm7, %v2959_v44, %v2961_v51 }
 0x24b   : > { %v3016_v54 = vsel %vm3012_vm7, %v2957_v20, %v2959_v44  ;;  %3063 = vmatprep.subr.bf16.mxu0 %v3017_v21 }
 0x24c   : > { %3064 = vmatpush1.bf16.msra.mxu0 %v3016_v54 }
 0x24d   : > { %v2695_v42 = vpop.permute.xlu0 %2694 }
 0x24e   : > { %v2967_v22 = vpop.permute.xlu1 %2966  ;;  %v2725_v15 = vsel %vm2704_vm6, %v2693_v41, %v2695_v42 }
 0x24f   : > { %3984 = vmatprep.subr.bf16.mxu1 %v2725_v15  ;;  %2806 = vmatmul.mubr.bf16.gmra.mrb[8].mxu0 %v4319_v23 }
 0x250   : > { %3985 = vmatpush3.bf16.msra.mxu1 %v2725_v15  ;;  %2815 = vmatprep.mubr.bf16.mxu0 %v4382_v25 }
 0x251   : > { %v2969_v39 = vpop.permute.xlu0 %2968 }
 0x252   : > { %v2965_v11 = vpop.permute.xlu1 %2964  ;;  %v3020_v45 = vsel %vm3012_vm7, %v2967_v22, %v2969_v39 }
 0x253   : > { %v3019_v46 = vsel %vm3012_vm7, %v2965_v11, %v2967_v22  ;;  %3065 = vmatprep.subr.bf16.mxu0 %v3020_v45 }
 0x254   : > { %3066 = vmatpush1.bf16.msra.mxu0 %v3019_v46 }
 0x255   : > { %v2703_v26 = vpop.permute.xlu0 %2702 }
 0x256   : > { %v2975_v14 = vpop.permute.xlu1 %2974  ;;  %v2728_v10 = vsel %vm2704_vm6, %v2701_v43, %v2703_v26 }
 0x257   : > { %3986 = vmatprep.subr.bf16.mxu1 %v2728_v10  ;;  %2816 = vmatmul.mubr.bf16.gmra.mrb[12].mxu0 %v4320_v56 }
 0x258   : > { %3987 = vmatpush3.bf16.msra.mxu1 %v2728_v10  ;;  %3093 = vmatprep.mubr.bf16.mxu0 %v4382_v25 }
 0x259   : > { %v2977_v24 = vpop.permute.xlu0 %2976 }
 0x25a   : > { %v2973_v27 = vpop.permute.xlu1 %2972  ;;  %v3023_v12 = vsel %vm3012_vm7, %v2975_v14, %v2977_v24 }
 0x25b   : > { %v3022_v53 = vsel %vm3012_vm7, %v2973_v27, %v2975_v14  ;;  %3067 = vmatprep.subr.bf16.mxu0 %v3023_v12  ;;  %3989 = vmatmul.mubr.bf16.vlgmr.msra.gmra.mrb[0].mxu1 %v4318_v55 }
 0x25c   : > { %3068 = vmatpush1.bf16.msra.mxu0 %v3022_v53  ;;  %3992 = vmatprep.mubr.bf16.mxu1 %v4319_v23 }
 0x25d   : > { %v2955_v16 = vpop.permute.xlu0 %2954 }
 0x25e   : > { %v2983_v28 = vpop.permute.xlu1 %2982  ;;  %v3015_v17 = vsel %vm3012_vm7, %v2953_v36, %v2955_v16 }
 0x25f   : > { %3996 = vmatprep.subr.bf16.mxu1 %v3015_v17 }
 0x260   : > { %3997 = vmatpush3.bf16.msra.mxu1 %v3015_v17 }
 0x261   : > { %v2985_v58 = vpop.permute.xlu0 %2984 }
 0x262   : > { %v2981_v60 = vpop.permute.xlu1 %2980  ;;  %v3026_v57 = vsel %vm3012_vm7, %v2983_v28, %v2985_v58 }
 0x263   : > { %v3025_v59 = vsel %vm3012_vm7, %v2981_v60, %v2983_v28  ;;  %3069 = vmatprep.subr.bf16.mxu0 %v3026_v57  ;;  %3993 = vmatmul.mubr.bf16.gmra.mrb[4].mxu1 %v4320_v56 }
 0x264   : > { %3070 = vmatpush1.bf16.msra.mxu0 %v3025_v59  ;;  %4012 = vmatprep.mubr.bf16.mxu1 %v4321_v32 }
 0x265   : > { %v2963_v63 = vpop.permute.xlu0 %2962 }
 0x266   : > { %v2991_v61 = vpop.permute.xlu1 %2990  ;;  %v3018_v29 = vsel %vm3012_vm7, %v2961_v51, %v2963_v63 }
 0x267   : > { %3998 = vmatprep.subr.bf16.mxu1 %v3018_v29 }
 0x268   : > { %3999 = vmatpush3.bf16.msra.mxu1 %v3018_v29 }
 0x269   : > { %v2993_v18 = vpop.permute.xlu0 %2992 }
 0x26a   : > { %v2989_v33 = vpop.permute.xlu1 %2988  ;;  %v3029_v19 = vsel %vm3012_vm7, %v2991_v61, %v2993_v18 }
 0x26b   : > { %v3028_v37 = vsel %vm3012_vm7, %v2989_v33, %v2991_v61  ;;  %3071 = vmatprep.subr.bf16.mxu0 %v3029_v19 }
 0x26c   : > { %3072 = vmatpush1.bf16.msra.mxu0 %v3028_v37 }
 0x26d   : > { %v2971_v34 = vpop.permute.xlu0 %2970 }
 0x26e   : > { %v2999_v31 = vpop.permute.xlu1 %2998  ;;  %v3021_v1 = vsel %vm3012_vm7, %v2969_v39, %v2971_v34 }
 0x26f   : > { %4000 = vmatprep.subr.bf16.mxu1 %v3021_v1 }
 0x270   : > { %4001 = vmatpush3.bf16.msra.mxu1 %v3021_v1 }
 0x271   : > { %v3001_v2 = vpop.permute.xlu0 %3000 }
 0x272   : > { %v2997_v38 = vpop.permute.xlu1 %2996  ;;  %v3032_v4 = vsel %vm3012_vm7, %v2999_v31, %v3001_v2 }
 0x273   : > { %v3031_v41 = vsel %vm3012_vm7, %v2997_v38, %v2999_v31  ;;  %3073 = vmatprep.subr.bf16.mxu0 %v3032_v4 }
 0x274   : > { %3074 = vmatpush1.bf16.msra.mxu0 %v3031_v41 }
 0x275   : > { %v2979_v5 = vpop.permute.xlu0 %2978 }
 0x276   : > { %v3007_v0 = vpop.permute.xlu1 %3006  ;;  %v3024_v7 = vsel %vm3012_vm7, %v2977_v24, %v2979_v5 }
 0x277   : > { %4002 = vmatprep.subr.bf16.mxu1 %v3024_v7 }
 0x278   : > { %4003 = vmatpush3.bf16.msra.mxu1 %v3024_v7 }
 0x279   : > { %v3009_v8 = vpop.permute.xlu0 %3008 }
 0x27a   : > { %v3005_v6 = vpop.permute.xlu1 %3004  ;;  %v3035_v48 = vsel %vm3012_vm7, %v3007_v0, %v3009_v8 }
 0x27b   : > { %v3034_v43 = vsel %vm3012_vm7, %v3005_v6, %v3007_v0  ;;  %3075 = vmatprep.subr.bf16.mxu0 %v3035_v48 }
 0x27c   : > { %3076 = vmatpush1.bf16.msra.mxu0 %v3034_v43 }
 0x27d   : > { %v2987_v49 = vpop.permute.xlu0 %2986 }
 0x27e   : > { %v2995_v47 = vpop.permute.xlu1 %2994  ;;  %v3027_v30 = vsel %vm3012_vm7, %v2985_v58, %v2987_v49 }
 0x27f   : > { %3094 = vmatmul.mubr.bf16.vlgmr.msra.gmra.mrb[0].mxu0 %v4321_v32  ;;  %4004 = vmatprep.subr.bf16.mxu1 %v3027_v30  ;;  %v3030_v62 = vsel %vm3012_vm7, %v2993_v18, %v2995_v47 }
 0x280   : > { %4005 = vmatpush3.bf16.msra.mxu1 %v3027_v30  ;;  %3103 = vmatprep.mubr.bf16.mxu0 %v4382_v25 }
 0x281   : > { %v3003_v50 = vpop.permute.xlu0 %3002  ;;  %4006 = vmatprep.subr.bf16.mxu1 %v3030_v62 }
 0x282   : > { %v3033_v36 = vsel %vm3012_vm7, %v3001_v2, %v3003_v50  ;;  %v3011_v52 = vpop.permute.xlu1 %3010 }
 0x283   : > { %v3036_v13 = vsel %vm3012_vm7, %v3009_v8, %v3011_v52 }
 0x284   : > { %4007 = vmatpush3.bf16.msra.mxu1 %v3030_v62 }
 0x285   : > { %4008 = vmatprep.subr.bf16.mxu1 %v3033_v36 }
 0x287   : > { %3104 = vmatmul.mubr.bf16.gmra.mrb[4].mxu0 %v4322_v35 }
 0x288   : > { %4009 = vmatpush3.bf16.msra.mxu1 %v3033_v36  ;;  %3113 = vmatprep.mubr.bf16.mxu0 %v4382_v25 }
 0x289   : > { %4010 = vmatprep.subr.bf16.mxu1 %v3036_v13 }
 0x28c   : > { %4011 = vmatpush3.bf16.msra.mxu1 %v3036_v13 }
 0x28f   : > { %3114 = vmatmul.mubr.bf16.gmra.mrb[8].mxu0 %v4323_v3  ;;  %4013 = vmatmul.mubr.bf16.vlgmr.msra.gmra.mrb[0].mxu1 %v4322_v35 }
 0x290   : > { %3123 = vmatprep.mubr.bf16.mxu0 %v4382_v25  ;;  %4016 = vmatprep.mubr.bf16.mxu1 %v4323_v3 }
 0x292   : > { %v3234_v55 = vpop.permute.xlu0 %3233 }
 0x293   : > { %v3239_v9 = vpop.permute.xlu1 %3238 }
 0x296   : > { %v3249_v14 = vpop.permute.xlu0 %3248 }
 0x297   : > { %3124 = vmatmul.mubr.bf16.gmra.mrb[12].mxu0 %v4324_v40  ;;  %4017 = vmatmul.mubr.bf16.gmra.mrb[4].mxu1 %v4324_v40  ;;  %v3244_v46 = vpop.permute.xlu1 %3243 }
 0x29c   : > { %v3259_v59 = vpop.permute.xlu0 %3258  ;;  %v3254_v63 = vpop.permute.xlu1 %3253 }
 0x2a0   : > { %v3269_v13 = vpop.permute.xlu0 %3268  ;;  %v3264_v3 = vpop.permute.xlu1 %3263 }
 0x352   : > { %v3095_v44 = vpop.f32.mrb[0].mxu0 }
 0x353   : > { %v3271_v51 = vadd.f32 %v3234_v55, %v3095_v44  ;;  %v3097_v20 = vpop.f32.mrb[1].mxu0 }
 0x354   : > { %v3272_v21 = vadd.f32 %v3234_v55, %v3097_v20  ;;  %v3099_v54 = vpop.f32.mrb[2].mxu0 }
 0x355   : > { %v3295_v23 = vmax.f32 %v3271_v51, 0.0  ;;  %v3274_v42 = vadd.f32 %v3239_v9, %v3099_v54  ;;  %v3101_v22 = vpop.f32.mrb[3].mxu0 }
 0x356   : > { %v3296_v15 = vmax.f32 %v3272_v21, 0.0  ;;  %v3275_v25 = vadd.f32 %v3239_v9, %v3101_v22 }
 0x357   : > { %v3298_v39 = vmax.f32 %v3274_v42, 0.0 }
 0x358   : > { %v3680_v11 = vpack.c.bf16 %v3296_v15, %v3295_v23  ;;  %v3299_v45 = vmax.f32 %v3275_v25, 0.0 }
 0x35a   : > { %3399 = vst [vmem:[%s5725_s14] sm:$0xff] %v3680_v11  ;;  %v3682_v56 = vpack.c.bf16 %v3299_v45, %v3298_v39  ;;  %v3105_v26 = vpop.f32.mrb[4].mxu0 }
 0x35b   : > { %v3277_v10 = vadd.f32 %v3244_v46, %v3105_v26  ;;  %v3107_v24 = vpop.f32.mrb[5].mxu0 }
 0x35c   : > { %3401 = vst [vmem:[%s5725_s14 + $0xc] sm:$0xff] %v3682_v56  ;;  %v3278_v27 = vadd.f32 %v3244_v46, %v3107_v24  ;;  %v3109_v12 = vpop.f32.mrb[6].mxu0 }
 0x35d   : > { %v3301_v53 = vmax.f32 %v3277_v10, 0.0  ;;  %v3280_v16 = vadd.f32 %v3249_v14, %v3109_v12  ;;  %v3111_v28 = vpop.f32.mrb[7].mxu0 }
 0x35e   : > { %v3302_v17 = vmax.f32 %v3278_v27, 0.0  ;;  %v3281_v58 = vadd.f32 %v3249_v14, %v3111_v28 }
 0x35f   : > { %v3304_v60 = vmax.f32 %v3280_v16, 0.0 }
 0x360   : > { %v3684_v57 = vpack.c.bf16 %v3302_v17, %v3301_v53  ;;  %v3305_v32 = vmax.f32 %v3281_v58, 0.0 }
 0x362   : > { %3403 = vst [vmem:[%s5725_s14 + $0x18] sm:$0xff] %v3684_v57  ;;  %v3686_v61 = vpack.c.bf16 %v3305_v32, %v3304_v60  ;;  %v3115_v29 = vpop.f32.mrb[8].mxu0  ;;  %v4014_v18 = vpop.f32.mrb[0].mxu1 }
 0x363   : > { %v3283_v33 = vadd.f32 %v3254_v63, %v3115_v29  ;;  %v3279_v19 = vadd.f32 %v4014_v18, %v3244_v46  ;;  %v3117_v37 = vpop.f32.mrb[9].mxu0  ;;  %v3168_v34 = vpop.f32.mrb[1].mxu1 }
 0x364   : > { %3405 = vst [vmem:[%s5725_s14 + $0x24] sm:$0xff] %v3686_v61  ;;  %v3284_v31 = vadd.f32 %v3254_v63, %v3117_v37  ;;  %v3273_v1 = vadd.f32 %v3234_v55, %v3168_v34  ;;  %v3119_v2 = vpop.f32.mrb[10].mxu0  ;;  %v4015_v38 = vpop.f32.mrb[2].mxu1 }
 0x365   : > { %v3307_v4 = vmax.f32 %v3283_v33, 0.0  ;;  %v3303_v41 = vmax.f32 %v3279_v19, 0.0  ;;  %v3286_v5 = vadd.f32 %v3259_v59, %v3119_v2  ;;  %v3282_v0 = vadd.f32 %v4015_v38, %v3249_v14  ;;  %v3121_v7 = vpop.f32.mrb[11].mxu0  ;;  %v3171_v8 = vpop.f32.mrb[3].mxu1 }
 0x366   : > { %v3308_v6 = vmax.f32 %v3284_v31, 0.0  ;;  %v3297_v48 = vmax.f32 %v3273_v1, 0.0  ;;  %v3287_v43 = vadd.f32 %v3259_v59, %v3121_v7  ;;  %v3276_v49 = vadd.f32 %v3239_v9, %v3171_v8 }
 0x367   : > { %v3685_v47 = vpack.c.bf16 %v3303_v41, %v3303_v41  ;;  %v3310_v30 = vmax.f32 %v3286_v5, 0.0  ;;  %v3306_v62 = vmax.f32 %v3282_v0, 0.0 }
 0x368   : > { %v3688_v50 = vpack.c.bf16 %v3308_v6, %v3307_v4  ;;  %v3681_v35 = vpack.c.bf16 %v3297_v48, %v3297_v48  ;;  %v3311_v36 = vmax.f32 %v3287_v43, 0.0  ;;  %v3300_v52 = vmax.f32 %v3276_v49, 0.0 }
 0x369   : > { %3404 = vst [vmem:[%s5725_s14 + $0x20] sm:$0xf] %v3685_v47  ;;  %v3687_v40 = vpack.c.bf16 %v3306_v62, %v3306_v62 }
 0x36a   : > { %3407 = vst [vmem:[%s5725_s14 + $0x30] sm:$0xff] %v3688_v50  ;;  %3400 = vst [vmem:[%s5725_s14 + $0x8] sm:$0xf] %v3681_v35  ;;  %v3690_v55 = vpack.c.bf16 %v3311_v36, %v3310_v30  ;;  %v3683_v44 = vpack.c.bf16 %v3300_v52, %v3300_v52  ;;  %v3125_v51 = vpop.f32.mrb[12].mxu0  ;;  %v4018_v9 = vpop.f32.mrb[4].mxu1 }
 0x36b   : > { %3406 = vst [vmem:[%s5725_s14 + $0x2c] sm:$0xf] %v3687_v40  ;;  %v3289_v20 = vadd.f32 %v3264_v3, %v3125_v51  ;;  %v3291_v21 = vadd.f32 %v4018_v9, %v3264_v3  ;;  %v3127_v54 = vpop.f32.mrb[13].mxu0  ;;  %v3184_v23 = vpop.f32.mrb[5].mxu1 }
 0x36c   : > { %3409 = vst [vmem:[%s5725_s14 + $0x3c] sm:$0xff] %v3690_v55  ;;  %3402 = vst [vmem:[%s5725_s14 + $0x14] sm:$0xf] %v3683_v44  ;;  %v3290_v42 = vadd.f32 %v3264_v3, %v3127_v54  ;;  %v3285_v22 = vadd.f32 %v3254_v63, %v3184_v23  ;;  %v3129_v15 = vpop.f32.mrb[14].mxu0  ;;  %v4019_v25 = vpop.f32.mrb[6].mxu1 }
 0x36d   : > { %v3313_v39 = vmax.f32 %v3289_v20, 0.0  ;;  %v3315_v11 = vmax.f32 %v3291_v21, 0.0  ;;  %v3292_v45 = vadd.f32 %v3269_v13, %v3129_v15  ;;  %v3294_v46 = vadd.f32 %v4019_v25, %v3269_v13  ;;  %v3131_v56 = vpop.f32.mrb[15].mxu0  ;;  %v3187_v26 = vpop.f32.mrb[7].mxu1 }
 0x36e   : > { %v3314_v14 = vmax.f32 %v3290_v42, 0.0  ;;  %v3309_v10 = vmax.f32 %v3285_v22, 0.0  ;;  %v3293_v24 = vadd.f32 %v3269_v13, %v3131_v56  ;;  %v3288_v27 = vadd.f32 %v3259_v59, %v3187_v26 }
 0x36f   : > { %v3693_v12 = vpack.c.bf16 %v3315_v11, %v3315_v11  ;;  %v3316_v53 = vmax.f32 %v3292_v45, 0.0  ;;  %v3318_v16 = vmax.f32 %v3294_v46, 0.0 }
 0x370   : > { %v3692_v28 = vpack.c.bf16 %v3314_v14, %v3313_v39  ;;  %v3689_v17 = vpack.c.bf16 %v3309_v10, %v3309_v10  ;;  %v3317_v58 = vmax.f32 %v3293_v24, 0.0  ;;  %v3312_v60 = vmax.f32 %v3288_v27, 0.0 }
 0x371   : > { %3412 = vst [vmem:[%s5725_s14 + $0x50] sm:$0xf] %v3693_v12  ;;  %v3695_v57 = vpack.c.bf16 %v3318_v16, %v3318_v16 }
 0x372   : > { %3411 = vst [vmem:[%s5725_s14 + $0x48] sm:$0xff] %v3692_v28  ;;  %3408 = vst [vmem:[%s5725_s14 + $0x38] sm:$0xf] %v3689_v17  ;;  %v3694_v32 = vpack.c.bf16 %v3317_v58, %v3316_v53  ;;  %v3691_v63 = vpack.c.bf16 %v3312_v60, %v3312_v60 }
 0x373   : > { %3414 = vst [vmem:[%s5725_s14 + $0x5c] sm:$0xf] %v3695_v57 }
 0x374   : > { %3413 = vst [vmem:[%s5725_s14 + $0x54] sm:$0xff] %v3694_v32  ;;  %3410 = vst [vmem:[%s5725_s14 + $0x44] sm:$0xf] %v3691_v63 }
 0x375 PF: > { %s14_s17 = sadd.s32 1, %s4379_s17   ;;  %s5757_s15 = smov %s4375_s16 }
 0x376   : > { %p11_p5 = scmp.ge.s32.totalorder %s14_s17, 4   ;;  %s5758_s16 = smov %s5760_s18 }
 0x378   :  { %13 = sbr.rel (!%p11_p5) target bundleno = 2 (0x2), region = 77 }

// kernel: decoder_cnn_forward.7
= control target key start
LH: loop header
LB: loop body
LE: loop exit
PB: predicated region body
PF: predicated region fallthrough
CT: control target
= control target key end

     0   :  { %s3123_s15 = smov 0   ;;  %s3125_s16 = smov 0   ;;  %s3902_s0 = inlined_call_operand.vmem [shape: bf16[2,64,1536], index: 0, kind: input, shape index: {}]   ;;  %s3903_s1 = inlined_call_operand.vmem [shape: bf16[2,64,384], index: 1, kind: input, shape index: {}]   ;;  %s3904_s2 = inlined_call_operand.vmem [shape: bf16[9,32,64], index: 2, kind: input, shape index: {}]   ;;  %s3905_s3 = inlined_call_operand.vmem [shape: f32[32,1], index: 3, kind: input, shape index: {}]   ;;  %s3906_s4 = inlined_call_operand.vmem [shape: bf16[2,32,1536], index: 4, kind: output, shape index: {}]  }
   0x1   :  { %s3127_s17 = smov 0   ;;  %s3129_s18 = smov 0  }
   0x2   :  { %s3131_s19 = smov 0   ;;  %s3133_s20 = smov 0  }
   0x3   :  { %s3135_s21 = smov 0  }
   0x4 LB: > { %s23_s22 = sadd.s32 1, %s3079_s19  ;;  %s26_s23 = sadd.s32 1, %s3083_s20  ;;  %s3087_s21 = sphi %s3135_s21, %s14_s21   ;;  %s3083_s20 = sphi %s3133_s20, %s3914_s20   ;;  %s3079_s19 = sphi %s3131_s19, %s3913_s19   ;;  %s3075_s18 = sphi %s3129_s18, %s3912_s18   ;;  %s3071_s17 = sphi %s3127_s17, %s3911_s17   ;;  %s3067_s16 = sphi %s3125_s16, %s3910_s16   ;;  %s3063_s15 = sphi %s3123_s15, %s3909_s15  }
   0x5   : > { %p24_p0 = scmp.ge.s32.totalorder %s23_s22, 3  ;;  %s2648_s24 = sadd.s32 4294967295, %s3087_s21  }
   0x6   : > { %p42_p1 = scmp.ne.s32.totalorder %s3067_s16, %s3063_s15  ;;  %p43_p2 = scmp.eq.s32.totalorder %s3087_s21, 0 }
   0x7   : > { %s3916_s22 = smov (%p24_p0, %s23_s22), 0  ;;  %s3918_s23 = smov (!%p24_p0, %s26_s23), %s3083_s20 }
   0x8   : > { %p28_p3 = scmp.ge.s32.totalorder %s3918_s23, 2  ;;  %p144_p4 = scmp.eq.s32.totalorder %s2648_s24, 5 }
   0x9   : > { %s31_s25 = ssub.s32 %s3079_s19, %s3916_s22  ;;  %p3169_p5 = por %p43_p2, %p42_p1 }
   0xa   : > { %s3920_s23 = smov (%p28_p3, %s3918_s23), 0  ;;  %p3175_p6 = por %p144_p4, %p42_p1 }
   0xb   : > { %s30_s28 = ssub.s32 %s3083_s20, %s3920_s23  ;;  %s35_s30 = sadd.s32 1, %s3067_s16 }
   0xc   : > { %s32_s29 = sor.u32 %s31_s25, %s30_s28  ;;  %p2651_p8 = scmp.ge.s32.totalorder %s3087_s21, 6 }
   0xd   : > { %p33_p7 = scmp.eq.s32.totalorder %s32_s29, 0 }
   0xe   : > { %172 = sbr.rel (%p2651_p8) target bundleno = 49 (0x31), region = 24 }
   0xf   : > { %s3183_s5 = scalar_select %p33_p7, %s3067_s16, %s35_s30  }
  0x15   : > { %175 = sbr.rel (!%p3169_p5) target bundleno = 37 (0x25), region = 28  ;;  %s177_s6 = sand.u32 (%p3169_p5), 1, %s3067_s16  }
  0x16   : > { %s2653_s7 = sshll.u32 (%p3169_p5), %s3079_s19, 2  ;;  %s2652_s8 = sshll.u32 (%p3169_p5), %s177_s6, 7 }
  0x17   : > { %s2916_s9 = smul.u32 (%p3169_p5), 96, %s3083_s20  ;;  %s179_s24 = scalar_lea.vmem (%p3169_p5), [#allocation3], %s2652_s8 }
  0x19   : > { %s182_s10 = sadd.s32 (%p3169_p5), %s2916_s9, %s2653_s7 }
  0x1a   : > { %s2654_s11 = sshll.u32 (%p3169_p5), %s182_s10, 2 }
  0x1b   : > { %s3194_s14 = scalar_lea.vmem (%p3169_p5), %s3902_s0, %s2654_s11 }
  0x1c   : > { %v197_v0 = vld [vmem:[%s3194_s14] sm:$0xff]  ;;  %v199_v1 = vld [vmem:[%s3194_s14 + $0x8] sm:$0xff]  ;;  %v201_v2 = vld [vmem:[%s3194_s14 + $0x30] sm:$0xff] }
  0x1d   : > { %198 = vst [vmem:[%s179_s24] sm:$0xff] %v197_v0  ;;  %200 = vst [vmem:[%s179_s24 + $0x8] sm:$0xff] %v199_v1  ;;  %v203_v3 = vld [vmem:[%s3194_s14 + $0x38] sm:$0xff]  ;;  %v205_v4 = vld [vmem:[%s3194_s14 + $0x60] sm:$0xff] }
  0x1e   : > { %202 = vst [vmem:[%s179_s24 + $0x10] sm:$0xff] %v201_v2  ;;  %v207_v5 = vld [vmem:[%s3194_s14 + $0x68] sm:$0xff]  ;;  %204 = vst [vmem:[%s179_s24 + $0x18] sm:$0xff] %v203_v3  ;;  %v209_v6 = vld [vmem:[%s3194_s14 + $0x90] sm:$0xff] }
  0x1f   : > { %206 = vst [vmem:[%s179_s24 + $0x20] sm:$0xff] %v205_v4  ;;  %208 = vst [vmem:[%s179_s24 + $0x28] sm:$0xff] %v207_v5  ;;  %v211_v7 = vld [vmem:[%s3194_s14 + $0x98] sm:$0xff]  ;;  %v213_v8 = vld [vmem:[%s3194_s14 + $0xc0] sm:$0xff] }
  0x20   : > { %210 = vst [vmem:[%s179_s24 + $0x30] sm:$0xff] %v209_v6  ;;  %212 = vst [vmem:[%s179_s24 + $0x38] sm:$0xff] %v211_v7  ;;  %v215_v9 = vld [vmem:[%s3194_s14 + $0xc8] sm:$0xff]  ;;  %v217_v10 = vld [vmem:[%s3194_s14 + $0xf0] sm:$0xff] }
  0x21   : > { %214 = vst [vmem:[%s179_s24 + $0x40] sm:$0xff] %v213_v8  ;;  %v219_v11 = vld [vmem:[%s3194_s14 + $0xf8] sm:$0xff]  ;;  %216 = vst [vmem:[%s179_s24 + $0x48] sm:$0xff] %v215_v9  ;;  %v221_v12 = vld [vmem:[%s3194_s14 + $0x120] sm:$0xff] }
  0x22   : > { %218 = vst [vmem:[%s179_s24 + $0x50] sm:$0xff] %v217_v10  ;;  %220 = vst [vmem:[%s179_s24 + $0x58] sm:$0xff] %v219_v11  ;;  %v223_v13 = vld [vmem:[%s3194_s14 + $0x128] sm:$0xff]  ;;  %v225_v14 = vld [vmem:[%s3194_s14 + $0x150] sm:$0xff] }
  0x23   : > { %222 = vst [vmem:[%s179_s24 + $0x60] sm:$0xff] %v221_v12  ;;  %224 = vst [vmem:[%s179_s24 + $0x68] sm:$0xff] %v223_v13  ;;  %v227_v15 = vld [vmem:[%s3194_s14 + $0x158] sm:$0xff] }
  0x24   : > { %226 = vst [vmem:[%s179_s24 + $0x70] sm:$0xff] %v225_v14  ;;  %228 = vst [vmem:[%s179_s24 + $0x78] sm:$0xff] %v227_v15 }
  0x25 PF: > { %234 = sbr.rel (!%p3169_p5) target bundleno = 49 (0x31), region = 51  ;;  %s236_s25 = sand.u32 (%p3169_p5), 1, %s3067_s16  }
  0x26   : > { %s2917_s28 = smul.u32 (%p3169_p5), 24, %s3083_s20  ;;  %s2655_s29 = sshll.u32 (%p3169_p5), %s236_s25, 5 }
  0x27   : > { %s238_s10 = scalar_lea.vmem (%p3169_p5), [#allocation4], %s2655_s29 }
  0x28   : > { %s240_s30 = sadd.s32 (%p3169_p5), %s3079_s19, %s2917_s28 }
  0x29   : > { %s2656_s6 = sshll.u32 (%p3169_p5), %s240_s30, 2 }
  0x2a   : > { %s242_s9 = scalar_lea.vmem (%p3169_p5), %s3903_s1, %s2656_s6 }
  0x2b   : > { %v258_v16 = vld [vmem:[%s242_s9] sm:$0xf] (%p3169_p5)  ;;  %v260_v17 = vld [vmem:[%s242_s9 + $0xc] sm:$0xf] (%p3169_p5)  ;;  %v262_v18 = vld [vmem:[%s242_s9 + $0x18] sm:$0xf] (%p3169_p5) }
  0x2c   : > { %259 = vst [vmem:[%s238_s10] sm:$0xf] %v258_v16  ;;  %261 = vst [vmem:[%s238_s10 + $0x4] sm:$0xf] %v260_v17  ;;  %v264_v19 = vld [vmem:[%s242_s9 + $0x24] sm:$0xf] }
  0x2d   : > { %263 = vst [vmem:[%s238_s10 + $0x8] sm:$0xf] %v262_v18  ;;  %v266_v20 = vld [vmem:[%s242_s9 + $0x30] sm:$0xf]  ;;  %v268_v21 = vld [vmem:[%s242_s9 + $0x3c] sm:$0xf] }
  0x2e   : > { %265 = vst [vmem:[%s238_s10 + $0xc] sm:$0xf] %v264_v19  ;;  %267 = vst [vmem:[%s238_s10 + $0x10] sm:$0xf] %v266_v20  ;;  %v270_v22 = vld [vmem:[%s242_s9 + $0x48] sm:$0xf] }
  0x2f   : > { %269 = vst [vmem:[%s238_s10 + $0x14] sm:$0xf] %v268_v21  ;;  %v272_v23 = vld [vmem:[%s242_s9 + $0x54] sm:$0xf]  ;;  %271 = vst [vmem:[%s238_s10 + $0x18] sm:$0xf] %v270_v22 }
  0x30   : > { %273 = vst [vmem:[%s238_s10 + $0x1c] sm:$0xf] %v272_v23 }
  0x31 PF: > { %p2657_p9 = scmp.ge.s32.totalorder %s3087_s21, 1  ;;  %p311_p10 = scmp.lt.s32.totalorder %s3087_s21, 7 }
  0x33   : > { %p312_p11 = pnand %p2657_p9, %p311_p10 }
  0x34   : > { %s3223_s26 = sand.u32 (!%p312_p11), 1, %s3063_s15   ;;  %s3089_s15 = smov (!%p312_p11), 127   ;;  %v3090_v41 = vmov (!%p312_p11), 0   ;;  %vm619_vm0 = vcmask (!%p312_p11), 1039360   ;;  %v3014_v15 = vld [vmem:[%s3904_s2 + $0x10] sm:$0xff] (!%p312_p11)   ;;  %vm652_vm1 = vcmask (!%p312_p11), 523264  }
  0x35   : > { %315 = sbr.rel (%p312_p11) target bundleno = 731 (0x2db), region = 92  ;;  %s2658_s11 = sshll.u32 (!%p312_p11), %s3223_s26, 7  ;;  %691 = vmatprep.mubr.bf16.mxu0 (!%p312_p11), %v3090_v41  ;;  %744 = vmatprep.mubr.bf16.mxu1 (!%p312_p11), %v3090_v41  ;;  %v3015_v22 = vld [vmem:[%s3904_s2 + $0x18] sm:$0xff] (!%p312_p11)   ;;  %vm942_vm2 = vcmask (!%p312_p11), 1031168   ;;  %vm1158_vm3 = vcmask (!%p312_p11), 752640   ;;  %vm1374_vm4 = vcmask (!%p312_p11), 744448  }
  0x36   : > { %s2659_s12 = sshll.u32 (!%p312_p11), %s3223_s26, 5  ;;  %s3227_s13 = scalar_lea.vmem (!%p312_p11), [#allocation3], %s2658_s11  ;;  %2984 = vset.pattern.permute.xlu0 (!%p312_p11), %v3090_v41  ;;  %2985 = vset.pattern.permute.xlu1 (!%p312_p11), %v3090_v41  ;;  %vm1590_vm5 = vcmask (!%p312_p11), 736256   ;;  %vm1806_vm6 = vcmask (!%p312_p11), 457728   ;;  %vm2022_vm7 = vcmask (!%p312_p11), 449536   ;;  %vm2238_vm8 = vcmask (!%p312_p11), 441344  }
  0x37   : > { %v3230_v24 = vld [vmem:[%s3227_s13 + $0xc] ss:$16 sps:$4 sm:$0xff] (!%p312_p11)   ;;  %v3233_v25 = vld [vmem:[%s3227_s13 + $0x4] ss:$16 sps:$4 sm:$0xff] (!%p312_p11)   ;;  %s3237_s14 = scalar_lea.vmem (!%p312_p11), [#allocation4], %s2659_s12  ;;  %s3091_s24 = smov (!%p312_p11), 126  }
  0x38   : > { %585 = vrot.lane.b32.xlu1 (!%p312_p11), %v3230_v24, %s3089_s15  ;;  %v3240_v26 = vld [vmem:[%s3237_s14] sm:$0xff] (!%p312_p11)   ;;  %581 = vrot.lane.b32.xlu0 (!%p312_p11), %v3233_v25, %s3089_s15  ;;  %v3245_v27 = vld [vmem:[%s3227_s13 + $0x8] ss:$16 sps:$4 sm:$0xff] (!%p312_p11)   ;;  %s3092_s25 = smov (!%p312_p11), 92   ;;  %s3093_s28 = smov (!%p312_p11), 91  }
  0x39   : > { %v3250_v28 = vld [vmem:[%s3227_s13 + $0x24] ss:$16 sps:$4 sm:$0xff] (!%p312_p11)   ;;  %v3255_v29 = vld [vmem:[%s3227_s13] ss:$16 sps:$4 sm:$0xff] (!%p312_p11)   ;;  %v3260_v30 = vld [vmem:[%s3227_s13 + $0x2c] ss:$16 sps:$4 sm:$0xff] (!%p312_p11)  }
  0x3a   : > { %v3265_v31 = vld [vmem:[%s3227_s13 + $0x28] ss:$16 sps:$4 sm:$0xff] (!%p312_p11)   ;;  %v3268_v32 = vld [vmem:[%s3227_s13 + $0x20] ss:$16 sps:$4 sm:$0xff] (!%p312_p11)   ;;  %v3281_v35 = vld [vmem:[%s3227_s13 + $0x44] ss:$16 sps:$4 sm:$0xff] (!%p312_p11)  }
  0x3b   : > { %v3273_v33 = vld [vmem:[%s3237_s14 + $0x8] sm:$0xff] (!%p312_p11)   ;;  %v3288_v36 = vld [vmem:[%s3237_s14 + $0x10] sm:$0xff] (!%p312_p11)   ;;  %v3329_v44 = vld [vmem:[%s3237_s14 + $0x18] sm:$0xff] (!%p312_p11)   ;;  %s3094_s8 = smov (!%p312_p11), 90   ;;  %s3096_s6 = smov (!%p312_p11), 55  }
  0x3c   : > { %587 = vrot.lane.b32.xlu1 %v3240_v26, %s3089_s15  ;;  %583 = vrot.lane.b32.xlu0 %v3245_v27, %s3089_s15  ;;  %v3278_v34 = vld [vmem:[%s3227_s13 + $0x48] ss:$16 sps:$4 sm:$0xff]   ;;  %v3291_v37 = vld [vmem:[%s3227_s13 + $0x4c] ss:$16 sps:$4 sm:$0xff]   ;;  %s3097_s11 = smov 54   ;;  %s2776_s9 = sshll.u32 (%p3175_p6), %s3071_s17, 2 }
  0x3d   : > { %v3300_v38 = vld [vmem:[%s3227_s13 + $0x64] ss:$16 sps:$4 sm:$0xff]   ;;  %v3305_v39 = vld [vmem:[%s3227_s13 + $0x40] ss:$16 sps:$4 sm:$0xff]   ;;  %v3310_v40 = vld [vmem:[%s3227_s13 + $0x6c] ss:$16 sps:$4 sm:$0xff]  }
  0x3e   : > { %v3316_v42 = vld [vmem:[%s3227_s13 + $0x68] ss:$16 sps:$4 sm:$0xff]   ;;  %v3324_v43 = vld [vmem:[%s3227_s13 + $0x60] ss:$16 sps:$4 sm:$0xff]   ;;  %s2918_s10 = smul.u32 (%p3175_p6), 48, %s3075_s18 }
  0x40   : > { %591 = vrot.lane.b32.xlu1 %v3250_v28, %s3089_s15  ;;  %579 = vrot.lane.b32.xlu0 %v3255_v29, %s3089_s15 }
  0x44   : > { %595 = vrot.lane.b32.xlu1 %v3260_v30, %s3089_s15  ;;  %593 = vrot.lane.b32.xlu0 %v3265_v31, %s3089_s15 }
  0x48   : > { %589 = vrot.lane.b32.xlu1 %v3268_v32, %s3089_s15  ;;  %597 = vrot.lane.b32.xlu0 %v3273_v33, %s3089_s15 }
  0x4c   : > { %603 = vrot.lane.b32.xlu1 %v3278_v34, %s3089_s15  ;;  %601 = vrot.lane.b32.xlu0 %v3281_v35, %s3089_s15 }
  0x50   : > { %607 = vrot.lane.b32.xlu1 %v3288_v36, %s3089_s15  ;;  %605 = vrot.lane.b32.xlu0 %v3291_v37, %s3089_s15 }
  0x54   : > { %611 = vrot.lane.b32.xlu1 %v3300_v38, %s3089_s15  ;;  %599 = vrot.lane.b32.xlu0 %v3305_v39, %s3089_s15 }
  0x58   : > { %615 = vrot.lane.b32.xlu1 %v3310_v40, %s3089_s15  ;;  %613 = vrot.lane.b32.xlu0 %v3316_v42, %s3089_s15 }
  0x5c   : > { %609 = vrot.lane.b32.xlu1 %v3324_v43, %s3089_s15  ;;  %617 = vrot.lane.b32.xlu0 %v3329_v44, %s3089_s15 }
  0x60   : > { %906 = vrot.lane.b32.xlu1 %v3245_v27, %s3091_s24  ;;  %904 = vrot.lane.b32.xlu0 %v3233_v25, %s3091_s24 }
  0x64   : > { %910 = vrot.lane.b32.xlu1 %v3240_v26, %s3091_s24  ;;  %908 = vrot.lane.b32.xlu0 %v3230_v24, %s3091_s24 }
  0x68   : > { %914 = vrot.lane.b32.xlu1 %v3250_v28, %s3091_s24  ;;  %902 = vrot.lane.b32.xlu0 %v3255_v29, %s3091_s24 }
  0x6c   : > { %918 = vrot.lane.b32.xlu1 %v3260_v30, %s3091_s24  ;;  %916 = vrot.lane.b32.xlu0 %v3265_v31, %s3091_s24 }
  0x70   : > { %912 = vrot.lane.b32.xlu1 %v3268_v32, %s3091_s24  ;;  %920 = vrot.lane.b32.xlu0 %v3273_v33, %s3091_s24 }
  0x74   : > { %926 = vrot.lane.b32.xlu1 %v3278_v34, %s3091_s24  ;;  %924 = vrot.lane.b32.xlu0 %v3281_v35, %s3091_s24 }
  0x78   : > { %930 = vrot.lane.b32.xlu1 %v3288_v36, %s3091_s24  ;;  %928 = vrot.lane.b32.xlu0 %v3291_v37, %s3091_s24 }
  0x7c   : > { %934 = vrot.lane.b32.xlu1 %v3300_v38, %s3091_s24  ;;  %922 = vrot.lane.b32.xlu0 %v3305_v39, %s3091_s24 }
  0x80   : > { %938 = vrot.lane.b32.xlu1 %v3310_v40, %s3091_s24  ;;  %936 = vrot.lane.b32.xlu0 %v3316_v42, %s3091_s24 }
  0x84   : > { %932 = vrot.lane.b32.xlu1 %v3324_v43, %s3091_s24  ;;  %940 = vrot.lane.b32.xlu0 %v3329_v44, %s3091_s24  ;;  %s3095_s24 = smov 56  }
  0x88   : > { %1122 = vrot.lane.b32.xlu1 %v3245_v27, %s3092_s25  ;;  %1120 = vrot.lane.b32.xlu0 %v3233_v25, %s3092_s25 }
  0x8c   : > { %1126 = vrot.lane.b32.xlu1 %v3240_v26, %s3092_s25  ;;  %1124 = vrot.lane.b32.xlu0 %v3230_v24, %s3092_s25 }
  0x90   : > { %1130 = vrot.lane.b32.xlu1 %v3250_v28, %s3092_s25  ;;  %1118 = vrot.lane.b32.xlu0 %v3255_v29, %s3092_s25 }
  0x94   : > { %1134 = vrot.lane.b32.xlu1 %v3260_v30, %s3092_s25  ;;  %1132 = vrot.lane.b32.xlu0 %v3265_v31, %s3092_s25 }
  0x98   : > { %1128 = vrot.lane.b32.xlu1 %v3268_v32, %s3092_s25  ;;  %1136 = vrot.lane.b32.xlu0 %v3273_v33, %s3092_s25 }
  0x9c   : > { %1142 = vrot.lane.b32.xlu1 %v3278_v34, %s3092_s25  ;;  %1140 = vrot.lane.b32.xlu0 %v3281_v35, %s3092_s25 }
  0xa0   : > { %1146 = vrot.lane.b32.xlu1 %v3288_v36, %s3092_s25  ;;  %1144 = vrot.lane.b32.xlu0 %v3291_v37, %s3092_s25 }
  0xa4   : > { %1150 = vrot.lane.b32.xlu1 %v3300_v38, %s3092_s25  ;;  %1138 = vrot.lane.b32.xlu0 %v3305_v39, %s3092_s25 }
  0xa8   : > { %1154 = vrot.lane.b32.xlu1 %v3310_v40, %s3092_s25  ;;  %1152 = vrot.lane.b32.xlu0 %v3316_v42, %s3092_s25 }
  0xaa   : > { %v586_v45 = vpop.permute.xlu1 %585  ;;  %v582_v46 = vpop.permute.xlu0 %581 }
  0xac   : > { %1148 = vrot.lane.b32.xlu1 %v3324_v43, %s3092_s25  ;;  %1156 = vrot.lane.b32.xlu0 %v3329_v44, %s3092_s25 }
  0xae   : > { %v588_v47 = vpop.permute.xlu1 %587  ;;  %v584_v48 = vpop.permute.xlu0 %583 }
  0xaf   : > { %v623_v49 = vsel %vm619_vm0, %v586_v45, %v588_v47  ;;  %v621_v50 = vsel %vm619_vm0, %v582_v46, %v584_v48  ;;  %v622_v51 = vsel %vm619_vm0, %v584_v48, %v586_v45  ;;  %v3016_v48 = vld [vmem:[%s3904_s2] sm:$0xff]  }
  0xb0   : > { %712 = vmatprep.subr.bf16.mxu1 %v623_v49  ;;  %1338 = vrot.lane.b32.xlu1 %v3245_v27, %s3093_s28 }
  0xb1   : > { %659 = vmatprep.subr.bf16.mxu0 %v621_v50  ;;  %1336 = vrot.lane.b32.xlu0 %v3233_v25, %s3093_s28 }
  0xb2   : > { %713 = vmatpush1.bf16.msra.mxu1 %v622_v51  ;;  %v592_v52 = vpop.permute.xlu1 %591  ;;  %v580_v53 = vpop.permute.xlu0 %579 }
  0xb3   : > { %v620_v54 = vsel %vm619_vm0, %v580_v53, %v582_v46 }
  0xb4   : > { %1342 = vrot.lane.b32.xlu1 %v3240_v26, %s3093_s28  ;;  %660 = vmatpush1.bf16.msra.mxu0 %v620_v54 }
  0xb5   : > { %1340 = vrot.lane.b32.xlu0 %v3230_v24, %s3093_s28 }
  0xb6   : > { %v596_v55 = vpop.permute.xlu1 %595  ;;  %v594_v56 = vpop.permute.xlu0 %593 }
  0xb7   : > { %v625_v57 = vsel %vm619_vm0, %v592_v52, %v594_v56  ;;  %v626_v62 = vsel %vm619_vm0, %v594_v56, %v596_v55 }
  0xb8   : > { %1346 = vrot.lane.b32.xlu1 %v3250_v28, %s3093_s28  ;;  %661 = vmatprep.subr.bf16.mxu0 %v625_v57 }
  0xb9   : > { %1334 = vrot.lane.b32.xlu0 %v3255_v29, %s3093_s28 }
  0xba   : > { %v590_v58 = vpop.permute.xlu1 %589  ;;  %v598_v59 = vpop.permute.xlu0 %597 }
  0xbb   : > { %v624_v60 = vsel %vm619_vm0, %v590_v58, %v592_v52  ;;  %v627_v61 = vsel %vm619_vm0, %v596_v55, %v598_v59 }
  0xbc   : > { %1350 = vrot.lane.b32.xlu1 %v3260_v30, %s3093_s28  ;;  %662 = vmatpush1.bf16.msra.mxu0 %v624_v60 }
  0xbd   : > { %1348 = vrot.lane.b32.xlu0 %v3265_v31, %s3093_s28  ;;  %714 = vmatprep.subr.bf16.mxu1 %v627_v61 }
  0xbe   : > { %715 = vmatpush1.bf16.msra.mxu1 %v626_v62  ;;  %v604_v63 = vpop.permute.xlu1 %603  ;;  %v602_v0 = vpop.permute.xlu0 %601  ;;  %v3017_v62 = vld [vmem:[%s3904_s2 + $0x8] sm:$0xff]  }
  0xbf   : > { %v629_v1 = vsel %vm619_vm0, %v602_v0, %v604_v63 }
  0xc0   : > { %1344 = vrot.lane.b32.xlu1 %v3268_v32, %s3093_s28  ;;  %663 = vmatprep.subr.bf16.mxu0 %v629_v1 }
  0xc1   : > { %1352 = vrot.lane.b32.xlu0 %v3273_v33, %s3093_s28 }
  0xc2   : > { %v608_v2 = vpop.permute.xlu1 %607  ;;  %v606_v3 = vpop.permute.xlu0 %605 }
  0xc3   : > { %v631_v4 = vsel %vm619_vm0, %v606_v3, %v608_v2  ;;  %v630_v5 = vsel %vm619_vm0, %v604_v63, %v606_v3 }
  0xc4   : > { %1358 = vrot.lane.b32.xlu1 %v3278_v34, %s3093_s28  ;;  %716 = vmatprep.subr.bf16.mxu1 %v631_v4 }
  0xc5   : > { %1356 = vrot.lane.b32.xlu0 %v3281_v35, %s3093_s28  ;;  %717 = vmatpush1.bf16.msra.mxu1 %v630_v5 }
  0xc6   : > { %v612_v6 = vpop.permute.xlu1 %611  ;;  %v600_v7 = vpop.permute.xlu0 %599 }
  0xc7   : > { %v628_v8 = vsel %vm619_vm0, %v600_v7, %v602_v0 }
  0xc8   : > { %1362 = vrot.lane.b32.xlu1 %v3288_v36, %s3093_s28  ;;  %664 = vmatpush1.bf16.msra.mxu0 %v628_v8 }
  0xc9   : > { %1360 = vrot.lane.b32.xlu0 %v3291_v37, %s3093_s28 }
  0xca   : > { %v616_v9 = vpop.permute.xlu1 %615  ;;  %v614_v10 = vpop.permute.xlu0 %613 }
  0xcb   : > { %v633_v11 = vsel %vm619_vm0, %v612_v6, %v614_v10  ;;  %v634_v17 = vsel %vm619_vm0, %v614_v10, %v616_v9 }
  0xcc   : > { %1366 = vrot.lane.b32.xlu1 %v3300_v38, %s3093_s28  ;;  %665 = vmatprep.subr.bf16.mxu0 %v633_v11 }
  0xcd   : > { %1354 = vrot.lane.b32.xlu0 %v3305_v39, %s3093_s28 }
  0xce   : > { %v610_v12 = vpop.permute.xlu1 %609  ;;  %v618_v13 = vpop.permute.xlu0 %617 }
  0xcf   : > { %v632_v14 = vsel %vm619_vm0, %v610_v12, %v612_v6  ;;  %v635_v16 = vsel %vm619_vm0, %v616_v9, %v618_v13 }
  0xd0   : > { %1370 = vrot.lane.b32.xlu1 %v3310_v40, %s3093_s28  ;;  %666 = vmatpush1.bf16.msra.mxu0 %v632_v14  ;;  %v3018_v14 = vld [vmem:[%s3904_s2 + $0x20] sm:$0xff]  }
  0xd1   : > { %1368 = vrot.lane.b32.xlu0 %v3316_v42, %s3093_s28  ;;  %718 = vmatprep.subr.bf16.mxu1 %v635_v16 }
  0xd2   : > { %719 = vmatpush1.bf16.msra.mxu1 %v634_v17  ;;  %v907_v18 = vpop.permute.xlu1 %906  ;;  %781 = vmatprep.subr.bf16.mxu0 %v3233_v25  ;;  %v905_v19 = vpop.permute.xlu0 %904 }
  0xd3   : > { %2687 = vmatmul.mubr.msk.bf16.vlgmr.msra.gmra.mrb[0].mxu0 %vm652_vm1, %v3014_v15  ;;  %834 = vmatprep.subr.bf16.mxu1 %v3230_v24  ;;  %v944_v49 = vsel %vm942_vm2, %v905_v19, %v907_v18 }
  0xd4   : > { %1364 = vrot.lane.b32.xlu1 %v3324_v43, %s3093_s28  ;;  %782 = vmatpush1.bf16.msra.mxu0 %v3255_v29 }
  0xd5   : > { %1372 = vrot.lane.b32.xlu0 %v3329_v44, %s3093_s28  ;;  %2689 = vmatmul.mubr.msk.bf16.vlgmr.msra.gmra.mrb[0].mxu1 %vm652_vm1, %v3014_v15 }
  0xd6   : > { %835 = vmatpush1.bf16.msra.mxu1 %v3245_v27  ;;  %v911_v20 = vpop.permute.xlu1 %910  ;;  %783 = vmatprep.subr.bf16.mxu0 %v3250_v28  ;;  %v909_v21 = vpop.permute.xlu0 %908 }
  0xd7   : > { %836 = vmatprep.subr.bf16.mxu1 %v3260_v30  ;;  %701 = vmatprep.mubr.bf16.mxu0 %v3090_v41  ;;  %v946_v51 = vsel %vm942_vm2, %v909_v21, %v911_v20  ;;  %v945_v55 = vsel %vm942_vm2, %v907_v18, %v909_v21 }
  0xd8   : > { %1554 = vrot.lane.b32.xlu1 %v3245_v27, %s3094_s8  ;;  %784 = vmatpush1.bf16.msra.mxu0 %v3268_v32 }
  0xd9   : > { %1552 = vrot.lane.b32.xlu0 %v3233_v25, %s3094_s8  ;;  %785 = vmatprep.subr.bf16.mxu0 %v3281_v35 }
  0xda   : > { %837 = vmatpush1.bf16.msra.mxu1 %v3265_v31  ;;  %v915_v23 = vpop.permute.xlu1 %914  ;;  %754 = vmatprep.mubr.bf16.mxu1 %v3090_v41  ;;  %v903_v45 = vpop.permute.xlu0 %902 }
  0xdb   : > { %2688 = vmatmul.mubr.msk.bf16.gmra.mrb[4].mxu0 %vm652_vm1, %v3015_v22  ;;  %838 = vmatprep.subr.bf16.mxu1 %v3291_v37  ;;  %v943_v52 = vsel %vm942_vm2, %v903_v45, %v905_v19 }
  0xdc   : > { %1558 = vrot.lane.b32.xlu1 %v3240_v26, %s3094_s8  ;;  %786 = vmatpush1.bf16.msra.mxu0 %v3305_v39 }
  0xdd   : > { %1556 = vrot.lane.b32.xlu0 %v3230_v24, %s3094_s8  ;;  %2690 = vmatmul.mubr.msk.bf16.gmra.mrb[4].mxu1 %vm652_vm1, %v3015_v22  ;;  %v3019_v22 = vld [vmem:[%s3904_s2 + $0x28] sm:$0xff]  }
  0xde   : > { %839 = vmatpush1.bf16.msra.mxu1 %v3278_v34  ;;  %v919_v46 = vpop.permute.xlu1 %918  ;;  %787 = vmatprep.subr.bf16.mxu0 %v3300_v38  ;;  %v917_v47 = vpop.permute.xlu0 %916 }
  0xdf   : > { %840 = vmatprep.subr.bf16.mxu1 %v3310_v40  ;;  %813 = vmatprep.mubr.bf16.mxu0 %v3090_v41  ;;  %v948_v54 = vsel %vm942_vm2, %v915_v23, %v917_v47  ;;  %v949_v61 = vsel %vm942_vm2, %v917_v47, %v919_v46 }
  0xe0   : > { %1562 = vrot.lane.b32.xlu1 %v3250_v28, %s3094_s8  ;;  %788 = vmatpush1.bf16.msra.mxu0 %v3324_v43 }
  0xe1   : > { %1550 = vrot.lane.b32.xlu0 %v3255_v29, %s3094_s8  ;;  %981 = vmatprep.subr.bf16.mxu0 %v944_v49 }
  0xe2   : > { %841 = vmatpush1.bf16.msra.mxu1 %v3316_v42  ;;  %v913_v50 = vpop.permute.xlu1 %912  ;;  %866 = vmatprep.mubr.bf16.mxu1 %v3090_v41  ;;  %v921_v53 = vpop.permute.xlu0 %920 }
  0xe3   : > { %1034 = vmatprep.subr.bf16.mxu1 %v946_v51  ;;  %2693 = vmatmul.mubr.msk.bf16.vlgmr.msra.gmra.mrb[0].mxu0 %vm652_vm1, %v3016_v48  ;;  %v950_v57 = vsel %vm942_vm2, %v919_v46, %v921_v53  ;;  %v947_v58 = vsel %vm942_vm2, %v913_v50, %v915_v23 }
  0xe4   : > { %1566 = vrot.lane.b32.xlu1 %v3260_v30, %s3094_s8  ;;  %982 = vmatpush1.bf16.msra.mxu0 %v943_v52 }
  0xe5   : > { %1564 = vrot.lane.b32.xlu0 %v3265_v31, %s3094_s8  ;;  %2695 = vmatmul.mubr.msk.bf16.vlgmr.msra.gmra.mrb[0].mxu1 %vm652_vm1, %v3016_v48 }
  0xe6   : > { %983 = vmatprep.subr.bf16.mxu0 %v948_v54  ;;  %1035 = vmatpush1.bf16.msra.mxu1 %v945_v55  ;;  %v927_v56 = vpop.permute.xlu1 %926  ;;  %v925_v59 = vpop.permute.xlu0 %924 }
  0xe7   : > { %1036 = vmatprep.subr.bf16.mxu1 %v950_v57  ;;  %876 = vmatprep.mubr.bf16.mxu1 %v3090_v41  ;;  %v952_v60 = vsel %vm942_vm2, %v925_v59, %v927_v56 }
  0xe8   : > { %1560 = vrot.lane.b32.xlu1 %v3268_v32, %s3094_s8  ;;  %984 = vmatpush1.bf16.msra.mxu0 %v947_v58 }
  0xe9   : > { %1568 = vrot.lane.b32.xlu0 %v3273_v33, %s3094_s8  ;;  %985 = vmatprep.subr.bf16.mxu0 %v952_v60 }
  0xea   : > { %1037 = vmatpush1.bf16.msra.mxu1 %v949_v61  ;;  %v931_v63 = vpop.permute.xlu1 %930  ;;  %823 = vmatprep.mubr.bf16.mxu0 %v3090_v41  ;;  %v929_v0 = vpop.permute.xlu0 %928 }
  0xeb   : > { %2694 = vmatmul.mubr.msk.bf16.gmra.mrb[4].mxu0 %vm652_vm1, %v3017_v62  ;;  %v954_v1 = vsel %vm942_vm2, %v929_v0, %v931_v63  ;;  %v953_v2 = vsel %vm942_vm2, %v927_v56, %v929_v0 }
  0xec   : > { %1574 = vrot.lane.b32.xlu1 %v3278_v34, %s3094_s8  ;;  %1013 = vmatprep.mubr.bf16.mxu0 %v3090_v41 }
  0xed   : > { %1572 = vrot.lane.b32.xlu0 %v3281_v35, %s3094_s8  ;;  %1038 = vmatprep.subr.bf16.mxu1 %v954_v1 }
  0xee   : > { %1039 = vmatpush1.bf16.msra.mxu1 %v953_v2  ;;  %v935_v3 = vpop.permute.xlu1 %934  ;;  %v923_v4 = vpop.permute.xlu0 %922 }
  0xef   : > { %2696 = vmatmul.mubr.msk.bf16.gmra.mrb[4].mxu1 %vm652_vm1, %v3017_v62  ;;  %v951_v5 = vsel %vm942_vm2, %v923_v4, %v925_v59 }
  0xf0   : > { %1578 = vrot.lane.b32.xlu1 %v3288_v36, %s3094_s8  ;;  %1066 = vmatprep.mubr.bf16.mxu1 %v3090_v41 }
  0xf1   : > { %1576 = vrot.lane.b32.xlu0 %v3291_v37, %s3094_s8  ;;  %986 = vmatpush1.bf16.msra.mxu0 %v951_v5 }
  0xf2   : > { %v939_v6 = vpop.permute.xlu1 %938  ;;  %v937_v7 = vpop.permute.xlu0 %936 }
  0xf3   : > { %v956_v8 = vsel %vm942_vm2, %v935_v3, %v937_v7  ;;  %v957_v13 = vsel %vm942_vm2, %v937_v7, %v939_v6 }
  0xf4   : > { %1582 = vrot.lane.b32.xlu1 %v3300_v38, %s3094_s8  ;;  %987 = vmatprep.subr.bf16.mxu0 %v956_v8 }
  0xf5   : > { %1570 = vrot.lane.b32.xlu0 %v3305_v39, %s3094_s8 }
  0xf6   : > { %v933_v9 = vpop.permute.xlu1 %932  ;;  %v941_v11 = vpop.permute.xlu0 %940 }
  0xf7   : > { %v955_v10 = vsel %vm942_vm2, %v933_v9, %v935_v3  ;;  %v958_v12 = vsel %vm942_vm2, %v939_v6, %v941_v11  ;;  %v3020_v9 = vld [vmem:[%s3904_s2 + $0x30] sm:$0xff]  }
  0xf8   : > { %1586 = vrot.lane.b32.xlu1 %v3310_v40, %s3094_s8  ;;  %988 = vmatpush1.bf16.msra.mxu0 %v955_v10 }
  0xf9   : > { %1584 = vrot.lane.b32.xlu0 %v3316_v42, %s3094_s8  ;;  %1040 = vmatprep.subr.bf16.mxu1 %v958_v12 }
  0xfa   : > { %1041 = vmatpush1.bf16.msra.mxu1 %v957_v13  ;;  %v1123_v15 = vpop.permute.xlu1 %1122  ;;  %v1121_v16 = vpop.permute.xlu0 %1120 }
  0xfb   : > { %2703 = vmatmul.mubr.msk.bf16.vlgmr.msra.gmra.mrb[0].mxu0 %vm652_vm1, %v3018_v14  ;;  %v1160_v17 = vsel %vm1158_vm3, %v1121_v16, %v1123_v15 }
  0xfc   : > { %1580 = vrot.lane.b32.xlu1 %v3324_v43, %s3094_s8  ;;  %1023 = vmatprep.mubr.bf16.mxu0 %v3090_v41 }
  0xfd   : > { %1588 = vrot.lane.b32.xlu0 %v3329_v44, %s3094_s8  ;;  %1197 = vmatprep.subr.bf16.mxu0 %v1160_v17  ;;  %v3021_v17 = vld [vmem:[%s3904_s2 + $0x38] sm:$0xff]   ;;  %s2660_s8 = sshll.u32 %s3223_s26, 6 }
  0xfe   : > { %v1127_v18 = vpop.permute.xlu1 %1126  ;;  %2705 = vmatmul.mubr.msk.bf16.vlgmr.msra.gmra.mrb[0].mxu1 %vm652_vm1, %v3018_v14  ;;  %v1125_v19 = vpop.permute.xlu0 %1124  ;;  %s3856_s26 = scalar_lea.vmem [#allocation5], %s2660_s8 }
  0xff   : > { %1076 = vmatprep.mubr.bf16.mxu1 %v3090_v41  ;;  %v1162_v20 = vsel %vm1158_vm3, %v1125_v19, %v1127_v18  ;;  %v1161_v21 = vsel %vm1158_vm3, %v1123_v15, %v1125_v19 }
 0x100   : > { %1770 = vrot.lane.b32.xlu1 %v3245_v27, %s3095_s24  ;;  %1250 = vmatprep.subr.bf16.mxu1 %v1162_v20 }
 0x101   : > { %1768 = vrot.lane.b32.xlu0 %v3233_v25, %s3095_s24  ;;  %1251 = vmatpush1.bf16.msra.mxu1 %v1161_v21 }
 0x102   : > { %v1131_v23 = vpop.permute.xlu1 %1130  ;;  %v1119_v45 = vpop.permute.xlu0 %1118 }
 0x103   : > { %2704 = vmatmul.mubr.msk.bf16.gmra.mrb[4].mxu0 %vm652_vm1, %v3019_v22  ;;  %v1159_v46 = vsel %vm1158_vm3, %v1119_v45, %v1121_v16 }
 0x104   : > { %1774 = vrot.lane.b32.xlu1 %v3240_v26, %s3095_s24  ;;  %1229 = vmatprep.mubr.bf16.mxu0 %v3090_v41 }
 0x105   : > { %1772 = vrot.lane.b32.xlu0 %v3230_v24, %s3095_s24  ;;  %1198 = vmatpush1.bf16.msra.mxu0 %v1159_v46 }
 0x106   : > { %v1135_v47 = vpop.permute.xlu1 %1134  ;;  %2706 = vmatmul.mubr.msk.bf16.gmra.mrb[4].mxu1 %vm652_vm1, %v3019_v22  ;;  %v1133_v48 = vpop.permute.xlu0 %1132 }
 0x107   : > { %1282 = vmatprep.mubr.bf16.mxu1 %v3090_v41  ;;  %v1164_v49 = vsel %vm1158_vm3, %v1131_v23, %v1133_v48  ;;  %v1165_v54 = vsel %vm1158_vm3, %v1133_v48, %v1135_v47 }
 0x108   : > { %1778 = vrot.lane.b32.xlu1 %v3250_v28, %s3095_s24  ;;  %1199 = vmatprep.subr.bf16.mxu0 %v1164_v49 }
 0x109   : > { %1766 = vrot.lane.b32.xlu0 %v3255_v29, %s3095_s24 }
 0x10a   : > { %v1129_v50 = vpop.permute.xlu1 %1128  ;;  %v1137_v52 = vpop.permute.xlu0 %1136 }
 0x10b   : > { %v1163_v51 = vsel %vm1158_vm3, %v1129_v50, %v1131_v23  ;;  %v1166_v53 = vsel %vm1158_vm3, %v1135_v47, %v1137_v52 }
 0x10c   : > { %1782 = vrot.lane.b32.xlu1 %v3260_v30, %s3095_s24  ;;  %1200 = vmatpush1.bf16.msra.mxu0 %v1163_v51 }
 0x10d   : > { %1780 = vrot.lane.b32.xlu0 %v3265_v31, %s3095_s24  ;;  %1252 = vmatprep.subr.bf16.mxu1 %v1166_v53 }
 0x10e   : > { %1253 = vmatpush1.bf16.msra.mxu1 %v1165_v54  ;;  %v1143_v55 = vpop.permute.xlu1 %1142  ;;  %v1141_v56 = vpop.permute.xlu0 %1140 }
 0x10f   : > { %v1168_v57 = vsel %vm1158_vm3, %v1141_v56, %v1143_v55 }
 0x110   : > { %1776 = vrot.lane.b32.xlu1 %v3268_v32, %s3095_s24  ;;  %1201 = vmatprep.subr.bf16.mxu0 %v1168_v57 }
 0x111   : > { %1784 = vrot.lane.b32.xlu0 %v3273_v33, %s3095_s24 }
 0x112   : > { %v1147_v58 = vpop.permute.xlu1 %1146  ;;  %v1145_v59 = vpop.permute.xlu0 %1144 }
 0x113   : > { %v1170_v60 = vsel %vm1158_vm3, %v1145_v59, %v1147_v58  ;;  %v1169_v61 = vsel %vm1158_vm3, %v1143_v55, %v1145_v59 }
 0x114   : > { %1790 = vrot.lane.b32.xlu1 %v3278_v34, %s3095_s24  ;;  %1254 = vmatprep.subr.bf16.mxu1 %v1170_v60 }
 0x115   : > { %1788 = vrot.lane.b32.xlu0 %v3281_v35, %s3095_s24  ;;  %1255 = vmatpush1.bf16.msra.mxu1 %v1169_v61 }
 0x116   : > { %v1151_v62 = vpop.permute.xlu1 %1150  ;;  %v1139_v63 = vpop.permute.xlu0 %1138 }
 0x117   : > { %v1167_v0 = vsel %vm1158_vm3, %v1139_v63, %v1141_v56 }
 0x118   : > { %1794 = vrot.lane.b32.xlu1 %v3288_v36, %s3095_s24  ;;  %1202 = vmatpush1.bf16.msra.mxu0 %v1167_v0 }
 0x119   : > { %1792 = vrot.lane.b32.xlu0 %v3291_v37, %s3095_s24 }
 0x11a   : > { %v1155_v1 = vpop.permute.xlu1 %1154  ;;  %v1153_v2 = vpop.permute.xlu0 %1152 }
 0x11b   : > { %v1172_v3 = vsel %vm1158_vm3, %v1151_v62, %v1153_v2  ;;  %v1173_v8 = vsel %vm1158_vm3, %v1153_v2, %v1155_v1 }
 0x11c   : > { %1798 = vrot.lane.b32.xlu1 %v3300_v38, %s3095_s24  ;;  %1203 = vmatprep.subr.bf16.mxu0 %v1172_v3  ;;  %v3022_v3 = vld [vmem:[%s3904_s2 + $0x40] sm:$0xff]  }
 0x11d   : > { %1786 = vrot.lane.b32.xlu0 %v3305_v39, %s3095_s24 }
 0x11e   : > { %v1149_v4 = vpop.permute.xlu1 %1148  ;;  %v1157_v6 = vpop.permute.xlu0 %1156 }
 0x11f   : > { %v1171_v5 = vsel %vm1158_vm3, %v1149_v4, %v1151_v62  ;;  %v1174_v7 = vsel %vm1158_vm3, %v1155_v1, %v1157_v6 }
 0x120   : > { %1802 = vrot.lane.b32.xlu1 %v3310_v40, %s3095_s24  ;;  %1204 = vmatpush1.bf16.msra.mxu0 %v1171_v5 }
 0x121   : > { %1800 = vrot.lane.b32.xlu0 %v3316_v42, %s3095_s24  ;;  %1256 = vmatprep.subr.bf16.mxu1 %v1174_v7 }
 0x122   : > { %1257 = vmatpush1.bf16.msra.mxu1 %v1173_v8  ;;  %v1339_v10 = vpop.permute.xlu1 %1338 }
 0x123   : > { %v1337_v11 = vpop.permute.xlu0 %1336  ;;  %2713 = vmatmul.mubr.msk.bf16.vlgmr.msra.gmra.mrb[0].mxu0 %vm652_vm1, %v3020_v9 }
 0x124   : > { %1796 = vrot.lane.b32.xlu1 %v3324_v43, %s3095_s24  ;;  %v1376_v12 = vsel %vm1374_vm4, %v1337_v11, %v1339_v10  ;;  %1239 = vmatprep.mubr.bf16.mxu0 %v3090_v41 }
 0x125   : > { %1804 = vrot.lane.b32.xlu0 %v3329_v44, %s3095_s24  ;;  %1413 = vmatprep.subr.bf16.mxu0 %v1376_v12 }
 0x126   : > { %v1343_v13 = vpop.permute.xlu1 %1342  ;;  %2715 = vmatmul.mubr.msk.bf16.vlgmr.msra.gmra.mrb[0].mxu1 %vm652_vm1, %v3020_v9 }
 0x127   : > { %v1341_v14 = vpop.permute.xlu0 %1340  ;;  %1292 = vmatprep.mubr.bf16.mxu1 %v3090_v41 }
 0x128   : > { %1986 = vrot.lane.b32.xlu1 %v3245_v27, %s3096_s6  ;;  %v1378_v15 = vsel %vm1374_vm4, %v1341_v14, %v1343_v13  ;;  %v1377_v16 = vsel %vm1374_vm4, %v1339_v10, %v1341_v14 }
 0x129   : > { %1984 = vrot.lane.b32.xlu0 %v3233_v25, %s3096_s6  ;;  %1466 = vmatprep.subr.bf16.mxu1 %v1378_v15 }
 0x12a   : > { %1467 = vmatpush1.bf16.msra.mxu1 %v1377_v16  ;;  %v1347_v18 = vpop.permute.xlu1 %1346 }
 0x12b   : > { %v1335_v19 = vpop.permute.xlu0 %1334  ;;  %2714 = vmatmul.mubr.msk.bf16.gmra.mrb[4].mxu0 %vm652_vm1, %v3021_v17 }
 0x12c   : > { %v1375_v20 = vsel %vm1374_vm4, %v1335_v19, %v1337_v11  ;;  %1990 = vrot.lane.b32.xlu1 %v3240_v26, %s3096_s6  ;;  %1445 = vmatprep.mubr.bf16.mxu0 %v3090_v41  ;;  %v3023_v11 = vld [vmem:[%s3904_s2 + $0x48] sm:$0xff]  }
 0x12d   : > { %1988 = vrot.lane.b32.xlu0 %v3230_v24, %s3096_s6  ;;  %1414 = vmatpush1.bf16.msra.mxu0 %v1375_v20 }
 0x12e   : > { %v1351_v21 = vpop.permute.xlu1 %1350  ;;  %2716 = vmatmul.mubr.msk.bf16.gmra.mrb[4].mxu1 %vm652_vm1, %v3021_v17 }
 0x12f   : > { %v1349_v22 = vpop.permute.xlu0 %1348  ;;  %1498 = vmatprep.mubr.bf16.mxu1 %v3090_v41 }
 0x130   : > { %1994 = vrot.lane.b32.xlu1 %v3250_v28, %s3096_s6  ;;  %v1380_v23 = vsel %vm1374_vm4, %v1347_v18, %v1349_v22  ;;  %v1381_v48 = vsel %vm1374_vm4, %v1349_v22, %v1351_v21 }
 0x131   : > { %1982 = vrot.lane.b32.xlu0 %v3255_v29, %s3096_s6  ;;  %1415 = vmatprep.subr.bf16.mxu0 %v1380_v23 }
 0x132   : > { %v1345_v45 = vpop.permute.xlu1 %1344 }
 0x133   : > { %v1379_v46 = vsel %vm1374_vm4, %v1345_v45, %v1347_v18  ;;  %v1353_v24 = vpop.permute.xlu0 %1352 }
 0x134   : > { %1998 = vrot.lane.b32.xlu1 %v3260_v30, %s3096_s6  ;;  %1416 = vmatpush1.bf16.msra.mxu0 %v1379_v46  ;;  %v1382_v47 = vsel %vm1374_vm4, %v1351_v21, %v1353_v24 }
 0x135   : > { %1996 = vrot.lane.b32.xlu0 %v3265_v31, %s3096_s6  ;;  %1468 = vmatprep.subr.bf16.mxu1 %v1382_v47 }
 0x136   : > { %1469 = vmatpush1.bf16.msra.mxu1 %v1381_v48  ;;  %v1359_v49 = vpop.permute.xlu1 %1358 }
 0x137   : > { %v1357_v50 = vpop.permute.xlu0 %1356 }
 0x138   : > { %1992 = vrot.lane.b32.xlu1 %v3268_v32, %s3096_s6  ;;  %v1384_v51 = vsel %vm1374_vm4, %v1357_v50, %v1359_v49 }
 0x139   : > { %2000 = vrot.lane.b32.xlu0 %v3273_v33, %s3096_s6  ;;  %1417 = vmatprep.subr.bf16.mxu0 %v1384_v51  ;;  %v2399_v51 = vld [vmem:[%s3905_s3] sm:$0xff] }
 0x13a   : > { %v1363_v52 = vpop.permute.xlu1 %1362 }
 0x13b   : > { %v1361_v53 = vpop.permute.xlu0 %1360 }
 0x13c   : > { %v1385_v54 = vsel %vm1374_vm4, %v1359_v49, %v1361_v53  ;;  %2006 = vrot.lane.b32.xlu1 %v3278_v34, %s3096_s6  ;;  %v1386_v55 = vsel %vm1374_vm4, %v1361_v53, %v1363_v52 }
 0x13d   : > { %2004 = vrot.lane.b32.xlu0 %v3281_v35, %s3096_s6  ;;  %1470 = vmatprep.subr.bf16.mxu1 %v1386_v55 }
 0x13e   : > { %1471 = vmatpush1.bf16.msra.mxu1 %v1385_v54  ;;  %v1367_v56 = vpop.permute.xlu1 %1366  ;;  %v2401_v54 = vld [vmem:[%s3905_s3 + $0x10] sm:$0xff] }
 0x13f   : > { %v1355_v57 = vpop.permute.xlu0 %1354 }
 0x140   : > { %v1383_v58 = vsel %vm1374_vm4, %v1355_v57, %v1357_v50  ;;  %2010 = vrot.lane.b32.xlu1 %v3288_v36, %s3096_s6 }
 0x141   : > { %2008 = vrot.lane.b32.xlu0 %v3291_v37, %s3096_s6  ;;  %1418 = vmatpush1.bf16.msra.mxu0 %v1383_v58 }
 0x142   : > { %v1371_v59 = vpop.permute.xlu1 %1370 }
 0x143   : > { %v1369_v60 = vpop.permute.xlu0 %1368 }
 0x144   : > { %2014 = vrot.lane.b32.xlu1 %v3300_v38, %s3096_s6  ;;  %v1388_v61 = vsel %vm1374_vm4, %v1367_v56, %v1369_v60  ;;  %v1389_v2 = vsel %vm1374_vm4, %v1369_v60, %v1371_v59 }
 0x145   : > { %2002 = vrot.lane.b32.xlu0 %v3305_v39, %s3096_s6  ;;  %1419 = vmatprep.subr.bf16.mxu0 %v1388_v61 }
 0x146   : > { %v1365_v62 = vpop.permute.xlu1 %1364 }
 0x147   : > { %v1387_v63 = vsel %vm1374_vm4, %v1365_v62, %v1367_v56  ;;  %v1373_v0 = vpop.permute.xlu0 %1372  ;;  %v2402_v56 = vld [vmem:[%s3905_s3 + $0x18] sm:$0xff] }
 0x148   : > { %2018 = vrot.lane.b32.xlu1 %v3310_v40, %s3096_s6  ;;  %1420 = vmatpush1.bf16.msra.mxu0 %v1387_v63  ;;  %v1390_v1 = vsel %vm1374_vm4, %v1371_v59, %v1373_v0 }
 0x149   : > { %2016 = vrot.lane.b32.xlu0 %v3316_v42, %s3096_s6  ;;  %1472 = vmatprep.subr.bf16.mxu1 %v1390_v1 }
 0x14a   : > { %1473 = vmatpush1.bf16.msra.mxu1 %v1389_v2  ;;  %v1555_v4 = vpop.permute.xlu1 %1554 }
 0x14b   : > { %v1553_v5 = vpop.permute.xlu0 %1552  ;;  %2723 = vmatmul.mubr.msk.bf16.vlgmr.msra.gmra.mrb[0].mxu0 %vm652_vm1, %v3022_v3 }
 0x14c   : > { %2012 = vrot.lane.b32.xlu1 %v3324_v43, %s3096_s6  ;;  %v1592_v6 = vsel %vm1590_vm5, %v1553_v5, %v1555_v4  ;;  %1455 = vmatprep.mubr.bf16.mxu0 %v3090_v41 }
 0x14d   : > { %2020 = vrot.lane.b32.xlu0 %v3329_v44, %s3096_s6  ;;  %1629 = vmatprep.subr.bf16.mxu0 %v1592_v6 }
 0x14e   : > { %v1559_v7 = vpop.permute.xlu1 %1558  ;;  %2725 = vmatmul.mubr.msk.bf16.vlgmr.msra.gmra.mrb[0].mxu1 %vm652_vm1, %v3022_v3 }
 0x14f   : > { %v1557_v8 = vpop.permute.xlu0 %1556  ;;  %1508 = vmatprep.mubr.bf16.mxu1 %v3090_v41 }
 0x150   : > { %v1593_v9 = vsel %vm1590_vm5, %v1555_v4, %v1557_v8  ;;  %2202 = vrot.lane.b32.xlu1 %v3245_v27, %s3097_s11  ;;  %v1594_v10 = vsel %vm1590_vm5, %v1557_v8, %v1559_v7  ;;  %v3032_v27 = vld [vmem:[%s3227_s13 + $0xc] ss:$16 sps:$4 sm:$0xff]  }
 0x151   : > { %2200 = vrot.lane.b32.xlu0 %v3233_v25, %s3097_s11  ;;  %1682 = vmatprep.subr.bf16.mxu1 %v1594_v10 }
 0x152   : > { %1683 = vmatpush1.bf16.msra.mxu1 %v1593_v9  ;;  %v1563_v12 = vpop.permute.xlu1 %1562 }
 0x153   : > { %v1551_v13 = vpop.permute.xlu0 %1550  ;;  %2724 = vmatmul.mubr.msk.bf16.gmra.mrb[4].mxu0 %vm652_vm1, %v3023_v11 }
 0x154   : > { %v1591_v14 = vsel %vm1590_vm5, %v1551_v13, %v1553_v5  ;;  %2206 = vrot.lane.b32.xlu1 %v3240_v26, %s3097_s11  ;;  %1661 = vmatprep.mubr.bf16.mxu0 %v3090_v41 }
 0x155   : > { %2204 = vrot.lane.b32.xlu0 %v3032_v27, %s3097_s11  ;;  %1630 = vmatpush1.bf16.msra.mxu0 %v1591_v14 }
 0x156   : > { %v1567_v25 = vpop.permute.xlu1 %1566  ;;  %2726 = vmatmul.mubr.msk.bf16.gmra.mrb[4].mxu1 %vm652_vm1, %v3023_v11 }
 0x157   : > { %v1565_v15 = vpop.permute.xlu0 %1564  ;;  %1714 = vmatprep.mubr.bf16.mxu1 %v3090_v41 }
 0x158   : > { %2210 = vrot.lane.b32.xlu1 %v3250_v28, %s3097_s11  ;;  %v1596_v16 = vsel %vm1590_vm5, %v1563_v12, %v1565_v15  ;;  %v1597_v20 = vsel %vm1590_vm5, %v1565_v15, %v1567_v25 }
 0x159   : > { %2198 = vrot.lane.b32.xlu0 %v3255_v29, %s3097_s11  ;;  %1631 = vmatprep.subr.bf16.mxu0 %v1596_v16 }
 0x15a   : > { %v1561_v26 = vpop.permute.xlu1 %1560 }
 0x15b   : > { %v1595_v17 = vsel %vm1590_vm5, %v1561_v26, %v1563_v12  ;;  %v1569_v18 = vpop.permute.xlu0 %1568 }
 0x15c   : > { %2214 = vrot.lane.b32.xlu1 %v3260_v30, %s3097_s11  ;;  %1632 = vmatpush1.bf16.msra.mxu0 %v1595_v17  ;;  %v1598_v19 = vsel %vm1590_vm5, %v1567_v25, %v1569_v18  ;;  %v3026_v18 = vld [vmem:[%s3904_s2 + $0x60] sm:$0xff]  }
 0x15d   : > { %2212 = vrot.lane.b32.xlu0 %v3265_v31, %s3097_s11  ;;  %1684 = vmatprep.subr.bf16.mxu1 %v1598_v19 }
 0x15e   : > { %1685 = vmatpush1.bf16.msra.mxu1 %v1597_v20  ;;  %v1575_v28 = vpop.permute.xlu1 %1574 }
 0x15f   : > { %v1573_v29 = vpop.permute.xlu0 %1572 }
 0x160   : > { %2208 = vrot.lane.b32.xlu1 %v3268_v32, %s3097_s11  ;;  %v1600_v21 = vsel %vm1590_vm5, %v1573_v29, %v1575_v28 }
 0x161   : > { %2216 = vrot.lane.b32.xlu0 %v3273_v33, %s3097_s11  ;;  %1633 = vmatprep.subr.bf16.mxu0 %v1600_v21 }
 0x162   : > { %v1579_v30 = vpop.permute.xlu1 %1578 }
 0x163   : > { %v1577_v22 = vpop.permute.xlu0 %1576 }
 0x164   : > { %v1601_v23 = vsel %vm1590_vm5, %v1575_v28, %v1577_v22  ;;  %2222 = vrot.lane.b32.xlu1 %v3278_v34, %s3097_s11  ;;  %v1602_v31 = vsel %vm1590_vm5, %v1577_v22, %v1579_v30 }
 0x165   : > { %2220 = vrot.lane.b32.xlu0 %v3281_v35, %s3097_s11  ;;  %1686 = vmatprep.subr.bf16.mxu1 %v1602_v31 }
 0x166   : > { %1687 = vmatpush1.bf16.msra.mxu1 %v1601_v23  ;;  %v1583_v32 = vpop.permute.xlu1 %1582  ;;  %v3027_v23 = vld [vmem:[%s3904_s2 + $0x68] sm:$0xff]  }
 0x167   : > { %v1571_v45 = vpop.permute.xlu0 %1570 }
 0x168   : > { %v1599_v46 = vsel %vm1590_vm5, %v1571_v45, %v1573_v29  ;;  %2226 = vrot.lane.b32.xlu1 %v3288_v36, %s3097_s11 }
 0x169   : > { %2224 = vrot.lane.b32.xlu0 %v3291_v37, %s3097_s11  ;;  %1634 = vmatpush1.bf16.msra.mxu0 %v1599_v46 }
 0x16a   : > { %v1587_v33 = vpop.permute.xlu1 %1586 }
 0x16b   : > { %v1585_v34 = vpop.permute.xlu0 %1584 }
 0x16c   : > { %2230 = vrot.lane.b32.xlu1 %v3300_v38, %s3097_s11  ;;  %v1604_v35 = vsel %vm1590_vm5, %v1583_v32, %v1585_v34  ;;  %v1605_v37 = vsel %vm1590_vm5, %v1585_v34, %v1587_v33  ;;  %v3024_v38 = vld [vmem:[%s3904_s2 + $0x50] sm:$0xff]  }
 0x16d   : > { %2218 = vrot.lane.b32.xlu0 %v3305_v39, %s3097_s11  ;;  %1635 = vmatprep.subr.bf16.mxu0 %v1604_v35 }
 0x16e   : > { %v1581_v24 = vpop.permute.xlu1 %1580 }
 0x16f   : > { %v1603_v47 = vsel %vm1590_vm5, %v1581_v24, %v1583_v32  ;;  %v1589_v48 = vpop.permute.xlu0 %1588 }
 0x170   : > { %2234 = vrot.lane.b32.xlu1 %v3310_v40, %s3097_s11  ;;  %1636 = vmatpush1.bf16.msra.mxu0 %v1603_v47  ;;  %v1606_v36 = vsel %vm1590_vm5, %v1587_v33, %v1589_v48 }
 0x171   : > { %2232 = vrot.lane.b32.xlu0 %v3316_v42, %s3097_s11  ;;  %1688 = vmatprep.subr.bf16.mxu1 %v1606_v36  ;;  %v2400_v42 = vld [vmem:[%s3905_s3 + $0x8] sm:$0xff] }
 0x172   : > { %1689 = vmatpush1.bf16.msra.mxu1 %v1605_v37  ;;  %v1771_v39 = vpop.permute.xlu1 %1770 }
 0x173   : > { %v1769_v49 = vpop.permute.xlu0 %1768  ;;  %2733 = vmatmul.mubr.msk.bf16.vlgmr.msra.gmra.mrb[0].mxu0 %vm652_vm1, %v3024_v38 }
 0x174   : > { %2228 = vrot.lane.b32.xlu1 %v3324_v43, %s3097_s11  ;;  %v1808_v40 = vsel %vm1806_vm6, %v1769_v49, %v1771_v39  ;;  %1671 = vmatprep.mubr.bf16.mxu0 %v3090_v41 }
 0x175   : > { %2236 = vrot.lane.b32.xlu0 %v3329_v44, %s3097_s11  ;;  %1845 = vmatprep.subr.bf16.mxu0 %v1808_v40  ;;  %v3025_v44 = vld [vmem:[%s3904_s2 + $0x58] sm:$0xff]   ;;  %s2520_s11 = sadd.s32 (%p3175_p6), %s2918_s10, %s2776_s9 }
 0x176   : > { %v1775_v50 = vpop.permute.xlu1 %1774  ;;  %2735 = vmatmul.mubr.msk.bf16.vlgmr.msra.gmra.mrb[0].mxu1 %vm652_vm1, %v3024_v38  ;;  %s2777_s27 = sshll.u32 (%p3175_p6), %s2520_s11, 2 }
 0x177   : > { %v1773_v43 = vpop.permute.xlu0 %1772  ;;  %1724 = vmatprep.mubr.bf16.mxu1 %v3090_v41  ;;  %s2522_s13 = scalar_lea.vmem (%p3175_p6), %s3906_s4, %s2777_s27 }
 0x178   : > { %v1809_v52 = vsel %vm1806_vm6, %v1771_v39, %v1773_v43  ;;  %v1810_v53 = vsel %vm1806_vm6, %v1773_v43, %v1775_v50  ;;  %2410 = vperm.xlu1 %2985, %v2400_v42  }
 0x179   : > { %1898 = vmatprep.subr.bf16.mxu1 %v1810_v53  ;;  %2405 = vperm.xlu0 %2984, %v2399_v51  }
 0x17a   : > { %1899 = vmatpush1.bf16.msra.mxu1 %v1809_v52  ;;  %v1779_v55 = vpop.permute.xlu1 %1778 }
 0x17b   : > { %v1767_v57 = vpop.permute.xlu0 %1766  ;;  %2734 = vmatmul.mubr.msk.bf16.gmra.mrb[4].mxu0 %vm652_vm1, %v3025_v44 }
 0x17c   : > { %v1807_v58 = vsel %vm1806_vm6, %v1767_v57, %v1769_v49  ;;  %1877 = vmatprep.mubr.bf16.mxu0 %v3090_v41  ;;  %2415 = vperm.xlu1 %2985, %v2401_v54  }
 0x17d   : > { %1846 = vmatpush1.bf16.msra.mxu0 %v1807_v58  ;;  %2420 = vperm.xlu0 %2984, %v2402_v56  }
 0x17e   : > { %v1783_v59 = vpop.permute.xlu1 %1782  ;;  %2736 = vmatmul.mubr.msk.bf16.gmra.mrb[4].mxu1 %vm652_vm1, %v3025_v44 }
 0x17f   : > { %v1781_v60 = vpop.permute.xlu0 %1780  ;;  %1930 = vmatprep.mubr.bf16.mxu1 %v3090_v41 }
 0x180   : > { %v1812_v61 = vsel %vm1806_vm6, %v1779_v55, %v1781_v60  ;;  %v1813_v2 = vsel %vm1806_vm6, %v1781_v60, %v1783_v59  ;;  %v3028_v60 = vld [vmem:[%s3904_s2 + $0x70] sm:$0xff]  }
 0x181   : > { %1847 = vmatprep.subr.bf16.mxu0 %v1812_v61 }
 0x182   : > { %v1777_v62 = vpop.permute.xlu1 %1776 }
 0x183   : > { %v1811_v63 = vsel %vm1806_vm6, %v1777_v62, %v1779_v55  ;;  %v1785_v0 = vpop.permute.xlu0 %1784 }
 0x184   : > { %1848 = vmatpush1.bf16.msra.mxu0 %v1811_v63  ;;  %v1814_v1 = vsel %vm1806_vm6, %v1783_v59, %v1785_v0 }
 0x185   : > { %1900 = vmatprep.subr.bf16.mxu1 %v1814_v1 }
 0x186   : > { %1901 = vmatpush1.bf16.msra.mxu1 %v1813_v2  ;;  %v1791_v3 = vpop.permute.xlu1 %1790  ;;  %v3029_v2 = vld [vmem:[%s3904_s2 + $0x78] sm:$0xff]  }
 0x187   : > { %v1789_v4 = vpop.permute.xlu0 %1788 }
 0x188   : > { %v1816_v5 = vsel %vm1806_vm6, %v1789_v4, %v1791_v3 }
 0x189   : > { %1849 = vmatprep.subr.bf16.mxu0 %v1816_v5 }
 0x18a   : > { %v1795_v6 = vpop.permute.xlu1 %1794 }
 0x18b   : > { %v1793_v7 = vpop.permute.xlu0 %1792 }
 0x18c   : > { %v1817_v8 = vsel %vm1806_vm6, %v1791_v3, %v1793_v7  ;;  %v1818_v9 = vsel %vm1806_vm6, %v1793_v7, %v1795_v6 }
 0x18d   : > { %1902 = vmatprep.subr.bf16.mxu1 %v1818_v9 }
 0x18e   : > { %1903 = vmatpush1.bf16.msra.mxu1 %v1817_v8  ;;  %v1799_v10 = vpop.permute.xlu1 %1798 }
 0x18f   : > { %v1787_v11 = vpop.permute.xlu0 %1786 }
 0x190   : > { %v1815_v12 = vsel %vm1806_vm6, %v1787_v11, %v1789_v4 }
 0x191   : > { %1850 = vmatpush1.bf16.msra.mxu0 %v1815_v12 }
 0x192   : > { %v1803_v13 = vpop.permute.xlu1 %1802 }
 0x193   : > { %v1801_v14 = vpop.permute.xlu0 %1800 }
 0x194   : > { %v1820_v27 = vsel %vm1806_vm6, %v1799_v10, %v1801_v14  ;;  %v1821_v17 = vsel %vm1806_vm6, %v1801_v14, %v1803_v13 }
 0x195   : > { %1851 = vmatprep.subr.bf16.mxu0 %v1820_v27 }
 0x196   : > { %v1797_v25 = vpop.permute.xlu1 %1796 }
 0x197   : > { %v1819_v15 = vsel %vm1806_vm6, %v1797_v25, %v1799_v10  ;;  %v1805_v16 = vpop.permute.xlu0 %1804 }
 0x198   : > { %1852 = vmatpush1.bf16.msra.mxu0 %v1819_v15  ;;  %v1822_v26 = vsel %vm1806_vm6, %v1803_v13, %v1805_v16 }
 0x199   : > { %1904 = vmatprep.subr.bf16.mxu1 %v1822_v26 }
 0x19a   : > { %1905 = vmatpush1.bf16.msra.mxu1 %v1821_v17  ;;  %v1987_v19 = vpop.permute.xlu1 %1986 }
 0x19b   : > { %v1985_v20 = vpop.permute.xlu0 %1984  ;;  %2743 = vmatmul.mubr.msk.bf16.vlgmr.msra.gmra.mrb[0].mxu0 %vm652_vm1, %v3026_v18 }
 0x19c   : > { %v2024_v28 = vsel %vm2022_vm7, %v1985_v20, %v1987_v19  ;;  %1887 = vmatprep.mubr.bf16.mxu0 %v3090_v41 }
 0x19d   : > { %2061 = vmatprep.subr.bf16.mxu0 %v2024_v28  ;;  %2745 = vmatmul.mubr.msk.bf16.vlgmr.msra.gmra.mrb[0].mxu1 %vm652_vm1, %v3026_v18 }
 0x19e   : > { %v1991_v29 = vpop.permute.xlu1 %1990  ;;  %1940 = vmatprep.mubr.bf16.mxu1 %v3090_v41 }
 0x19f   : > { %v1989_v21 = vpop.permute.xlu0 %1988 }
 0x1a0   : > { %v2025_v30 = vsel %vm2022_vm7, %v1987_v19, %v1989_v21  ;;  %v2026_v22 = vsel %vm2022_vm7, %v1989_v21, %v1991_v29 }
 0x1a1   : > { %2114 = vmatprep.subr.bf16.mxu1 %v2026_v22 }
 0x1a2   : > { %2115 = vmatpush1.bf16.msra.mxu1 %v2025_v30  ;;  %v1995_v31 = vpop.permute.xlu1 %1994 }
 0x1a3   : > { %v1983_v32 = vpop.permute.xlu0 %1982  ;;  %2744 = vmatmul.mubr.msk.bf16.gmra.mrb[4].mxu0 %vm652_vm1, %v3027_v23 }
 0x1a4   : > { %v2023_v45 = vsel %vm2022_vm7, %v1983_v32, %v1985_v20  ;;  %2093 = vmatprep.mubr.bf16.mxu0 %v3090_v41 }
 0x1a5   : > { %2062 = vmatpush1.bf16.msra.mxu0 %v2023_v45  ;;  %2746 = vmatmul.mubr.msk.bf16.gmra.mrb[4].mxu1 %vm652_vm1, %v3027_v23  ;;  %v3030_v45 = vld [vmem:[%s3904_s2 + $0x80] sm:$0xff]  }
 0x1a6   : > { %v1999_v46 = vpop.permute.xlu1 %1998  ;;  %2146 = vmatprep.mubr.bf16.mxu1 %v3090_v41 }
 0x1a7   : > { %v1997_v33 = vpop.permute.xlu0 %1996 }
 0x1a8   : > { %v2028_v34 = vsel %vm2022_vm7, %v1995_v31, %v1997_v33  ;;  %v2029_v36 = vsel %vm2022_vm7, %v1997_v33, %v1999_v46 }
 0x1a9   : > { %2063 = vmatprep.subr.bf16.mxu0 %v2028_v34  ;;  %v3031_v34 = vld [vmem:[%s3904_s2 + $0x88] sm:$0xff]  }
 0x1aa   : > { %v1993_v35 = vpop.permute.xlu1 %1992 }
 0x1ab   : > { %v2027_v24 = vsel %vm2022_vm7, %v1993_v35, %v1995_v31  ;;  %v2001_v47 = vpop.permute.xlu0 %2000 }
 0x1ac   : > { %2064 = vmatpush1.bf16.msra.mxu0 %v2027_v24  ;;  %v2030_v48 = vsel %vm2022_vm7, %v1999_v46, %v2001_v47 }
 0x1ad   : > { %2116 = vmatprep.subr.bf16.mxu1 %v2030_v48 }
 0x1ae   : > { %2117 = vmatpush1.bf16.msra.mxu1 %v2029_v36  ;;  %v2007_v37 = vpop.permute.xlu1 %2006 }
 0x1af   : > { %v2005_v38 = vpop.permute.xlu0 %2004 }
 0x1b0   : > { %v2032_v39 = vsel %vm2022_vm7, %v2005_v38, %v2007_v37 }
 0x1b1   : > { %2065 = vmatprep.subr.bf16.mxu0 %v2032_v39 }
 0x1b2   : > { %v2011_v49 = vpop.permute.xlu1 %2010 }
 0x1b3   : > { %v2009_v40 = vpop.permute.xlu0 %2008 }
 0x1b4   : > { %v2033_v42 = vsel %vm2022_vm7, %v2007_v37, %v2009_v40  ;;  %v2034_v50 = vsel %vm2022_vm7, %v2009_v40, %v2011_v49 }
 0x1b5   : > { %2118 = vmatprep.subr.bf16.mxu1 %v2034_v50 }
 0x1b6   : > { %2119 = vmatpush1.bf16.msra.mxu1 %v2033_v42  ;;  %v2015_v51 = vpop.permute.xlu1 %2014 }
 0x1b7   : > { %v2003_v43 = vpop.permute.xlu0 %2002 }
 0x1b8   : > { %v2031_v52 = vsel %vm2022_vm7, %v2003_v43, %v2005_v38 }
 0x1b9   : > { %2066 = vmatpush1.bf16.msra.mxu0 %v2031_v52 }
 0x1ba   : > { %v2019_v53 = vpop.permute.xlu1 %2018 }
 0x1bb   : > { %v2017_v44 = vpop.permute.xlu0 %2016 }
 0x1bc   : > { %v2036_v54 = vsel %vm2022_vm7, %v2015_v51, %v2017_v44  ;;  %v2037_v59 = vsel %vm2022_vm7, %v2017_v44, %v2019_v53 }
 0x1bd   : > { %2067 = vmatprep.subr.bf16.mxu0 %v2036_v54 }
 0x1be   : > { %v2013_v55 = vpop.permute.xlu1 %2012 }
 0x1bf   : > { %v2035_v56 = vsel %vm2022_vm7, %v2013_v55, %v2015_v51  ;;  %v2021_v57 = vpop.permute.xlu0 %2020 }
 0x1c0   : > { %2068 = vmatpush1.bf16.msra.mxu0 %v2035_v56  ;;  %v2038_v58 = vsel %vm2022_vm7, %v2019_v53, %v2021_v57 }
 0x1c1   : > { %2120 = vmatprep.subr.bf16.mxu1 %v2038_v58 }
 0x1c2   : > { %2121 = vmatpush1.bf16.msra.mxu1 %v2037_v59  ;;  %v2203_v61 = vpop.permute.xlu1 %2202 }
 0x1c3   : > { %v2201_v62 = vpop.permute.xlu0 %2200  ;;  %2753 = vmatmul.mubr.msk.bf16.vlgmr.msra.gmra.mrb[0].mxu0 %vm652_vm1, %v3028_v60 }
 0x1c4   : > { %v2240_v63 = vsel %vm2238_vm8, %v2201_v62, %v2203_v61  ;;  %2103 = vmatprep.mubr.bf16.mxu0 %v3090_v41 }
 0x1c5   : > { %2277 = vmatprep.subr.bf16.mxu0 %v2240_v63  ;;  %2755 = vmatmul.mubr.msk.bf16.vlgmr.msra.gmra.mrb[0].mxu1 %vm652_vm1, %v3028_v60 }
 0x1c6   : > { %v2207_v0 = vpop.permute.xlu1 %2206  ;;  %2156 = vmatprep.mubr.bf16.mxu1 %v3090_v41 }
 0x1c7   : > { %v2205_v1 = vpop.permute.xlu0 %2204 }
 0x1c8   : > { %v2241_v3 = vsel %vm2238_vm8, %v2203_v61, %v2205_v1  ;;  %v2242_v4 = vsel %vm2238_vm8, %v2205_v1, %v2207_v0 }
 0x1c9   : > { %2330 = vmatprep.subr.bf16.mxu1 %v2242_v4 }
 0x1ca   : > { %2331 = vmatpush1.bf16.msra.mxu1 %v2241_v3  ;;  %v2211_v5 = vpop.permute.xlu1 %2210 }
 0x1cb   : > { %v2199_v6 = vpop.permute.xlu0 %2198  ;;  %2754 = vmatmul.mubr.msk.bf16.gmra.mrb[4].mxu0 %vm652_vm1, %v3029_v2 }
 0x1cc   : > { %v2239_v7 = vsel %vm2238_vm8, %v2199_v6, %v2201_v62  ;;  %2309 = vmatprep.mubr.bf16.mxu0 %v3090_v41 }
 0x1cd   : > { %2278 = vmatpush1.bf16.msra.mxu0 %v2239_v7  ;;  %2756 = vmatmul.mubr.msk.bf16.gmra.mrb[4].mxu1 %vm652_vm1, %v3029_v2 }
 0x1ce   : > { %v2215_v8 = vpop.permute.xlu1 %2214  ;;  %2362 = vmatprep.mubr.bf16.mxu1 %v3090_v41 }
 0x1cf   : > { %v2213_v9 = vpop.permute.xlu0 %2212 }
 0x1d0   : > { %v2244_v10 = vsel %vm2238_vm8, %v2211_v5, %v2213_v9  ;;  %v2245_v27 = vsel %vm2238_vm8, %v2213_v9, %v2215_v8 }
 0x1d1   : > { %2279 = vmatprep.subr.bf16.mxu0 %v2244_v10 }
 0x1d2   : > { %v2209_v11 = vpop.permute.xlu1 %2208 }
 0x1d3   : > { %v2243_v12 = vsel %vm2238_vm8, %v2209_v11, %v2211_v5  ;;  %v2217_v13 = vpop.permute.xlu0 %2216 }
 0x1d4   : > { %2280 = vmatpush1.bf16.msra.mxu0 %v2243_v12  ;;  %v2246_v14 = vsel %vm2238_vm8, %v2215_v8, %v2217_v13 }
 0x1d5   : > { %2332 = vmatprep.subr.bf16.mxu1 %v2246_v14 }
 0x1d6   : > { %2333 = vmatpush1.bf16.msra.mxu1 %v2245_v27  ;;  %v2223_v25 = vpop.permute.xlu1 %2222 }
 0x1d7   : > { %v2221_v15 = vpop.permute.xlu0 %2220 }
 0x1d8   : > { %v2248_v16 = vsel %vm2238_vm8, %v2221_v15, %v2223_v25 }
 0x1d9   : > { %2281 = vmatprep.subr.bf16.mxu0 %v2248_v16 }
 0x1da   : > { %v2227_v26 = vpop.permute.xlu1 %2226 }
 0x1db   : > { %v2225_v17 = vpop.permute.xlu0 %2224 }
 0x1dc   : > { %v2249_v18 = vsel %vm2238_vm8, %v2223_v25, %v2225_v17  ;;  %v2250_v19 = vsel %vm2238_vm8, %v2225_v17, %v2227_v26 }
 0x1dd   : > { %2334 = vmatprep.subr.bf16.mxu1 %v2250_v19 }
 0x1de   : > { %2335 = vmatpush1.bf16.msra.mxu1 %v2249_v18  ;;  %v2231_v20 = vpop.permute.xlu1 %2230 }
 0x1df   : > { %v2219_v28 = vpop.permute.xlu0 %2218 }
 0x1e0   : > { %v2247_v29 = vsel %vm2238_vm8, %v2219_v28, %v2221_v15 }
 0x1e1   : > { %2282 = vmatpush1.bf16.msra.mxu0 %v2247_v29 }
 0x1e2   : > { %v2235_v21 = vpop.permute.xlu1 %2234 }
 0x1e3   : > { %v2233_v30 = vpop.permute.xlu0 %2232 }
 0x1e4   : > { %v2252_v22 = vsel %vm2238_vm8, %v2231_v20, %v2233_v30  ;;  %v2253_v33 = vsel %vm2238_vm8, %v2233_v30, %v2235_v21 }
 0x1e5   : > { %2283 = vmatprep.subr.bf16.mxu0 %v2252_v22 }
 0x1e6   : > { %v2229_v23 = vpop.permute.xlu1 %2228 }
 0x1e7   : > { %v2251_v31 = vsel %vm2238_vm8, %v2229_v23, %v2231_v20  ;;  %v2237_v32 = vpop.permute.xlu0 %2236 }
 0x1e8   : > { %2284 = vmatpush1.bf16.msra.mxu0 %v2251_v31  ;;  %v2254_v46 = vsel %vm2238_vm8, %v2235_v21, %v2237_v32 }
 0x1e9   : > { %2336 = vmatprep.subr.bf16.mxu1 %v2254_v46 }
 0x1ea   : > { %2337 = vmatpush1.bf16.msra.mxu1 %v2253_v33 }
 0x1eb   : > { %2763 = vmatmul.mubr.msk.bf16.vlgmr.msra.gmra.mrb[0].mxu0 %vm652_vm1, %v3030_v45 }
 0x1ec   : > { %2319 = vmatprep.mubr.bf16.mxu0 %v3090_v41 }
 0x1ed   : > { %2765 = vmatmul.mubr.msk.bf16.vlgmr.msra.gmra.mrb[0].mxu1 %vm652_vm1, %v3030_v45 }
 0x1ee   : > { %2372 = vmatprep.mubr.bf16.mxu1 %v3090_v41 }
 0x1f3   : > { %2764 = vmatmul.mubr.msk.bf16.gmra.mrb[4].mxu0 %vm652_vm1, %v3031_v34 }
 0x1f5   : > { %2766 = vmatmul.mubr.msk.bf16.gmra.mrb[4].mxu1 %vm652_vm1, %v3031_v34 }
 0x1f7   : > { %v2411_v47 = vpop.permute.xlu1 %2410 }
 0x1f8   : > { %v2406_v35 = vpop.permute.xlu0 %2405 }
 0x1fb   : > { %v2416_v61 = vpop.permute.xlu1 %2415 }
 0x1fc   : > { %v2421_v5 = vpop.permute.xlu0 %2420 }
 0x2be   : > { %v2311_v24 = vpop.f32.mrb[0].mxu0 }
 0x2bf   : > { %v2313_v48 = vpop.f32.mrb[1].mxu0  ;;  %v2423_v36 = vadd.f32 %v2406_v35, %v2311_v24 }
 0x2c0   : > { %v2424_v37 = vadd.f32 %v2406_v35, %v2313_v48  ;;  %v2364_v38 = vpop.f32.mrb[0].mxu1  ;;  %v2315_v39 = vpop.f32.mrb[2].mxu0 }
 0x2c1   : > { %v2439_v49 = vmax.f32 %v2423_v36, 0.0  ;;  %v2425_v40 = vadd.f32 %v2406_v35, %v2364_v38  ;;  %v2427_v41 = vadd.f32 %v2411_v47, %v2315_v39  ;;  %v2366_v42 = vpop.f32.mrb[1].mxu1  ;;  %v2317_v50 = vpop.f32.mrb[3].mxu0 }
 0x2c2   : > { %v2440_v51 = vmax.f32 %v2424_v37, 0.0  ;;  %v2426_v43 = vadd.f32 %v2406_v35, %v2366_v42  ;;  %v2428_v52 = vadd.f32 %v2411_v47, %v2317_v50  ;;  %v2368_v53 = vpop.f32.mrb[2].mxu1 }
 0x2c3   : > { %v2441_v44 = vmax.f32 %v2425_v40, 0.0  ;;  %v2443_v54 = vmax.f32 %v2427_v41, 0.0  ;;  %v2429_v55 = vadd.f32 %v2411_v47, %v2368_v53  ;;  %v2370_v56 = vpop.f32.mrb[3].mxu1 }
 0x2c4   : > { %v2780_v57 = vpack.c.bf16 %v2440_v51, %v2439_v49  ;;  %v2442_v58 = vmax.f32 %v2426_v43, 0.0  ;;  %v2444_v59 = vmax.f32 %v2428_v52, 0.0  ;;  %v2430_v60 = vadd.f32 %v2411_v47, %v2370_v56 }
 0x2c5   : > { %v2445_v62 = vmax.f32 %v2429_v55, 0.0 }
 0x2c6   : > { %2503 = vst [vmem:[%s3856_s26] sm:$0xff] %v2780_v57  ;;  %v2781_v63 = vpack.c.bf16 %v2442_v58, %v2441_v44  ;;  %v2782_v0 = vpack.c.bf16 %v2444_v59, %v2443_v54  ;;  %v2446_v1 = vmax.f32 %v2430_v60, 0.0  ;;  %v2321_v2 = vpop.f32.mrb[4].mxu0 }
 0x2c7   : > { %v2431_v3 = vadd.f32 %v2416_v61, %v2321_v2  ;;  %v2323_v4 = vpop.f32.mrb[5].mxu0 }
 0x2c8   : > { %2504 = vst [vmem:[%s3856_s26 + $0x8] sm:$0xff] %v2781_v63  ;;  %2505 = vst [vmem:[%s3856_s26 + $0x10] sm:$0xff] %v2782_v0  ;;  %v2783_v6 = vpack.c.bf16 %v2446_v1, %v2445_v62  ;;  %v2432_v7 = vadd.f32 %v2416_v61, %v2323_v4  ;;  %v2374_v8 = vpop.f32.mrb[4].mxu1  ;;  %v2325_v9 = vpop.f32.mrb[6].mxu0 }
 0x2c9   : > { %v2447_v10 = vmax.f32 %v2431_v3, 0.0  ;;  %v2433_v11 = vadd.f32 %v2416_v61, %v2374_v8  ;;  %v2435_v12 = vadd.f32 %v2421_v5, %v2325_v9  ;;  %v2376_v13 = vpop.f32.mrb[5].mxu1  ;;  %v2327_v14 = vpop.f32.mrb[7].mxu0 }
 0x2ca   : > { %2506 = vst [vmem:[%s3856_s26 + $0x18] sm:$0xff] %v2783_v6  ;;  %v2448_v27 = vmax.f32 %v2432_v7, 0.0  ;;  %v2434_v25 = vadd.f32 %v2416_v61, %v2376_v13  ;;  %v2436_v15 = vadd.f32 %v2421_v5, %v2327_v14  ;;  %v2378_v16 = vpop.f32.mrb[6].mxu1 }
 0x2cb   : > { %v2449_v26 = vmax.f32 %v2433_v11, 0.0  ;;  %v2451_v17 = vmax.f32 %v2435_v12, 0.0  ;;  %v2437_v18 = vadd.f32 %v2421_v5, %v2378_v16  ;;  %v2380_v19 = vpop.f32.mrb[7].mxu1 }
 0x2cc   : > { %v2784_v20 = vpack.c.bf16 %v2448_v27, %v2447_v10  ;;  %v2450_v28 = vmax.f32 %v2434_v25, 0.0  ;;  %v2452_v29 = vmax.f32 %v2436_v15, 0.0  ;;  %v2438_v21 = vadd.f32 %v2421_v5, %v2380_v19  ;;  %2517 = sbr.rel (!%p3175_p6) target bundleno = 731 (0x2db), region = 104 }
 0x2cd   : > { %v2453_v30 = vmax.f32 %v2437_v18, 0.0  ;;  %v2535_v45 = vld [vmem:[%s3856_s26] sm:$0xff] (%p3175_p6) }
 0x2ce   : > { %2507 = vst [vmem:[%s3856_s26 + $0x20] sm:$0xff] %v2784_v20  ;;  %v2785_v22 = vpack.c.bf16 %v2450_v28, %v2449_v26  ;;  %v2786_v23 = vpack.c.bf16 %v2452_v29, %v2451_v17  ;;  %v2454_v31 = vmax.f32 %v2438_v21, 0.0  ;;  %2536 = vst [vmem:[%s2522_s13] sm:$0xff] (%p3175_p6), %v2535_v45 }
 0x2cf   : > { %v2537_v46 = vld [vmem:[%s3856_s26 + $0x8] sm:$0xff] (%p3175_p6)  ;;  %v2539_v33 = vld [vmem:[%s3856_s26 + $0x10] sm:$0xff] (%p3175_p6) }
 0x2d0   : > { %2508 = vst [vmem:[%s3856_s26 + $0x28] sm:$0xff] %v2785_v22  ;;  %2509 = vst [vmem:[%s3856_s26 + $0x30] sm:$0xff] %v2786_v23  ;;  %v2787_v32 = vpack.c.bf16 %v2454_v31, %v2453_v30 }
 0x2d1   : > { %v2541_v34 = vld [vmem:[%s3856_s26 + $0x18] sm:$0xff] (%p3175_p6)  ;;  %2538 = vst [vmem:[%s2522_s13 + $0x8] sm:$0xff] (%p3175_p6), %v2537_v46  ;;  %2540 = vst [vmem:[%s2522_s13 + $0x30] sm:$0xff] (%p3175_p6), %v2539_v33 }
 0x2d2   : > { %2510 = vst [vmem:[%s3856_s26 + $0x38] sm:$0xff] %v2787_v32  ;;  %2542 = vst [vmem:[%s2522_s13 + $0x38] sm:$0xff] (%p3175_p6), %v2541_v34 }
 0x2d5   : > { %v2543_v35 = vld [vmem:[%s3856_s26 + $0x20] sm:$0xff] }
 0x2d6   : > { %2544 = vst [vmem:[%s2522_s13 + $0x60] sm:$0xff] %v2543_v35 }
 0x2d7   : > { %v2545_v24 = vld [vmem:[%s3856_s26 + $0x28] sm:$0xff]  ;;  %v2547_v47 = vld [vmem:[%s3856_s26 + $0x30] sm:$0xff] }
 0x2d8   : > { %2546 = vst [vmem:[%s2522_s13 + $0x68] sm:$0xff] %v2545_v24  ;;  %2548 = vst [vmem:[%s2522_s13 + $0x90] sm:$0xff] %v2547_v47 }
 0x2d9   : > { %v2549_v48 = vld [vmem:[%s3856_s26 + $0x38] sm:$0xff] }
 0x2da   : > { %2550 = vst [vmem:[%s2522_s13 + $0x98] sm:$0xff] %v2549_v48 }
 0x2db PF: > { %s14_s21 = sadd.s32 1, %s3087_s21   ;;  %s3909_s15 = smov %s3067_s16 }
 0x2dc   : > { %p11_p12 = scmp.ge.s32.totalorder %s14_s21, 8   ;;  %s3910_s16 = smov %s3183_s5 }
 0x2dd   : > { %s3911_s17 = smov %s3079_s19  ;;  %s3912_s18 = smov %s3083_s20 }
 0x2de   : > { %s3913_s19 = smov %s3916_s22  ;;  %s3914_s20 = smov %s3920_s23 }
 0x2df   :  { %13 = sbr.rel (!%p11_p12) target bundleno = 4 (0x4), region = 174 }

// kernel: decoder_cnn_forward.8
= control target key start
LH: loop header
LB: loop body
LE: loop exit
PB: predicated region body
PF: predicated region fallthrough
CT: control target
= control target key end

     0   :  { %s3515_s15 = smov 0   ;;  %s3517_s16 = smov 0   ;;  %s4233_s0 = inlined_call_operand.vmem [shape: bf16[2,32,5120], index: 0, kind: input, shape index: {}]   ;;  %s4234_s1 = inlined_call_operand.vmem [shape: bf16[2,32,1280], index: 1, kind: input, shape index: {}]   ;;  %s4235_s2 = inlined_call_operand.vmem [shape: bf16[9,16,32], index: 2, kind: input, shape index: {}]   ;;  %s4236_s3 = inlined_call_operand.vmem [shape: f32[16,1], index: 3, kind: input, shape index: {}]   ;;  %s4237_s4 = inlined_call_operand.vmem [shape: bf16[2,16,5120], index: 4, kind: output, shape index: {}]  }
   0x1   :  { %s3519_s17 = smov 0   ;;  %s3521_s18 = smov 0  }
   0x2   :  { %s3523_s19 = smov 0   ;;  %s3525_s20 = smov 0  }
   0x3   :  { %s3527_s21 = smov 0  }
   0x4 LB: > { %s23_s22 = sadd.s32 1, %s3471_s19  ;;  %s26_s23 = sadd.s32 1, %s3475_s20  ;;  %s3479_s21 = sphi %s3527_s21, %s14_s21   ;;  %s3475_s20 = sphi %s3525_s20, %s4245_s20   ;;  %s3471_s19 = sphi %s3523_s19, %s4244_s19   ;;  %s3467_s18 = sphi %s3521_s18, %s4243_s18   ;;  %s3463_s17 = sphi %s3519_s17, %s4242_s17   ;;  %s3459_s16 = sphi %s3517_s16, %s4241_s16   ;;  %s3455_s15 = sphi %s3515_s15, %s4240_s15  }
   0x5   : > { %p24_p0 = scmp.ge.s32.totalorder %s23_s22, 5  ;;  %s3096_s24 = sadd.s32 4294967295, %s3479_s21  }
   0x6   : > { %p42_p1 = scmp.ne.s32.totalorder %s3459_s16, %s3455_s15  ;;  %p43_p2 = scmp.eq.s32.totalorder %s3479_s21, 0 }
   0x7   : > { %s4247_s22 = smov (%p24_p0, %s23_s22), 0  ;;  %s4249_s23 = smov (!%p24_p0, %s26_s23), %s3475_s20 }
   0x8   : > { %p28_p3 = scmp.ge.s32.totalorder %s4249_s23, 2  ;;  %p144_p4 = scmp.eq.s32.totalorder %s3096_s24, 9 }
   0x9   : > { %s31_s25 = ssub.s32 %s3471_s19, %s4247_s22  ;;  %p3561_p5 = por %p43_p2, %p42_p1 }
   0xa   : > { %s4251_s23 = smov (%p28_p3, %s4249_s23), 0  ;;  %p3567_p6 = por %p144_p4, %p42_p1 }
   0xb   : > { %s30_s28 = ssub.s32 %s3475_s20, %s4251_s23  ;;  %s35_s30 = sadd.s32 1, %s3459_s16 }
   0xc   : > { %s32_s29 = sor.u32 %s31_s25, %s30_s28  ;;  %p3099_p8 = scmp.ge.s32.totalorder %s3479_s21, 10 }
   0xd   : > { %p33_p7 = scmp.eq.s32.totalorder %s32_s29, 0 }
   0xe   : > { %172 = sbr.rel (%p3099_p8) target bundleno = 47 (0x2f), region = 24 }
   0xf   : > { %s3575_s5 = scalar_select %p33_p7, %s3459_s16, %s35_s30  }
  0x15   : > { %175 = sbr.rel (!%p3561_p5) target bundleno = 37 (0x25), region = 28  ;;  %s177_s6 = sand.u32 (%p3561_p5), 1, %s3459_s16  }
  0x16   : > { %s3101_s7 = sshll.u32 (%p3561_p5), %s3471_s19, 3  ;;  %s3100_s8 = sshll.u32 (%p3561_p5), %s177_s6, 7 }
  0x17   : > { %s3340_s9 = smul.u32 (%p3561_p5), 160, %s3475_s20  ;;  %s179_s24 = scalar_lea.vmem (%p3561_p5), [#allocation3], %s3100_s8 }
  0x19   : > { %s182_s10 = sadd.s32 (%p3561_p5), %s3340_s9, %s3101_s7 }
  0x1a   : > { %s3102_s11 = sshll.u32 (%p3561_p5), %s182_s10, 2 }
  0x1b   : > { %s3586_s14 = scalar_lea.vmem (%p3561_p5), %s4233_s0, %s3102_s11 }
  0x1c   : > { %v197_v0 = vld [vmem:[%s3586_s14] sm:$0xff]  ;;  %v199_v1 = vld [vmem:[%s3586_s14 + $0x8] sm:$0xff]  ;;  %v201_v2 = vld [vmem:[%s3586_s14 + $0x10] sm:$0xff] }
  0x1d   : > { %198 = vst [vmem:[%s179_s24] sm:$0xff] %v197_v0  ;;  %200 = vst [vmem:[%s179_s24 + $0x8] sm:$0xff] %v199_v1  ;;  %v203_v3 = vld [vmem:[%s3586_s14 + $0x18] sm:$0xff]  ;;  %v205_v4 = vld [vmem:[%s3586_s14 + $0xa0] sm:$0xff] }
  0x1e   : > { %202 = vst [vmem:[%s179_s24 + $0x10] sm:$0xff] %v201_v2  ;;  %v207_v5 = vld [vmem:[%s3586_s14 + $0xa8] sm:$0xff]  ;;  %204 = vst [vmem:[%s179_s24 + $0x18] sm:$0xff] %v203_v3  ;;  %v209_v6 = vld [vmem:[%s3586_s14 + $0xb0] sm:$0xff] }
  0x1f   : > { %206 = vst [vmem:[%s179_s24 + $0x20] sm:$0xff] %v205_v4  ;;  %208 = vst [vmem:[%s179_s24 + $0x28] sm:$0xff] %v207_v5  ;;  %v211_v7 = vld [vmem:[%s3586_s14 + $0xb8] sm:$0xff]  ;;  %v213_v8 = vld [vmem:[%s3586_s14 + $0x140] sm:$0xff] }
  0x20   : > { %210 = vst [vmem:[%s179_s24 + $0x30] sm:$0xff] %v209_v6  ;;  %212 = vst [vmem:[%s179_s24 + $0x38] sm:$0xff] %v211_v7  ;;  %v215_v9 = vld [vmem:[%s3586_s14 + $0x148] sm:$0xff]  ;;  %v217_v10 = vld [vmem:[%s3586_s14 + $0x150] sm:$0xff] }
  0x21   : > { %214 = vst [vmem:[%s179_s24 + $0x40] sm:$0xff] %v213_v8  ;;  %v219_v11 = vld [vmem:[%s3586_s14 + $0x158] sm:$0xff]  ;;  %216 = vst [vmem:[%s179_s24 + $0x48] sm:$0xff] %v215_v9  ;;  %v221_v12 = vld [vmem:[%s3586_s14 + $0x1e0] sm:$0xff] }
  0x22   : > { %218 = vst [vmem:[%s179_s24 + $0x50] sm:$0xff] %v217_v10  ;;  %220 = vst [vmem:[%s179_s24 + $0x58] sm:$0xff] %v219_v11  ;;  %v223_v13 = vld [vmem:[%s3586_s14 + $0x1e8] sm:$0xff]  ;;  %v225_v14 = vld [vmem:[%s3586_s14 + $0x1f0] sm:$0xff] }
  0x23   : > { %222 = vst [vmem:[%s179_s24 + $0x60] sm:$0xff] %v221_v12  ;;  %224 = vst [vmem:[%s179_s24 + $0x68] sm:$0xff] %v223_v13  ;;  %v227_v15 = vld [vmem:[%s3586_s14 + $0x1f8] sm:$0xff] }
  0x24   : > { %226 = vst [vmem:[%s179_s24 + $0x70] sm:$0xff] %v225_v14  ;;  %228 = vst [vmem:[%s179_s24 + $0x78] sm:$0xff] %v227_v15 }
  0x25 PF: > { %234 = sbr.rel (!%p3561_p5) target bundleno = 47 (0x2f), region = 51  ;;  %s236_s25 = sand.u32 (%p3561_p5), 1, %s3459_s16  }
  0x26   : > { %s3104_s28 = sshll.u32 (%p3561_p5), %s3471_s19, 1  ;;  %s3103_s29 = sshll.u32 (%p3561_p5), %s236_s25, 5 }
  0x27   : > { %s3341_s30 = smul.u32 (%p3561_p5), 40, %s3475_s20  ;;  %s238_s11 = scalar_lea.vmem (%p3561_p5), [#allocation4], %s3103_s29 }
  0x29   : > { %s241_s6 = sadd.s32 (%p3561_p5), %s3341_s30, %s3104_s28 }
  0x2a   : > { %s3105_s7 = sshll.u32 (%p3561_p5), %s241_s6, 2 }
  0x2b   : > { %s243_s10 = scalar_lea.vmem (%p3561_p5), %s4234_s1, %s3105_s7 }
  0x2c   : > { %v277_v16 = vld [vmem:[%s243_s10] sm:$0xff]  ;;  %v279_v17 = vld [vmem:[%s243_s10 + $0x28] sm:$0xff]  ;;  %v281_v18 = vld [vmem:[%s243_s10 + $0x50] sm:$0xff] }
  0x2d   : > { %278 = vst [vmem:[%s238_s11] sm:$0xff] %v277_v16  ;;  %280 = vst [vmem:[%s238_s11 + $0x8] sm:$0xff] %v279_v17  ;;  %v283_v19 = vld [vmem:[%s243_s10 + $0x78] sm:$0xff] }
  0x2e   : > { %282 = vst [vmem:[%s238_s11 + $0x10] sm:$0xff] %v281_v18  ;;  %284 = vst [vmem:[%s238_s11 + $0x18] sm:$0xff] %v283_v19 }
  0x2f PF: > { %p3106_p9 = scmp.ge.s32.totalorder %s3479_s21, 1  ;;  %p289_p10 = scmp.lt.s32.totalorder %s3479_s21, 11 }
  0x31   : > { %p290_p11 = pnand %p3106_p9, %p289_p10 }
  0x32   : > { %s3615_s26 = sand.u32 (!%p290_p11), 1, %s3455_s15   ;;  %s3481_s15 = smov (!%p290_p11), 127   ;;  %v3482_v37 = vmov (!%p290_p11), 0   ;;  %vm557_vm0 = vcmask (!%p290_p11), 1039360   ;;  %v3414_v7 = vld [vmem:[%s4235_s2 + $0x8] sm:$0xff] (!%p290_p11)   ;;  %vm590_vm1 = vcmask (!%p290_p11), 261120  }
  0x33   : > { %293 = sbr.rel (%p290_p11) target bundleno = 692 (0x2b4), region = 89  ;;  %s3107_s12 = sshll.u32 (!%p290_p11), %s3615_s26, 7  ;;  %626 = vmatprep.mubr.bf16.mxu0 (!%p290_p11), %v3482_v37  ;;  %669 = vmatprep.mubr.bf16.mxu1 (!%p290_p11), %v3482_v37  ;;  %vm990_vm2 = vcmask (!%p290_p11), 1031168   ;;  %vm1258_vm3 = vcmask (!%p290_p11), 457728   ;;  %vm1526_vm4 = vcmask (!%p290_p11), 449536   ;;  %vm1794_vm5 = vcmask (!%p290_p11), 441344  }
  0x34   : > { %s3618_s13 = scalar_lea.vmem (!%p290_p11), [#allocation3], %s3107_s12  ;;  %s3108_s14 = sshll.u32 (!%p290_p11), %s3615_s26, 5  ;;  %3408 = vset.pattern.permute.xlu0 (!%p290_p11), %v3482_v37  ;;  %3409 = vset.pattern.permute.xlu1 (!%p290_p11), %v3482_v37  ;;  %vm2098_vm6 = vcmask (!%p290_p11), 916480   ;;  %vm2366_vm7 = vcmask (!%p290_p11), 908288   ;;  %vm2634_vm8 = vcmask (!%p290_p11), 900096  }
  0x35   : > { %v336_v20 = vld [vmem:[%s3618_s13 + $0x8] sm:$0xff] (!%p290_p11)  ;;  %v335_v22 = vld [vmem:[%s3618_s13] sm:$0xff] (!%p290_p11)  ;;  %v337_v25 = vld [vmem:[%s3618_s13 + $0x10] sm:$0xff] (!%p290_p11)  ;;  %s3641_s24 = scalar_lea.vmem (!%p290_p11), [#allocation4], %s3108_s14  ;;  %s3483_s25 = smov (!%p290_p11), 126  }
  0x36   : > { %v340_v21 = vld [vmem:[%s3618_s13 + $0x28] sm:$0xff] (!%p290_p11)  ;;  %v339_v24 = vld [vmem:[%s3618_s13 + $0x20] sm:$0xff] (!%p290_p11)  ;;  %v341_v26 = vld [vmem:[%s3618_s13 + $0x30] sm:$0xff] (!%p290_p11)  ;;  %s3484_s28 = smov (!%p290_p11), 56   ;;  %s3485_s29 = smov (!%p290_p11), 55  }
  0x37   : > { %v3624_v23 = vcombine.high (!%p290_p11), %v336_v20, %v340_v21  ;;  %v3629_v27 = vcombine.high (!%p290_p11), %v335_v22, %v339_v24  ;;  %v3633_v28 = vcombine.low (!%p290_p11), %v337_v25, %v341_v26  ;;  %v3637_v29 = vcombine.low (!%p290_p11), %v336_v20, %v340_v21  ;;  %v343_v30 = vld [vmem:[%s3618_s13 + $0x40] sm:$0xff] (!%p290_p11)  ;;  %v344_v32 = vld [vmem:[%s3618_s13 + $0x48] sm:$0xff] (!%p290_p11)  ;;  %v345_v39 = vld [vmem:[%s3618_s13 + $0x50] sm:$0xff] (!%p290_p11)  ;;  %s3486_s7 = smov (!%p290_p11), 54   ;;  %s3487_s12 = smov (!%p290_p11), 112  }
  0x38   : > { %v347_v31 = vld [vmem:[%s3618_s13 + $0x60] sm:$0xff] (!%p290_p11)  ;;  %v348_v34 = vld [vmem:[%s3618_s13 + $0x68] sm:$0xff] (!%p290_p11)  ;;  %v3651_v35 = vcombine.low (!%p290_p11), %v335_v22, %v339_v24  ;;  %v349_v40 = vld [vmem:[%s3618_s13 + $0x70] sm:$0xff] (!%p290_p11)  ;;  %v3683_v46 = vcombine.high (!%p290_p11), %v337_v25, %v341_v26 }
  0x39   : > { %527 = vrot.lane.b32.xlu1 (!%p290_p11), %v3624_v23, %s3481_s15  ;;  %523 = vrot.lane.b32.xlu0 (!%p290_p11), %v3629_v27, %s3481_s15  ;;  %v3646_v33 = vcombine.high (!%p290_p11), %v343_v30, %v347_v31  ;;  %v3655_v36 = vcombine.high (!%p290_p11), %v344_v32, %v348_v34  ;;  %v3660_v38 = vcombine.low (!%p290_p11), %v344_v32, %v348_v34  ;;  %v338_v43 = vld [vmem:[%s3618_s13 + $0x18] sm:$0xff] (!%p290_p11)  ;;  %v3688_v47 = vld [vmem:[%s3641_s24] ss:$8 sps:$4 sm:$0xff] (!%p290_p11)  }
  0x3a   : > { %v3669_v41 = vcombine.low %v343_v30, %v347_v31  ;;  %v3673_v42 = vcombine.low %v345_v39, %v349_v40  ;;  %v342_v44 = vld [vmem:[%s3618_s13 + $0x38] sm:$0xff]  ;;  %v3702_v52 = vcombine.high %v345_v39, %v349_v40  ;;  %v3415_v34 = vld [vmem:[%s4235_s2] sm:$0xff]  }
  0x3b   : > { %v3679_v45 = vcombine.low %v338_v43, %v342_v44  ;;  %v3692_v48 = vcombine.high %v338_v43, %v342_v44  ;;  %v346_v49 = vld [vmem:[%s3618_s13 + $0x58] sm:$0xff] }
  0x3c   : > { %v350_v50 = vld [vmem:[%s3618_s13 + $0x78] sm:$0xff] }
  0x3d   : > { %529 = vrot.lane.b32.xlu1 %v3633_v28, %s3481_s15  ;;  %525 = vrot.lane.b32.xlu0 %v3637_v29, %s3481_s15  ;;  %v3698_v51 = vcombine.low %v346_v49, %v350_v50  ;;  %v3707_v53 = vld [vmem:[%s3641_s24 + $0x10] ss:$8 sps:$4 sm:$0xff]   ;;  %v3711_v54 = vcombine.high %v346_v49, %v350_v50 }
  0x41   : > { %541 = vrot.lane.b32.xlu1 %v3646_v33, %s3481_s15  ;;  %521 = vrot.lane.b32.xlu0 %v3651_v35, %s3481_s15 }
  0x45   : > { %545 = vrot.lane.b32.xlu1 %v3655_v36, %s3481_s15  ;;  %543 = vrot.lane.b32.xlu0 %v3660_v38, %s3481_s15 }
  0x49   : > { %539 = vrot.lane.b32.xlu1 %v3669_v41, %s3481_s15  ;;  %547 = vrot.lane.b32.xlu0 %v3673_v42, %s3481_s15 }
  0x4d   : > { %533 = vrot.lane.b32.xlu1 %v3679_v45, %s3481_s15  ;;  %531 = vrot.lane.b32.xlu0 %v3683_v46, %s3481_s15 }
  0x51   : > { %537 = vrot.lane.b32.xlu1 %v3688_v47, %s3481_s15  ;;  %535 = vrot.lane.b32.xlu0 %v3692_v48, %s3481_s15 }
  0x55   : > { %551 = vrot.lane.b32.xlu1 %v3698_v51, %s3481_s15  ;;  %549 = vrot.lane.b32.xlu0 %v3702_v52, %s3481_s15 }
  0x59   : > { %555 = vrot.lane.b32.xlu1 %v3707_v53, %s3481_s15  ;;  %553 = vrot.lane.b32.xlu0 %v3711_v54, %s3481_s15  ;;  %s3488_s15 = smov 111  }
  0x5d   : > { %958 = vrot.lane.b32.xlu1 %v3637_v29, %s3483_s25  ;;  %956 = vrot.lane.b32.xlu0 %v3629_v27, %s3483_s25 }
  0x61   : > { %962 = vrot.lane.b32.xlu1 %v3633_v28, %s3483_s25  ;;  %960 = vrot.lane.b32.xlu0 %v3624_v23, %s3483_s25 }
  0x65   : > { %974 = vrot.lane.b32.xlu1 %v3646_v33, %s3483_s25  ;;  %954 = vrot.lane.b32.xlu0 %v3651_v35, %s3483_s25 }
  0x69   : > { %978 = vrot.lane.b32.xlu1 %v3655_v36, %s3483_s25  ;;  %976 = vrot.lane.b32.xlu0 %v3660_v38, %s3483_s25 }
  0x6d   : > { %972 = vrot.lane.b32.xlu1 %v3669_v41, %s3483_s25  ;;  %980 = vrot.lane.b32.xlu0 %v3673_v42, %s3483_s25 }
  0x71   : > { %966 = vrot.lane.b32.xlu1 %v3679_v45, %s3483_s25  ;;  %964 = vrot.lane.b32.xlu0 %v3683_v46, %s3483_s25 }
  0x75   : > { %970 = vrot.lane.b32.xlu1 %v3688_v47, %s3483_s25  ;;  %968 = vrot.lane.b32.xlu0 %v3692_v48, %s3483_s25 }
  0x79   : > { %984 = vrot.lane.b32.xlu1 %v3698_v51, %s3483_s25  ;;  %982 = vrot.lane.b32.xlu0 %v3702_v52, %s3483_s25 }
  0x7d   : > { %988 = vrot.lane.b32.xlu1 %v3707_v53, %s3483_s25  ;;  %986 = vrot.lane.b32.xlu0 %v3711_v54, %s3483_s25  ;;  %s3200_s25 = sshll.u32 (%p3567_p6), %s3463_s17, 3 }
  0x81   : > { %1226 = vrot.lane.b32.xlu1 %v3637_v29, %s3484_s28  ;;  %1224 = vrot.lane.b32.xlu0 %v3629_v27, %s3484_s28 }
  0x85   : > { %1230 = vrot.lane.b32.xlu1 %v3633_v28, %s3484_s28  ;;  %1228 = vrot.lane.b32.xlu0 %v3624_v23, %s3484_s28 }
  0x89   : > { %1242 = vrot.lane.b32.xlu1 %v3646_v33, %s3484_s28  ;;  %1222 = vrot.lane.b32.xlu0 %v3651_v35, %s3484_s28 }
  0x8d   : > { %1246 = vrot.lane.b32.xlu1 %v3655_v36, %s3484_s28  ;;  %1244 = vrot.lane.b32.xlu0 %v3660_v38, %s3484_s28 }
  0x91   : > { %1240 = vrot.lane.b32.xlu1 %v3669_v41, %s3484_s28  ;;  %1248 = vrot.lane.b32.xlu0 %v3673_v42, %s3484_s28 }
  0x95   : > { %1234 = vrot.lane.b32.xlu1 %v3679_v45, %s3484_s28  ;;  %1232 = vrot.lane.b32.xlu0 %v3683_v46, %s3484_s28 }
  0x99   : > { %1238 = vrot.lane.b32.xlu1 %v3688_v47, %s3484_s28  ;;  %1236 = vrot.lane.b32.xlu0 %v3692_v48, %s3484_s28 }
  0x9d   : > { %1252 = vrot.lane.b32.xlu1 %v3698_v51, %s3484_s28  ;;  %1250 = vrot.lane.b32.xlu0 %v3702_v52, %s3484_s28 }
  0xa1   : > { %1256 = vrot.lane.b32.xlu1 %v3707_v53, %s3484_s28  ;;  %1254 = vrot.lane.b32.xlu0 %v3711_v54, %s3484_s28  ;;  %s3489_s28 = smov 110  }
  0xa5   : > { %1494 = vrot.lane.b32.xlu1 %v3637_v29, %s3485_s29  ;;  %1492 = vrot.lane.b32.xlu0 %v3629_v27, %s3485_s29 }
  0xa9   : > { %1498 = vrot.lane.b32.xlu1 %v3633_v28, %s3485_s29  ;;  %1496 = vrot.lane.b32.xlu0 %v3624_v23, %s3485_s29 }
  0xab   : > { %v528_v55 = vpop.permute.xlu1 %527  ;;  %v524_v56 = vpop.permute.xlu0 %523 }
  0xad   : > { %1510 = vrot.lane.b32.xlu1 %v3646_v33, %s3485_s29  ;;  %1490 = vrot.lane.b32.xlu0 %v3651_v35, %s3485_s29 }
  0xaf   : > { %v530_v57 = vpop.permute.xlu1 %529  ;;  %v526_v58 = vpop.permute.xlu0 %525 }
  0xb0   : > { %v561_v59 = vsel %vm557_vm0, %v528_v55, %v530_v57  ;;  %v559_v60 = vsel %vm557_vm0, %v524_v56, %v526_v58  ;;  %v560_v61 = vsel %vm557_vm0, %v526_v58, %v528_v55 }
  0xb1   : > { %637 = vmatprep.subr.bf16.mxu1 %v561_v59  ;;  %1514 = vrot.lane.b32.xlu1 %v3655_v36, %s3485_s29 }
  0xb2   : > { %594 = vmatprep.subr.bf16.mxu0 %v559_v60  ;;  %1512 = vrot.lane.b32.xlu0 %v3660_v38, %s3485_s29 }
  0xb3   : > { %638 = vmatpush1.bf16.msra.mxu1 %v560_v61  ;;  %v542_v62 = vpop.permute.xlu1 %541  ;;  %v522_v63 = vpop.permute.xlu0 %521 }
  0xb4   : > { %v558_v0 = vsel %vm557_vm0, %v522_v63, %v524_v56 }
  0xb5   : > { %1508 = vrot.lane.b32.xlu1 %v3669_v41, %s3485_s29  ;;  %595 = vmatpush1.bf16.msra.mxu0 %v558_v0 }
  0xb6   : > { %1516 = vrot.lane.b32.xlu0 %v3673_v42, %s3485_s29 }
  0xb7   : > { %v546_v1 = vpop.permute.xlu1 %545  ;;  %v544_v2 = vpop.permute.xlu0 %543 }
  0xb8   : > { %v567_v3 = vsel %vm557_vm0, %v542_v62, %v544_v2  ;;  %v568_v9 = vsel %vm557_vm0, %v544_v2, %v546_v1 }
  0xb9   : > { %1502 = vrot.lane.b32.xlu1 %v3679_v45, %s3485_s29  ;;  %596 = vmatprep.subr.bf16.mxu0 %v567_v3 }
  0xba   : > { %1500 = vrot.lane.b32.xlu0 %v3683_v46, %s3485_s29 }
  0xbb   : > { %v540_v4 = vpop.permute.xlu1 %539  ;;  %v548_v5 = vpop.permute.xlu0 %547 }
  0xbc   : > { %v566_v6 = vsel %vm557_vm0, %v540_v4, %v542_v62  ;;  %v569_v8 = vsel %vm557_vm0, %v546_v1, %v548_v5  ;;  %v3416_v62 = vld [vmem:[%s4235_s2 + $0x10] sm:$0xff]  }
  0xbd   : > { %1506 = vrot.lane.b32.xlu1 %v3688_v47, %s3485_s29  ;;  %597 = vmatpush1.bf16.msra.mxu0 %v566_v6 }
  0xbe   : > { %1504 = vrot.lane.b32.xlu0 %v3692_v48, %s3485_s29  ;;  %639 = vmatprep.subr.bf16.mxu1 %v569_v8 }
  0xbf   : > { %640 = vmatpush1.bf16.msra.mxu1 %v568_v9  ;;  %v534_v10 = vpop.permute.xlu1 %533  ;;  %v532_v11 = vpop.permute.xlu0 %531 }
  0xc0   : > { %3133 = vmatmul.mubr.msk.bf16.vlgmr.msra.gmra.mrb[0].mxu0 %vm590_vm1, %v3414_v7  ;;  %v563_v12 = vsel %vm557_vm0, %v532_v11, %v534_v10  ;;  %v562_v13 = vsel %vm557_vm0, %v530_v57, %v532_v11 }
  0xc1   : > { %1520 = vrot.lane.b32.xlu1 %v3698_v51, %s3485_s29  ;;  %712 = vmatprep.mubr.bf16.mxu0 %v3482_v37 }
  0xc2   : > { %1518 = vrot.lane.b32.xlu0 %v3702_v52, %s3485_s29  ;;  %680 = vmatprep.subr.bf16.mxu0 %v563_v12 }
  0xc3   : > { %681 = vmatpush1.bf16.msra.mxu0 %v562_v13  ;;  %v538_v14 = vpop.permute.xlu1 %537  ;;  %3134 = vmatmul.mubr.msk.bf16.vlgmr.msra.gmra.mrb[0].mxu1 %vm590_vm1, %v3414_v7  ;;  %v536_v15 = vpop.permute.xlu0 %535 }
  0xc4   : > { %755 = vmatprep.mubr.bf16.mxu1 %v3482_v37  ;;  %v565_v16 = vsel %vm557_vm0, %v536_v15, %v538_v14  ;;  %v564_v17 = vsel %vm557_vm0, %v534_v10, %v536_v15 }
  0xc5   : > { %1524 = vrot.lane.b32.xlu1 %v3707_v53, %s3485_s29  ;;  %723 = vmatprep.subr.bf16.mxu1 %v565_v16 }
  0xc6   : > { %1522 = vrot.lane.b32.xlu0 %v3711_v54, %s3485_s29  ;;  %724 = vmatpush1.bf16.msra.mxu1 %v564_v17 }
  0xc7   : > { %v552_v18 = vpop.permute.xlu1 %551  ;;  %v550_v19 = vpop.permute.xlu0 %549 }
  0xc8   : > { %v571_v20 = vsel %vm557_vm0, %v550_v19, %v552_v18  ;;  %v570_v21 = vsel %vm557_vm0, %v548_v5, %v550_v19 }
  0xc9   : > { %1762 = vrot.lane.b32.xlu1 %v3637_v29, %s3486_s7  ;;  %682 = vmatprep.subr.bf16.mxu0 %v571_v20 }
  0xca   : > { %1760 = vrot.lane.b32.xlu0 %v3629_v27, %s3486_s7  ;;  %683 = vmatpush1.bf16.msra.mxu0 %v570_v21 }
  0xcb   : > { %v556_v22 = vpop.permute.xlu1 %555  ;;  %v554_v24 = vpop.permute.xlu0 %553  ;;  %774 = vmatprep.subr.bf16.mxu0 %v3629_v27 }
  0xcc   : > { %v573_v25 = vsel %vm557_vm0, %v554_v24, %v556_v22  ;;  %v572_v26 = vsel %vm557_vm0, %v552_v18, %v554_v24 }
  0xcd   : > { %1766 = vrot.lane.b32.xlu1 %v3633_v28, %s3486_s7  ;;  %725 = vmatprep.subr.bf16.mxu1 %v573_v25 }
  0xce   : > { %1764 = vrot.lane.b32.xlu0 %v3624_v23, %s3486_s7  ;;  %3135 = vmatmul.mubr.msk.bf16.vlgmr.msra.gmra.mrb[4].mxu0 %vm590_vm1, %v3414_v7 }
  0xcf   : > { %726 = vmatpush1.bf16.msra.mxu1 %v572_v26  ;;  %v959_v30 = vpop.permute.xlu1 %958  ;;  %775 = vmatpush1.bf16.msra.mxu0 %v3651_v35  ;;  %v957_v31 = vpop.permute.xlu0 %956 }
  0xd0   : > { %817 = vmatprep.subr.bf16.mxu1 %v3624_v23  ;;  %776 = vmatprep.subr.bf16.mxu0 %v3646_v33  ;;  %v992_v44 = vsel %vm990_vm2, %v957_v31, %v959_v30 }
  0xd1   : > { %1778 = vrot.lane.b32.xlu1 %v3646_v33, %s3486_s7  ;;  %806 = vmatprep.mubr.bf16.mxu0 %v3482_v37 }
  0xd2   : > { %1758 = vrot.lane.b32.xlu0 %v3651_v35, %s3486_s7  ;;  %3136 = vmatmul.mubr.msk.bf16.vlgmr.msra.gmra.mrb[4].mxu1 %vm590_vm1, %v3414_v7 }
  0xd3   : > { %818 = vmatpush1.bf16.msra.mxu1 %v3637_v29  ;;  %v963_v32 = vpop.permute.xlu1 %962  ;;  %777 = vmatpush1.bf16.msra.mxu0 %v3669_v41  ;;  %v961_v39 = vpop.permute.xlu0 %960 }
  0xd4   : > { %819 = vmatprep.subr.bf16.mxu1 %v3655_v36  ;;  %860 = vmatprep.subr.bf16.mxu0 %v3683_v46  ;;  %v994_v55 = vsel %vm990_vm2, %v961_v39, %v963_v32  ;;  %v993_v59 = vsel %vm990_vm2, %v959_v30, %v961_v39 }
  0xd5   : > { %1782 = vrot.lane.b32.xlu1 %v3655_v36, %s3486_s7  ;;  %849 = vmatprep.mubr.bf16.mxu1 %v3482_v37 }
  0xd6   : > { %1780 = vrot.lane.b32.xlu0 %v3660_v38, %s3486_s7  ;;  %3138 = vmatmul.mubr.msk.bf16.vlgmr.msra.gmra.mrb[0].mxu0 %vm590_vm1, %v3415_v34 }
  0xd7   : > { %820 = vmatpush1.bf16.msra.mxu1 %v3660_v38  ;;  %v975_v35 = vpop.permute.xlu1 %974  ;;  %861 = vmatpush1.bf16.msra.mxu0 %v3633_v28  ;;  %v955_v40 = vpop.permute.xlu0 %954 }
  0xd8   : > { %903 = vmatprep.subr.bf16.mxu1 %v3692_v48  ;;  %862 = vmatprep.subr.bf16.mxu0 %v3702_v52 }
  0xd9   : > { %1776 = vrot.lane.b32.xlu1 %v3669_v41, %s3486_s7  ;;  %892 = vmatprep.mubr.bf16.mxu0 %v3482_v37  ;;  %v991_v41 = vsel %vm990_vm2, %v955_v40, %v957_v31  ;;  %v3418_v40 = vld [vmem:[%s4235_s2 + $0x18] sm:$0xff]  }
  0xda   : > { %1784 = vrot.lane.b32.xlu0 %v3673_v42, %s3486_s7  ;;  %3139 = vmatmul.mubr.msk.bf16.vlgmr.msra.gmra.mrb[0].mxu1 %vm590_vm1, %v3415_v34 }
  0xdb   : > { %904 = vmatpush1.bf16.msra.mxu1 %v3679_v45  ;;  %v979_v43 = vpop.permute.xlu1 %978  ;;  %863 = vmatpush1.bf16.msra.mxu0 %v3673_v42  ;;  %v977_v49 = vpop.permute.xlu0 %976 }
  0xdc   : > { %905 = vmatprep.subr.bf16.mxu1 %v3711_v54  ;;  %1026 = vmatprep.subr.bf16.mxu0 %v992_v44  ;;  %v1000_v56 = vsel %vm990_vm2, %v975_v35, %v977_v49  ;;  %v1001_v2 = vsel %vm990_vm2, %v977_v49, %v979_v43 }
  0xdd   : > { %1770 = vrot.lane.b32.xlu1 %v3679_v45, %s3486_s7  ;;  %935 = vmatprep.mubr.bf16.mxu1 %v3482_v37 }
  0xde   : > { %1768 = vrot.lane.b32.xlu0 %v3683_v46, %s3486_s7  ;;  %3140 = vmatmul.mubr.msk.bf16.vlgmr.msra.gmra.mrb[4].mxu0 %vm590_vm1, %v3415_v34 }
  0xdf   : > { %906 = vmatpush1.bf16.msra.mxu1 %v3698_v51  ;;  %v973_v50 = vpop.permute.xlu1 %972  ;;  %1027 = vmatpush1.bf16.msra.mxu0 %v991_v41  ;;  %v981_v57 = vpop.permute.xlu0 %980 }
  0xe0   : > { %1069 = vmatprep.subr.bf16.mxu1 %v994_v55  ;;  %v999_v58 = vsel %vm990_vm2, %v973_v50, %v975_v35  ;;  %1028 = vmatprep.subr.bf16.mxu0 %v1000_v56  ;;  %v1002_v61 = vsel %vm990_vm2, %v979_v43, %v981_v57  ;;  %v3954_v56 = vld [vmem:[%s3641_s24 + $0x14] ss:$8 sps:$4 sm:$0xff]  }
  0xe1   : > { %1774 = vrot.lane.b32.xlu1 %v3688_v47, %s3486_s7  ;;  %1058 = vmatprep.mubr.bf16.mxu0 %v3482_v37 }
  0xe2   : > { %1772 = vrot.lane.b32.xlu0 %v3692_v48, %s3486_s7  ;;  %3141 = vmatmul.mubr.msk.bf16.vlgmr.msra.gmra.mrb[4].mxu1 %vm590_vm1, %v3415_v34 }
  0xe3   : > { %1070 = vmatpush1.bf16.msra.mxu1 %v993_v59  ;;  %v967_v60 = vpop.permute.xlu1 %966  ;;  %1029 = vmatpush1.bf16.msra.mxu0 %v999_v58  ;;  %v965_v63 = vpop.permute.xlu0 %964 }
  0xe4   : > { %1071 = vmatprep.subr.bf16.mxu1 %v1002_v61  ;;  %v996_v0 = vsel %vm990_vm2, %v965_v63, %v967_v60  ;;  %v995_v1 = vsel %vm990_vm2, %v963_v32, %v965_v63  ;;  %1101 = vmatprep.mubr.bf16.mxu1 %v3482_v37  ;;  %v3934_v32 = vld [vmem:[%s3641_s24 + $0x4] ss:$8 sps:$4 sm:$0xff]   ;;  %s3109_s24 = sshll.u32 %s3615_s26, 6 }
  0xe5   : > { %1788 = vrot.lane.b32.xlu1 %v3698_v51, %s3486_s7  ;;  %1112 = vmatprep.subr.bf16.mxu0 %v996_v0  ;;  %s4187_s26 = scalar_lea.vmem [#allocation5], %s3109_s24 }
  0xe6   : > { %1786 = vrot.lane.b32.xlu0 %v3702_v52, %s3486_s7  ;;  %3145 = vmatmul.mubr.msk.bf16.vlgmr.msra.gmra.mrb[0].mxu0 %vm590_vm1, %v3416_v62 }
  0xe7   : > { %1072 = vmatpush1.bf16.msra.mxu1 %v1001_v2  ;;  %v971_v3 = vpop.permute.xlu1 %970  ;;  %1113 = vmatpush1.bf16.msra.mxu0 %v995_v1  ;;  %v969_v4 = vpop.permute.xlu0 %968 }
  0xe8   : > { %1144 = vmatprep.mubr.bf16.mxu0 %v3482_v37  ;;  %v998_v5 = vsel %vm990_vm2, %v969_v4, %v971_v3  ;;  %v997_v6 = vsel %vm990_vm2, %v967_v60, %v969_v4 }
  0xe9   : > { %1792 = vrot.lane.b32.xlu1 %v3707_v53, %s3486_s7  ;;  %1155 = vmatprep.subr.bf16.mxu1 %v998_v5 }
  0xea   : > { %1790 = vrot.lane.b32.xlu0 %v3711_v54, %s3486_s7  ;;  %3146 = vmatmul.mubr.msk.bf16.vlgmr.msra.gmra.mrb[0].mxu1 %vm590_vm1, %v3416_v62 }
  0xeb   : > { %v985_v7 = vpop.permute.xlu1 %984  ;;  %1156 = vmatpush1.bf16.msra.mxu1 %v997_v6  ;;  %v983_v8 = vpop.permute.xlu0 %982  ;;  %1187 = vmatprep.mubr.bf16.mxu1 %v3482_v37 }
  0xec   : > { %v1004_v9 = vsel %vm990_vm2, %v983_v8, %v985_v7  ;;  %v1003_v10 = vsel %vm990_vm2, %v981_v57, %v983_v8 }
  0xed   : > { %2066 = vrot.lane.b32.xlu1 %v3624_v23, %s3487_s12  ;;  %1114 = vmatprep.subr.bf16.mxu0 %v1004_v9 }
  0xee   : > { %2064 = vrot.lane.b32.xlu0 %v3637_v29, %s3487_s12  ;;  %1115 = vmatpush1.bf16.msra.mxu0 %v1003_v10 }
  0xef   : > { %v989_v11 = vpop.permute.xlu1 %988  ;;  %v987_v12 = vpop.permute.xlu0 %986 }
  0xf0   : > { %v1006_v13 = vsel %vm990_vm2, %v987_v12, %v989_v11  ;;  %v1005_v14 = vsel %vm990_vm2, %v985_v7, %v987_v12 }
  0xf1   : > { %2070 = vrot.lane.b32.xlu1 %v3683_v46, %s3487_s12  ;;  %1157 = vmatprep.subr.bf16.mxu1 %v1006_v13 }
  0xf2   : > { %2068 = vrot.lane.b32.xlu0 %v3633_v28, %s3487_s12  ;;  %1158 = vmatpush1.bf16.msra.mxu1 %v1005_v14 }
  0xf3   : > { %v1227_v15 = vpop.permute.xlu1 %1226  ;;  %3147 = vmatmul.mubr.msk.bf16.vlgmr.msra.gmra.mrb[4].mxu0 %vm590_vm1, %v3416_v62  ;;  %v1225_v16 = vpop.permute.xlu0 %1224 }
  0xf4   : > { %1326 = vmatprep.mubr.bf16.mxu0 %v3482_v37  ;;  %v1260_v17 = vsel %vm1258_vm3, %v1225_v16, %v1227_v15 }
  0xf5   : > { %2082 = vrot.lane.b32.xlu1 %v3660_v38, %s3487_s12  ;;  %1294 = vmatprep.subr.bf16.mxu0 %v1260_v17 }
  0xf6   : > { %2062 = vrot.lane.b32.xlu0 %v3629_v27, %s3487_s12  ;;  %3148 = vmatmul.mubr.msk.bf16.vlgmr.msra.gmra.mrb[4].mxu1 %vm590_vm1, %v3416_v62 }
  0xf7   : > { %v1231_v18 = vpop.permute.xlu1 %1230  ;;  %v1229_v19 = vpop.permute.xlu0 %1228  ;;  %1369 = vmatprep.mubr.bf16.mxu1 %v3482_v37 }
  0xf8   : > { %v1262_v20 = vsel %vm1258_vm3, %v1229_v19, %v1231_v18  ;;  %v1261_v21 = vsel %vm1258_vm3, %v1227_v15, %v1229_v19 }
  0xf9   : > { %2086 = vrot.lane.b32.xlu1 %v3673_v42, %s3487_s12  ;;  %1337 = vmatprep.subr.bf16.mxu1 %v1262_v20 }
  0xfa   : > { %2084 = vrot.lane.b32.xlu0 %v3655_v36, %s3487_s12  ;;  %1338 = vmatpush1.bf16.msra.mxu1 %v1261_v21  ;;  %v3420_v21 = vld [vmem:[%s4235_s2 + $0x20] sm:$0xff]  }
  0xfb   : > { %v1243_v22 = vpop.permute.xlu1 %1242  ;;  %v1223_v24 = vpop.permute.xlu0 %1222 }
  0xfc   : > { %v1259_v25 = vsel %vm1258_vm3, %v1223_v24, %v1225_v16 }
  0xfd   : > { %2080 = vrot.lane.b32.xlu1 %v3646_v33, %s3487_s12  ;;  %1295 = vmatpush1.bf16.msra.mxu0 %v1259_v25 }
  0xfe   : > { %2088 = vrot.lane.b32.xlu0 %v3702_v52, %s3487_s12 }
  0xff   : > { %v1247_v26 = vpop.permute.xlu1 %1246  ;;  %v1245_v30 = vpop.permute.xlu0 %1244 }
 0x100   : > { %v1268_v31 = vsel %vm1258_vm3, %v1243_v22, %v1245_v30  ;;  %v1269_v44 = vsel %vm1258_vm3, %v1245_v30, %v1247_v26 }
 0x101   : > { %2074 = vrot.lane.b32.xlu1 %v3692_v48, %s3487_s12  ;;  %1296 = vmatprep.subr.bf16.mxu0 %v1268_v31 }
 0x102   : > { %2072 = vrot.lane.b32.xlu0 %v3679_v45, %s3487_s12 }
 0x103   : > { %v1241_v34 = vpop.permute.xlu1 %1240  ;;  %v1249_v35 = vpop.permute.xlu0 %1248 }
 0x104   : > { %v1267_v39 = vsel %vm1258_vm3, %v1241_v34, %v1243_v22  ;;  %v1270_v43 = vsel %vm1258_vm3, %v1247_v26, %v1249_v35 }
 0x105   : > { %2078 = vrot.lane.b32.xlu1 %v3934_v32, %s3487_s12  ;;  %1297 = vmatpush1.bf16.msra.mxu0 %v1267_v39 }
 0x106   : > { %2076 = vrot.lane.b32.xlu0 %v3688_v47, %s3487_s12  ;;  %1339 = vmatprep.subr.bf16.mxu1 %v1270_v43 }
 0x107   : > { %1340 = vmatpush1.bf16.msra.mxu1 %v1269_v44  ;;  %v1235_v49 = vpop.permute.xlu1 %1234  ;;  %v1233_v41 = vpop.permute.xlu0 %1232 }
 0x108   : > { %3152 = vmatmul.mubr.msk.bf16.vlgmr.msra.gmra.mrb[0].mxu0 %vm590_vm1, %v3418_v40  ;;  %v1264_v50 = vsel %vm1258_vm3, %v1233_v41, %v1235_v49  ;;  %v1263_v55 = vsel %vm1258_vm3, %v1231_v18, %v1233_v41 }
 0x109   : > { %2092 = vrot.lane.b32.xlu1 %v3711_v54, %s3487_s12  ;;  %1412 = vmatprep.mubr.bf16.mxu0 %v3482_v37 }
 0x10a   : > { %2090 = vrot.lane.b32.xlu0 %v3698_v51, %s3487_s12  ;;  %1380 = vmatprep.subr.bf16.mxu0 %v1264_v50 }
 0x10b   : > { %1381 = vmatpush1.bf16.msra.mxu0 %v1263_v55  ;;  %v1239_v57 = vpop.permute.xlu1 %1238  ;;  %3153 = vmatmul.mubr.msk.bf16.vlgmr.msra.gmra.mrb[0].mxu1 %vm590_vm1, %v3418_v40  ;;  %v1237_v58 = vpop.permute.xlu0 %1236 }
 0x10c   : > { %1455 = vmatprep.mubr.bf16.mxu1 %v3482_v37  ;;  %v1265_v59 = vsel %vm1258_vm3, %v1235_v49, %v1237_v58  ;;  %v1266_v60 = vsel %vm1258_vm3, %v1237_v58, %v1239_v57 }
 0x10d   : > { %2096 = vrot.lane.b32.xlu1 %v3954_v56, %s3487_s12  ;;  %1423 = vmatprep.subr.bf16.mxu1 %v1266_v60 }
 0x10e   : > { %2094 = vrot.lane.b32.xlu0 %v3707_v53, %s3487_s12  ;;  %1424 = vmatpush1.bf16.msra.mxu1 %v1265_v59 }
 0x10f   : > { %v1253_v61 = vpop.permute.xlu1 %1252  ;;  %v1251_v62 = vpop.permute.xlu0 %1250 }
 0x110   : > { %v1271_v63 = vsel %vm1258_vm3, %v1249_v35, %v1251_v62  ;;  %v1272_v0 = vsel %vm1258_vm3, %v1251_v62, %v1253_v61 }
 0x111   : > { %2334 = vrot.lane.b32.xlu1 %v3624_v23, %s3488_s15  ;;  %1382 = vmatprep.subr.bf16.mxu0 %v1272_v0 }
 0x112   : > { %2332 = vrot.lane.b32.xlu0 %v3637_v29, %s3488_s15  ;;  %1383 = vmatpush1.bf16.msra.mxu0 %v1271_v63 }
 0x113   : > { %v1257_v1 = vpop.permute.xlu1 %1256  ;;  %v1255_v2 = vpop.permute.xlu0 %1254 }
 0x114   : > { %v1273_v3 = vsel %vm1258_vm3, %v1253_v61, %v1255_v2  ;;  %v1274_v4 = vsel %vm1258_vm3, %v1255_v2, %v1257_v1 }
 0x115   : > { %2338 = vrot.lane.b32.xlu1 %v3683_v46, %s3488_s15  ;;  %1425 = vmatprep.subr.bf16.mxu1 %v1274_v4 }
 0x116   : > { %2336 = vrot.lane.b32.xlu0 %v3633_v28, %s3488_s15  ;;  %1426 = vmatpush1.bf16.msra.mxu1 %v1273_v3 }
 0x117   : > { %v1495_v5 = vpop.permute.xlu1 %1494  ;;  %3154 = vmatmul.mubr.msk.bf16.vlgmr.msra.gmra.mrb[4].mxu0 %vm590_vm1, %v3418_v40  ;;  %v1493_v6 = vpop.permute.xlu0 %1492 }
 0x118   : > { %1594 = vmatprep.mubr.bf16.mxu0 %v3482_v37  ;;  %v1528_v7 = vsel %vm1526_vm4, %v1493_v6, %v1495_v5 }
 0x119   : > { %2350 = vrot.lane.b32.xlu1 %v3660_v38, %s3488_s15  ;;  %1562 = vmatprep.subr.bf16.mxu0 %v1528_v7 }
 0x11a   : > { %2330 = vrot.lane.b32.xlu0 %v3629_v27, %s3488_s15  ;;  %3155 = vmatmul.mubr.msk.bf16.vlgmr.msra.gmra.mrb[4].mxu1 %vm590_vm1, %v3418_v40 }
 0x11b   : > { %v1499_v8 = vpop.permute.xlu1 %1498  ;;  %v1497_v9 = vpop.permute.xlu0 %1496  ;;  %1637 = vmatprep.mubr.bf16.mxu1 %v3482_v37 }
 0x11c   : > { %v1529_v10 = vsel %vm1526_vm4, %v1495_v5, %v1497_v9  ;;  %v1530_v11 = vsel %vm1526_vm4, %v1497_v9, %v1499_v8 }
 0x11d   : > { %2354 = vrot.lane.b32.xlu1 %v3673_v42, %s3488_s15  ;;  %1605 = vmatprep.subr.bf16.mxu1 %v1530_v11 }
 0x11e   : > { %2352 = vrot.lane.b32.xlu0 %v3655_v36, %s3488_s15  ;;  %1606 = vmatpush1.bf16.msra.mxu1 %v1529_v10 }
 0x11f   : > { %v1511_v12 = vpop.permute.xlu1 %1510  ;;  %v1491_v13 = vpop.permute.xlu0 %1490 }
 0x120   : > { %v1527_v14 = vsel %vm1526_vm4, %v1491_v13, %v1493_v6 }
 0x121   : > { %2348 = vrot.lane.b32.xlu1 %v3646_v33, %s3488_s15  ;;  %1563 = vmatpush1.bf16.msra.mxu0 %v1527_v14 }
 0x122   : > { %2356 = vrot.lane.b32.xlu0 %v3702_v52, %s3488_s15 }
 0x123   : > { %v1515_v15 = vpop.permute.xlu1 %1514 }
 0x124   : > { %v1513_v16 = vpop.permute.xlu0 %1512 }
 0x125   : > { %2342 = vrot.lane.b32.xlu1 %v3692_v48, %s3488_s15  ;;  %v1536_v17 = vsel %vm1526_vm4, %v1511_v12, %v1513_v16  ;;  %v1537_v24 = vsel %vm1526_vm4, %v1513_v16, %v1515_v15 }
 0x126   : > { %2340 = vrot.lane.b32.xlu0 %v3679_v45, %s3488_s15  ;;  %1564 = vmatprep.subr.bf16.mxu0 %v1536_v17 }
 0x127   : > { %v1509_v18 = vpop.permute.xlu1 %1508 }
 0x128   : > { %v1535_v19 = vsel %vm1526_vm4, %v1509_v18, %v1511_v12  ;;  %v1517_v20 = vpop.permute.xlu0 %1516 }
 0x129   : > { %2346 = vrot.lane.b32.xlu1 %v3934_v32, %s3488_s15  ;;  %1565 = vmatpush1.bf16.msra.mxu0 %v1535_v19  ;;  %v1538_v22 = vsel %vm1526_vm4, %v1515_v15, %v1517_v20 }
 0x12a   : > { %2344 = vrot.lane.b32.xlu0 %v3688_v47, %s3488_s15  ;;  %1607 = vmatprep.subr.bf16.mxu1 %v1538_v22 }
 0x12b   : > { %1608 = vmatpush1.bf16.msra.mxu1 %v1537_v24  ;;  %v1503_v25 = vpop.permute.xlu1 %1502 }
 0x12c   : > { %v1501_v26 = vpop.permute.xlu0 %1500  ;;  %3159 = vmatmul.mubr.msk.bf16.vlgmr.msra.gmra.mrb[0].mxu0 %vm590_vm1, %v3420_v21 }
 0x12d   : > { %v1531_v30 = vsel %vm1526_vm4, %v1499_v8, %v1501_v26  ;;  %2360 = vrot.lane.b32.xlu1 %v3711_v54, %s3488_s15  ;;  %v1532_v31 = vsel %vm1526_vm4, %v1501_v26, %v1503_v25  ;;  %1680 = vmatprep.mubr.bf16.mxu0 %v3482_v37  ;;  %v2858_v8 = vld [vmem:[%s4236_s3] sm:$0xff] }
 0x12e   : > { %2358 = vrot.lane.b32.xlu0 %v3698_v51, %s3488_s15  ;;  %1648 = vmatprep.subr.bf16.mxu0 %v1532_v31 }
 0x12f   : > { %1649 = vmatpush1.bf16.msra.mxu0 %v1531_v30  ;;  %v1507_v34 = vpop.permute.xlu1 %1506  ;;  %3160 = vmatmul.mubr.msk.bf16.vlgmr.msra.gmra.mrb[0].mxu1 %vm590_vm1, %v3420_v21 }
 0x130   : > { %v1505_v39 = vpop.permute.xlu0 %1504  ;;  %1723 = vmatprep.mubr.bf16.mxu1 %v3482_v37 }
 0x131   : > { %v1533_v35 = vsel %vm1526_vm4, %v1503_v25, %v1505_v39  ;;  %2364 = vrot.lane.b32.xlu1 %v3954_v56, %s3488_s15  ;;  %v1534_v40 = vsel %vm1526_vm4, %v1505_v39, %v1507_v34 }
 0x132   : > { %2362 = vrot.lane.b32.xlu0 %v3707_v53, %s3488_s15  ;;  %1691 = vmatprep.subr.bf16.mxu1 %v1534_v40 }
 0x133   : > { %1692 = vmatpush1.bf16.msra.mxu1 %v1533_v35  ;;  %v1521_v43 = vpop.permute.xlu1 %1520  ;;  %v3422_v35 = vld [vmem:[%s4235_s2 + $0x30] sm:$0xff]  }
 0x134   : > { %v1519_v44 = vpop.permute.xlu0 %1518 }
 0x135   : > { %v1539_v49 = vsel %vm1526_vm4, %v1517_v20, %v1519_v44  ;;  %2602 = vrot.lane.b32.xlu1 %v3624_v23, %s3489_s28  ;;  %v1540_v41 = vsel %vm1526_vm4, %v1519_v44, %v1521_v43 }
 0x136   : > { %2600 = vrot.lane.b32.xlu0 %v3637_v29, %s3489_s28  ;;  %1650 = vmatprep.subr.bf16.mxu0 %v1540_v41 }
 0x137   : > { %1651 = vmatpush1.bf16.msra.mxu0 %v1539_v49  ;;  %v1525_v50 = vpop.permute.xlu1 %1524 }
 0x138   : > { %v1523_v55 = vpop.permute.xlu0 %1522 }
 0x139   : > { %v1541_v57 = vsel %vm1526_vm4, %v1521_v43, %v1523_v55  ;;  %2606 = vrot.lane.b32.xlu1 %v3683_v46, %s3489_s28  ;;  %v1542_v58 = vsel %vm1526_vm4, %v1523_v55, %v1525_v50 }
 0x13a   : > { %2604 = vrot.lane.b32.xlu0 %v3633_v28, %s3489_s28  ;;  %1693 = vmatprep.subr.bf16.mxu1 %v1542_v58 }
 0x13b   : > { %1694 = vmatpush1.bf16.msra.mxu1 %v1541_v57  ;;  %v1763_v23 = vpop.permute.xlu1 %1762  ;;  %3161 = vmatmul.mubr.msk.bf16.vlgmr.msra.gmra.mrb[4].mxu0 %vm590_vm1, %v3420_v21 }
 0x13c   : > { %v1761_v29 = vpop.permute.xlu0 %1760  ;;  %1862 = vmatprep.mubr.bf16.mxu0 %v3482_v37 }
 0x13d   : > { %2618 = vrot.lane.b32.xlu1 %v3660_v38, %s3489_s28  ;;  %v1796_v59 = vsel %vm1794_vm5, %v1761_v29, %v1763_v23 }
 0x13e   : > { %2598 = vrot.lane.b32.xlu0 %v3629_v27, %s3489_s28  ;;  %1830 = vmatprep.subr.bf16.mxu0 %v1796_v59 }
 0x13f   : > { %v1767_v46 = vpop.permute.xlu1 %1766  ;;  %3162 = vmatmul.mubr.msk.bf16.vlgmr.msra.gmra.mrb[4].mxu1 %vm590_vm1, %v3420_v21 }
 0x140   : > { %v1765_v28 = vpop.permute.xlu0 %1764  ;;  %1905 = vmatprep.mubr.bf16.mxu1 %v3482_v37 }
 0x141   : > { %v1797_v60 = vsel %vm1794_vm5, %v1763_v23, %v1765_v28  ;;  %2622 = vrot.lane.b32.xlu1 %v3673_v42, %s3489_s28  ;;  %v1798_v61 = vsel %vm1794_vm5, %v1765_v28, %v1767_v46 }
 0x142   : > { %2620 = vrot.lane.b32.xlu0 %v3655_v36, %s3489_s28  ;;  %1873 = vmatprep.subr.bf16.mxu1 %v1798_v61 }
 0x143   : > { %1874 = vmatpush1.bf16.msra.mxu1 %v1797_v60  ;;  %v1779_v27 = vpop.permute.xlu1 %1778 }
 0x144   : > { %v1759_v38 = vpop.permute.xlu0 %1758 }
 0x145   : > { %v1795_v62 = vsel %vm1794_vm5, %v1759_v38, %v1761_v29  ;;  %2616 = vrot.lane.b32.xlu1 %v3646_v33, %s3489_s28  ;;  %v3421_v33 = vld [vmem:[%s4235_s2 + $0x28] sm:$0xff]  }
 0x146   : > { %2624 = vrot.lane.b32.xlu0 %v3702_v52, %s3489_s28  ;;  %1831 = vmatpush1.bf16.msra.mxu0 %v1795_v62 }
 0x147   : > { %v1783_v63 = vpop.permute.xlu1 %1782 }
 0x148   : > { %v1781_v42 = vpop.permute.xlu0 %1780 }
 0x149   : > { %2610 = vrot.lane.b32.xlu1 %v3692_v48, %s3489_s28  ;;  %v1804_v36 = vsel %vm1794_vm5, %v1779_v27, %v1781_v42  ;;  %v1805_v52 = vsel %vm1794_vm5, %v1781_v42, %v1783_v63 }
 0x14a   : > { %2608 = vrot.lane.b32.xlu0 %v3679_v45, %s3489_s28  ;;  %1832 = vmatprep.subr.bf16.mxu0 %v1804_v36 }
 0x14b   : > { %v1777_v0 = vpop.permute.xlu1 %1776 }
 0x14c   : > { %v1803_v1 = vsel %vm1794_vm5, %v1777_v0, %v1779_v27  ;;  %v1785_v2 = vpop.permute.xlu0 %1784 }
 0x14d   : > { %2614 = vrot.lane.b32.xlu1 %v3934_v32, %s3489_s28  ;;  %1833 = vmatpush1.bf16.msra.mxu0 %v1803_v1  ;;  %v1806_v48 = vsel %vm1794_vm5, %v1783_v63, %v1785_v2 }
 0x14e   : > { %2612 = vrot.lane.b32.xlu0 %v3688_v47, %s3489_s28  ;;  %1875 = vmatprep.subr.bf16.mxu1 %v1806_v48 }
 0x14f   : > { %1876 = vmatpush1.bf16.msra.mxu1 %v1805_v52  ;;  %v1771_v45 = vpop.permute.xlu1 %1770 }
 0x150   : > { %v1769_v3 = vpop.permute.xlu0 %1768  ;;  %3166 = vmatmul.mubr.msk.bf16.vlgmr.msra.gmra.mrb[0].mxu0 %vm590_vm1, %v3421_v33 }
 0x151   : > { %v1799_v4 = vsel %vm1794_vm5, %v1767_v46, %v1769_v3  ;;  %2628 = vrot.lane.b32.xlu1 %v3711_v54, %s3489_s28  ;;  %v1800_v32 = vsel %vm1794_vm5, %v1769_v3, %v1771_v45  ;;  %1948 = vmatprep.mubr.bf16.mxu0 %v3482_v37 }
 0x152   : > { %2626 = vrot.lane.b32.xlu0 %v3698_v51, %s3489_s28  ;;  %1916 = vmatprep.subr.bf16.mxu0 %v1800_v32  ;;  %v2859_v51 = vld [vmem:[%s4236_s3 + $0x8] sm:$0xff] }
 0x153   : > { %1917 = vmatpush1.bf16.msra.mxu0 %v1799_v4  ;;  %v1775_v47 = vpop.permute.xlu1 %1774  ;;  %3167 = vmatmul.mubr.msk.bf16.vlgmr.msra.gmra.mrb[0].mxu1 %vm590_vm1, %v3421_v33 }
 0x154   : > { %v1773_v5 = vpop.permute.xlu0 %1772  ;;  %1991 = vmatprep.mubr.bf16.mxu1 %v3482_v37 }
 0x155   : > { %v1801_v6 = vsel %vm1794_vm5, %v1771_v45, %v1773_v5  ;;  %2632 = vrot.lane.b32.xlu1 %v3954_v56, %s3489_s28  ;;  %v1802_v54 = vsel %vm1794_vm5, %v1773_v5, %v1775_v47 }
 0x156   : > { %2630 = vrot.lane.b32.xlu0 %v3707_v53, %s3489_s28  ;;  %1959 = vmatprep.subr.bf16.mxu1 %v1802_v54  ;;  %s3342_s28 = smul.u32 (%p3567_p6), 80, %s3467_s18 }
 0x157   : > { %1960 = vmatpush1.bf16.msra.mxu1 %v1801_v6  ;;  %v1789_v7 = vpop.permute.xlu1 %1788  ;;  %v3423_v6 = vld [vmem:[%s4235_s2 + $0x38] sm:$0xff]  }
 0x158   : > { %v1787_v9 = vpop.permute.xlu0 %1786  ;;  %s2967_s29 = sadd.s32 (%p3567_p6), %s3342_s28, %s3200_s25 }
 0x159   : > { %v1807_v10 = vsel %vm1794_vm5, %v1785_v2, %v1787_v9  ;;  %v1808_v56 = vsel %vm1794_vm5, %v1787_v9, %v1789_v7  ;;  %2867 = vperm.xlu1 %3409, %v2859_v51   ;;  %s3201_s27 = sshll.u32 (%p3567_p6), %s2967_s29, 2 }
 0x15a   : > { %1918 = vmatprep.subr.bf16.mxu0 %v1808_v56  ;;  %2862 = vperm.xlu0 %3408, %v2858_v8   ;;  %s2969_s7 = scalar_lea.vmem (%p3567_p6), %s4237_s4, %s3201_s27 }
 0x15b   : > { %1919 = vmatpush1.bf16.msra.mxu0 %v1807_v10  ;;  %v1793_v53 = vpop.permute.xlu1 %1792 }
 0x15c   : > { %v1791_v11 = vpop.permute.xlu0 %1790 }
 0x15d   : > { %v1809_v12 = vsel %vm1794_vm5, %v1789_v7, %v1791_v11  ;;  %v1810_v13 = vsel %vm1794_vm5, %v1791_v11, %v1793_v53 }
 0x15e   : > { %1961 = vmatprep.subr.bf16.mxu1 %v1810_v13  ;;  %3168 = vmatmul.mubr.msk.bf16.vlgmr.msra.gmra.mrb[4].mxu0 %vm590_vm1, %v3421_v33 }
 0x15f   : > { %1962 = vmatpush1.bf16.msra.mxu1 %v1809_v12  ;;  %v2067_v14 = vpop.permute.xlu1 %2066  ;;  %2166 = vmatprep.mubr.bf16.mxu0 %v3482_v37 }
 0x160   : > { %v2065_v15 = vpop.permute.xlu0 %2064 }
 0x161   : > { %v2100_v16 = vsel %vm2098_vm6, %v2065_v15, %v2067_v14 }
 0x162   : > { %2134 = vmatprep.subr.bf16.mxu0 %v2100_v16  ;;  %3169 = vmatmul.mubr.msk.bf16.vlgmr.msra.gmra.mrb[4].mxu1 %vm590_vm1, %v3421_v33 }
 0x163   : > { %v2071_v17 = vpop.permute.xlu1 %2070  ;;  %2209 = vmatprep.mubr.bf16.mxu1 %v3482_v37 }
 0x164   : > { %v2069_v18 = vpop.permute.xlu0 %2068 }
 0x165   : > { %v2101_v19 = vsel %vm2098_vm6, %v2067_v14, %v2069_v18  ;;  %v2102_v20 = vsel %vm2098_vm6, %v2069_v18, %v2071_v17 }
 0x166   : > { %2177 = vmatprep.subr.bf16.mxu1 %v2102_v20 }
 0x167   : > { %2178 = vmatpush1.bf16.msra.mxu1 %v2101_v19  ;;  %v2083_v21 = vpop.permute.xlu1 %2082 }
 0x168   : > { %v2063_v22 = vpop.permute.xlu0 %2062 }
 0x169   : > { %v2099_v24 = vsel %vm2098_vm6, %v2063_v22, %v2065_v15 }
 0x16a   : > { %2135 = vmatpush1.bf16.msra.mxu0 %v2099_v24 }
 0x16b   : > { %v2087_v25 = vpop.permute.xlu1 %2086 }
 0x16c   : > { %v2085_v26 = vpop.permute.xlu0 %2084 }
 0x16d   : > { %v2108_v30 = vsel %vm2098_vm6, %v2083_v21, %v2085_v26  ;;  %v2109_v43 = vsel %vm2098_vm6, %v2085_v26, %v2087_v25 }
 0x16e   : > { %2136 = vmatprep.subr.bf16.mxu0 %v2108_v30 }
 0x16f   : > { %v2081_v31 = vpop.permute.xlu1 %2080 }
 0x170   : > { %v2107_v34 = vsel %vm2098_vm6, %v2081_v31, %v2083_v21  ;;  %v2089_v39 = vpop.permute.xlu0 %2088 }
 0x171   : > { %2137 = vmatpush1.bf16.msra.mxu0 %v2107_v34  ;;  %v2110_v40 = vsel %vm2098_vm6, %v2087_v25, %v2089_v39 }
 0x172   : > { %2179 = vmatprep.subr.bf16.mxu1 %v2110_v40 }
 0x173   : > { %2180 = vmatpush1.bf16.msra.mxu1 %v2109_v43  ;;  %v2075_v44 = vpop.permute.xlu1 %2074 }
 0x174   : > { %v2073_v49 = vpop.permute.xlu0 %2072  ;;  %3173 = vmatmul.mubr.msk.bf16.vlgmr.msra.gmra.mrb[0].mxu0 %vm590_vm1, %v3422_v35 }
 0x175   : > { %v2103_v41 = vsel %vm2098_vm6, %v2071_v17, %v2073_v49  ;;  %v2104_v50 = vsel %vm2098_vm6, %v2073_v49, %v2075_v44  ;;  %2252 = vmatprep.mubr.bf16.mxu0 %v3482_v37 }
 0x176   : > { %2220 = vmatprep.subr.bf16.mxu0 %v2104_v50  ;;  %3174 = vmatmul.mubr.msk.bf16.vlgmr.msra.gmra.mrb[0].mxu1 %vm590_vm1, %v3422_v35 }
 0x177   : > { %2221 = vmatpush1.bf16.msra.mxu0 %v2103_v41  ;;  %v2079_v55 = vpop.permute.xlu1 %2078  ;;  %2295 = vmatprep.mubr.bf16.mxu1 %v3482_v37 }
 0x178   : > { %v2077_v57 = vpop.permute.xlu0 %2076 }
 0x179   : > { %v2105_v58 = vsel %vm2098_vm6, %v2075_v44, %v2077_v57  ;;  %v2106_v23 = vsel %vm2098_vm6, %v2077_v57, %v2079_v55  ;;  %v3424_v55 = vld [vmem:[%s4235_s2 + $0x40] sm:$0xff]  }
 0x17a   : > { %2263 = vmatprep.subr.bf16.mxu1 %v2106_v23 }
 0x17b   : > { %2264 = vmatpush1.bf16.msra.mxu1 %v2105_v58  ;;  %v2093_v29 = vpop.permute.xlu1 %2092 }
 0x17c   : > { %v2091_v59 = vpop.permute.xlu0 %2090 }
 0x17d   : > { %v2111_v46 = vsel %vm2098_vm6, %v2089_v39, %v2091_v59  ;;  %v2112_v28 = vsel %vm2098_vm6, %v2091_v59, %v2093_v29 }
 0x17e   : > { %2222 = vmatprep.subr.bf16.mxu0 %v2112_v28 }
 0x17f   : > { %2223 = vmatpush1.bf16.msra.mxu0 %v2111_v46  ;;  %v2097_v60 = vpop.permute.xlu1 %2096 }
 0x180   : > { %v2095_v61 = vpop.permute.xlu0 %2094 }
 0x181   : > { %v2113_v27 = vsel %vm2098_vm6, %v2093_v29, %v2095_v61  ;;  %v2114_v38 = vsel %vm2098_vm6, %v2095_v61, %v2097_v60 }
 0x182   : > { %2265 = vmatprep.subr.bf16.mxu1 %v2114_v38  ;;  %3175 = vmatmul.mubr.msk.bf16.vlgmr.msra.gmra.mrb[4].mxu0 %vm590_vm1, %v3422_v35 }
 0x183   : > { %2266 = vmatpush1.bf16.msra.mxu1 %v2113_v27  ;;  %v2335_v62 = vpop.permute.xlu1 %2334  ;;  %2434 = vmatprep.mubr.bf16.mxu0 %v3482_v37 }
 0x184   : > { %v2333_v63 = vpop.permute.xlu0 %2332 }
 0x185   : > { %v2368_v42 = vsel %vm2366_vm7, %v2333_v63, %v2335_v62 }
 0x186   : > { %2402 = vmatprep.subr.bf16.mxu0 %v2368_v42  ;;  %3176 = vmatmul.mubr.msk.bf16.vlgmr.msra.gmra.mrb[4].mxu1 %vm590_vm1, %v3422_v35 }
 0x187   : > { %v2339_v36 = vpop.permute.xlu1 %2338  ;;  %2477 = vmatprep.mubr.bf16.mxu1 %v3482_v37 }
 0x188   : > { %v2337_v0 = vpop.permute.xlu0 %2336 }
 0x189   : > { %v2369_v1 = vsel %vm2366_vm7, %v2335_v62, %v2337_v0  ;;  %v2370_v2 = vsel %vm2366_vm7, %v2337_v0, %v2339_v36 }
 0x18a   : > { %2445 = vmatprep.subr.bf16.mxu1 %v2370_v2 }
 0x18b   : > { %2446 = vmatpush1.bf16.msra.mxu1 %v2369_v1  ;;  %v2351_v33 = vpop.permute.xlu1 %2350 }
 0x18c   : > { %v2331_v48 = vpop.permute.xlu0 %2330 }
 0x18d   : > { %v2367_v52 = vsel %vm2366_vm7, %v2331_v48, %v2333_v63 }
 0x18e   : > { %2403 = vmatpush1.bf16.msra.mxu0 %v2367_v52 }
 0x18f   : > { %v2355_v45 = vpop.permute.xlu1 %2354 }
 0x190   : > { %v2353_v3 = vpop.permute.xlu0 %2352 }
 0x191   : > { %v2376_v4 = vsel %vm2366_vm7, %v2351_v33, %v2353_v3  ;;  %v2377_v51 = vsel %vm2366_vm7, %v2353_v3, %v2355_v45 }
 0x192   : > { %2404 = vmatprep.subr.bf16.mxu0 %v2376_v4 }
 0x193   : > { %v2349_v32 = vpop.permute.xlu1 %2348 }
 0x194   : > { %v2375_v47 = vsel %vm2366_vm7, %v2349_v32, %v2351_v33  ;;  %v2357_v5 = vpop.permute.xlu0 %2356 }
 0x195   : > { %2405 = vmatpush1.bf16.msra.mxu0 %v2375_v47  ;;  %v2378_v54 = vsel %vm2366_vm7, %v2355_v45, %v2357_v5 }
 0x196   : > { %2447 = vmatprep.subr.bf16.mxu1 %v2378_v54 }
 0x197   : > { %2448 = vmatpush1.bf16.msra.mxu1 %v2377_v51  ;;  %v2343_v7 = vpop.permute.xlu1 %2342 }
 0x198   : > { %v2341_v8 = vpop.permute.xlu0 %2340  ;;  %3180 = vmatmul.mubr.msk.bf16.vlgmr.msra.gmra.mrb[0].mxu0 %vm590_vm1, %v3423_v6 }
 0x199   : > { %v2371_v9 = vsel %vm2366_vm7, %v2339_v36, %v2341_v8  ;;  %v2372_v10 = vsel %vm2366_vm7, %v2341_v8, %v2343_v7  ;;  %2520 = vmatprep.mubr.bf16.mxu0 %v3482_v37 }
 0x19a   : > { %2488 = vmatprep.subr.bf16.mxu0 %v2372_v10  ;;  %3181 = vmatmul.mubr.msk.bf16.vlgmr.msra.gmra.mrb[0].mxu1 %vm590_vm1, %v3423_v6 }
 0x19b   : > { %2489 = vmatpush1.bf16.msra.mxu0 %v2371_v9  ;;  %v2347_v56 = vpop.permute.xlu1 %2346  ;;  %2563 = vmatprep.mubr.bf16.mxu1 %v3482_v37 }
 0x19c   : > { %v2345_v53 = vpop.permute.xlu0 %2344 }
 0x19d   : > { %v2373_v11 = vsel %vm2366_vm7, %v2343_v7, %v2345_v53  ;;  %v2374_v12 = vsel %vm2366_vm7, %v2345_v53, %v2347_v56 }
 0x19e   : > { %2531 = vmatprep.subr.bf16.mxu1 %v2374_v12 }
 0x19f   : > { %2532 = vmatpush1.bf16.msra.mxu1 %v2373_v11  ;;  %v2361_v13 = vpop.permute.xlu1 %2360 }
 0x1a0   : > { %v2359_v14 = vpop.permute.xlu0 %2358 }
 0x1a1   : > { %v2379_v15 = vsel %vm2366_vm7, %v2357_v5, %v2359_v14  ;;  %v2380_v16 = vsel %vm2366_vm7, %v2359_v14, %v2361_v13 }
 0x1a2   : > { %2490 = vmatprep.subr.bf16.mxu0 %v2380_v16 }
 0x1a3   : > { %2491 = vmatpush1.bf16.msra.mxu0 %v2379_v15  ;;  %v2365_v17 = vpop.permute.xlu1 %2364 }
 0x1a4   : > { %v2363_v18 = vpop.permute.xlu0 %2362 }
 0x1a5   : > { %v2381_v19 = vsel %vm2366_vm7, %v2361_v13, %v2363_v18  ;;  %v2382_v20 = vsel %vm2366_vm7, %v2363_v18, %v2365_v17 }
 0x1a6   : > { %2533 = vmatprep.subr.bf16.mxu1 %v2382_v20  ;;  %3182 = vmatmul.mubr.msk.bf16.vlgmr.msra.gmra.mrb[4].mxu0 %vm590_vm1, %v3423_v6 }
 0x1a7   : > { %2534 = vmatpush1.bf16.msra.mxu1 %v2381_v19  ;;  %v2603_v21 = vpop.permute.xlu1 %2602  ;;  %2702 = vmatprep.mubr.bf16.mxu0 %v3482_v37 }
 0x1a8   : > { %v2601_v22 = vpop.permute.xlu0 %2600 }
 0x1a9   : > { %v2636_v24 = vsel %vm2634_vm8, %v2601_v22, %v2603_v21 }
 0x1aa   : > { %2670 = vmatprep.subr.bf16.mxu0 %v2636_v24  ;;  %3183 = vmatmul.mubr.msk.bf16.vlgmr.msra.gmra.mrb[4].mxu1 %vm590_vm1, %v3423_v6 }
 0x1ab   : > { %v2607_v25 = vpop.permute.xlu1 %2606  ;;  %2745 = vmatprep.mubr.bf16.mxu1 %v3482_v37 }
 0x1ac   : > { %v2605_v26 = vpop.permute.xlu0 %2604 }
 0x1ad   : > { %v2637_v30 = vsel %vm2634_vm8, %v2603_v21, %v2605_v26  ;;  %v2638_v31 = vsel %vm2634_vm8, %v2605_v26, %v2607_v25 }
 0x1ae   : > { %2713 = vmatprep.subr.bf16.mxu1 %v2638_v31 }
 0x1af   : > { %2714 = vmatpush1.bf16.msra.mxu1 %v2637_v30  ;;  %v2619_v34 = vpop.permute.xlu1 %2618 }
 0x1b0   : > { %v2599_v39 = vpop.permute.xlu0 %2598 }
 0x1b1   : > { %v2635_v35 = vsel %vm2634_vm8, %v2599_v39, %v2601_v22 }
 0x1b2   : > { %2671 = vmatpush1.bf16.msra.mxu0 %v2635_v35 }
 0x1b3   : > { %v2623_v40 = vpop.permute.xlu1 %2622 }
 0x1b4   : > { %v2621_v43 = vpop.permute.xlu0 %2620 }
 0x1b5   : > { %v2644_v44 = vsel %vm2634_vm8, %v2619_v34, %v2621_v43  ;;  %v2645_v58 = vsel %vm2634_vm8, %v2621_v43, %v2623_v40 }
 0x1b6   : > { %2672 = vmatprep.subr.bf16.mxu0 %v2644_v44 }
 0x1b7   : > { %v2617_v49 = vpop.permute.xlu1 %2616 }
 0x1b8   : > { %v2643_v41 = vsel %vm2634_vm8, %v2617_v49, %v2619_v34  ;;  %v2625_v50 = vpop.permute.xlu0 %2624 }
 0x1b9   : > { %2673 = vmatpush1.bf16.msra.mxu0 %v2643_v41  ;;  %v2646_v57 = vsel %vm2634_vm8, %v2623_v40, %v2625_v50 }
 0x1ba   : > { %2715 = vmatprep.subr.bf16.mxu1 %v2646_v57 }
 0x1bb   : > { %2716 = vmatpush1.bf16.msra.mxu1 %v2645_v58  ;;  %v2611_v23 = vpop.permute.xlu1 %2610 }
 0x1bc   : > { %v2609_v29 = vpop.permute.xlu0 %2608  ;;  %3187 = vmatmul.mubr.msk.bf16.vlgmr.msra.gmra.mrb[0].mxu0 %vm590_vm1, %v3424_v55 }
 0x1bd   : > { %v2639_v59 = vsel %vm2634_vm8, %v2607_v25, %v2609_v29  ;;  %v2640_v46 = vsel %vm2634_vm8, %v2609_v29, %v2611_v23  ;;  %2788 = vmatprep.mubr.bf16.mxu0 %v3482_v37 }
 0x1be   : > { %3188 = vmatmul.mubr.msk.bf16.vlgmr.msra.gmra.mrb[0].mxu1 %vm590_vm1, %v3424_v55  ;;  %2756 = vmatprep.subr.bf16.mxu0 %v2640_v46 }
 0x1bf   : > { %2757 = vmatpush1.bf16.msra.mxu0 %v2639_v59  ;;  %v2615_v28 = vpop.permute.xlu1 %2614  ;;  %2831 = vmatprep.mubr.bf16.mxu1 %v3482_v37 }
 0x1c0   : > { %v2613_v60 = vpop.permute.xlu0 %2612 }
 0x1c1   : > { %v2641_v61 = vsel %vm2634_vm8, %v2611_v23, %v2613_v60  ;;  %v2642_v27 = vsel %vm2634_vm8, %v2613_v60, %v2615_v28 }
 0x1c2   : > { %2799 = vmatprep.subr.bf16.mxu1 %v2642_v27 }
 0x1c3   : > { %2800 = vmatpush1.bf16.msra.mxu1 %v2641_v61  ;;  %v2629_v38 = vpop.permute.xlu1 %2628 }
 0x1c4   : > { %v2627_v62 = vpop.permute.xlu0 %2626 }
 0x1c5   : > { %v2647_v63 = vsel %vm2634_vm8, %v2625_v50, %v2627_v62  ;;  %v2648_v42 = vsel %vm2634_vm8, %v2627_v62, %v2629_v38 }
 0x1c6   : > { %2758 = vmatprep.subr.bf16.mxu0 %v2648_v42 }
 0x1c7   : > { %2759 = vmatpush1.bf16.msra.mxu0 %v2647_v63  ;;  %v2633_v36 = vpop.permute.xlu1 %2632 }
 0x1c8   : > { %v2631_v0 = vpop.permute.xlu0 %2630 }
 0x1c9   : > { %v2649_v37 = vsel %vm2634_vm8, %v2629_v38, %v2631_v0  ;;  %v2650_v1 = vsel %vm2634_vm8, %v2631_v0, %v2633_v36 }
 0x1ca   : > { %3189 = vmatmul.mubr.msk.bf16.vlgmr.msra.gmra.mrb[4].mxu0 %vm590_vm1, %v3424_v55  ;;  %2801 = vmatprep.subr.bf16.mxu1 %v2650_v1 }
 0x1cb   : > { %2802 = vmatpush1.bf16.msra.mxu1 %v2649_v37 }
 0x1ce   : > { %3190 = vmatmul.mubr.msk.bf16.vlgmr.msra.gmra.mrb[4].mxu1 %vm590_vm1, %v3424_v55 }
 0x1d8   : > { %v2868_v48 = vpop.permute.xlu1 %2867 }
 0x1d9   : > { %v2863_v2 = vpop.permute.xlu0 %2862 }
 0x28f   : > { %v2704_v33 = vpop.f32.mrb[0].mxu0 }
 0x290   : > { %v2706_v52 = vpop.f32.mrb[1].mxu0  ;;  %v2870_v45 = vadd.f32 %v2863_v2, %v2704_v33 }
 0x291   : > { %v2871_v3 = vadd.f32 %v2863_v2, %v2706_v52  ;;  %v2747_v4 = vpop.f32.mrb[0].mxu1  ;;  %v2708_v32 = vpop.f32.mrb[2].mxu0 }
 0x292   : > { %v2886_v47 = vmax.f32 %v2870_v45, 0.0  ;;  %v2872_v5 = vadd.f32 %v2863_v2, %v2747_v4  ;;  %v2878_v6 = vadd.f32 %v2868_v48, %v2708_v32  ;;  %v2749_v54 = vpop.f32.mrb[1].mxu1  ;;  %v2710_v51 = vpop.f32.mrb[3].mxu0 }
 0x293   : > { %v2887_v7 = vmax.f32 %v2871_v3, 0.0  ;;  %v2873_v8 = vadd.f32 %v2863_v2, %v2749_v54  ;;  %v2879_v9 = vadd.f32 %v2868_v48, %v2710_v51  ;;  %v2751_v10 = vpop.f32.mrb[2].mxu1 }
 0x294   : > { %v2888_v56 = vmax.f32 %v2872_v5, 0.0  ;;  %v2894_v53 = vmax.f32 %v2878_v6, 0.0  ;;  %v2880_v11 = vadd.f32 %v2868_v48, %v2751_v10  ;;  %v2753_v12 = vpop.f32.mrb[3].mxu1 }
 0x295   : > { %v3204_v13 = vpack.c.bf16 %v2887_v7, %v2886_v47  ;;  %v2889_v14 = vmax.f32 %v2873_v8, 0.0  ;;  %v2895_v15 = vmax.f32 %v2879_v9, 0.0  ;;  %v2881_v16 = vadd.f32 %v2868_v48, %v2753_v12 }
 0x296   : > { %v2896_v17 = vmax.f32 %v2880_v11, 0.0 }
 0x297   : > { %2950 = vst [vmem:[%s4187_s26] sm:$0xff] %v3204_v13  ;;  %v3205_v18 = vpack.c.bf16 %v2889_v14, %v2888_v56  ;;  %v3208_v19 = vpack.c.bf16 %v2895_v15, %v2894_v53  ;;  %v2897_v20 = vmax.f32 %v2881_v16, 0.0 }
 0x299   : > { %2951 = vst [vmem:[%s4187_s26 + $0x8] sm:$0xff] %v3205_v18  ;;  %2954 = vst [vmem:[%s4187_s26 + $0x20] sm:$0xff] %v3208_v19  ;;  %v3209_v21 = vpack.c.bf16 %v2897_v20, %v2896_v17 }
 0x29b   : > { %2955 = vst [vmem:[%s4187_s26 + $0x28] sm:$0xff] %v3209_v21 }
 0x29d   : > { %v2790_v22 = vpop.f32.mrb[4].mxu0 }
 0x29e   : > { %v2874_v24 = vadd.f32 %v2863_v2, %v2790_v22  ;;  %v2792_v25 = vpop.f32.mrb[5].mxu0  ;;  %v2982_v63 = vld [vmem:[%s4187_s26] sm:$0xff] (%p3567_p6) }
 0x29f   : > { %v2875_v26 = vadd.f32 %v2863_v2, %v2792_v25  ;;  %v2794_v30 = vpop.f32.mrb[6].mxu0  ;;  %2983 = vst [vmem:[%s2969_s7] sm:$0xff] (%p3567_p6), %v2982_v63 }
 0x2a0   : > { %v2890_v31 = vmax.f32 %v2874_v24, 0.0  ;;  %v2882_v34 = vadd.f32 %v2868_v48, %v2794_v30  ;;  %v2796_v39 = vpop.f32.mrb[7].mxu0  ;;  %v2984_v42 = vld [vmem:[%s4187_s26 + $0x8] sm:$0xff] (%p3567_p6)  ;;  %v2990_v37 = vld [vmem:[%s4187_s26 + $0x20] sm:$0xff] (%p3567_p6) }
 0x2a1   : > { %v2891_v35 = vmax.f32 %v2875_v26, 0.0  ;;  %v2883_v40 = vadd.f32 %v2868_v48, %v2796_v39  ;;  %v2833_v43 = vpop.f32.mrb[4].mxu1  ;;  %2985 = vst [vmem:[%s2969_s7 + $0x8] sm:$0xff] (%p3567_p6), %v2984_v42  ;;  %2991 = vst [vmem:[%s2969_s7 + $0xa0] sm:$0xff] (%p3567_p6), %v2990_v37 }
 0x2a2   : > { %v2898_v44 = vmax.f32 %v2882_v34, 0.0  ;;  %v2876_v49 = vadd.f32 %v2863_v2, %v2833_v43  ;;  %v2835_v41 = vpop.f32.mrb[5].mxu1  ;;  %v2992_v1 = vld [vmem:[%s4187_s26 + $0x28] sm:$0xff] (%p3567_p6) }
 0x2a3   : > { %v3206_v50 = vpack.c.bf16 %v2891_v35, %v2890_v31  ;;  %v2899_v55 = vmax.f32 %v2883_v40, 0.0  ;;  %v2877_v57 = vadd.f32 %v2863_v2, %v2835_v41  ;;  %v2837_v58 = vpop.f32.mrb[6].mxu1  ;;  %2993 = vst [vmem:[%s2969_s7 + $0xa8] sm:$0xff] (%p3567_p6), %v2992_v1 }
 0x2a4   : > { %v2892_v23 = vmax.f32 %v2876_v49, 0.0  ;;  %v2884_v29 = vadd.f32 %v2868_v48, %v2837_v58  ;;  %v2839_v59 = vpop.f32.mrb[7].mxu1 }
 0x2a5   : > { %2952 = vst [vmem:[%s4187_s26 + $0x10] sm:$0xff] %v3206_v50  ;;  %v3210_v46 = vpack.c.bf16 %v2899_v55, %v2898_v44  ;;  %v2893_v28 = vmax.f32 %v2877_v57, 0.0  ;;  %v2885_v60 = vadd.f32 %v2868_v48, %v2839_v59  ;;  %2964 = sbr.rel (!%p3567_p6) target bundleno = 692 (0x2b4), region = 101 }
 0x2a6   : > { %v2900_v61 = vmax.f32 %v2884_v29, 0.0 }
 0x2a7   : > { %2956 = vst [vmem:[%s4187_s26 + $0x30] sm:$0xff] %v3210_v46  ;;  %v3207_v27 = vpack.c.bf16 %v2893_v28, %v2892_v23  ;;  %v2901_v38 = vmax.f32 %v2885_v60, 0.0 }
 0x2a9   : > { %2953 = vst [vmem:[%s4187_s26 + $0x18] sm:$0xff] %v3207_v27  ;;  %v3211_v62 = vpack.c.bf16 %v2901_v38, %v2900_v61 }
 0x2ab   : > { %2957 = vst [vmem:[%s4187_s26 + $0x38] sm:$0xff] %v3211_v62 }
 0x2ac   : > { %v2986_v36 = vld [vmem:[%s4187_s26 + $0x10] sm:$0xff] }
 0x2ad   : > { %2987 = vst [vmem:[%s2969_s7 + $0x10] sm:$0xff] %v2986_v36 }
 0x2ae   : > { %v2994_v2 = vld [vmem:[%s4187_s26 + $0x30] sm:$0xff] }
 0x2af   : > { %2995 = vst [vmem:[%s2969_s7 + $0xb0] sm:$0xff] %v2994_v2 }
 0x2b0   : > { %v2988_v0 = vld [vmem:[%s4187_s26 + $0x18] sm:$0xff] }
 0x2b1   : > { %2989 = vst [vmem:[%s2969_s7 + $0x18] sm:$0xff] %v2988_v0 }
 0x2b2   : > { %v2996_v33 = vld [vmem:[%s4187_s26 + $0x38] sm:$0xff] }
 0x2b3   : > { %2997 = vst [vmem:[%s2969_s7 + $0xb8] sm:$0xff] %v2996_v33 }
 0x2b4 PF: > { %s14_s21 = sadd.s32 1, %s3479_s21   ;;  %s4240_s15 = smov %s3459_s16 }
 0x2b5   : > { %p11_p12 = scmp.ge.s32.totalorder %s14_s21, 12   ;;  %s4241_s16 = smov %s3575_s5 }
 0x2b6   : > { %s4242_s17 = smov %s3471_s19  ;;  %s4243_s18 = smov %s3475_s20 }
 0x2b7   : > { %s4244_s19 = smov %s4247_s22  ;;  %s4245_s20 = smov %s4251_s23 }
 0x2b8   :  { %13 = sbr.rel (!%p11_p12) target bundleno = 4 (0x4), region = 171 }

// kernel: decoder_cnn_forward.9
= control target key start
LH: loop header
LB: loop body
LE: loop exit
PB: predicated region body
PF: predicated region fallthrough
CT: control target
= control target key end

     0   :  { %s4697_s15 = smov 0   ;;  %s4699_s16 = smov 0   ;;  %s5852_s0 = inlined_call_operand.vmem [shape: bf16[2,16,20480], index: 0, kind: input, shape index: {}]   ;;  %s5853_s1 = inlined_call_operand.vmem [shape: bf16[2,16,3840], index: 1, kind: input, shape index: {}]   ;;  %s5854_s2 = inlined_call_operand.vmem [shape: bf16[9,3,16], index: 2, kind: input, shape index: {}]   ;;  %s5855_s3 = inlined_call_operand.vmem [shape: f32[3,1], index: 3, kind: input, shape index: {}]   ;;  %s5856_s4 = inlined_call_operand.vmem [shape: f32[2,3,20480], index: 4, kind: output, shape index: {}]  }
   0x1   :  { %s4701_s17 = smov 0   ;;  %s4703_s18 = smov 0  }
   0x2   :  { %s4705_s19 = smov 0   ;;  %s4707_s20 = smov 0  }
   0x3   :  { %s4709_s21 = smov 0  }
   0x4 LB: > { %s23_s22 = sadd.s32 1, %s4653_s19  ;;  %s26_s23 = sadd.s32 1, %s4657_s20  ;;  %s4661_s21 = sphi %s4709_s21, %s14_s21   ;;  %s4657_s20 = sphi %s4707_s20, %s5863_s20   ;;  %s4653_s19 = sphi %s4705_s19, %s5862_s19   ;;  %s4649_s18 = sphi %s4703_s18, %s5861_s18   ;;  %s4645_s17 = sphi %s4701_s17, %s5860_s17   ;;  %s4641_s16 = sphi %s4699_s16, %s5859_s16   ;;  %s4637_s15 = sphi %s4697_s15, %s5858_s15  }
   0x5   : > { %p24_p0 = scmp.ge.s32.totalorder %s23_s22, 10  ;;  %p42_p1 = scmp.ne.s32.totalorder %s4641_s16, %s4637_s15 }
   0x6   : > { %p43_p2 = scmp.eq.s32.totalorder %s4661_s21, 0  ;;  %s35_s28 = sadd.s32 1, %s4641_s16 }
   0x7   : > { %s5865_s22 = smov (%p24_p0, %s23_s22), 0  ;;  %s5867_s23 = smov (!%p24_p0, %s26_s23), %s4657_s20 }
   0x8   : > { %p4740_p3 = por %p43_p2, %p42_p1  ;;  %p28_p4 = scmp.ge.s32.totalorder %s5867_s23, 2 }
   0x9   : > { %s31_s25 = ssub.s32 %s4653_s19, %s5865_s22  ;;  %p4418_p6 = scmp.ge.s32.totalorder %s4661_s21, 20 }
   0xa   : > { %s5869_s23 = smov (%p28_p4, %s5867_s23), 0 }
   0xb   : > { %s30_s26 = ssub.s32 %s4657_s20, %s5869_s23  ;;  %172 = sbr.rel (%p4418_p6) target bundleno = 45 (0x2d), region = 24 }
   0xc   : > { %s32_s27 = sor.u32 %s31_s25, %s30_s26 }
   0xd   : > { %p33_p5 = scmp.eq.s32.totalorder %s32_s27, 0 }
   0xf   : > { %s4752_s29 = scalar_select %p33_p5, %s4641_s16, %s35_s28  }
  0x12   : > { %175 = sbr.rel (!%p4740_p3) target bundleno = 34 (0x22), region = 28  ;;  %s177_s30 = sand.u32 (%p4740_p3), 1, %s4641_s16  }
  0x13   : > { %s4420_s5 = sshll.u32 (%p4740_p3), %s4653_s19, 4  ;;  %s4419_s6 = sshll.u32 (%p4740_p3), %s177_s30, 7 }
  0x14   : > { %s4532_s7 = smul.u32 (%p4740_p3), 320, %s4657_s20  ;;  %s179_s13 = scalar_lea.vmem (%p4740_p3), [#allocation3], %s4419_s6 }
  0x16   : > { %s182_s8 = sadd.s32 (%p4740_p3), %s4532_s7, %s4420_s5 }
  0x17   : > { %s4421_s9 = sshll.u32 (%p4740_p3), %s182_s8, 2 }
  0x18   : > { %s4763_s12 = scalar_lea.vmem (%p4740_p3), %s5852_s0, %s4421_s9 }
  0x19   : > { %v197_v0 = vld [vmem:[%s4763_s12] sm:$0xff]  ;;  %v199_v1 = vld [vmem:[%s4763_s12 + $0x8] sm:$0xff]  ;;  %v201_v2 = vld [vmem:[%s4763_s12 + $0x10] sm:$0xff] }
  0x1a   : > { %198 = vst [vmem:[%s179_s13] sm:$0xff] %v197_v0  ;;  %200 = vst [vmem:[%s179_s13 + $0x8] sm:$0xff] %v199_v1  ;;  %v203_v3 = vld [vmem:[%s4763_s12 + $0x18] sm:$0xff]  ;;  %v205_v4 = vld [vmem:[%s4763_s12 + $0x20] sm:$0xff] }
  0x1b   : > { %202 = vst [vmem:[%s179_s13 + $0x10] sm:$0xff] %v201_v2  ;;  %v207_v5 = vld [vmem:[%s4763_s12 + $0x28] sm:$0xff]  ;;  %204 = vst [vmem:[%s179_s13 + $0x18] sm:$0xff] %v203_v3  ;;  %v209_v6 = vld [vmem:[%s4763_s12 + $0x30] sm:$0xff] }
  0x1c   : > { %206 = vst [vmem:[%s179_s13 + $0x20] sm:$0xff] %v205_v4  ;;  %208 = vst [vmem:[%s179_s13 + $0x28] sm:$0xff] %v207_v5  ;;  %v211_v7 = vld [vmem:[%s4763_s12 + $0x38] sm:$0xff]  ;;  %v213_v8 = vld [vmem:[%s4763_s12 + $0x280] sm:$0xff] }
  0x1d   : > { %210 = vst [vmem:[%s179_s13 + $0x30] sm:$0xff] %v209_v6  ;;  %212 = vst [vmem:[%s179_s13 + $0x38] sm:$0xff] %v211_v7  ;;  %v215_v9 = vld [vmem:[%s4763_s12 + $0x288] sm:$0xff]  ;;  %v217_v10 = vld [vmem:[%s4763_s12 + $0x290] sm:$0xff] }
  0x1e   : > { %214 = vst [vmem:[%s179_s13 + $0x40] sm:$0xff] %v213_v8  ;;  %v219_v11 = vld [vmem:[%s4763_s12 + $0x298] sm:$0xff]  ;;  %216 = vst [vmem:[%s179_s13 + $0x48] sm:$0xff] %v215_v9  ;;  %v221_v12 = vld [vmem:[%s4763_s12 + $0x2a0] sm:$0xff] }
  0x1f   : > { %218 = vst [vmem:[%s179_s13 + $0x50] sm:$0xff] %v217_v10  ;;  %220 = vst [vmem:[%s179_s13 + $0x58] sm:$0xff] %v219_v11  ;;  %v223_v13 = vld [vmem:[%s4763_s12 + $0x2a8] sm:$0xff]  ;;  %v225_v14 = vld [vmem:[%s4763_s12 + $0x2b0] sm:$0xff] }
  0x20   : > { %222 = vst [vmem:[%s179_s13 + $0x60] sm:$0xff] %v221_v12  ;;  %224 = vst [vmem:[%s179_s13 + $0x68] sm:$0xff] %v223_v13  ;;  %v227_v15 = vld [vmem:[%s4763_s12 + $0x2b8] sm:$0xff] }
  0x21   : > { %226 = vst [vmem:[%s179_s13 + $0x70] sm:$0xff] %v225_v14  ;;  %228 = vst [vmem:[%s179_s13 + $0x78] sm:$0xff] %v227_v15 }
  0x22 PF: > { %234 = sbr.rel (!%p4740_p3) target bundleno = 45 (0x2d), region = 51  ;;  %s236_s14 = sand.u32 (%p4740_p3), 1, %s4641_s16  }
  0x23   : > { %s239_s25 = smul.u32 (%p4740_p3), 3, %s4653_s19 }
  0x24   : > { %s4533_s26 = smul.u32 (%p4740_p3), 24, %s236_s14 }
  0x25   : > { %s4534_s27 = smul.u32 (%p4740_p3), 60, %s4657_s20 }
  0x26   : > { %s238_s8 = scalar_lea.vmem (%p4740_p3), [#allocation4], %s4533_s26 }
  0x27   : > { %s241_s28 = sadd.s32 (%p4740_p3), %s4534_s27, %s239_s25 }
  0x28   : > { %s4422_s30 = sshll.u32 (%p4740_p3), %s241_s28, 2 }
  0x29   : > { %s243_s7 = scalar_lea.vmem %s5853_s1, %s4422_s30 }
  0x2a   : > { %v258_v16 = vld [vmem:[%s243_s7] sm:$0xff]  ;;  %v260_v17 = vld [vmem:[%s243_s7 + $0x78] sm:$0xff]  ;;  %v4423_v18 = vld [vmem:[%s243_s7 + $0x8] sm:$0xf] }
  0x2b   : > { %259 = vst [vmem:[%s238_s8] sm:$0xff] %v258_v16  ;;  %261 = vst [vmem:[%s238_s8 + $0xc] sm:$0xff] %v260_v17  ;;  %v4425_v19 = vld [vmem:[%s243_s7 + $0x80] sm:$0xf] }
  0x2c   : > { %4424 = vst [vmem:[%s238_s8 + $0x8] sm:$0xf] %v4423_v18  ;;  %4426 = vst [vmem:[%s238_s8 + $0x14] sm:$0xf] %v4425_v19 }
  0x2d PF: > { %p4427_p7 = scmp.ge.s32.totalorder %s4661_s21, 1  ;;  %p277_p8 = scmp.lt.s32.totalorder %s4661_s21, 21 }
  0x2f   : > { %p278_p9 = pnand %p4427_p7, %p277_p8 }
  0x30   : > { %s284_s24 = sand.u32 (!%p278_p9), 1, %s4637_s15   ;;  %v4663_v23 = vmov (!%p278_p9), 0   ;;  %s4664_s15 = smov (!%p278_p9), 127   ;;  %vm543_vm0 = vcmask (!%p278_p9), 1039360   ;;  %v4947_v62 = vld [vmem:[%s5854_s2 + $0x2] sm:$0x3] (!%p278_p9) }
  0x31   : > { %281 = sbr.rel (%p278_p9) target bundleno = 686 (0x2ae), region = 77  ;;  %s4428_s9 = sshll.u32 (!%p278_p9), %s284_s24, 7  ;;  %612 = vmatprep.mubr.bf16.mxu0 (!%p278_p9), %v4663_v23  ;;  %653 = vmatprep.mubr.bf16.mxu1 (!%p278_p9), %v4663_v23  ;;  %vm576_vm1 = vcmask (!%p278_p9), 130048   ;;  %vm1275_vm2 = vcmask (!%p278_p9), 1031168   ;;  %vm1725_vm3 = vcmask (!%p278_p9), 916480   ;;  %vm2141_vm4 = vcmask (!%p278_p9), 908288  }
  0x32   : > { %s4792_s10 = scalar_lea.vmem (!%p278_p9), [#allocation3], %s4428_s9  ;;  %s4535_s11 = smul.u32 (!%p278_p9), 24, %s284_s24  ;;  %4602 = vset.pattern.permute.xlu0 (!%p278_p9), %v4663_v23  ;;  %vm2557_vm5 = vcmask (!%p278_p9), 900096   ;;  %vm3007_vm6 = vcmask (!%p278_p9), 785408   ;;  %vm3423_vm7 = vcmask (!%p278_p9), 777216   ;;  %vm3839_vm8 = vcmask (!%p278_p9), 769024  }
  0x33   : > { %v338_v20 = vld [vmem:[%s4792_s10 + $0x8] sm:$0xff] (!%p278_p9)  ;;  %v337_v22 = vld [vmem:[%s4792_s10] sm:$0xff] (!%p278_p9)  ;;  %v339_v26 = vld [vmem:[%s4792_s10 + $0x10] sm:$0xff] (!%p278_p9)  ;;  %s4665_s13 = smov (!%p278_p9), 126   ;;  %s4666_s14 = smov (!%p278_p9), 112  }
  0x34   : > { %v346_v21 = vld [vmem:[%s4792_s10 + $0x48] sm:$0xff] (!%p278_p9)  ;;  %v345_v25 = vld [vmem:[%s4792_s10 + $0x40] sm:$0xff] (!%p278_p9)  ;;  %v347_v27 = vld [vmem:[%s4792_s10 + $0x50] sm:$0xff] (!%p278_p9)  ;;  %s4815_s12 = scalar_lea.vmem (!%p278_p9), [#allocation4], %s4535_s11  ;;  %s4667_s25 = smov (!%p278_p9), 111  }
  0x35   : > { %v4799_v24 = vcombine.high (!%p278_p9), %v338_v20, %v346_v21  ;;  %v4805_v28 = vcombine.high (!%p278_p9), %v337_v22, %v345_v25  ;;  %v4809_v29 = vcombine.low (!%p278_p9), %v339_v26, %v347_v27  ;;  %v4813_v30 = vcombine.low (!%p278_p9), %v338_v20, %v346_v21  ;;  %v340_v33 = vld [vmem:[%s4792_s10 + $0x18] sm:$0xff] (!%p278_p9)  ;;  %v341_v37 = vld [vmem:[%s4792_s10 + $0x20] sm:$0xff] (!%p278_p9)  ;;  %v342_v41 = vld [vmem:[%s4792_s10 + $0x28] sm:$0xff] (!%p278_p9)  ;;  %s4668_s28 = smov (!%p278_p9), 110   ;;  %s4669_s6 = smov (!%p278_p9), 96  }
  0x36   : > { %v4819_v31 = vcombine.high (!%p278_p9), %v339_v26, %v347_v27  ;;  %v4823_v32 = vcombine.low (!%p278_p9), %v337_v22, %v345_v25  ;;  %v348_v34 = vld [vmem:[%s4792_s10 + $0x58] sm:$0xff] (!%p278_p9)  ;;  %v349_v38 = vld [vmem:[%s4792_s10 + $0x60] sm:$0xff] (!%p278_p9)  ;;  %v350_v42 = vld [vmem:[%s4792_s10 + $0x68] sm:$0xff] (!%p278_p9)  ;;  %s4670_s24 = smov (!%p278_p9), 95   ;;  %s4671_s11 = smov (!%p278_p9), 94  }
  0x37   : > { %515 = vrot.lane.b32.xlu1 (!%p278_p9), %v4799_v24, %s4664_s15  ;;  %511 = vrot.lane.b32.xlu0 (!%p278_p9), %v4805_v28, %s4664_s15  ;;  %v4829_v35 = vcombine.high (!%p278_p9), %v340_v33, %v348_v34  ;;  %v4833_v36 = vcombine.low (!%p278_p9), %v340_v33, %v348_v34  ;;  %v4839_v39 = vcombine.high (!%p278_p9), %v341_v37, %v349_v38  ;;  %v343_v45 = vld [vmem:[%s4792_s10 + $0x30] sm:$0xff] (!%p278_p9)  ;;  %v344_v49 = vld [vmem:[%s4792_s10 + $0x38] sm:$0xff] (!%p278_p9)  ;;  %p327_p10 = scmp.lt.s32.totalorder (!%p278_p9), %s4649_s18, 1  ;;  %s4429_s8 = sshll.u32 (!%p278_p9), %s4645_s17, 4 }
  0x38   : > { %v4843_v40 = vcombine.low %v341_v37, %v349_v38  ;;  %v4849_v43 = vcombine.high %v342_v41, %v350_v42  ;;  %v4853_v44 = vcombine.low %v342_v41, %v350_v42  ;;  %v351_v46 = vld [vmem:[%s4792_s10 + $0x70] sm:$0xff]  ;;  %v352_v50 = vld [vmem:[%s4792_s10 + $0x78] sm:$0xff]  ;;  %p329_p11 = scmp.lt.s32.totalorder %s4429_s8, 159 }
  0x39   : > { %v4859_v47 = vcombine.high %v343_v45, %v351_v46  ;;  %v4863_v48 = vcombine.low %v343_v45, %v351_v46  ;;  %v4869_v51 = vcombine.high %v344_v49, %v352_v50  ;;  %v4873_v52 = vcombine.low %v344_v49, %v352_v50  ;;  %v4880_v53 = vld [vmem:[%s4815_s12] ss:$12 sps:$4 sm:$0xff]   ;;  %v4918_v54 = vld [vmem:[%s4815_s12 + $0x4] ss:$12 sps:$4 sm:$0xff]   ;;  %s5871_s18 = smov (!%p327_p10, %s4649_s18), 1 }
  0x3a   : > { %s5873_s8 = smov (!%p329_p11, %s4429_s8), 159 }
  0x3b   : > { %517 = vrot.lane.b32.xlu1 %v4809_v29, %s4664_s15  ;;  %513 = vrot.lane.b32.xlu0 %v4813_v30, %s4664_s15 }
  0x3f   : > { %519 = vrot.lane.b32.xlu1 %v4819_v31, %s4664_s15  ;;  %509 = vrot.lane.b32.xlu0 %v4823_v32, %s4664_s15 }
  0x43   : > { %523 = vrot.lane.b32.xlu1 %v4829_v35, %s4664_s15  ;;  %521 = vrot.lane.b32.xlu0 %v4833_v36, %s4664_s15 }
  0x47   : > { %527 = vrot.lane.b32.xlu1 %v4839_v39, %s4664_s15  ;;  %525 = vrot.lane.b32.xlu0 %v4843_v40, %s4664_s15 }
  0x4b   : > { %531 = vrot.lane.b32.xlu1 %v4849_v43, %s4664_s15  ;;  %529 = vrot.lane.b32.xlu0 %v4853_v44, %s4664_s15 }
  0x4f   : > { %535 = vrot.lane.b32.xlu1 %v4859_v47, %s4664_s15  ;;  %533 = vrot.lane.b32.xlu0 %v4863_v48, %s4664_s15 }
  0x53   : > { %539 = vrot.lane.b32.xlu1 %v4869_v51, %s4664_s15  ;;  %537 = vrot.lane.b32.xlu0 %v4873_v52, %s4664_s15 }
  0x57   : > { %1243 = vrot.lane.b32.xlu1 %v4805_v28, %s4665_s13  ;;  %541 = vrot.lane.b32.xlu0 %v4880_v53, %s4664_s15 }
  0x5b   : > { %1247 = vrot.lane.b32.xlu1 %v4799_v24, %s4665_s13  ;;  %1245 = vrot.lane.b32.xlu0 %v4813_v30, %s4665_s13 }
  0x5f   : > { %1241 = vrot.lane.b32.xlu1 %v4823_v32, %s4665_s13  ;;  %1249 = vrot.lane.b32.xlu0 %v4809_v29, %s4665_s13 }
  0x63   : > { %1253 = vrot.lane.b32.xlu1 %v4833_v36, %s4665_s13  ;;  %1251 = vrot.lane.b32.xlu0 %v4819_v31, %s4665_s13 }
  0x67   : > { %1257 = vrot.lane.b32.xlu1 %v4843_v40, %s4665_s13  ;;  %1255 = vrot.lane.b32.xlu0 %v4829_v35, %s4665_s13 }
  0x6b   : > { %1261 = vrot.lane.b32.xlu1 %v4853_v44, %s4665_s13  ;;  %1259 = vrot.lane.b32.xlu0 %v4839_v39, %s4665_s13 }
  0x6f   : > { %1265 = vrot.lane.b32.xlu1 %v4863_v48, %s4665_s13  ;;  %1263 = vrot.lane.b32.xlu0 %v4849_v43, %s4665_s13 }
  0x73   : > { %1269 = vrot.lane.b32.xlu1 %v4873_v52, %s4665_s13  ;;  %1267 = vrot.lane.b32.xlu0 %v4859_v47, %s4665_s13 }
  0x77   : > { %1273 = vrot.lane.b32.xlu1 %v4880_v53, %s4665_s13  ;;  %1271 = vrot.lane.b32.xlu0 %v4869_v51, %s4665_s13 }
  0x7b   : > { %1695 = vrot.lane.b32.xlu1 %v4799_v24, %s4666_s14  ;;  %1693 = vrot.lane.b32.xlu0 %v4813_v30, %s4666_s14 }
  0x7f   : > { %1699 = vrot.lane.b32.xlu1 %v4819_v31, %s4666_s14  ;;  %1697 = vrot.lane.b32.xlu0 %v4809_v29, %s4666_s14 }
  0x83   : > { %1701 = vrot.lane.b32.xlu1 %v4833_v36, %s4666_s14  ;;  %1691 = vrot.lane.b32.xlu0 %v4805_v28, %s4666_s14 }
  0x87   : > { %1705 = vrot.lane.b32.xlu1 %v4843_v40, %s4666_s14  ;;  %1703 = vrot.lane.b32.xlu0 %v4829_v35, %s4666_s14 }
  0x8b   : > { %1709 = vrot.lane.b32.xlu1 %v4853_v44, %s4666_s14  ;;  %1707 = vrot.lane.b32.xlu0 %v4839_v39, %s4666_s14 }
  0x8f   : > { %1713 = vrot.lane.b32.xlu1 %v4863_v48, %s4666_s14  ;;  %1711 = vrot.lane.b32.xlu0 %v4849_v43, %s4666_s14 }
  0x93   : > { %1717 = vrot.lane.b32.xlu1 %v4873_v52, %s4666_s14  ;;  %1715 = vrot.lane.b32.xlu0 %v4859_v47, %s4666_s14 }
  0x97   : > { %1721 = vrot.lane.b32.xlu1 %v4880_v53, %s4666_s14  ;;  %1719 = vrot.lane.b32.xlu0 %v4869_v51, %s4666_s14 }
  0x9b   : > { %2109 = vrot.lane.b32.xlu1 %v4813_v30, %s4667_s25  ;;  %1723 = vrot.lane.b32.xlu0 %v4918_v54, %s4666_s14 }
  0x9f   : > { %2113 = vrot.lane.b32.xlu1 %v4809_v29, %s4667_s25  ;;  %2111 = vrot.lane.b32.xlu0 %v4799_v24, %s4667_s25 }
  0xa3   : > { %2107 = vrot.lane.b32.xlu1 %v4805_v28, %s4667_s25  ;;  %2115 = vrot.lane.b32.xlu0 %v4819_v31, %s4667_s25 }
  0xa7   : > { %2119 = vrot.lane.b32.xlu1 %v4829_v35, %s4667_s25  ;;  %2117 = vrot.lane.b32.xlu0 %v4833_v36, %s4667_s25 }
  0xa9   : > { %v516_v55 = vpop.permute.xlu1 %515  ;;  %v512_v56 = vpop.permute.xlu0 %511 }
  0xab   : > { %2123 = vrot.lane.b32.xlu1 %v4839_v39, %s4667_s25  ;;  %2121 = vrot.lane.b32.xlu0 %v4843_v40, %s4667_s25 }
  0xad   : > { %v518_v57 = vpop.permute.xlu1 %517  ;;  %v514_v58 = vpop.permute.xlu0 %513 }
  0xae   : > { %v547_v59 = vsel %vm543_vm0, %v516_v55, %v518_v57  ;;  %v545_v60 = vsel %vm543_vm0, %v512_v56, %v514_v58  ;;  %v546_v61 = vsel %vm543_vm0, %v514_v58, %v516_v55 }
  0xaf   : > { %621 = vmatprep.subr.bf16.mxu1 %v547_v59  ;;  %2127 = vrot.lane.b32.xlu1 %v4849_v43, %s4667_s25 }
  0xb0   : > { %580 = vmatprep.subr.bf16.mxu0 %v545_v60  ;;  %622 = vmatpush1.bf16.msra.mxu1 %v546_v61 }
  0xb1   : > { %v520_v63 = vpop.permute.xlu1 %519  ;;  %2125 = vrot.lane.b32.xlu0 %v4853_v44, %s4667_s25  ;;  %v510_v0 = vpop.permute.xlu0 %509 }
  0xb2   : > { %v544_v1 = vsel %vm543_vm0, %v510_v0, %v512_v56  ;;  %v548_v5 = vsel %vm543_vm0, %v518_v57, %v520_v63 }
  0xb3   : > { %4452 = vmatmul.mubr.msk.bf16.vlgmr.msra.gmra.mrb[0].mxu1 %vm576_vm1, %v4947_v62  ;;  %2131 = vrot.lane.b32.xlu1 %v4859_v47, %s4667_s25 }
  0xb4   : > { %581 = vmatpush1.bf16.msra.mxu0 %v544_v1  ;;  %735 = vmatprep.mubr.bf16.mxu1 %v4663_v23 }
  0xb5   : > { %v524_v2 = vpop.permute.xlu1 %523  ;;  %2129 = vrot.lane.b32.xlu0 %v4863_v48, %s4667_s25  ;;  %v522_v3 = vpop.permute.xlu0 %521 }
  0xb6   : > { %v549_v4 = vsel %vm543_vm0, %v520_v63, %v522_v3  ;;  %v550_v9 = vsel %vm543_vm0, %v522_v3, %v524_v2 }
  0xb7   : > { %4451 = vmatmul.mubr.msk.bf16.vlgmr.msra.gmra.mrb[0].mxu0 %vm576_vm1, %v4947_v62  ;;  %2135 = vrot.lane.b32.xlu1 %v4869_v51, %s4667_s25 }
  0xb8   : > { %662 = vmatprep.subr.bf16.mxu0 %v549_v4  ;;  %694 = vmatprep.mubr.bf16.mxu0 %v4663_v23 }
  0xb9   : > { %663 = vmatpush1.bf16.msra.mxu0 %v548_v5  ;;  %v528_v6 = vpop.permute.xlu1 %527  ;;  %2133 = vrot.lane.b32.xlu0 %v4873_v52, %s4667_s25  ;;  %v526_v7 = vpop.permute.xlu0 %525 }
  0xba   : > { %v551_v8 = vsel %vm543_vm0, %v524_v2, %v526_v7  ;;  %v552_v13 = vsel %vm543_vm0, %v526_v7, %v528_v6 }
  0xbb   : > { %2139 = vrot.lane.b32.xlu1 %v4918_v54, %s4667_s25  ;;  %703 = vmatprep.subr.bf16.mxu1 %v551_v8 }
  0xbc   : > { %704 = vmatpush1.bf16.msra.mxu1 %v550_v9 }
  0xbd   : > { %v532_v10 = vpop.permute.xlu1 %531  ;;  %2137 = vrot.lane.b32.xlu0 %v4880_v53, %s4667_s25  ;;  %v530_v11 = vpop.permute.xlu0 %529 }
  0xbe   : > { %v553_v12 = vsel %vm543_vm0, %v528_v6, %v530_v11  ;;  %v554_v17 = vsel %vm543_vm0, %v530_v11, %v532_v10  ;;  %v5136_v6 = vld [vmem:[%s5854_s2 + $0x4] sm:$0x3] }
  0xbf   : > { %4453 = vmatmul.mubr.msk.bf16.vlgmr.msra.gmra.mrb[4].mxu0 %vm576_vm1, %v4947_v62  ;;  %2527 = vrot.lane.b32.xlu1 %v4799_v24, %s4668_s28 }
  0xc0   : > { %4454 = vmatmul.mubr.msk.bf16.vlgmr.msra.gmra.mrb[4].mxu1 %vm576_vm1, %v4947_v62  ;;  %744 = vmatprep.subr.bf16.mxu0 %v553_v12 }
  0xc1   : > { %745 = vmatpush1.bf16.msra.mxu0 %v552_v13  ;;  %v536_v14 = vpop.permute.xlu1 %535  ;;  %776 = vmatprep.mubr.bf16.mxu0 %v4663_v23  ;;  %v534_v15 = vpop.permute.xlu0 %533 }
  0xc2   : > { %817 = vmatprep.mubr.bf16.mxu1 %v4663_v23  ;;  %2525 = vrot.lane.b32.xlu0 %v4813_v30, %s4668_s28  ;;  %v555_v16 = vsel %vm543_vm0, %v532_v10, %v534_v15  ;;  %v556_v21 = vsel %vm543_vm0, %v534_v15, %v536_v14 }
  0xc3   : > { %2531 = vrot.lane.b32.xlu1 %v4819_v31, %s4668_s28  ;;  %785 = vmatprep.subr.bf16.mxu1 %v555_v16 }
  0xc4   : > { %786 = vmatpush1.bf16.msra.mxu1 %v554_v17 }
  0xc5   : > { %v540_v18 = vpop.permute.xlu1 %539  ;;  %v538_v19 = vpop.permute.xlu0 %537 }
  0xc6   : > { %2529 = vrot.lane.b32.xlu0 %v4809_v29, %s4668_s28  ;;  %v557_v20 = vsel %vm543_vm0, %v536_v14, %v538_v19  ;;  %v558_v27 = vsel %vm543_vm0, %v538_v19, %v540_v18 }
  0xc7   : > { %4455 = vmatmul.mubr.msk.bf16.vlgmr.msra.gmra.mrb[8].mxu0 %vm576_vm1, %v4947_v62  ;;  %2533 = vrot.lane.b32.xlu1 %v4833_v36, %s4668_s28 }
  0xc8   : > { %4456 = vmatmul.mubr.msk.bf16.vlgmr.msra.gmra.mrb[8].mxu1 %vm576_vm1, %v4947_v62  ;;  %826 = vmatprep.subr.bf16.mxu0 %v557_v20 }
  0xc9   : > { %827 = vmatpush1.bf16.msra.mxu0 %v556_v21  ;;  %858 = vmatprep.mubr.bf16.mxu0 %v4663_v23  ;;  %v5001_v22 = vpop.permute.xlu1 %1243  ;;  %v542_v25 = vpop.permute.xlu0 %541 }
  0xca   : > { %899 = vmatprep.mubr.bf16.mxu1 %v4663_v23  ;;  %911 = vmatprep.subr.bf16.mxu0 %v4805_v28  ;;  %v559_v26 = vsel %vm543_vm0, %v540_v18, %v542_v25 }
  0xcb   : > { %2523 = vrot.lane.b32.xlu0 %v4805_v28, %s4668_s28  ;;  %2537 = vrot.lane.b32.xlu1 %v4843_v40, %s4668_s28 }
  0xcc   : > { %867 = vmatprep.subr.bf16.mxu1 %v559_v26  ;;  %v5211_v26 = vld [vmem:[%s4815_s12 + $0x8] ss:$12 sps:$4 sm:$0xff]  }
  0xcd   : > { %868 = vmatpush1.bf16.msra.mxu1 %v558_v27  ;;  %v5011_v33 = vpop.permute.xlu1 %1247  ;;  %v5014_v34 = vpop.permute.xlu0 %1245 }
  0xce   : > { %952 = vmatprep.subr.bf16.mxu1 %v4799_v24  ;;  %v1277_v58 = vsel %vm1275_vm2, %v5001_v22, %v5014_v34  ;;  %v1278_v2 = vsel %vm1275_vm2, %v5014_v34, %v5011_v33 }
  0xcf   : > { %4457 = vmatmul.mubr.msk.bf16.vlgmr.msra.gmra.mrb[12].mxu0 %vm576_vm1, %v4947_v62  ;;  %2535 = vrot.lane.b32.xlu0 %v4829_v35, %s4668_s28 }
  0xd0   : > { %4458 = vmatmul.mubr.msk.bf16.vlgmr.msra.gmra.mrb[12].mxu1 %vm576_vm1, %v4947_v62  ;;  %912 = vmatpush1.bf16.msra.mxu0 %v4823_v32  ;;  %v472_v32 = vld [vmem:[%s5854_s2] sm:$0x3] }
  0xd1   : > { %953 = vmatpush1.bf16.msra.mxu1 %v4813_v30  ;;  %943 = vmatprep.mubr.bf16.mxu0 %v4663_v23  ;;  %v1242_v28 = vpop.permute.xlu1 %1241  ;;  %v5027_v37 = vpop.permute.xlu0 %1249 }
  0xd2   : > { %984 = vmatprep.mubr.bf16.mxu1 %v4663_v23  ;;  %993 = vmatprep.subr.bf16.mxu0 %v4819_v31  ;;  %v1279_v59 = vsel %vm1275_vm2, %v5011_v33, %v5027_v37  ;;  %v1276_v0 = vsel %vm1275_vm2, %v1242_v28, %v5001_v22 }
  0xd3   : > { %2541 = vrot.lane.b32.xlu1 %v4853_v44, %s4668_s28  ;;  %2539 = vrot.lane.b32.xlu0 %v4839_v39, %s4668_s28 }
  0xd4   : > { %1034 = vmatprep.subr.bf16.mxu1 %v4829_v35 }
  0xd5   : > { %v5037_v38 = vpop.permute.xlu1 %1253  ;;  %v5039_v41 = vpop.permute.xlu0 %1251 }
  0xd6   : > { %v1281_v3 = vsel %vm1275_vm2, %v5039_v41, %v5037_v38  ;;  %v1280_v9 = vsel %vm1275_vm2, %v5027_v37, %v5039_v41 }
  0xd7   : > { %4459 = vmatmul.mubr.msk.bf16.vlgmr.msra.gmra.mrb[16].mxu0 %vm576_vm1, %v472_v32  ;;  %2545 = vrot.lane.b32.xlu1 %v4863_v48, %s4668_s28 }
  0xd8   : > { %4460 = vmatmul.mubr.msk.bf16.vlgmr.msra.gmra.mrb[16].mxu1 %vm576_vm1, %v472_v32  ;;  %994 = vmatpush1.bf16.msra.mxu0 %v4809_v29 }
  0xd9   : > { %1035 = vmatpush1.bf16.msra.mxu1 %v4833_v36  ;;  %1025 = vmatprep.mubr.bf16.mxu0 %v4663_v23  ;;  %v5048_v42 = vpop.permute.xlu1 %1257  ;;  %v5053_v45 = vpop.permute.xlu0 %1255 }
  0xda   : > { %1066 = vmatprep.mubr.bf16.mxu1 %v4663_v23  ;;  %2543 = vrot.lane.b32.xlu0 %v4849_v43, %s4668_s28  ;;  %v1283_v1 = vsel %vm1275_vm2, %v5053_v45, %v5048_v42  ;;  %v1282_v11 = vsel %vm1275_vm2, %v5037_v38, %v5053_v45 }
  0xdb   : > { %1075 = vmatprep.subr.bf16.mxu0 %v4839_v39  ;;  %1116 = vmatprep.subr.bf16.mxu1 %v4849_v43 }
  0xdc   : > { %2549 = vrot.lane.b32.xlu1 %v4873_v52, %s4668_s28 }
  0xdd   : > { %v5059_v46 = vpop.permute.xlu1 %1261  ;;  %v5063_v49 = vpop.permute.xlu0 %1259 }
  0xde   : > { %2547 = vrot.lane.b32.xlu0 %v4859_v47, %s4668_s28  ;;  %v1285_v12 = vsel %vm1275_vm2, %v5063_v49, %v5059_v46  ;;  %v1284_v17 = vsel %vm1275_vm2, %v5048_v42, %v5063_v49 }
  0xdf   : > { %4461 = vmatmul.mubr.msk.bf16.vlgmr.msra.gmra.mrb[20].mxu0 %vm576_vm1, %v472_v32 }
  0xe0   : > { %4462 = vmatmul.mubr.msk.bf16.vlgmr.msra.gmra.mrb[20].mxu1 %vm576_vm1, %v472_v32  ;;  %1076 = vmatpush1.bf16.msra.mxu0 %v4843_v40 }
  0xe1   : > { %1117 = vmatpush1.bf16.msra.mxu1 %v4853_v44  ;;  %1107 = vmatprep.mubr.bf16.mxu0 %v4663_v23  ;;  %v5070_v50 = vpop.permute.xlu1 %1265  ;;  %v5074_v55 = vpop.permute.xlu0 %1263 }
  0xe2   : > { %1157 = vmatprep.subr.bf16.mxu0 %v4859_v47  ;;  %1148 = vmatprep.mubr.bf16.mxu1 %v4663_v23  ;;  %v1287_v10 = vsel %vm1275_vm2, %v5074_v55, %v5070_v50  ;;  %v1286_v19 = vsel %vm1275_vm2, %v5059_v46, %v5074_v55 }
  0xe3   : > { %1198 = vmatprep.subr.bf16.mxu1 %v4869_v51  ;;  %2553 = vrot.lane.b32.xlu1 %v4880_v53, %s4668_s28 }
  0xe4   : > { %2551 = vrot.lane.b32.xlu0 %v4869_v51, %s4668_s28 }
  0xe5   : > { %v5081_v56 = vpop.permute.xlu1 %1269  ;;  %v5083_v57 = vpop.permute.xlu0 %1267 }
  0xe6   : > { %v1289_v20 = vsel %vm1275_vm2, %v5083_v57, %v5081_v56  ;;  %v1288_v33 = vsel %vm1275_vm2, %v5070_v50, %v5083_v57  ;;  %v5277_v57 = vld [vmem:[%s5854_s2 + $0x6] sm:$0x3] }
  0xe7   : > { %4463 = vmatmul.mubr.msk.bf16.vlgmr.msra.gmra.mrb[24].mxu0 %vm576_vm1, %v472_v32  ;;  %2975 = vrot.lane.b32.xlu1 %v4799_v24, %s4669_s6 }
  0xe8   : > { %1158 = vmatpush1.bf16.msra.mxu0 %v4863_v48  ;;  %4464 = vmatmul.mubr.msk.bf16.vlgmr.msra.gmra.mrb[24].mxu1 %vm576_vm1, %v472_v32 }
  0xe9   : > { %1199 = vmatpush1.bf16.msra.mxu1 %v4873_v52  ;;  %1311 = vmatprep.subr.bf16.mxu0 %v1277_v58  ;;  %v1274_v60 = vpop.permute.xlu1 %1273  ;;  %v5099_v61 = vpop.permute.xlu0 %1271 }
  0xea   : > { %1352 = vmatprep.subr.bf16.mxu1 %v1279_v59  ;;  %2555 = vrot.lane.b32.xlu0 %v4918_v54, %s4668_s28  ;;  %v1291_v18 = vsel %vm1275_vm2, %v5099_v61, %v1274_v60  ;;  %v1290_v28 = vsel %vm1275_vm2, %v5081_v56, %v5099_v61 }
  0xeb   : > { %1189 = vmatprep.mubr.bf16.mxu0 %v4663_v23  ;;  %1230 = vmatprep.mubr.bf16.mxu1 %v4663_v23 }
  0xec   : > { %2979 = vrot.lane.b32.xlu1 %v4819_v31, %s4669_s6 }
  0xed   : > { %v5105_v62 = vpop.permute.xlu1 %1695  ;;  %v5109_v63 = vpop.permute.xlu0 %1693 }
  0xee   : > { %2977 = vrot.lane.b32.xlu0 %v4809_v29, %s4669_s6  ;;  %v1727_v37 = vsel %vm1725_vm3, %v5109_v63, %v5105_v62 }
  0xef   : > { %4465 = vmatmul.mubr.msk.bf16.vlgmr.msra.gmra.mrb[28].mxu0 %vm576_vm1, %v472_v32 }
  0xf0   : > { %1312 = vmatpush1.bf16.msra.mxu0 %v1276_v0  ;;  %4466 = vmatmul.mubr.msk.bf16.vlgmr.msra.gmra.mrb[28].mxu1 %vm576_vm1, %v472_v32 }
  0xf1   : > { %1353 = vmatpush1.bf16.msra.mxu1 %v1278_v2  ;;  %1393 = vmatprep.subr.bf16.mxu0 %v1281_v3  ;;  %v5124_v4 = vpop.permute.xlu1 %1699  ;;  %v5128_v5 = vpop.permute.xlu0 %1697 }
  0xf2   : > { %1434 = vmatprep.subr.bf16.mxu1 %v1283_v1  ;;  %2973 = vrot.lane.b32.xlu1 %v4813_v30, %s4669_s6  ;;  %v1729_v34 = vsel %vm1725_vm3, %v5128_v5, %v5124_v4  ;;  %v1728_v49 = vsel %vm1725_vm3, %v5105_v62, %v5128_v5 }
  0xf3   : > { %2981 = vrot.lane.b32.xlu0 %v4833_v36, %s4669_s6  ;;  %1343 = vmatprep.mubr.bf16.mxu0 %v4663_v23 }
  0xf4   : > { %1384 = vmatprep.mubr.bf16.mxu1 %v4663_v23 }
  0xf5   : > { %v5139_v7 = vpop.permute.xlu1 %1701  ;;  %v5143_v8 = vpop.permute.xlu0 %1691 }
  0xf6   : > { %2985 = vrot.lane.b32.xlu1 %v4843_v40, %s4669_s6  ;;  %v1726_v45 = vsel %vm1725_vm3, %v5143_v8, %v5109_v63  ;;  %v1730_v60 = vsel %vm1725_vm3, %v5124_v4, %v5139_v7 }
  0xf7   : > { %4468 = vmatmul.mubr.msk.bf16.vlgmr.msra.gmra.mrb[32].mxu0 %vm576_vm1, %v5136_v6  ;;  %2983 = vrot.lane.b32.xlu0 %v4829_v35, %s4669_s6 }
  0xf8   : > { %1394 = vmatpush1.bf16.msra.mxu0 %v1280_v9  ;;  %4469 = vmatmul.mubr.msk.bf16.vlgmr.msra.gmra.mrb[32].mxu1 %vm576_vm1, %v5136_v6 }
  0xf9   : > { %1435 = vmatpush1.bf16.msra.mxu1 %v1282_v11  ;;  %1475 = vmatprep.subr.bf16.mxu0 %v1285_v12  ;;  %v5163_v13 = vpop.permute.xlu1 %1705  ;;  %v5167_v14 = vpop.permute.xlu0 %1703 }
  0xfa   : > { %1516 = vmatprep.subr.bf16.mxu1 %v1287_v10  ;;  %2989 = vrot.lane.b32.xlu1 %v4853_v44, %s4669_s6  ;;  %v1731_v50 = vsel %vm1725_vm3, %v5139_v7, %v5167_v14  ;;  %v1732_v62 = vsel %vm1725_vm3, %v5167_v14, %v5163_v13 }
  0xfb   : > { %2987 = vrot.lane.b32.xlu0 %v4839_v39, %s4669_s6  ;;  %1425 = vmatprep.mubr.bf16.mxu0 %v4663_v23 }
  0xfc   : > { %1466 = vmatprep.mubr.bf16.mxu1 %v4663_v23 }
  0xfd   : > { %v5173_v15 = vpop.permute.xlu1 %1709  ;;  %v5177_v16 = vpop.permute.xlu0 %1707 }
  0xfe   : > { %2993 = vrot.lane.b32.xlu1 %v4863_v48, %s4669_s6  ;;  %v1733_v46 = vsel %vm1725_vm3, %v5163_v13, %v5177_v16  ;;  %v1734_v4 = vsel %vm1725_vm3, %v5177_v16, %v5173_v15 }
  0xff   : > { %4470 = vmatmul.mubr.msk.bf16.vlgmr.msra.gmra.mrb[36].mxu0 %vm576_vm1, %v5136_v6  ;;  %2991 = vrot.lane.b32.xlu0 %v4849_v43, %s4669_s6 }
 0x100   : > { %1476 = vmatpush1.bf16.msra.mxu0 %v1284_v17  ;;  %4471 = vmatmul.mubr.msk.bf16.vlgmr.msra.gmra.mrb[36].mxu1 %vm576_vm1, %v5136_v6 }
 0x101   : > { %1517 = vmatpush1.bf16.msra.mxu1 %v1286_v19  ;;  %1557 = vmatprep.subr.bf16.mxu0 %v1289_v20  ;;  %v5196_v21 = vpop.permute.xlu1 %1713  ;;  %v5200_v22 = vpop.permute.xlu0 %1711 }
 0x102   : > { %1598 = vmatprep.subr.bf16.mxu1 %v1291_v18  ;;  %2997 = vrot.lane.b32.xlu1 %v4873_v52, %s4669_s6  ;;  %v1735_v63 = vsel %vm1725_vm3, %v5173_v15, %v5200_v22 }
 0x103   : > { %2995 = vrot.lane.b32.xlu0 %v4859_v47, %s4669_s6  ;;  %1507 = vmatprep.mubr.bf16.mxu0 %v4663_v23 }
 0x104   : > { %1548 = vmatprep.mubr.bf16.mxu1 %v4663_v23 }
 0x105   : > { %v5206_v25 = vpop.permute.xlu1 %1717  ;;  %v5213_v27 = vpop.permute.xlu0 %1715 }
 0x106   : > { %3001 = vrot.lane.b32.xlu1 %v4880_v53, %s4669_s6  ;;  %v1737_v61 = vsel %vm1725_vm3, %v5196_v21, %v5213_v27  ;;  %v1738_v11 = vsel %vm1725_vm3, %v5213_v27, %v5206_v25  ;;  %v5411_v27 = vld [vmem:[%s5854_s2 + $0x8] sm:$0x3] }
 0x107   : > { %4472 = vmatmul.mubr.msk.bf16.vlgmr.msra.gmra.mrb[40].mxu0 %vm576_vm1, %v5136_v6  ;;  %2999 = vrot.lane.b32.xlu0 %v4869_v51, %s4669_s6 }
 0x108   : > { %1558 = vmatpush1.bf16.msra.mxu0 %v1288_v33  ;;  %4473 = vmatmul.mubr.msk.bf16.vlgmr.msra.gmra.mrb[40].mxu1 %vm576_vm1, %v5136_v6 }
 0x109   : > { %1599 = vmatpush1.bf16.msra.mxu1 %v1290_v28  ;;  %1761 = vmatprep.subr.bf16.mxu0 %v1727_v37  ;;  %v5233_v32 = vpop.permute.xlu1 %1721  ;;  %v5237_v38 = vpop.permute.xlu0 %1719 }
 0x10a   : > { %1802 = vmatprep.subr.bf16.mxu1 %v1729_v34  ;;  %3005 = vrot.lane.b32.xlu1 %v5211_v26, %s4669_s6  ;;  %v1739_v7 = vsel %vm1725_vm3, %v5206_v25, %v5237_v38  ;;  %v1740_v14 = vsel %vm1725_vm3, %v5237_v38, %v5233_v32 }
 0x10b   : > { %3003 = vrot.lane.b32.xlu0 %v4918_v54, %s4669_s6  ;;  %1589 = vmatprep.mubr.bf16.mxu0 %v4663_v23 }
 0x10c   : > { %1630 = vmatprep.mubr.bf16.mxu1 %v4663_v23 }
 0x10d   : > { %v5243_v41 = vpop.permute.xlu1 %2109  ;;  %v1724_v42 = vpop.permute.xlu0 %1723 }
 0x10e   : > { %3393 = vrot.lane.b32.xlu1 %v4809_v29, %s4670_s24  ;;  %v1741_v5 = vsel %vm1725_vm3, %v5233_v32, %v1724_v42 }
 0x10f   : > { %4474 = vmatmul.mubr.msk.bf16.vlgmr.msra.gmra.mrb[44].mxu0 %vm576_vm1, %v5136_v6  ;;  %3391 = vrot.lane.b32.xlu0 %v4799_v24, %s4670_s24 }
 0x110   : > { %1762 = vmatpush1.bf16.msra.mxu0 %v1726_v45  ;;  %4475 = vmatmul.mubr.msk.bf16.vlgmr.msra.gmra.mrb[44].mxu1 %vm576_vm1, %v5136_v6  ;;  %v1736_v6 = vsel %vm1725_vm3, %v5200_v22, %v5196_v21 }
 0x111   : > { %1803 = vmatpush1.bf16.msra.mxu1 %v1728_v49  ;;  %1843 = vmatprep.subr.bf16.mxu0 %v1731_v50  ;;  %v5265_v55 = vpop.permute.xlu1 %2113  ;;  %v5269_v56 = vpop.permute.xlu0 %2111 }
 0x112   : > { %1884 = vmatprep.subr.bf16.mxu1 %v1733_v46  ;;  %3397 = vrot.lane.b32.xlu1 %v4833_v36, %s4670_s24  ;;  %v2143_v15 = vsel %vm2141_vm4, %v5243_v41, %v5269_v56 }
 0x113   : > { %3395 = vrot.lane.b32.xlu0 %v4819_v31, %s4670_s24  ;;  %1793 = vmatprep.mubr.bf16.mxu0 %v4663_v23 }
 0x114   : > { %1834 = vmatprep.mubr.bf16.mxu1 %v4663_v23 }
 0x115   : > { %v5280_v58 = vpop.permute.xlu1 %2107  ;;  %v5284_v59 = vpop.permute.xlu0 %2115 }
 0x116   : > { %3399 = vrot.lane.b32.xlu1 %v4829_v35, %s4670_s24  ;;  %v2145_v12 = vsel %vm2141_vm4, %v5265_v55, %v5284_v59  ;;  %v2142_v20 = vsel %vm2141_vm4, %v5280_v58, %v5243_v41 }
 0x117   : > { %4477 = vmatmul.mubr.msk.bf16.vlgmr.msra.gmra.mrb[48].mxu0 %vm576_vm1, %v5277_v57  ;;  %3389 = vrot.lane.b32.xlu0 %v4813_v30, %s4670_s24 }
 0x118   : > { %1844 = vmatpush1.bf16.msra.mxu0 %v1730_v60  ;;  %4478 = vmatmul.mubr.msk.bf16.vlgmr.msra.gmra.mrb[48].mxu1 %vm576_vm1, %v5277_v57 }
 0x119   : > { %1885 = vmatpush1.bf16.msra.mxu1 %v1732_v62  ;;  %1925 = vmatprep.subr.bf16.mxu0 %v1735_v63  ;;  %v5304_v0 = vpop.permute.xlu1 %2119  ;;  %v5308_v1 = vpop.permute.xlu0 %2117 }
 0x11a   : > { %1966 = vmatprep.subr.bf16.mxu1 %v1737_v61  ;;  %3403 = vrot.lane.b32.xlu1 %v4839_v39, %s4670_s24  ;;  %v2147_v19 = vsel %vm2141_vm4, %v5308_v1, %v5304_v0 }
 0x11b   : > { %1875 = vmatprep.mubr.bf16.mxu0 %v4663_v23  ;;  %3401 = vrot.lane.b32.xlu0 %v4843_v40, %s4670_s24 }
 0x11c   : > { %1916 = vmatprep.mubr.bf16.mxu1 %v4663_v23 }
 0x11d   : > { %v5314_v2 = vpop.permute.xlu1 %2123  ;;  %v5318_v3 = vpop.permute.xlu0 %2121 }
 0x11e   : > { %3407 = vrot.lane.b32.xlu1 %v4849_v43, %s4670_s24  ;;  %v2149_v21 = vsel %vm2141_vm4, %v5318_v3, %v5314_v2 }
 0x11f   : > { %4479 = vmatmul.mubr.msk.bf16.vlgmr.msra.gmra.mrb[52].mxu0 %vm576_vm1, %v5277_v57  ;;  %3405 = vrot.lane.b32.xlu0 %v4853_v44, %s4670_s24 }
 0x120   : > { %1926 = vmatpush1.bf16.msra.mxu0 %v1734_v4  ;;  %4480 = vmatmul.mubr.msk.bf16.vlgmr.msra.gmra.mrb[52].mxu1 %vm576_vm1, %v5277_v57 }
 0x121   : > { %1967 = vmatpush1.bf16.msra.mxu1 %v1736_v6  ;;  %2007 = vmatprep.subr.bf16.mxu0 %v1739_v7  ;;  %v5337_v8 = vpop.permute.xlu1 %2127 }
 0x122   : > { %2048 = vmatprep.subr.bf16.mxu1 %v1741_v5  ;;  %3411 = vrot.lane.b32.xlu1 %v4859_v47, %s4670_s24 }
 0x123   : > { %1957 = vmatprep.mubr.bf16.mxu0 %v4663_v23  ;;  %3409 = vrot.lane.b32.xlu0 %v4863_v48, %s4670_s24  ;;  %v5344_v9 = vpop.permute.xlu0 %2125 }
 0x124   : > { %1998 = vmatprep.mubr.bf16.mxu1 %v4663_v23  ;;  %v2150_v41 = vsel %vm2141_vm4, %v5314_v2, %v5344_v9 }
 0x125   : > { %v5347_v10 = vpop.permute.xlu1 %2131 }
 0x126   : > { %3415 = vrot.lane.b32.xlu1 %v4869_v51, %s4670_s24 }
 0x127   : > { %4481 = vmatmul.mubr.msk.bf16.vlgmr.msra.gmra.mrb[56].mxu0 %vm576_vm1, %v5277_v57  ;;  %3413 = vrot.lane.b32.xlu0 %v4873_v52, %s4670_s24  ;;  %v5361_v13 = vpop.permute.xlu0 %2129 }
 0x128   : > { %2008 = vmatpush1.bf16.msra.mxu0 %v1738_v11  ;;  %4482 = vmatmul.mubr.msk.bf16.vlgmr.msra.gmra.mrb[56].mxu1 %vm576_vm1, %v5277_v57  ;;  %v2153_v28 = vsel %vm2141_vm4, %v5361_v13, %v5347_v10  ;;  %v2152_v42 = vsel %vm2141_vm4, %v5337_v8, %v5361_v13 }
 0x129   : > { %2049 = vmatpush1.bf16.msra.mxu1 %v1740_v14  ;;  %2177 = vmatprep.subr.bf16.mxu0 %v2143_v15  ;;  %v5371_v16 = vpop.permute.xlu1 %2135 }
 0x12a   : > { %2218 = vmatprep.subr.bf16.mxu1 %v2145_v12  ;;  %3419 = vrot.lane.b32.xlu1 %v4918_v54, %s4670_s24 }
 0x12b   : > { %2039 = vmatprep.mubr.bf16.mxu0 %v4663_v23  ;;  %3417 = vrot.lane.b32.xlu0 %v4880_v53, %s4670_s24  ;;  %v5378_v17 = vpop.permute.xlu0 %2133 }
 0x12c   : > { %2080 = vmatprep.mubr.bf16.mxu1 %v4663_v23  ;;  %v2155_v38 = vsel %vm2141_vm4, %v5378_v17, %v5371_v16 }
 0x12d   : > { %v2140_v18 = vpop.permute.xlu1 %2139 }
 0x12e   : > { %3807 = vrot.lane.b32.xlu1 %v4799_v24, %s4671_s11  ;;  %v2144_v24 = vsel %vm2141_vm4, %v5269_v56, %v5265_v55 }
 0x12f   : > { %4483 = vmatmul.mubr.msk.bf16.vlgmr.msra.gmra.mrb[60].mxu0 %vm576_vm1, %v5277_v57  ;;  %3421 = vrot.lane.b32.xlu0 %v5211_v26, %s4670_s24  ;;  %v2138_v22 = vpop.permute.xlu0 %2137  ;;  %s4536_s24 = smul.u32 160, %s5871_s18 }
 0x130   : > { %2178 = vmatpush1.bf16.msra.mxu0 %v2142_v20  ;;  %4484 = vmatmul.mubr.msk.bf16.vlgmr.msra.gmra.mrb[60].mxu1 %vm576_vm1, %v5277_v57 }
 0x131   : > { %2219 = vmatpush1.bf16.msra.mxu1 %v2144_v24  ;;  %2259 = vmatprep.subr.bf16.mxu0 %v2147_v19  ;;  %v5401_v25 = vpop.permute.xlu1 %2527  ;;  %s332_s17 = sadd.s32 %s4536_s24, %s5873_s8 }
 0x132   : > { %3811 = vrot.lane.b32.xlu1 %v4819_v31, %s4671_s11  ;;  %2300 = vmatprep.subr.bf16.mxu1 %v2149_v21  ;;  %v2151_v31 = vsel %vm2141_vm4, %v5344_v9, %v5337_v8  ;;  %s4430_s9 = sshll.u32 %s332_s17, 2 }
 0x133   : > { %2209 = vmatprep.mubr.bf16.mxu0 %v4663_v23  ;;  %3809 = vrot.lane.b32.xlu0 %v4809_v29, %s4671_s11  ;;  %v2146_v29 = vsel %vm2141_vm4, %v5284_v59, %v5308_v1 }
 0x134   : > { %2250 = vmatprep.mubr.bf16.mxu1 %v4663_v23  ;;  %v2526_v33 = vpop.permute.xlu0 %2525 }
 0x135   : > { %v5414_v34 = vpop.permute.xlu1 %2531  ;;  %v2559_v46 = vsel %vm2557_vm5, %v2526_v33, %v5401_v25 }
 0x136   : > { %3805 = vrot.lane.b32.xlu1 %v4813_v30, %s4671_s11  ;;  %v2148_v30 = vsel %vm2141_vm4, %v5304_v0, %v5318_v3 }
 0x137   : > { %4486 = vmatmul.mubr.msk.bf16.vlgmr.msra.gmra.mrb[64].mxu0 %vm576_vm1, %v5411_v27  ;;  %3813 = vrot.lane.b32.xlu0 %v4833_v36, %s4671_s11 }
 0x138   : > { %2260 = vmatpush1.bf16.msra.mxu0 %v2146_v29  ;;  %4487 = vmatmul.mubr.msk.bf16.vlgmr.msra.gmra.mrb[64].mxu1 %vm576_vm1, %v5411_v27  ;;  %v2530_v37 = vpop.permute.xlu0 %2529 }
 0x139   : > { %2301 = vmatpush1.bf16.msra.mxu1 %v2148_v30  ;;  %2341 = vmatprep.subr.bf16.mxu0 %v2151_v31  ;;  %v5436_v32 = vpop.permute.xlu1 %2533  ;;  %v2560_v57 = vsel %vm2557_vm5, %v5401_v25, %v2530_v37  ;;  %v5547_v25 = vld [vmem:[%s5854_s2 + $0xc] sm:$0x3] }
 0x13a   : > { %2382 = vmatprep.subr.bf16.mxu1 %v2153_v28  ;;  %2291 = vmatprep.mubr.bf16.mxu0 %v4663_v23  ;;  %v2562_v61 = vsel %vm2557_vm5, %v5414_v34, %v5436_v32 }
 0x13b   : > { %3817 = vrot.lane.b32.xlu1 %v4843_v40, %s4671_s11  ;;  %3815 = vrot.lane.b32.xlu0 %v4829_v35, %s4671_s11  ;;  %v2157_v40 = vsel %vm2141_vm4, %v2138_v22, %v2140_v18 }
 0x13c   : > { %2332 = vmatprep.mubr.bf16.mxu1 %v4663_v23 }
 0x13d   : > { %v2524_v36 = vpop.permute.xlu0 %2523  ;;  %v2538_v35 = vpop.permute.xlu1 %2537 }
 0x13e   : > { %v2558_v56 = vsel %vm2557_vm5, %v2524_v36, %v2526_v33 }
 0x13f   : > { %4488 = vmatmul.mubr.msk.bf16.vlgmr.msra.gmra.mrb[68].mxu0 %vm576_vm1, %v5411_v27  ;;  %3821 = vrot.lane.b32.xlu1 %v4853_v44, %s4671_s11 }
 0x140   : > { %2342 = vmatpush1.bf16.msra.mxu0 %v2150_v41  ;;  %4489 = vmatmul.mubr.msk.bf16.vlgmr.msra.gmra.mrb[68].mxu1 %vm576_vm1, %v5411_v27 }
 0x141   : > { %2383 = vmatpush1.bf16.msra.mxu1 %v2152_v42  ;;  %2423 = vmatprep.subr.bf16.mxu0 %v2155_v38  ;;  %v2536_v45 = vpop.permute.xlu0 %2535 }
 0x142   : > { %3819 = vrot.lane.b32.xlu0 %v4839_v39, %s4671_s11  ;;  %2464 = vmatprep.subr.bf16.mxu1 %v2157_v40  ;;  %v2154_v39 = vsel %vm2141_vm4, %v5347_v10, %v5378_v17  ;;  %v2563_v55 = vsel %vm2557_vm5, %v5436_v32, %v2536_v45  ;;  %v2564_v62 = vsel %vm2557_vm5, %v2536_v45, %v2538_v35 }
 0x143   : > { %2373 = vmatprep.mubr.bf16.mxu0 %v4663_v23  ;;  %3825 = vrot.lane.b32.xlu1 %v4863_v48, %s4671_s11  ;;  %v2561_v48 = vsel %vm2557_vm5, %v2530_v37, %v5414_v34 }
 0x144   : > { %2414 = vmatprep.mubr.bf16.mxu1 %v4663_v23 }
 0x145   : > { %v2542_v44 = vpop.permute.xlu1 %2541  ;;  %v2540_v49 = vpop.permute.xlu0 %2539 }
 0x146   : > { %3823 = vrot.lane.b32.xlu0 %v4849_v43, %s4671_s11  ;;  %v2156_v43 = vsel %vm2141_vm4, %v5371_v16, %v2138_v22  ;;  %v2566_v3 = vsel %vm2557_vm5, %v2540_v49, %v2542_v44 }
 0x147   : > { %4490 = vmatmul.mubr.msk.bf16.vlgmr.msra.gmra.mrb[72].mxu0 %vm576_vm1, %v5411_v27  ;;  %3829 = vrot.lane.b32.xlu1 %v4873_v52, %s4671_s11 }
 0x148   : > { %2424 = vmatpush1.bf16.msra.mxu0 %v2154_v39  ;;  %4491 = vmatmul.mubr.msk.bf16.vlgmr.msra.gmra.mrb[72].mxu1 %vm576_vm1, %v5411_v27 }
 0x149   : > { %2465 = vmatpush1.bf16.msra.mxu1 %v2156_v43  ;;  %2593 = vmatprep.subr.bf16.mxu0 %v2559_v46  ;;  %v2546_v50 = vpop.permute.xlu1 %2545 }
 0x14a   : > { %3827 = vrot.lane.b32.xlu0 %v4859_v47, %s4671_s11  ;;  %2634 = vmatprep.subr.bf16.mxu1 %v2561_v48  ;;  %v2565_v47 = vsel %vm2557_vm5, %v2538_v35, %v2540_v49 }
 0x14b   : > { %2455 = vmatprep.mubr.bf16.mxu0 %v4663_v23  ;;  %3833 = vrot.lane.b32.xlu1 %v4880_v53, %s4671_s11 }
 0x14c   : > { %2496 = vmatprep.mubr.bf16.mxu1 %v4663_v23  ;;  %v2544_v52 = vpop.permute.xlu0 %2543 }
 0x14d   : > { %v2567_v59 = vsel %vm2557_vm5, %v2542_v44, %v2544_v52  ;;  %v2568_v5 = vsel %vm2557_vm5, %v2544_v52, %v2546_v50 }
 0x14e   : > { %3831 = vrot.lane.b32.xlu0 %v4869_v51, %s4671_s11  ;;  %v2550_v53 = vpop.permute.xlu1 %2549 }
 0x14f   : > { %4492 = vmatmul.mubr.msk.bf16.vlgmr.msra.gmra.mrb[76].mxu0 %vm576_vm1, %v5411_v27  ;;  %3837 = vrot.lane.b32.xlu1 %v5211_v26, %s4671_s11  ;;  %v4494_v26 = vld [vmem:[%s5854_s2 + $0xa] sm:$0x3] }
 0x150   : > { %2594 = vmatpush1.bf16.msra.mxu0 %v2558_v56  ;;  %4493 = vmatmul.mubr.msk.bf16.vlgmr.msra.gmra.mrb[76].mxu1 %vm576_vm1, %v5411_v27  ;;  %v2548_v51 = vpop.permute.xlu0 %2547 }
 0x151   : > { %2635 = vmatpush1.bf16.msra.mxu1 %v2560_v57  ;;  %2675 = vmatprep.subr.bf16.mxu0 %v2563_v55  ;;  %v2570_v10 = vsel %vm2557_vm5, %v2548_v51, %v2550_v53 }
 0x152   : > { %3835 = vrot.lane.b32.xlu0 %v4918_v54, %s4671_s11  ;;  %2716 = vmatprep.subr.bf16.mxu1 %v2565_v47  ;;  %v2569_v54 = vsel %vm2557_vm5, %v2546_v50, %v2548_v51  ;;  %s5797_s11 = scalar_lea.vmem %s5856_s4, %s4430_s9 }
 0x153   : > { %2625 = vmatprep.mubr.bf16.mxu0 %v4663_v23  ;;  %2666 = vmatprep.mubr.bf16.mxu1 %v4663_v23 }
 0x155   : > { %v2554_v58 = vpop.permute.xlu1 %2553 }
 0x156   : > { %v2552_v60 = vpop.permute.xlu0 %2551 }
 0x157   : > { %4495 = vmatmul.mubr.msk.bf16.vlgmr.msra.gmra.mrb[80].mxu0 %vm576_vm1, %v4494_v26  ;;  %v2571_v1 = vsel %vm2557_vm5, %v2550_v53, %v2552_v60  ;;  %v2572_v12 = vsel %vm2557_vm5, %v2552_v60, %v2554_v58  ;;  %v4219_v60 = vld [vmem:[%s5855_s3] sm:$0x7] }
 0x158   : > { %2676 = vmatpush1.bf16.msra.mxu0 %v2562_v61  ;;  %4496 = vmatmul.mubr.msk.bf16.vlgmr.msra.gmra.mrb[80].mxu1 %vm576_vm1, %v4494_v26 }
 0x159   : > { %2717 = vmatpush1.bf16.msra.mxu1 %v2564_v62  ;;  %2757 = vmatprep.subr.bf16.mxu0 %v2567_v59  ;;  %v2976_v63 = vpop.permute.xlu1 %2975 }
 0x15a   : > { %2798 = vmatprep.subr.bf16.mxu1 %v2569_v54  ;;  %2707 = vmatprep.mubr.bf16.mxu0 %v4663_v23 }
 0x15b   : > { %2748 = vmatprep.mubr.bf16.mxu1 %v4663_v23  ;;  %4222 = vperm.xlu0 %4602, %v4219_v60  }
 0x15c   : > { %v2556_v0 = vpop.permute.xlu0 %2555 }
 0x15d   : > { %v2573_v4 = vsel %vm2557_vm5, %v2554_v58, %v2556_v0 }
 0x15e   : > { %v2980_v2 = vpop.permute.xlu1 %2979 }
 0x15f   : > { %4497 = vmatmul.mubr.msk.bf16.vlgmr.msra.gmra.mrb[84].mxu0 %vm576_vm1, %v4494_v26 }
 0x160   : > { %2758 = vmatpush1.bf16.msra.mxu0 %v2566_v3  ;;  %4498 = vmatmul.mubr.msk.bf16.vlgmr.msra.gmra.mrb[84].mxu1 %vm576_vm1, %v4494_v26  ;;  %v2978_v6 = vpop.permute.xlu0 %2977 }
 0x161   : > { %2799 = vmatpush1.bf16.msra.mxu1 %v2568_v5  ;;  %2839 = vmatprep.subr.bf16.mxu0 %v2571_v1  ;;  %v3009_v9 = vsel %vm3007_vm6, %v2976_v63, %v2978_v6  ;;  %v3010_v19 = vsel %vm3007_vm6, %v2978_v6, %v2980_v2 }
 0x162   : > { %2880 = vmatprep.subr.bf16.mxu1 %v2573_v4  ;;  %2789 = vmatprep.mubr.bf16.mxu0 %v4663_v23 }
 0x163   : > { %2830 = vmatprep.mubr.bf16.mxu1 %v4663_v23 }
 0x164   : > { %v2974_v7 = vpop.permute.xlu1 %2973 }
 0x165   : > { %v2982_v8 = vpop.permute.xlu0 %2981  ;;  %v3008_v18 = vsel %vm3007_vm6, %v2974_v7, %v2976_v63  ;;  %v5611_v7 = vld [vmem:[%s5854_s2 + $0xe] sm:$0x3] }
 0x166   : > { %v3011_v11 = vsel %vm3007_vm6, %v2980_v2, %v2982_v8 }
 0x167   : > { %4499 = vmatmul.mubr.msk.bf16.vlgmr.msra.gmra.mrb[88].mxu0 %vm576_vm1, %v4494_v26 }
 0x168   : > { %2840 = vmatpush1.bf16.msra.mxu0 %v2570_v10  ;;  %4500 = vmatmul.mubr.msk.bf16.vlgmr.msra.gmra.mrb[88].mxu1 %vm576_vm1, %v4494_v26  ;;  %v2986_v13 = vpop.permute.xlu1 %2985 }
 0x169   : > { %2881 = vmatpush1.bf16.msra.mxu1 %v2572_v12  ;;  %3043 = vmatprep.subr.bf16.mxu0 %v3009_v9  ;;  %v2984_v14 = vpop.permute.xlu0 %2983 }
 0x16a   : > { %3084 = vmatprep.subr.bf16.mxu1 %v3011_v11  ;;  %2871 = vmatprep.mubr.bf16.mxu0 %v4663_v23  ;;  %v3013_v17 = vsel %vm3007_vm6, %v2984_v14, %v2986_v13  ;;  %v3012_v34 = vsel %vm3007_vm6, %v2982_v8, %v2984_v14 }
 0x16b   : > { %2912 = vmatprep.mubr.bf16.mxu1 %v4663_v23 }
 0x16c   : > { %v2990_v15 = vpop.permute.xlu1 %2989 }
 0x16d   : > { %v2988_v16 = vpop.permute.xlu0 %2987 }
 0x16e   : > { %v3015_v21 = vsel %vm3007_vm6, %v2988_v16, %v2990_v15  ;;  %v3014_v31 = vsel %vm3007_vm6, %v2986_v13, %v2988_v16 }
 0x16f   : > { %4501 = vmatmul.mubr.msk.bf16.vlgmr.msra.gmra.mrb[92].mxu0 %vm576_vm1, %v4494_v26 }
 0x170   : > { %3044 = vmatpush1.bf16.msra.mxu0 %v3008_v18  ;;  %4502 = vmatmul.mubr.msk.bf16.vlgmr.msra.gmra.mrb[92].mxu1 %vm576_vm1, %v4494_v26  ;;  %v2994_v20 = vpop.permute.xlu1 %2993 }
 0x171   : > { %3085 = vmatpush1.bf16.msra.mxu1 %v3010_v19  ;;  %v2992_v22 = vpop.permute.xlu0 %2991  ;;  %3125 = vmatprep.subr.bf16.mxu0 %v3013_v17 }
 0x172   : > { %3075 = vmatprep.mubr.bf16.mxu0 %v4663_v23  ;;  %3116 = vmatprep.mubr.bf16.mxu1 %v4663_v23  ;;  %v3017_v33 = vsel %vm3007_vm6, %v2992_v22, %v2994_v20  ;;  %v3016_v38 = vsel %vm3007_vm6, %v2990_v15, %v2992_v22 }
 0x173   : > { %3166 = vmatprep.subr.bf16.mxu1 %v3015_v21 }
 0x174   : > { %v2998_v24 = vpop.permute.xlu1 %2997 }
 0x175   : > { %v2996_v27 = vpop.permute.xlu0 %2995 }
 0x176   : > { %v3019_v28 = vsel %vm3007_vm6, %v2996_v27, %v2998_v24  ;;  %v3018_v41 = vsel %vm3007_vm6, %v2994_v20, %v2996_v27 }
 0x177   : > { %4504 = vmatmul.mubr.msk.bf16.vlgmr.msra.gmra.mrb[96].mxu0 %vm576_vm1, %v5547_v25 }
 0x178   : > { %3126 = vmatpush1.bf16.msra.mxu0 %v3012_v34  ;;  %4505 = vmatmul.mubr.msk.bf16.vlgmr.msra.gmra.mrb[96].mxu1 %vm576_vm1, %v5547_v25  ;;  %v3002_v29 = vpop.permute.xlu1 %3001 }
 0x179   : > { %3167 = vmatpush1.bf16.msra.mxu1 %v3014_v31  ;;  %v3000_v30 = vpop.permute.xlu0 %2999  ;;  %3207 = vmatprep.subr.bf16.mxu0 %v3017_v33 }
 0x17a   : > { %3157 = vmatprep.mubr.bf16.mxu0 %v4663_v23  ;;  %3198 = vmatprep.mubr.bf16.mxu1 %v4663_v23  ;;  %v3021_v36 = vsel %vm3007_vm6, %v3000_v30, %v3002_v29  ;;  %v3020_v39 = vsel %vm3007_vm6, %v2998_v24, %v3000_v30 }
 0x17b   : > { %3248 = vmatprep.subr.bf16.mxu1 %v3019_v28 }
 0x17c   : > { %v3006_v37 = vpop.permute.xlu1 %3005 }
 0x17d   : > { %v3004_v32 = vpop.permute.xlu0 %3003 }
 0x17e   : > { %v3023_v35 = vsel %vm3007_vm6, %v3004_v32, %v3006_v37  ;;  %v3022_v43 = vsel %vm3007_vm6, %v3002_v29, %v3004_v32 }
 0x17f   : > { %4506 = vmatmul.mubr.msk.bf16.vlgmr.msra.gmra.mrb[100].mxu0 %vm576_vm1, %v5547_v25 }
 0x180   : > { %3208 = vmatpush1.bf16.msra.mxu0 %v3016_v38  ;;  %4507 = vmatmul.mubr.msk.bf16.vlgmr.msra.gmra.mrb[100].mxu1 %vm576_vm1, %v5547_v25  ;;  %v3394_v40 = vpop.permute.xlu1 %3393 }
 0x181   : > { %3249 = vmatpush1.bf16.msra.mxu1 %v3018_v41  ;;  %v3392_v42 = vpop.permute.xlu0 %3391  ;;  %3289 = vmatprep.subr.bf16.mxu0 %v3021_v36 }
 0x182   : > { %3239 = vmatprep.mubr.bf16.mxu0 %v4663_v23  ;;  %3280 = vmatprep.mubr.bf16.mxu1 %v4663_v23  ;;  %v3425_v46 = vsel %vm3423_vm7, %v3392_v42, %v3394_v40 }
 0x183   : > { %3330 = vmatprep.subr.bf16.mxu1 %v3023_v35 }
 0x184   : > { %v3398_v45 = vpop.permute.xlu1 %3397 }
 0x185   : > { %v3396_v44 = vpop.permute.xlu0 %3395 }
 0x186   : > { %v5570_v49 = vpop.f32.mrb[0].mxu1  ;;  %v3427_v55 = vsel %vm3423_vm7, %v3396_v44, %v3398_v45  ;;  %v3426_v62 = vsel %vm3423_vm7, %v3394_v40, %v3396_v44 }
 0x187   : > { %4508 = vmatmul.mubr.msk.bf16.vlgmr.msra.gmra.mrb[104].mxu0 %vm576_vm1, %v5547_v25  ;;  %v5575_v48 = vpop.f32.mrb[1].mxu1 }
 0x188   : > { %3290 = vmatpush1.bf16.msra.mxu0 %v3020_v39  ;;  %4509 = vmatmul.mubr.msk.bf16.vlgmr.msra.gmra.mrb[104].mxu1 %vm576_vm1, %v5547_v25  ;;  %v3400_v50 = vpop.permute.xlu1 %3399  ;;  %v659_v52 = vpop.f32.mrb[2].mxu1 }
 0x189   : > { %3331 = vmatpush1.bf16.msra.mxu1 %v3022_v43  ;;  %v3390_v56 = vpop.permute.xlu0 %3389  ;;  %3459 = vmatprep.subr.bf16.mxu0 %v3425_v46  ;;  %v660_v47 = vpop.f32.mrb[3].mxu1  ;;  %v3428_v13 = vsel %vm3423_vm7, %v3398_v45, %v3400_v50 }
 0x18a   : > { %v5581_v53 = vpop.f32.mrb[0].mxu0  ;;  %3321 = vmatprep.mubr.bf16.mxu0 %v4663_v23  ;;  %3362 = vmatprep.mubr.bf16.mxu1 %v4663_v23  ;;  %v3424_v54 = vsel %vm3423_vm7, %v3390_v56, %v3392_v42 }
 0x18b   : > { %v5585_v57 = vpop.f32.mrb[1].mxu0  ;;  %3500 = vmatprep.subr.bf16.mxu1 %v3427_v55 }
 0x18c   : > { %v3404_v51 = vpop.permute.xlu1 %3403  ;;  %v618_v26 = vpop.f32.mrb[2].mxu0 }
 0x18d   : > { %v619_v58 = vpop.f32.mrb[3].mxu0  ;;  %v3402_v59 = vpop.permute.xlu0 %3401 }
 0x18e   : > { %v3429_v61 = vsel %vm3423_vm7, %v3400_v50, %v3402_v59  ;;  %v3430_v10 = vsel %vm3423_vm7, %v3402_v59, %v3404_v51 }
 0x18f   : > { %4510 = vmatmul.mubr.msk.bf16.vlgmr.msra.gmra.mrb[108].mxu0 %vm576_vm1, %v5547_v25 }
 0x190   : > { %3460 = vmatpush1.bf16.msra.mxu0 %v3424_v54  ;;  %4511 = vmatmul.mubr.msk.bf16.vlgmr.msra.gmra.mrb[108].mxu1 %vm576_vm1, %v5547_v25  ;;  %v3408_v63 = vpop.permute.xlu1 %3407 }
 0x191   : > { %3501 = vmatpush1.bf16.msra.mxu1 %v3426_v62  ;;  %3541 = vmatprep.subr.bf16.mxu0 %v3429_v61  ;;  %v3406_v0 = vpop.permute.xlu0 %3405 }
 0x192   : > { %v5597_v1 = vpop.f32.mrb[4].mxu0  ;;  %3491 = vmatprep.mubr.bf16.mxu0 %v4663_v23  ;;  %3532 = vmatprep.mubr.bf16.mxu1 %v4663_v23  ;;  %v3431_v2 = vsel %vm3423_vm7, %v3404_v51, %v3406_v0  ;;  %v3432_v31 = vsel %vm3423_vm7, %v3406_v0, %v3408_v63 }
 0x193   : > { %v5602_v3 = vpop.f32.mrb[4].mxu1  ;;  %v5604_v4 = vpop.f32.mrb[5].mxu0  ;;  %3582 = vmatprep.subr.bf16.mxu1 %v3431_v2 }
 0x194   : > { %v3412_v5 = vpop.permute.xlu1 %3411  ;;  %v5606_v6 = vpop.f32.mrb[5].mxu1 }
 0x195   : > { %v700_v8 = vpop.f32.mrb[6].mxu0  ;;  %v741_v9 = vpop.f32.mrb[6].mxu1 }
 0x196   : > { %v701_v11 = vpop.f32.mrb[7].mxu0  ;;  %v742_v12 = vpop.f32.mrb[7].mxu1 }
 0x197   : > { %4513 = vmatmul.mubr.msk.bf16.vlgmr.msra.gmra.mrb[112].mxu0 %vm576_vm1, %v5611_v7  ;;  %v3410_v14 = vpop.permute.xlu0 %3409 }
 0x198   : > { %3542 = vmatpush1.bf16.msra.mxu0 %v3428_v13  ;;  %4514 = vmatmul.mubr.msk.bf16.vlgmr.msra.gmra.mrb[112].mxu1 %vm576_vm1, %v5611_v7  ;;  %v3416_v15 = vpop.permute.xlu1 %3415  ;;  %v3433_v16 = vsel %vm3423_vm7, %v3408_v63, %v3410_v14  ;;  %v3434_v27 = vsel %vm3423_vm7, %v3410_v14, %v3412_v5 }
 0x199   : > { %3583 = vmatpush1.bf16.msra.mxu1 %v3430_v10  ;;  %3623 = vmatprep.subr.bf16.mxu0 %v3433_v16 }
 0x19a   : > { %v5620_v17 = vpop.f32.mrb[8].mxu0  ;;  %3573 = vmatprep.mubr.bf16.mxu0 %v4663_v23  ;;  %3614 = vmatprep.mubr.bf16.mxu1 %v4663_v23 }
 0x19b   : > { %v5624_v18 = vpop.f32.mrb[8].mxu1  ;;  %v3414_v19 = vpop.permute.xlu0 %3413 }
 0x19c   : > { %v3420_v20 = vpop.permute.xlu1 %3419  ;;  %v5626_v21 = vpop.f32.mrb[9].mxu0  ;;  %v3435_v22 = vsel %vm3423_vm7, %v3412_v5, %v3414_v19  ;;  %v3436_v43 = vsel %vm3423_vm7, %v3414_v19, %v3416_v15  ;;  %v5692_v19 = vld [vmem:[%s5854_s2 + $0x10] sm:$0x3] }
 0x19d   : > { %v5629_v24 = vpop.f32.mrb[9].mxu1  ;;  %v782_v25 = vpop.f32.mrb[10].mxu0  ;;  %3664 = vmatprep.subr.bf16.mxu1 %v3435_v22 }
 0x19e   : > { %v823_v33 = vpop.f32.mrb[10].mxu1  ;;  %v783_v34 = vpop.f32.mrb[11].mxu0 }
 0x19f   : > { %4515 = vmatmul.mubr.msk.bf16.vlgmr.msra.gmra.mrb[116].mxu0 %vm576_vm1, %v5611_v7  ;;  %v824_v29 = vpop.f32.mrb[11].mxu1  ;;  %v3418_v28 = vpop.permute.xlu0 %3417 }
 0x1a0   : > { %3624 = vmatpush1.bf16.msra.mxu0 %v3432_v31  ;;  %4516 = vmatmul.mubr.msk.bf16.vlgmr.msra.gmra.mrb[116].mxu1 %vm576_vm1, %v5611_v7  ;;  %v3808_v30 = vpop.permute.xlu1 %3807  ;;  %v3437_v37 = vsel %vm3423_vm7, %v3416_v15, %v3418_v28  ;;  %v3438_v44 = vsel %vm3423_vm7, %v3418_v28, %v3420_v20 }
 0x1a1   : > { %3665 = vmatpush1.bf16.msra.mxu1 %v3434_v27  ;;  %3705 = vmatprep.subr.bf16.mxu0 %v3437_v37 }
 0x1a2   : > { %v5638_v32 = vpop.f32.mrb[12].mxu0  ;;  %3655 = vmatprep.mubr.bf16.mxu0 %v4663_v23  ;;  %3696 = vmatprep.mubr.bf16.mxu1 %v4663_v23 }
 0x1a3   : > { %v5642_v36 = vpop.f32.mrb[12].mxu1  ;;  %v3422_v38 = vpop.permute.xlu0 %3421 }
 0x1a4   : > { %v3812_v41 = vpop.permute.xlu1 %3811  ;;  %v5644_v40 = vpop.f32.mrb[13].mxu0  ;;  %v3439_v35 = vsel %vm3423_vm7, %v3420_v20, %v3422_v38 }
 0x1a5   : > { %v5647_v42 = vpop.f32.mrb[13].mxu1  ;;  %v864_v45 = vpop.f32.mrb[14].mxu0  ;;  %3746 = vmatprep.subr.bf16.mxu1 %v3439_v35 }
 0x1a6   : > { %v905_v46 = vpop.f32.mrb[14].mxu1  ;;  %v865_v39 = vpop.f32.mrb[15].mxu0 }
 0x1a7   : > { %4517 = vmatmul.mubr.msk.bf16.vlgmr.msra.gmra.mrb[120].mxu0 %vm576_vm1, %v5611_v7  ;;  %v906_v50 = vpop.f32.mrb[15].mxu1  ;;  %v3810_v52 = vpop.permute.xlu0 %3809 }
 0x1a8   : > { %3706 = vmatpush1.bf16.msra.mxu0 %v3436_v43  ;;  %4518 = vmatmul.mubr.msk.bf16.vlgmr.msra.gmra.mrb[120].mxu1 %vm576_vm1, %v5611_v7  ;;  %v3841_v55 = vsel %vm3839_vm8, %v3808_v30, %v3810_v52  ;;  %v3806_v56 = vpop.permute.xlu1 %3805 }
 0x1a9   : > { %3747 = vmatpush1.bf16.msra.mxu1 %v3438_v44  ;;  %3875 = vmatprep.subr.bf16.mxu0 %v3841_v55 }
 0x1aa   : > { %v945_v47 = vpop.f32.mrb[16].mxu0  ;;  %3737 = vmatprep.mubr.bf16.mxu0 %v4663_v23  ;;  %3778 = vmatprep.mubr.bf16.mxu1 %v4663_v23 }
 0x1ab   : > { %v5659_v51 = vadd.f32 %v945_v47, %v5581_v53  ;;  %v947_v26 = vpop.f32.mrb[17].mxu0  ;;  %v986_v58 = vpop.f32.mrb[16].mxu1  ;;  %v3842_v53 = vsel %vm3839_vm8, %v3810_v52, %v3812_v41 }
 0x1ac   : > { %v5662_v59 = vadd.f32 %v947_v26, %v5585_v57  ;;  %v5665_v60 = vadd.f32 %v986_v58, %v5570_v49  ;;  %v988_v61 = vpop.f32.mrb[17].mxu1  ;;  %v3814_v54 = vpop.permute.xlu0 %3813  ;;  %v3840_v57 = vsel %vm3839_vm8, %v3806_v56, %v3808_v30 }
 0x1ad   : > { %v5668_v62 = vadd.f32 %v988_v61, %v5575_v48  ;;  %v949_v63 = vpop.f32.mrb[18].mxu0  ;;  %v990_v0 = vpop.f32.mrb[18].mxu1  ;;  %v3843_v2 = vsel %vm3839_vm8, %v3812_v41, %v3814_v54 }
 0x1ae   : > { %3916 = vmatprep.subr.bf16.mxu1 %v3843_v2  ;;  %v950_v5 = vpop.f32.mrb[19].mxu0  ;;  %v991_v8 = vpop.f32.mrb[19].mxu1 }
 0x1af   : > { %4519 = vmatmul.mubr.msk.bf16.vlgmr.msra.gmra.mrb[124].mxu0 %vm576_vm1, %v5611_v7  ;;  %v3818_v49 = vpop.permute.xlu1 %3817 }
 0x1b0   : > { %3876 = vmatpush1.bf16.msra.mxu0 %v3840_v57  ;;  %4520 = vmatmul.mubr.msk.bf16.vlgmr.msra.gmra.mrb[124].mxu1 %vm576_vm1, %v5611_v7  ;;  %v3816_v48 = vpop.permute.xlu0 %3815 }
 0x1b1   : > { %3917 = vmatpush1.bf16.msra.mxu1 %v3842_v53  ;;  %3907 = vmatprep.mubr.bf16.mxu0 %v4663_v23  ;;  %v3845_v9 = vsel %vm3839_vm8, %v3816_v48, %v3818_v49 }
 0x1b2   : > { %v1027_v10 = vpop.f32.mrb[20].mxu0  ;;  %3957 = vmatprep.subr.bf16.mxu0 %v3845_v9  ;;  %3948 = vmatprep.mubr.bf16.mxu1 %v4663_v23 }
 0x1b3   : > { %v5681_v11 = vadd.f32 %v1027_v10, %v5597_v1  ;;  %v1029_v12 = vpop.f32.mrb[21].mxu0  ;;  %v1068_v13 = vpop.f32.mrb[20].mxu1 }
 0x1b4   : > { %v5684_v14 = vadd.f32 %v1029_v12, %v5604_v4  ;;  %v5687_v7 = vadd.f32 %v1068_v13, %v5602_v3  ;;  %v1070_v15 = vpop.f32.mrb[21].mxu1  ;;  %v3822_v16 = vpop.permute.xlu1 %3821  ;;  %v3844_v3 = vsel %vm3839_vm8, %v3814_v54, %v3816_v48 }
 0x1b5   : > { %v5695_v20 = vadd.f32 %v1070_v15, %v5606_v6  ;;  %v3820_v1 = vpop.permute.xlu0 %3819  ;;  %v1031_v22 = vpop.f32.mrb[22].mxu0 }
 0x1b6   : > { %v3846_v25 = vsel %vm3839_vm8, %v3818_v49, %v3820_v1  ;;  %v1072_v27 = vpop.f32.mrb[22].mxu1  ;;  %v3847_v4 = vsel %vm3839_vm8, %v3820_v1, %v3822_v16  ;;  %v1032_v33 = vpop.f32.mrb[23].mxu0 }
 0x1b7   : > { %4522 = vmatmul.mubr.msk.bf16.vlgmr.msra.gmra.mrb[128].mxu0 %vm576_vm1, %v5692_v19  ;;  %3998 = vmatprep.subr.bf16.mxu1 %v3847_v4  ;;  %v1073_v34 = vpop.f32.mrb[23].mxu1 }
 0x1b8   : > { %3958 = vmatpush1.bf16.msra.mxu0 %v3844_v3  ;;  %4523 = vmatmul.mubr.msk.bf16.vlgmr.msra.gmra.mrb[128].mxu1 %vm576_vm1, %v5692_v19  ;;  %v3826_v6 = vpop.permute.xlu1 %3825 }
 0x1b9   : > { %3999 = vmatpush1.bf16.msra.mxu1 %v3846_v25  ;;  %v3824_v31 = vpop.permute.xlu0 %3823  ;;  %3989 = vmatprep.mubr.bf16.mxu0 %v4663_v23 }
 0x1ba   : > { %v1109_v29 = vpop.f32.mrb[24].mxu0  ;;  %v3849_v28 = vsel %vm3839_vm8, %v3824_v31, %v3826_v6  ;;  %4030 = vmatprep.mubr.bf16.mxu1 %v4663_v23  ;;  %v3848_v56 = vsel %vm3839_vm8, %v3822_v16, %v3824_v31 }
 0x1bb   : > { %v5708_v30 = vadd.f32 %v1109_v29, %v5620_v17  ;;  %v1111_v37 = vpop.f32.mrb[25].mxu0  ;;  %v1150_v38 = vpop.f32.mrb[24].mxu1  ;;  %4039 = vmatprep.subr.bf16.mxu0 %v3849_v28 }
 0x1bc   : > { %v5711_v41 = vadd.f32 %v1111_v37, %v5626_v21  ;;  %v5714_v35 = vadd.f32 %v1150_v38, %v5624_v18  ;;  %v1152_v45 = vpop.f32.mrb[25].mxu1  ;;  %v3830_v44 = vpop.permute.xlu1 %3829 }
 0x1bd   : > { %v5717_v46 = vadd.f32 %v1152_v45, %v5629_v24  ;;  %v3828_v39 = vpop.permute.xlu0 %3827  ;;  %v1113_v43 = vpop.f32.mrb[26].mxu0 }
 0x1be   : > { %v3850_v50 = vsel %vm3839_vm8, %v3826_v6, %v3828_v39  ;;  %v1154_v17 = vpop.f32.mrb[26].mxu1  ;;  %v3851_v52 = vsel %vm3839_vm8, %v3828_v39, %v3830_v44  ;;  %v1114_v55 = vpop.f32.mrb[27].mxu0 }
 0x1bf   : > { %4524 = vmatmul.mubr.msk.bf16.vlgmr.msra.gmra.mrb[132].mxu0 %vm576_vm1, %v5692_v19  ;;  %4080 = vmatprep.subr.bf16.mxu1 %v3851_v52  ;;  %v1155_v18 = vpop.f32.mrb[27].mxu1 }
 0x1c0   : > { %4040 = vmatpush1.bf16.msra.mxu0 %v3848_v56  ;;  %4525 = vmatmul.mubr.msk.bf16.vlgmr.msra.gmra.mrb[132].mxu1 %vm576_vm1, %v5692_v19  ;;  %v3834_v21 = vpop.permute.xlu1 %3833 }
 0x1c1   : > { %4081 = vmatpush1.bf16.msra.mxu1 %v3850_v50  ;;  %v3832_v24 = vpop.permute.xlu0 %3831  ;;  %4071 = vmatprep.mubr.bf16.mxu0 %v4663_v23 }
 0x1c2   : > { %v1191_v47 = vpop.f32.mrb[28].mxu0  ;;  %v3853_v26 = vsel %vm3839_vm8, %v3832_v24, %v3834_v21  ;;  %4112 = vmatprep.mubr.bf16.mxu1 %v4663_v23  ;;  %v3852_v10 = vsel %vm3839_vm8, %v3830_v44, %v3832_v24 }
 0x1c3   : > { %v5730_v58 = vadd.f32 %v1191_v47, %v5638_v32  ;;  %v1193_v61 = vpop.f32.mrb[29].mxu0  ;;  %v1232_v54 = vpop.f32.mrb[28].mxu1  ;;  %4121 = vmatprep.subr.bf16.mxu0 %v3853_v26 }
 0x1c4   : > { %v1194_v63 = vadd.f32 %v1193_v61, %v5644_v40  ;;  %v1233_v0 = vadd.f32 %v1232_v54, %v5642_v36  ;;  %v1234_v2 = vpop.f32.mrb[29].mxu1  ;;  %v3838_v53 = vpop.permute.xlu1 %3837 }
 0x1c5   : > { %v1235_v5 = vadd.f32 %v1234_v2, %v5647_v42  ;;  %v3836_v8 = vpop.permute.xlu0 %3835  ;;  %v1195_v57 = vpop.f32.mrb[30].mxu0 }
 0x1c6   : > { %v3854_v49 = vsel %vm3839_vm8, %v3834_v21, %v3836_v8  ;;  %v1236_v48 = vpop.f32.mrb[30].mxu1  ;;  %v3855_v9 = vsel %vm3839_vm8, %v3836_v8, %v3838_v53  ;;  %v1196_v32 = vpop.f32.mrb[31].mxu0 }
 0x1c7   : > { %4526 = vmatmul.mubr.msk.bf16.vlgmr.msra.gmra.mrb[136].mxu0 %vm576_vm1, %v5692_v19  ;;  %4162 = vmatprep.subr.bf16.mxu1 %v3855_v9  ;;  %v1237_v40 = vpop.f32.mrb[31].mxu1 }
 0x1c8   : > { %4122 = vmatpush1.bf16.msra.mxu0 %v3852_v10  ;;  %4527 = vmatmul.mubr.msk.bf16.vlgmr.msra.gmra.mrb[136].mxu1 %vm576_vm1, %v5692_v19 }
 0x1c9   : > { %4163 = vmatpush1.bf16.msra.mxu1 %v3854_v49  ;;  %4153 = vmatprep.mubr.bf16.mxu0 %v4663_v23 }
 0x1ca   : > { %v1345_v36 = vpop.f32.mrb[32].mxu0  ;;  %4194 = vmatprep.mubr.bf16.mxu1 %v4663_v23 }
 0x1cb   : > { %v1639_v42 = vadd.f32 %v1345_v36, %v5659_v51  ;;  %v1347_v12 = vpop.f32.mrb[33].mxu0  ;;  %v1386_v13 = vpop.f32.mrb[32].mxu1 }
 0x1cc   : > { %v1640_v15 = vadd.f32 %v1347_v12, %v5662_v59  ;;  %v1641_v16 = vadd.f32 %v1386_v13, %v5665_v60  ;;  %v1388_v1 = vpop.f32.mrb[33].mxu1  ;;  %v1349_v22 = vpop.f32.mrb[34].mxu0 }
 0x1cd   : > { %v1642_v25 = vadd.f32 %v1388_v1, %v5668_v62  ;;  %v1390_v27 = vpop.f32.mrb[34].mxu1  ;;  %v1350_v4 = vpop.f32.mrb[35].mxu0 }
 0x1ce   : > { %v1391_v33 = vpop.f32.mrb[35].mxu1 }
 0x1cf   : > { %4528 = vmatmul.mubr.msk.bf16.vlgmr.msra.gmra.mrb[140].mxu0 %vm576_vm1, %v5692_v19 }
 0x1d0   : > { %4529 = vmatmul.mubr.msk.bf16.vlgmr.msra.gmra.mrb[140].mxu1 %vm576_vm1, %v5692_v19 }
 0x1d2   : > { %v1427_v23 = vpop.f32.mrb[36].mxu0 }
 0x1d3   : > { %v1643_v51 = vadd.f32 %v1427_v23, %v5681_v11  ;;  %v1429_v3 = vpop.f32.mrb[37].mxu0  ;;  %v1468_v59 = vpop.f32.mrb[36].mxu1 }
 0x1d4   : > { %v1644_v60 = vadd.f32 %v1429_v3, %v5684_v14  ;;  %v1645_v34 = vadd.f32 %v1468_v59, %v5687_v7  ;;  %v1470_v6 = vpop.f32.mrb[37].mxu1  ;;  %v1431_v62 = vpop.f32.mrb[38].mxu0 }
 0x1d5   : > { %v1646_v31 = vadd.f32 %v1470_v6, %v5695_v20  ;;  %v1472_v29 = vpop.f32.mrb[38].mxu1  ;;  %v1432_v28 = vpop.f32.mrb[39].mxu0 }
 0x1d6   : > { %v1473_v37 = vpop.f32.mrb[39].mxu1 }
 0x1da   : > { %v1509_v38 = vpop.f32.mrb[40].mxu0 }
 0x1db   : > { %v1647_v45 = vadd.f32 %v1509_v38, %v5708_v30  ;;  %v1511_v19 = vpop.f32.mrb[41].mxu0  ;;  %v1550_v44 = vpop.f32.mrb[40].mxu1 }
 0x1dc   : > { %v1648_v11 = vadd.f32 %v1511_v19, %v5711_v41  ;;  %v1649_v39 = vadd.f32 %v1550_v44, %v5714_v35  ;;  %v1552_v43 = vpop.f32.mrb[41].mxu1  ;;  %v1513_v14 = vpop.f32.mrb[42].mxu0 }
 0x1dd   : > { %v1650_v7 = vadd.f32 %v1552_v43, %v5717_v46  ;;  %v1554_v50 = vpop.f32.mrb[42].mxu1  ;;  %v1514_v17 = vpop.f32.mrb[43].mxu0 }
 0x1de   : > { %v1555_v52 = vpop.f32.mrb[43].mxu1 }
 0x1e2   : > { %v1591_v20 = vpop.f32.mrb[44].mxu0 }
 0x1e3   : > { %v1651_v55 = vadd.f32 %v1591_v20, %v5730_v58  ;;  %v1593_v56 = vpop.f32.mrb[45].mxu0  ;;  %v1632_v18 = vpop.f32.mrb[44].mxu1 }
 0x1e4   : > { %v1652_v21 = vadd.f32 %v1593_v56, %v1194_v63  ;;  %v1653_v30 = vadd.f32 %v1632_v18, %v1233_v0  ;;  %v1634_v24 = vpop.f32.mrb[45].mxu1  ;;  %v1595_v47 = vpop.f32.mrb[46].mxu0 }
 0x1e5   : > { %v1654_v26 = vadd.f32 %v1634_v24, %v1235_v5  ;;  %v1636_v41 = vpop.f32.mrb[46].mxu1  ;;  %v1596_v61 = vpop.f32.mrb[47].mxu0 }
 0x1e6   : > { %v1637_v35 = vpop.f32.mrb[47].mxu1 }
 0x1ea   : > { %v1795_v54 = vpop.f32.mrb[48].mxu0 }
 0x1eb   : > { %v2089_v2 = vadd.f32 %v1795_v54, %v1639_v42  ;;  %v1797_v53 = vpop.f32.mrb[49].mxu0  ;;  %v1836_v46 = vpop.f32.mrb[48].mxu1 }
 0x1ec   : > { %v2090_v8 = vadd.f32 %v1797_v53, %v1640_v15  ;;  %v2091_v57 = vadd.f32 %v1836_v46, %v1641_v16  ;;  %v1838_v49 = vpop.f32.mrb[49].mxu1  ;;  %v1799_v48 = vpop.f32.mrb[50].mxu0 }
 0x1ed   : > { %v2092_v9 = vadd.f32 %v1838_v49, %v1642_v25  ;;  %v1840_v58 = vpop.f32.mrb[50].mxu1  ;;  %v1800_v32 = vpop.f32.mrb[51].mxu0 }
 0x1ee   : > { %v1841_v10 = vpop.f32.mrb[51].mxu1 }
 0x1f2   : > { %v1877_v63 = vpop.f32.mrb[52].mxu0 }
 0x1f3   : > { %v2093_v0 = vadd.f32 %v1877_v63, %v1643_v51  ;;  %v1879_v40 = vpop.f32.mrb[53].mxu0  ;;  %v1918_v36 = vpop.f32.mrb[52].mxu1 }
 0x1f4   : > { %v2094_v5 = vadd.f32 %v1879_v40, %v1644_v60  ;;  %v2095_v12 = vadd.f32 %v1918_v36, %v1645_v34  ;;  %v1920_v13 = vpop.f32.mrb[53].mxu1  ;;  %v1881_v1 = vpop.f32.mrb[54].mxu0 }
 0x1f5   : > { %v2096_v22 = vadd.f32 %v1920_v13, %v1646_v31  ;;  %v1922_v42 = vpop.f32.mrb[54].mxu1  ;;  %v1882_v27 = vpop.f32.mrb[55].mxu0 }
 0x1f6   : > { %v1923_v4 = vpop.f32.mrb[55].mxu1 }
 0x1fa   : > { %v1959_v15 = vpop.f32.mrb[56].mxu0 }
 0x1fb   : > { %v2097_v16 = vadd.f32 %v1959_v15, %v1647_v45  ;;  %v1961_v33 = vpop.f32.mrb[57].mxu0  ;;  %v2000_v23 = vpop.f32.mrb[56].mxu1 }
 0x1fc   : > { %v2098_v25 = vadd.f32 %v1961_v33, %v1648_v11  ;;  %v2099_v3 = vadd.f32 %v2000_v23, %v1649_v39  ;;  %v2002_v59 = vpop.f32.mrb[57].mxu1  ;;  %v1963_v6 = vpop.f32.mrb[58].mxu0 }
 0x1fd   : > { %v2100_v62 = vadd.f32 %v2002_v59, %v1650_v7  ;;  %v2004_v51 = vpop.f32.mrb[58].mxu1  ;;  %v1964_v29 = vpop.f32.mrb[59].mxu0 }
 0x1fe   : > { %v2005_v28 = vpop.f32.mrb[59].mxu1 }
 0x202   : > { %v2041_v60 = vpop.f32.mrb[60].mxu0 }
 0x203   : > { %v2101_v34 = vadd.f32 %v2041_v60, %v1651_v55  ;;  %v2043_v37 = vpop.f32.mrb[61].mxu0  ;;  %v2082_v38 = vpop.f32.mrb[60].mxu1 }
 0x204   : > { %v2102_v31 = vadd.f32 %v2043_v37, %v1652_v21  ;;  %v2103_v19 = vadd.f32 %v2082_v38, %v1653_v30  ;;  %v2084_v44 = vpop.f32.mrb[61].mxu1  ;;  %v2045_v43 = vpop.f32.mrb[62].mxu0 }
 0x205   : > { %v2104_v14 = vadd.f32 %v2084_v44, %v1654_v26  ;;  %v2086_v45 = vpop.f32.mrb[62].mxu1  ;;  %v2046_v50 = vpop.f32.mrb[63].mxu0 }
 0x206   : > { %v2087_v17 = vpop.f32.mrb[63].mxu1 }
 0x20a   : > { %v2211_v11 = vpop.f32.mrb[64].mxu0 }
 0x20b   : > { %v2505_v39 = vadd.f32 %v2211_v11, %v2089_v2  ;;  %v2213_v52 = vpop.f32.mrb[65].mxu0  ;;  %v2252_v20 = vpop.f32.mrb[64].mxu1 }
 0x20c   : > { %v2506_v7 = vadd.f32 %v2213_v52, %v2090_v8  ;;  %v2507_v56 = vadd.f32 %v2252_v20, %v2091_v57  ;;  %v2254_v18 = vpop.f32.mrb[65].mxu1  ;;  %v2215_v24 = vpop.f32.mrb[66].mxu0 }
 0x20d   : > { %v2508_v47 = vadd.f32 %v2254_v18, %v2092_v9  ;;  %v2256_v55 = vpop.f32.mrb[66].mxu1  ;;  %v2216_v41 = vpop.f32.mrb[67].mxu0 }
 0x20e   : > { %v2257_v61 = vpop.f32.mrb[67].mxu1 }
 0x212   : > { %v2293_v21 = vpop.f32.mrb[68].mxu0 }
 0x213   : > { %v2509_v30 = vadd.f32 %v2293_v21, %v2093_v0  ;;  %v2295_v35 = vpop.f32.mrb[69].mxu0  ;;  %v2334_v54 = vpop.f32.mrb[68].mxu1 }
 0x214   : > { %v2510_v26 = vadd.f32 %v2295_v35, %v2094_v5  ;;  %v2511_v53 = vadd.f32 %v2334_v54, %v2095_v12  ;;  %v2336_v46 = vpop.f32.mrb[69].mxu1  ;;  %v2297_v49 = vpop.f32.mrb[70].mxu0 }
 0x215   : > { %v2512_v48 = vadd.f32 %v2336_v46, %v2096_v22  ;;  %v2338_v2 = vpop.f32.mrb[70].mxu1  ;;  %v2298_v58 = vpop.f32.mrb[71].mxu0 }
 0x216   : > { %v2339_v32 = vpop.f32.mrb[71].mxu1 }
 0x21a   : > { %v2375_v8 = vpop.f32.mrb[72].mxu0 }
 0x21b   : > { %v2513_v57 = vadd.f32 %v2375_v8, %v2097_v16  ;;  %v2377_v10 = vpop.f32.mrb[73].mxu0  ;;  %v2416_v63 = vpop.f32.mrb[72].mxu1 }
 0x21c   : > { %v2514_v9 = vadd.f32 %v2377_v10, %v2098_v25  ;;  %v2515_v40 = vadd.f32 %v2416_v63, %v2099_v3  ;;  %v2418_v36 = vpop.f32.mrb[73].mxu1  ;;  %v2379_v13 = vpop.f32.mrb[74].mxu0 }
 0x21d   : > { %v2516_v1 = vadd.f32 %v2418_v36, %v2100_v62  ;;  %v2420_v0 = vpop.f32.mrb[74].mxu1  ;;  %v2380_v42 = vpop.f32.mrb[75].mxu0 }
 0x21e   : > { %v2421_v27 = vpop.f32.mrb[75].mxu1 }
 0x222   : > { %v2457_v5 = vpop.f32.mrb[76].mxu0 }
 0x223   : > { %v2517_v12 = vadd.f32 %v2457_v5, %v2101_v34  ;;  %v2459_v4 = vpop.f32.mrb[77].mxu0  ;;  %v2498_v15 = vpop.f32.mrb[76].mxu1 }
 0x224   : > { %v2518_v22 = vadd.f32 %v2459_v4, %v2102_v31  ;;  %v2519_v33 = vadd.f32 %v2498_v15, %v2103_v19  ;;  %v2500_v23 = vpop.f32.mrb[77].mxu1  ;;  %v2461_v59 = vpop.f32.mrb[78].mxu0 }
 0x225   : > { %v2520_v6 = vadd.f32 %v2500_v23, %v2104_v14  ;;  %v2502_v16 = vpop.f32.mrb[78].mxu1  ;;  %v2462_v51 = vpop.f32.mrb[79].mxu0 }
 0x226   : > { %v2503_v29 = vpop.f32.mrb[79].mxu1 }
 0x22a   : > { %v2627_v25 = vpop.f32.mrb[80].mxu0 }
 0x22b   : > { %v2921_v3 = vadd.f32 %v2627_v25, %v2505_v39  ;;  %v2629_v28 = vpop.f32.mrb[81].mxu0  ;;  %v2668_v60 = vpop.f32.mrb[80].mxu1 }
 0x22c   : > { %v2922_v62 = vadd.f32 %v2629_v28, %v2506_v7  ;;  %v2923_v37 = vadd.f32 %v2668_v60, %v2507_v56  ;;  %v2670_v38 = vpop.f32.mrb[81].mxu1  ;;  %v2631_v44 = vpop.f32.mrb[82].mxu0 }
 0x22d   : > { %v2924_v43 = vadd.f32 %v2670_v38, %v2508_v47  ;;  %v2672_v34 = vpop.f32.mrb[82].mxu1  ;;  %v2632_v45 = vpop.f32.mrb[83].mxu0 }
 0x22e   : > { %v2673_v50 = vpop.f32.mrb[83].mxu1 }
 0x232   : > { %v2709_v31 = vpop.f32.mrb[84].mxu0 }
 0x233   : > { %v2925_v19 = vadd.f32 %v2709_v31, %v2509_v30  ;;  %v2711_v17 = vpop.f32.mrb[85].mxu0  ;;  %v2750_v11 = vpop.f32.mrb[84].mxu1 }
 0x234   : > { %v2926_v14 = vadd.f32 %v2711_v17, %v2510_v26  ;;  %v2927_v52 = vadd.f32 %v2750_v11, %v2511_v53  ;;  %v2752_v20 = vpop.f32.mrb[85].mxu1  ;;  %v2713_v18 = vpop.f32.mrb[86].mxu0 }
 0x235   : > { %v2928_v24 = vadd.f32 %v2752_v20, %v2512_v48  ;;  %v2754_v39 = vpop.f32.mrb[86].mxu1  ;;  %v2714_v55 = vpop.f32.mrb[87].mxu0 }
 0x236   : > { %v2755_v41 = vpop.f32.mrb[87].mxu1 }
 0x23a   : > { %v2791_v7 = vpop.f32.mrb[88].mxu0 }
 0x23b   : > { %v2929_v56 = vadd.f32 %v2791_v7, %v2513_v57  ;;  %v2793_v61 = vpop.f32.mrb[89].mxu0  ;;  %v2832_v21 = vpop.f32.mrb[88].mxu1 }
 0x23c   : > { %v2930_v47 = vadd.f32 %v2793_v61, %v2514_v9  ;;  %v2931_v35 = vadd.f32 %v2832_v21, %v2515_v40  ;;  %v2834_v54 = vpop.f32.mrb[89].mxu1  ;;  %v2795_v46 = vpop.f32.mrb[90].mxu0 }
 0x23d   : > { %v2932_v49 = vadd.f32 %v2834_v54, %v2516_v1  ;;  %v2836_v30 = vpop.f32.mrb[90].mxu1  ;;  %v2796_v2 = vpop.f32.mrb[91].mxu0 }
 0x23e   : > { %v2837_v58 = vpop.f32.mrb[91].mxu1 }
 0x242   : > { %v2873_v26 = vpop.f32.mrb[92].mxu0 }
 0x243   : > { %v2933_v53 = vadd.f32 %v2873_v26, %v2517_v12  ;;  %v2875_v32 = vpop.f32.mrb[93].mxu0  ;;  %v2914_v8 = vpop.f32.mrb[92].mxu1 }
 0x244   : > { %v2934_v48 = vadd.f32 %v2875_v32, %v2518_v22  ;;  %v2935_v10 = vadd.f32 %v2914_v8, %v2519_v33  ;;  %v2916_v63 = vpop.f32.mrb[93].mxu1  ;;  %v2877_v36 = vpop.f32.mrb[94].mxu0 }
 0x245   : > { %v2936_v13 = vadd.f32 %v2916_v63, %v2520_v6  ;;  %v2918_v57 = vpop.f32.mrb[94].mxu1  ;;  %v2878_v0 = vpop.f32.mrb[95].mxu0 }
 0x246   : > { %v2919_v42 = vpop.f32.mrb[95].mxu1 }
 0x24a   : > { %v3077_v9 = vpop.f32.mrb[96].mxu0 }
 0x24b   : > { %v3371_v40 = vadd.f32 %v3077_v9, %v2921_v3  ;;  %v3079_v27 = vpop.f32.mrb[97].mxu0  ;;  %v3118_v5 = vpop.f32.mrb[96].mxu1 }
 0x24c   : > { %v3372_v1 = vadd.f32 %v3079_v27, %v2922_v62  ;;  %v3373_v4 = vadd.f32 %v3118_v5, %v2923_v37  ;;  %v3120_v15 = vpop.f32.mrb[97].mxu1  ;;  %v3081_v23 = vpop.f32.mrb[98].mxu0 }
 0x24d   : > { %v3374_v59 = vadd.f32 %v3120_v15, %v2924_v43  ;;  %v3122_v12 = vpop.f32.mrb[98].mxu1  ;;  %v3082_v16 = vpop.f32.mrb[99].mxu0 }
 0x24e   : > { %v3123_v51 = vpop.f32.mrb[99].mxu1 }
 0x252   : > { %v3159_v22 = vpop.f32.mrb[100].mxu0 }
 0x253   : > { %v3375_v33 = vadd.f32 %v3159_v22, %v2925_v19  ;;  %v3161_v29 = vpop.f32.mrb[101].mxu0  ;;  %v3200_v25 = vpop.f32.mrb[100].mxu1 }
 0x254   : > { %v3376_v6 = vadd.f32 %v3161_v29, %v2926_v14  ;;  %v3377_v28 = vadd.f32 %v3200_v25, %v2927_v52  ;;  %v3202_v60 = vpop.f32.mrb[101].mxu1  ;;  %v3163_v38 = vpop.f32.mrb[102].mxu0 }
 0x255   : > { %v3378_v44 = vadd.f32 %v3202_v60, %v2928_v24  ;;  %v3204_v3 = vpop.f32.mrb[102].mxu1  ;;  %v3164_v34 = vpop.f32.mrb[103].mxu0 }
 0x256   : > { %v3205_v45 = vpop.f32.mrb[103].mxu1 }
 0x25a   : > { %v3241_v62 = vpop.f32.mrb[104].mxu0 }
 0x25b   : > { %v3379_v37 = vadd.f32 %v3241_v62, %v2929_v56  ;;  %v3243_v50 = vpop.f32.mrb[105].mxu0  ;;  %v3282_v31 = vpop.f32.mrb[104].mxu1 }
 0x25c   : > { %v3380_v43 = vadd.f32 %v3243_v50, %v2930_v47  ;;  %v3381_v17 = vadd.f32 %v3282_v31, %v2931_v35  ;;  %v3284_v11 = vpop.f32.mrb[105].mxu1  ;;  %v3245_v20 = vpop.f32.mrb[106].mxu0 }
 0x25d   : > { %v3382_v18 = vadd.f32 %v3284_v11, %v2932_v49  ;;  %v3286_v19 = vpop.f32.mrb[106].mxu1  ;;  %v3246_v39 = vpop.f32.mrb[107].mxu0 }
 0x25e   : > { %v3287_v55 = vpop.f32.mrb[107].mxu1  ;;  %v5788_v19 = vpop.permute.xlu0 %4222 }
 0x262   : > { %v3323_v14 = vpop.f32.mrb[108].mxu0 }
 0x263   : > { %v3383_v52 = vadd.f32 %v3323_v14, %v2933_v53  ;;  %v3325_v41 = vpop.f32.mrb[109].mxu0  ;;  %v3364_v7 = vpop.f32.mrb[108].mxu1 }
 0x264   : > { %v3384_v24 = vadd.f32 %v3325_v41, %v2934_v48  ;;  %v3385_v61 = vadd.f32 %v3364_v7, %v2935_v10  ;;  %v3366_v21 = vpop.f32.mrb[109].mxu1  ;;  %v3327_v54 = vpop.f32.mrb[110].mxu0 }
 0x265   : > { %v3386_v46 = vadd.f32 %v3366_v21, %v2936_v13  ;;  %v3368_v56 = vpop.f32.mrb[110].mxu1  ;;  %v3328_v30 = vpop.f32.mrb[111].mxu0 }
 0x266   : > { %v3369_v2 = vpop.f32.mrb[111].mxu1 }
 0x26a   : > { %v3493_v47 = vpop.f32.mrb[112].mxu0 }
 0x26b   : > { %v3787_v35 = vadd.f32 %v3493_v47, %v3371_v40  ;;  %v3495_v58 = vpop.f32.mrb[113].mxu0  ;;  %v3534_v26 = vpop.f32.mrb[112].mxu1 }
 0x26c   : > { %v3788_v49 = vadd.f32 %v3495_v58, %v3372_v1  ;;  %v3789_v32 = vadd.f32 %v3534_v26, %v3373_v4  ;;  %v3536_v8 = vpop.f32.mrb[113].mxu1  ;;  %v3497_v63 = vpop.f32.mrb[114].mxu0 }
 0x26d   : > { %v3790_v36 = vadd.f32 %v3536_v8, %v3374_v59  ;;  %v3538_v53 = vpop.f32.mrb[114].mxu1  ;;  %v3498_v57 = vpop.f32.mrb[115].mxu0 }
 0x26e   : > { %v3539_v0 = vpop.f32.mrb[115].mxu1 }
 0x272   : > { %v3575_v48 = vpop.f32.mrb[116].mxu0 }
 0x273   : > { %v5761_v10 = vadd.f32 %v3575_v48, %v3375_v33  ;;  %v3577_v42 = vpop.f32.mrb[117].mxu0  ;;  %v3616_v13 = vpop.f32.mrb[116].mxu1 }
 0x274   : > { %v5763_v9 = vadd.f32 %v3577_v42, %v3376_v6  ;;  %v5765_v27 = vadd.f32 %v3616_v13, %v3377_v28  ;;  %v3618_v40 = vpop.f32.mrb[117].mxu1  ;;  %v3579_v5 = vpop.f32.mrb[118].mxu0 }
 0x275   : > { %v5767_v15 = vadd.f32 %v3618_v40, %v3378_v44  ;;  %v3620_v1 = vpop.f32.mrb[118].mxu1  ;;  %v3580_v4 = vpop.f32.mrb[119].mxu0 }
 0x276   : > { %v3621_v23 = vpop.f32.mrb[119].mxu1 }
 0x27a   : > { %v3657_v59 = vpop.f32.mrb[120].mxu0 }
 0x27b   : > { %v5769_v12 = vadd.f32 %v3657_v59, %v3379_v37  ;;  %v3659_v16 = vpop.f32.mrb[121].mxu0  ;;  %v3698_v51 = vpop.f32.mrb[120].mxu1 }
 0x27c   : > { %v5771_v22 = vadd.f32 %v3659_v16, %v3380_v43  ;;  %v5773_v33 = vadd.f32 %v3698_v51, %v3381_v17  ;;  %v3700_v29 = vpop.f32.mrb[121].mxu1  ;;  %v3661_v25 = vpop.f32.mrb[122].mxu0 }
 0x27d   : > { %v5775_v6 = vadd.f32 %v3700_v29, %v3382_v18  ;;  %v3702_v28 = vpop.f32.mrb[122].mxu1  ;;  %v3662_v60 = vpop.f32.mrb[123].mxu0 }
 0x27e   : > { %v3703_v38 = vpop.f32.mrb[123].mxu1 }
 0x282   : > { %v3739_v44 = vpop.f32.mrb[124].mxu0 }
 0x283   : > { %v5780_v3 = vadd.f32 %v3739_v44, %v3383_v52  ;;  %v3741_v34 = vpop.f32.mrb[125].mxu0  ;;  %v3780_v45 = vpop.f32.mrb[124].mxu1 }
 0x284   : > { %v5782_v62 = vadd.f32 %v3741_v34, %v3384_v24  ;;  %v5784_v37 = vadd.f32 %v3780_v45, %v3385_v61  ;;  %v3782_v50 = vpop.f32.mrb[125].mxu1  ;;  %v3743_v31 = vpop.f32.mrb[126].mxu0 }
 0x285   : > { %v5786_v43 = vadd.f32 %v3782_v50, %v3386_v46  ;;  %v3784_v17 = vpop.f32.mrb[126].mxu1  ;;  %v3744_v11 = vpop.f32.mrb[127].mxu0 }
 0x286   : > { %v3785_v20 = vpop.f32.mrb[127].mxu1 }
 0x28a   : > { %v3909_v18 = vpop.f32.mrb[128].mxu0 }
 0x28b   : > { %v4203_v39 = vadd.f32 %v3909_v18, %v3787_v35  ;;  %v3911_v55 = vpop.f32.mrb[129].mxu0  ;;  %v3950_v14 = vpop.f32.mrb[128].mxu1 }
 0x28c   : > { %v4204_v52 = vadd.f32 %v3911_v55, %v3788_v49  ;;  %v4205_v41 = vadd.f32 %v3950_v14, %v3789_v32  ;;  %v3952_v7 = vpop.f32.mrb[129].mxu1  ;;  %v3913_v24 = vpop.f32.mrb[130].mxu0 }
 0x28d   : > { %v4206_v61 = vadd.f32 %v3952_v7, %v3790_v36  ;;  %v3954_v21 = vpop.f32.mrb[130].mxu1  ;;  %v3914_v54 = vpop.f32.mrb[131].mxu0  ;;  %v4225_v46 = vadd.f32 %v5788_v19, %v4203_v39 }
 0x28e   : > { %v3955_v56 = vpop.f32.mrb[131].mxu1  ;;  %v4226_v30 = vadd.f32 %v5788_v19, %v4204_v52  ;;  %v4227_v2 = vadd.f32 %v5788_v19, %v4205_v41 }
 0x28f   : > { %v4228_v47 = vadd.f32 %v5788_v19, %v4206_v61  ;;  %v4241_v35 = vmax.f32 %v4225_v46, 0.0 }
 0x290   : > { %v4242_v58 = vmax.f32 %v4226_v30, 0.0  ;;  %v4243_v26 = vmax.f32 %v4227_v2, 0.0 }
 0x291   : > { %v4244_v49 = vmax.f32 %v4228_v47, 0.0 }
 0x292   : > { %v3991_v32 = vpop.f32.mrb[132].mxu0  ;;  %v4273_v8 = vcombine.low %v4241_v35, %v4242_v58 }
 0x293   : > { %v4207_v63 = vadd.f32 %v3991_v32, %v5761_v10  ;;  %v3993_v36 = vpop.f32.mrb[133].mxu0  ;;  %v4274_v53 = vcombine.low %v4243_v26, %v4244_v49  ;;  %v4032_v57 = vpop.f32.mrb[132].mxu1 }
 0x294   : > { %v4208_v0 = vadd.f32 %v3993_v36, %v5763_v9  ;;  %4289 = vst [vmem:[%s5797_s11] sm:$0x77] %v4273_v8  ;;  %v4209_v48 = vadd.f32 %v4032_v57, %v5765_v27  ;;  %v4034_v42 = vpop.f32.mrb[133].mxu1  ;;  %v3995_v13 = vpop.f32.mrb[134].mxu0 }
 0x295   : > { %v4229_v40 = vadd.f32 %v5788_v19, %v4207_v63  ;;  %4290 = vst [vmem:[%s5797_s11 + $0x8] sm:$0x77] %v4274_v53  ;;  %v4210_v5 = vadd.f32 %v4034_v42, %v5767_v15  ;;  %v4036_v1 = vpop.f32.mrb[134].mxu1  ;;  %v3996_v4 = vpop.f32.mrb[135].mxu0 }
 0x296   : > { %v4230_v10 = vadd.f32 %v5788_v19, %v4208_v0  ;;  %v4231_v23 = vadd.f32 %v5788_v19, %v4209_v48  ;;  %v4037_v59 = vpop.f32.mrb[135].mxu1 }
 0x297   : > { %v4245_v16 = vmax.f32 %v4229_v40, 0.0  ;;  %v4232_v9 = vadd.f32 %v5788_v19, %v4210_v5 }
 0x298   : > { %v4246_v27 = vmax.f32 %v4230_v10, 0.0  ;;  %v4247_v51 = vmax.f32 %v4231_v23, 0.0 }
 0x299   : > { %v4248_v29 = vmax.f32 %v4232_v9, 0.0 }
 0x29a   : > { %v4275_v25 = vcombine.low %v4245_v16, %v4246_v27  ;;  %v4073_v28 = vpop.f32.mrb[136].mxu0 }
 0x29b   : > { %v4276_v60 = vcombine.low %v4247_v51, %v4248_v29  ;;  %v4211_v15 = vadd.f32 %v4073_v28, %v5769_v12  ;;  %v4075_v38 = vpop.f32.mrb[137].mxu0  ;;  %v4114_v44 = vpop.f32.mrb[136].mxu1 }
 0x29c   : > { %4291 = vst [vmem:[%s5797_s11 + $0x10] sm:$0x77] %v4275_v25  ;;  %v4212_v34 = vadd.f32 %v4075_v38, %v5771_v22  ;;  %v4213_v45 = vadd.f32 %v4114_v44, %v5773_v33  ;;  %v4116_v50 = vpop.f32.mrb[137].mxu1  ;;  %v4077_v31 = vpop.f32.mrb[138].mxu0 }
 0x29d   : > { %4292 = vst [vmem:[%s5797_s11 + $0x18] sm:$0x77] %v4276_v60  ;;  %v4233_v17 = vadd.f32 %v5788_v19, %v4211_v15  ;;  %v4214_v11 = vadd.f32 %v4116_v50, %v5775_v6  ;;  %v4118_v20 = vpop.f32.mrb[138].mxu1  ;;  %v4078_v18 = vpop.f32.mrb[139].mxu0 }
 0x29e   : > { %v4234_v39 = vadd.f32 %v5788_v19, %v4212_v34  ;;  %v4235_v12 = vadd.f32 %v5788_v19, %v4213_v45  ;;  %v4119_v55 = vpop.f32.mrb[139].mxu1 }
 0x29f   : > { %v4249_v14 = vmax.f32 %v4233_v17, 0.0  ;;  %v4236_v22 = vadd.f32 %v5788_v19, %v4214_v11 }
 0x2a0   : > { %v4250_v33 = vmax.f32 %v4234_v39, 0.0  ;;  %v4251_v52 = vmax.f32 %v4235_v12, 0.0 }
 0x2a1   : > { %v4252_v41 = vmax.f32 %v4236_v22, 0.0 }
 0x2a2   : > { %v4277_v7 = vcombine.low %v4249_v14, %v4250_v33  ;;  %v4155_v24 = vpop.f32.mrb[140].mxu0 }
 0x2a3   : > { %v4278_v61 = vcombine.low %v4251_v52, %v4252_v41  ;;  %v4215_v6 = vadd.f32 %v4155_v24, %v5780_v3  ;;  %v4157_v21 = vpop.f32.mrb[141].mxu0  ;;  %v4196_v54 = vpop.f32.mrb[140].mxu1 }
 0x2a4   : > { %4293 = vst [vmem:[%s5797_s11 + $0x20] sm:$0x77] %v4277_v7  ;;  %v4216_v46 = vadd.f32 %v4157_v21, %v5782_v62  ;;  %v4217_v56 = vadd.f32 %v4196_v54, %v5784_v37  ;;  %v4198_v30 = vpop.f32.mrb[141].mxu1  ;;  %v4159_v2 = vpop.f32.mrb[142].mxu0 }
 0x2a5   : > { %4294 = vst [vmem:[%s5797_s11 + $0x28] sm:$0x77] %v4278_v61  ;;  %v4237_v47 = vadd.f32 %v5788_v19, %v4215_v6  ;;  %v4218_v35 = vadd.f32 %v4198_v30, %v5786_v43  ;;  %v4200_v58 = vpop.f32.mrb[142].mxu1  ;;  %v4160_v26 = vpop.f32.mrb[143].mxu0 }
 0x2a6   : > { %v4238_v3 = vadd.f32 %v5788_v19, %v4216_v46  ;;  %v4239_v49 = vadd.f32 %v5788_v19, %v4217_v56  ;;  %v4201_v32 = vpop.f32.mrb[143].mxu1 }
 0x2a7   : > { %v4253_v8 = vmax.f32 %v4237_v47, 0.0  ;;  %v4240_v62 = vadd.f32 %v5788_v19, %v4218_v35 }
 0x2a8   : > { %v4254_v37 = vmax.f32 %v4238_v3, 0.0  ;;  %v4255_v63 = vmax.f32 %v4239_v49, 0.0 }
 0x2a9   : > { %v4256_v36 = vmax.f32 %v4240_v62, 0.0 }
 0x2aa   : > { %v4279_v53 = vcombine.low %v4253_v8, %v4254_v37 }
 0x2ab   : > { %v4280_v57 = vcombine.low %v4255_v63, %v4256_v36 }
 0x2ac   : > { %4295 = vst [vmem:[%s5797_s11 + $0x30] sm:$0x77] %v4279_v53 }
 0x2ad   : > { %4296 = vst [vmem:[%s5797_s11 + $0x38] sm:$0x77] %v4280_v57 }
 0x2ae PF: > { %s14_s21 = sadd.s32 1, %s4661_s21   ;;  %s5858_s15 = smov %s4641_s16 }
 0x2af   : > { %p11_p12 = scmp.ge.s32.totalorder %s14_s21, 22   ;;  %s5859_s16 = smov %s4752_s29 }
 0x2b0   : > { %s5860_s17 = smov %s4653_s19  ;;  %s5861_s18 = smov %s4657_s20 }
 0x2b1   : > { %s5862_s19 = smov %s5865_s22  ;;  %s5863_s20 = smov %s5869_s23 }
 0x2b2   :  { %13 = sbr.rel (!%p11_p12) target bundleno = 4 (0x4), region = 142 }

</bundles_post_ra>
